<compile_context>
chip_gen: v6e
topology: v6e:2x2x1
jax: 0.10.0
libtpu: 0.0.40
codegen_flags: <defaults>
</compile_context>

<pallas_src>
import functools

import jax
import jax.numpy as jnp
from jax.experimental import pallas as pl
from jax.experimental.pallas import tpu as pltpu


# ------------------------------ fused kernel --------------------------------

def _guard_cols(wp):
    # guard columns on each side of the padded row; must cover the largest
    # 3x3 tap offset (wp + 1), rounded up to a friendly multiple of 8.
    return ((wp + 1 + 7) // 8) * 8


def _make_kernel(H, W, F):
    Hp, Wp = H + 2, W + 2
    Lp = Hp * Wp                       # zero-padded image, flattened
    G = _guard_cols(Wp)
    Lg = Lp + 2 * G                    # guarded scratch row length
    OFF = [(t // 3 - 1) * Wp + (t % 3 - 1) for t in range(9)]

    def conv3x3(src, cin, w_ref, b_ref):
        # src: (C, Lg) scratch whose columns [G, G+Lp) hold the padded
        # activation (zero spatial halo); guard columns are zero, so every
        # shifted tap read is a plain static slice and needs no mask.
        taps = jnp.concatenate(
            [src[0:cin, pl.ds(G + OFF[t], Lp)] for t in range(9)], axis=0)
        return jnp.dot(w_ref[...], taps,
                       preferred_element_type=jnp.float32) + b_ref[...]

    def prelu(h, a_ref):
        return jnp.where(h >= 0.0, h, a_ref[...] * h)

    def kernel(prim_row, prim_pad, dual_pad, sino_pad, a_op, a_adj, mask_ref,
               dw1, db1, da1, dw2, db2, da2, dw3, db3,
               pw1, pb1, pa1, pw2, pb2, pa2, pw3, pb3,
               out_prim, out_dual, s_in, s_h):
        mask = mask_ref[...]                               # (1, Lp) halo mask
        s_in[...] = jnp.zeros(s_in.shape, s_in.dtype)      # zero guards/halos
        s_h[...] = jnp.zeros(s_h.shape, s_h.dtype)

        # evalop = op(primal) / operator_norm   (1/norm folded into a_op)
        evalop = jnp.dot(prim_row[0], a_op[...],
                         preferred_element_type=jnp.float32)          # (1, Lp)

        # dual = dual + dual_block(cat([dual, evalop, sino / norm], channel))
        dual_row = dual_pad[0]                                         # (1, Lp)
        s_in[:, pl.ds(G, Lp)] = jnp.concatenate(
            [dual_row, evalop, sino_pad[0]], axis=0)                   # (3, Lp)
        h = prelu(conv3x3(s_in, 3, dw1, db1), da1)                     # (F, Lp)
        s_h[:, pl.ds(G, Lp)] = h * mask
        h = prelu(conv3x3(s_h, F, dw2, db2), da2)
        s_h[:, pl.ds(G, Lp)] = h * mask
        new_dual = (conv3x3(s_h, F, dw3, db3) + dual_row) * mask       # (1, Lp)
        out_dual[0] = new_dual

        # evalop = op_adj(new_dual) / operator_norm (1/norm folded into a_adj)
        evalop = jnp.dot(new_dual, a_adj[...],
                         preferred_element_type=jnp.float32)           # (1, Lp)

        # primal = primal + primal_block(cat([primal, evalop], channel))
        prim_r = prim_pad[0]
        s_in[0:2, pl.ds(G, Lp)] = jnp.concatenate([prim_r, evalop], axis=0)
        h = prelu(conv3x3(s_in, 2, pw1, pb1), pa1)
        s_h[:, pl.ds(G, Lp)] = h * mask
        h = prelu(conv3x3(s_h, F, pw2, pb2), pa2)
        s_h[:, pl.ds(G, Lp)] = h * mask
        out_prim[0] = (conv3x3(s_h, F, pw3, pb3) + prim_r) * mask

    return kernel, Lp, Lg


def _batched_spec(shape):
    n = len(shape)
    return pl.BlockSpec((1,) + tuple(shape[1:]),
                        lambda b: (b,) + (0,) * (n - 1))


def _resident_spec(shape):
    n = len(shape)
    return pl.BlockSpec(tuple(shape), lambda b: (0,) * n)


# ------------------------------- forward pass -------------------------------

def iteration_forward(params, primal, dual, input_sinogram, A_pad, A_adj_pad):
    """Fused Pallas port of Iteration.forward; image tensors are (B, H, W, 1)."""
    B, H, W, _ = primal.shape
    assert dual.shape == primal.shape and input_sinogram.shape == primal.shape
    Hp, Wp = H + 2, W + 2
    Lp = Hp * Wp
    HW = H * W
    F = params["dual_block"]["w1"].shape[0]

    def pad_row(x):            # (B, H, W, 1) -> (B, 1, Lp), zero spatial halo
        return jnp.pad(x[..., 0], ((0, 0), (1, 1), (1, 1))).reshape(B, 1, Lp)

    prim_pad = pad_row(primal)
    dual_pad = pad_row(dual)
    sino_pad = pad_row(input_sinogram)
    prim_row = primal[..., 0].reshape(B, 1, HW)
    mask = jnp.pad(jnp.ones((H, W), jnp.float32),
                   ((1, 1), (1, 1))).reshape(1, Lp)

    pd, pp = params["dual_block"], params["primal_block"]
    batched = [prim_row, prim_pad, dual_pad, sino_pad]
    resident = [A_pad, A_adj_pad, mask,
                pd["w1"], pd["b1"], pd["a1"], pd["w2"], pd["b2"], pd["a2"],
                pd["w3"], pd["b3"],
                pp["w1"], pp["b1"], pp["a1"], pp["w2"], pp["b2"], pp["a2"],
                pp["w3"], pp["b3"]]
    in_specs = ([_batched_spec(a.shape) for a in batched] +
                [_resident_spec(a.shape) for a in resident])

    kernel, Lp_k, Lg = _make_kernel(H, W, F)
    assert Lp_k == Lp

    out_prim_pad, out_dual_pad = pl.pallas_call(
        kernel,
        grid_spec=pltpu.PrefetchScalarGridSpec(
            num_scalar_prefetch=0,
            grid=(B,),
            in_specs=in_specs,
            out_specs=[_batched_spec((B, 1, Lp)), _batched_spec((B, 1, Lp))],
            scratch_shapes=[pltpu.VMEM((3, Lg), jnp.float32),
                            pltpu.VMEM((F, Lg), jnp.float32)]),
        out_shape=(jax.ShapeDtypeStruct((B, 1, Lp), jnp.float32),
                   jax.ShapeDtypeStruct((B, 1, Lp), jnp.float32)),
        compiler_params=pltpu.CompilerParams(
            dimension_semantics=("parallel",)),
    )(*(batched + resident))

    def unpad(x):              # (B, 1, Lp) -> (B, H, W, 1)
        return x.reshape(B, Hp, Wp)[:, 1:H + 1, 1:W + 1, None]

    return unpad(out_prim_pad), unpad(out_dual_pad)


# ----------------------------- parameter handling ---------------------------

def _conv_weight(key, c_out, c_in):
    # matches weights_init: uniform(-lim, lim), lim = sqrt(6/(c_out+c_in)/3/3)
    lim = (6.0 / (c_out + c_in) / 3.0 / 3.0) ** 0.5
    # stored HWIO (kh, kw, c_in, c_out); torch stores (c_out, c_in, kh, kw)
    return jax.random.uniform(key, (3, 3, c_in, c_out), jnp.float32, -lim, lim)


def init_cnn_block(key, n_filters, c_in, c_out):
    k1, k2, k3 = jax.random.split(key, 3)
    return {
        "w1": _conv_weight(k1, n_filters, c_in),
        "b1": jnp.zeros((n_filters,), jnp.float32),
        "a1": jnp.zeros((n_filters,), jnp.float32),   # PReLU init=0.0
        "w2": _conv_weight(k2, n_filters, n_filters),
        "b2": jnp.zeros((n_filters,), jnp.float32),
        "a2": jnp.zeros((n_filters,), jnp.float32),   # PReLU init=0.0
        "w3": _conv_weight(k3, c_out, n_filters),
        "b3": jnp.zeros((c_out,), jnp.float32),
    }


def prepare_block_params(raw, sino_scale=None):
    """Kernel layout: conv weights -> (c_out, 9*c_in) (tap-major, matching the
    in-kernel im2col order), biases / PReLU alphas -> (c, 1) columns.
    Optionally folds 1/operator_norm into the sinogram input channel of w1."""
    def prep_w(w):
        kh, kw, cin, cout = w.shape
        return jnp.transpose(w, (3, 0, 1, 2)).reshape(cout, kh * kw * cin)

    w1 = prep_w(raw["w1"])
    if sino_scale is not None:
        cin1 = raw["w1"].shape[2]
        # sinogram is the last input channel -> columns c = cin1-1 of each tap
        w1 = w1.at[:, (cin1 - 1)::cin1].multiply(sino_scale)
    col = lambda v: v.reshape(-1, 1)
    return {
        "w1": w1, "b1": col(raw["b1"]), "a1": col(raw["a1"]),
        "w2": prep_w(raw["w2"]), "b2": col(raw["b2"]), "a2": col(raw["a2"]),
        "w3": prep_w(raw["w3"]), "b3": col(raw["b3"]),
    }


# ------------------------ pure-JAX reference (checking) ----------------------

def _reference_cnn_block(raw, x):
    def conv(h, w, b):
        return jax.lax.conv_general_dilated(
            h, w, window_strides=(1, 1), padding="SAME",
            dimension_numbers=("NHWC", "HWIO", "NHWC")) + b

    def prelu(h, a):
        return jnp.where(h >= 0.0, h, a * h)

    h = prelu(conv(x, raw["w1"], raw["b1"]), raw["a1"])
    h = prelu(conv(h, raw["w2"], raw["b2"]), raw["a2"])
    return conv(h, raw["w3"], raw["b3"])


def reference_forward(raw_params, primal, dual, sino, A, operator_norm):
    """Pure-JAX/XLA reference with the PyTorch module's semantics."""
    B, H, W, _ = primal.shape
    evalop = ((primal[..., 0].reshape(B, -1) @ A) / operator_norm
              ).reshape(B, H, W, 1)
    inp = jnp.concatenate([dual, evalop, sino / operator_norm], axis=-1)
    new_dual = dual + _reference_cnn_block(raw_params["dual_block"], inp)
    evalop = ((new_dual[..., 0].reshape(B, -1) @ A.T) / operator_norm
              ).reshape(B, H, W, 1)
    inp = jnp.concatenate([primal, evalop], axis=-1)
    new_primal = primal + _reference_cnn_block(raw_params["primal_block"], inp)
    return new_primal, new_dual


# --------------------------------- main --------------------------------------

if __name__ == "__main__":
    key = jax.random.PRNGKey(0)
    B, H, W = 2, 16, 16        # sinogram chosen to have the same spatial size
    n_filters = 32

    k_a, k_p, k_d, k_s, k_pb, k_db = jax.random.split(key, 6)

    # Synthetic dense linear operator (stand-in for pytorch_operator / adjoint).
    A = jax.random.normal(k_a, (H * W, H * W), jnp.float32) / (H * W) ** 0.5
    operator_norm = float(jnp.sqrt(jnp.sum(A * A)))   # Frobenius-norm scale

    # Fold 1/operator_norm and the spatial zero halo into the operator matrices
    # so the in-kernel matmuls directly produce halo-padded rows.
    Hp, Wp = H + 2, W + 2
    A_pad = jnp.pad((A / operator_norm).reshape(H * W, H, W),
                    ((0, 0), (1, 1), (1, 1))).reshape(H * W, Hp * Wp)
    A_adj_pad = jnp.pad((A.T / operator_norm).reshape(H, W, H, W),
                        ((1, 1), (1, 1), (1, 1), (1, 1))).reshape(Hp * Wp, Hp * Wp)

    raw_params = {
        "primal_block": init_cnn_block(k_pb, n_filters, 2, 1),
        "dual_block": init_cnn_block(k_db, n_filters, 3, 1),
    }
    params = {
        "primal_block": prepare_block_params(raw_params["primal_block"]),
        "dual_block": prepare_block_params(raw_params["dual_block"],
                                           sino_scale=1.0 / operator_norm),
    }

    primal = jax.random.normal(k_p, (B, H, W, 1), jnp.float32)
    dual = jax.random.normal(k_d, (B, H, W, 1), jnp.float32)
    sino = jax.random.normal(k_s, (B, H, W, 1), jnp.float32)

    fwd = jax.jit(functools.partial(iteration_forward,
                                    A_pad=A_pad, A_adj_pad=A_adj_pad))
    new_primal, new_dual = fwd(params, primal, dual, sino)
    jax.block_until_ready((new_primal, new_dual))

    assert new_primal.shape == (B, H, W, 1) and new_dual.shape == (B, H, W, 1)
    assert new_primal.dtype == jnp.float32 and new_dual.dtype == jnp.float32

    # Cross-check against a pure-JAX/XLA reference of the PyTorch module.
    ref_primal, ref_dual = reference_forward(raw_params, primal, dual, sino,
                                             A, operator_norm)
    assert jnp.allclose(new_dual, ref_dual, atol=2e-3, rtol=2e-3)
    assert jnp.allclose(new_primal, ref_primal, atol=2e-3, rtol=2e-3)

    print("KERNEL_OK")
</pallas_src>

<mosaic_0001>
module attributes {stable_mosaic.version = 11 : i64} {
  func.func @kernel(%arg0: i32, %arg1: memref<1x1x256xf32, #tpu.memory_space<vmem>>, %arg2: memref<1x1x324xf32, #tpu.memory_space<vmem>>, %arg3: memref<1x1x324xf32, #tpu.memory_space<vmem>>, %arg4: memref<1x1x324xf32, #tpu.memory_space<vmem>>, %arg5: memref<256x324xf32, #tpu.memory_space<vmem>>, %arg6: memref<324x324xf32, #tpu.memory_space<vmem>>, %arg7: memref<1x324xf32, #tpu.memory_space<vmem>>, %arg8: memref<32x27xf32, #tpu.memory_space<vmem>>, %arg9: memref<32x1xf32, #tpu.memory_space<vmem>>, %arg10: memref<32x1xf32, #tpu.memory_space<vmem>>, %arg11: memref<32x288xf32, #tpu.memory_space<vmem>>, %arg12: memref<32x1xf32, #tpu.memory_space<vmem>>, %arg13: memref<32x1xf32, #tpu.memory_space<vmem>>, %arg14: memref<1x288xf32, #tpu.memory_space<vmem>>, %arg15: memref<1x1xf32, #tpu.memory_space<vmem>>, %arg16: memref<32x18xf32, #tpu.memory_space<vmem>>, %arg17: memref<32x1xf32, #tpu.memory_space<vmem>>, %arg18: memref<32x1xf32, #tpu.memory_space<vmem>>, %arg19: memref<32x288xf32, #tpu.memory_space<vmem>>, %arg20: memref<32x1xf32, #tpu.memory_space<vmem>>, %arg21: memref<32x1xf32, #tpu.memory_space<vmem>>, %arg22: memref<1x288xf32, #tpu.memory_space<vmem>>, %arg23: memref<1x1xf32, #tpu.memory_space<vmem>>, %arg24: memref<1x1x324xf32, #tpu.memory_space<vmem>>, %arg25: memref<1x1x324xf32, #tpu.memory_space<vmem>>, %arg26: memref<3x372xf32, #tpu.memory_space<vmem>>, %arg27: memref<32x372xf32, #tpu.memory_space<vmem>>) attributes {dimension_semantics = [#tpu.dimension_semantics<parallel>], iteration_bounds = array<i64: 2>, scalar_prefetch = 0 : i64, scratch_operands = 2 : i64, tpu.core_type = #tpu.core_type<tc>, window_params = [{transform_indices = @transform_0, window_bounds = array<i64: 1, 1, 256>}, {transform_indices = @transform_1, window_bounds = array<i64: 1, 1, 324>}, {transform_indices = @transform_2, window_bounds = array<i64: 1, 1, 324>}, {transform_indices = @transform_3, window_bounds = array<i64: 1, 1, 324>}, {pipeline_mode = #tpu.pipeline_mode<synchronous>, transform_indices = @transform_4, window_bounds = array<i64: 256, 324>}, {pipeline_mode = #tpu.pipeline_mode<synchronous>, transform_indices = @transform_5, window_bounds = array<i64: 324, 324>}, {pipeline_mode = #tpu.pipeline_mode<synchronous>, transform_indices = @transform_6, window_bounds = array<i64: 1, 324>}, {pipeline_mode = #tpu.pipeline_mode<synchronous>, transform_indices = @transform_7, window_bounds = array<i64: 32, 27>}, {pipeline_mode = #tpu.pipeline_mode<synchronous>, transform_indices = @transform_8, window_bounds = array<i64: 32, 1>}, {pipeline_mode = #tpu.pipeline_mode<synchronous>, transform_indices = @transform_9, window_bounds = array<i64: 32, 1>}, {pipeline_mode = #tpu.pipeline_mode<synchronous>, transform_indices = @transform_10, window_bounds = array<i64: 32, 288>}, {pipeline_mode = #tpu.pipeline_mode<synchronous>, transform_indices = @transform_11, window_bounds = array<i64: 32, 1>}, {pipeline_mode = #tpu.pipeline_mode<synchronous>, transform_indices = @transform_12, window_bounds = array<i64: 32, 1>}, {pipeline_mode = #tpu.pipeline_mode<synchronous>, transform_indices = @transform_13, window_bounds = array<i64: 1, 288>}, {pipeline_mode = #tpu.pipeline_mode<synchronous>, transform_indices = @transform_14, window_bounds = array<i64: 1, 1>}, {pipeline_mode = #tpu.pipeline_mode<synchronous>, transform_indices = @transform_15, window_bounds = array<i64: 32, 18>}, {pipeline_mode = #tpu.pipeline_mode<synchronous>, transform_indices = @transform_16, window_bounds = array<i64: 32, 1>}, {pipeline_mode = #tpu.pipeline_mode<synchronous>, transform_indices = @transform_17, window_bounds = array<i64: 32, 1>}, {pipeline_mode = #tpu.pipeline_mode<synchronous>, transform_indices = @transform_18, window_bounds = array<i64: 32, 288>}, {pipeline_mode = #tpu.pipeline_mode<synchronous>, transform_indices = @transform_19, window_bounds = array<i64: 32, 1>}, {pipeline_mode = #tpu.pipeline_mode<synchronous>, transform_indices = @transform_20, window_bounds = array<i64: 32, 1>}, {pipeline_mode = #tpu.pipeline_mode<synchronous>, transform_indices = @transform_21, window_bounds = array<i64: 1, 288>}, {pipeline_mode = #tpu.pipeline_mode<synchronous>, transform_indices = @transform_22, window_bounds = array<i64: 1, 1>}, {transform_indices = @transform_23, window_bounds = array<i64: 1, 1, 324>}, {transform_indices = @transform_24, window_bounds = array<i64: 1, 1, 324>}]} {
    %c0 = arith.constant 0 : index
    %c0_0 = arith.constant 0 : index
    %0 = vector.load %arg7[%c0, %c0_0] : memref<1x324xf32, #tpu.memory_space<vmem>>, vector<1x324xf32>
    %cst = arith.constant 0.000000e+00 : f32
    %1 = vector.broadcast %cst : f32 to vector<3x372xf32>
    %c0_1 = arith.constant 0 : index
    %c0_2 = arith.constant 0 : index
    %2 = vector.load %arg26[%c0_1, %c0_2] : memref<3x372xf32, #tpu.memory_space<vmem>>, vector<3x372xf32>
    tpu.vector_store %arg26[%c0_1, %c0_2], %1 {strides = array<i32>} : memref<3x372xf32, #tpu.memory_space<vmem>>, vector<3x372xf32>,
    %cst_3 = arith.constant 0.000000e+00 : f32
    %3 = vector.broadcast %cst_3 : f32 to vector<32x372xf32>
    %c0_4 = arith.constant 0 : index
    %c0_5 = arith.constant 0 : index
    %4 = vector.load %arg27[%c0_4, %c0_5] : memref<32x372xf32, #tpu.memory_space<vmem>>, vector<32x372xf32>
    tpu.vector_store %arg27[%c0_4, %c0_5], %3 {strides = array<i32>} : memref<32x372xf32, #tpu.memory_space<vmem>>, vector<32x372xf32>,
    %c0_6 = arith.constant 0 : index
    %c0_7 = arith.constant 0 : index
    %c0_8 = arith.constant 0 : index
    %5 = vector.load %arg1[%c0_6, %c0_7, %c0_8] : memref<1x1x256xf32, #tpu.memory_space<vmem>>, vector<1x1x256xf32>
    %6 = vector.shape_cast %5 : vector<1x1x256xf32> to vector<1x256xf32>
    %c0_9 = arith.constant 0 : index
    %c0_10 = arith.constant 0 : index
    %7 = vector.load %arg5[%c0_9, %c0_10] : memref<256x324xf32, #tpu.memory_space<vmem>>, vector<256x324xf32>
    %cst_11 = arith.constant dense<0.000000e+00> : vector<1x324xf32>
    %8 = tpu.matmul %6, %7, %cst_11 {dimension_numbers = #tpu.dot_dimension_numbers<[1], [0], [0], [1], [0, 0, 1, 1], [], []>} : vector<1x256xf32>, vector<256x324xf32>, vector<1x324xf32> -> vector<1x324xf32>
    %c0_12 = arith.constant 0 : index
    %c0_13 = arith.constant 0 : index
    %c0_14 = arith.constant 0 : index
    %9 = vector.load %arg3[%c0_12, %c0_13, %c0_14] : memref<1x1x324xf32, #tpu.memory_space<vmem>>, vector<1x1x324xf32>
    %10 = vector.shape_cast %9 : vector<1x1x324xf32> to vector<1x324xf32>
    %c0_15 = arith.constant 0 : index
    %c0_16 = arith.constant 0 : index
    %c0_17 = arith.constant 0 : index
    %11 = vector.load %arg4[%c0_15, %c0_16, %c0_17] : memref<1x1x324xf32, #tpu.memory_space<vmem>>, vector<1x1x324xf32>
    %12 = vector.shape_cast %11 : vector<1x1x324xf32> to vector<1x324xf32>
    %13 = tpu.concatenate %10, %8, %12 in 0 : vector<1x324xf32>, vector<1x324xf32>, vector<1x324xf32> -> vector<3x324xf32>
    %c0_18 = arith.constant 0 : index
    %c24 = arith.constant 24 : index
    %14 = vector.load %arg26[%c0_18, %c24] : memref<3x372xf32, #tpu.memory_space<vmem>>, vector<3x324xf32>
    tpu.vector_store %arg26[%c0_18, %c24], %13 {strides = array<i32>} : memref<3x372xf32, #tpu.memory_space<vmem>>, vector<3x324xf32>,
    %c0_19 = arith.constant 0 : index
    %c5 = arith.constant 5 : index
    %15 = vector.load %arg26[%c0_19, %c5] : memref<3x372xf32, #tpu.memory_space<vmem>>, vector<3x324xf32>
    %c0_20 = arith.constant 0 : index
    %c6 = arith.constant 6 : index
    %16 = vector.load %arg26[%c0_20, %c6] : memref<3x372xf32, #tpu.memory_space<vmem>>, vector<3x324xf32>
    %c0_21 = arith.constant 0 : index
    %c7 = arith.constant 7 : index
    %17 = vector.load %arg26[%c0_21, %c7] : memref<3x372xf32, #tpu.memory_space<vmem>>, vector<3x324xf32>
    %c0_22 = arith.constant 0 : index
    %c23 = arith.constant 23 : index
    %18 = vector.load %arg26[%c0_22, %c23] : memref<3x372xf32, #tpu.memory_space<vmem>>, vector<3x324xf32>
    %c0_23 = arith.constant 0 : index
    %c24_24 = arith.constant 24 : index
    %19 = vector.load %arg26[%c0_23, %c24_24] : memref<3x372xf32, #tpu.memory_space<vmem>>, vector<3x324xf32>
    %c0_25 = arith.constant 0 : index
    %c25 = arith.constant 25 : index
    %20 = vector.load %arg26[%c0_25, %c25] : memref<3x372xf32, #tpu.memory_space<vmem>>, vector<3x324xf32>
    %c0_26 = arith.constant 0 : index
    %c41 = arith.constant 41 : index
    %21 = vector.load %arg26[%c0_26, %c41] : memref<3x372xf32, #tpu.memory_space<vmem>>, vector<3x324xf32>
    %c0_27 = arith.constant 0 : index
    %c42 = arith.constant 42 : index
    %22 = vector.load %arg26[%c0_27, %c42] : memref<3x372xf32, #tpu.memory_space<vmem>>, vector<3x324xf32>
    %c0_28 = arith.constant 0 : index
    %c43 = arith.constant 43 : index
    %23 = vector.load %arg26[%c0_28, %c43] : memref<3x372xf32, #tpu.memory_space<vmem>>, vector<3x324xf32>
    %24 = tpu.concatenate %15, %16, %17, %18, %19, %20, %21, %22, %23 in 0 : vector<3x324xf32>, vector<3x324xf32>, vector<3x324xf32>, vector<3x324xf32>, vector<3x324xf32>, vector<3x324xf32>, vector<3x324xf32>, vector<3x324xf32>, vector<3x324xf32> -> vector<27x324xf32>
    %c0_29 = arith.constant 0 : index
    %c0_30 = arith.constant 0 : index
    %25 = vector.load %arg8[%c0_29, %c0_30] : memref<32x27xf32, #tpu.memory_space<vmem>>, vector<32x27xf32>
    %cst_31 = arith.constant dense<0.000000e+00> : vector<32x324xf32>
    %26 = tpu.matmul %25, %24, %cst_31 {dimension_numbers = #tpu.dot_dimension_numbers<[1], [0], [0], [1], [0, 0, 1, 1], [], []>} : vector<32x27xf32>, vector<27x324xf32>, vector<32x324xf32> -> vector<32x324xf32>
    %c0_32 = arith.constant 0 : index
    %c0_33 = arith.constant 0 : index
    %27 = vector.load %arg9[%c0_32, %c0_33] : memref<32x1xf32, #tpu.memory_space<vmem>>, vector<32x1xf32>
    %28 = vector.broadcast %27 : vector<32x1xf32> to vector<32x324xf32>
    %29 = arith.addf %26, %28 : vector<32x324xf32>
    %cst_34 = arith.constant 0.000000e+00 : f32
    %30 = vector.broadcast %cst_34 : f32 to vector<32x324xf32>
    %31 = arith.cmpf oge, %29, %30 : vector<32x324xf32>
    %c0_35 = arith.constant 0 : index
    %c0_36 = arith.constant 0 : index
    %32 = vector.load %arg10[%c0_35, %c0_36] : memref<32x1xf32, #tpu.memory_space<vmem>>, vector<32x1xf32>
    %33 = vector.broadcast %32 : vector<32x1xf32> to vector<32x324xf32>
    %34 = arith.mulf %33, %29 : vector<32x324xf32>
    %35 = arith.select %31, %29, %34 : vector<32x324xi1>, vector<32x324xf32>
    %36 = vector.broadcast %0 : vector<1x324xf32> to vector<32x324xf32>
    %37 = arith.mulf %35, %36 : vector<32x324xf32>
    %c0_37 = arith.constant 0 : index
    %c24_38 = arith.constant 24 : index
    %38 = vector.load %arg27[%c0_37, %c24_38] : memref<32x372xf32, #tpu.memory_space<vmem>>, vector<32x324xf32>
    tpu.vector_store %arg27[%c0_37, %c24_38], %37 {strides = array<i32>} : memref<32x372xf32, #tpu.memory_space<vmem>>, vector<32x324xf32>,
    %c0_39 = arith.constant 0 : index
    %c5_40 = arith.constant 5 : index
    %39 = vector.load %arg27[%c0_39, %c5_40] : memref<32x372xf32, #tpu.memory_space<vmem>>, vector<32x324xf32>
    %c0_41 = arith.constant 0 : index
    %c6_42 = arith.constant 6 : index
    %40 = vector.load %arg27[%c0_41, %c6_42] : memref<32x372xf32, #tpu.memory_space<vmem>>, vector<32x324xf32>
    %c0_43 = arith.constant 0 : index
    %c7_44 = arith.constant 7 : index
    %41 = vector.load %arg27[%c0_43, %c7_44] : memref<32x372xf32, #tpu.memory_space<vmem>>, vector<32x324xf32>
    %c0_45 = arith.constant 0 : index
    %c23_46 = arith.constant 23 : index
    %42 = vector.load %arg27[%c0_45, %c23_46] : memref<32x372xf32, #tpu.memory_space<vmem>>, vector<32x324xf32>
    %c0_47 = arith.constant 0 : index
    %c24_48 = arith.constant 24 : index
    %43 = vector.load %arg27[%c0_47, %c24_48] : memref<32x372xf32, #tpu.memory_space<vmem>>, vector<32x324xf32>
    %c0_49 = arith.constant 0 : index
    %c25_50 = arith.constant 25 : index
    %44 = vector.load %arg27[%c0_49, %c25_50] : memref<32x372xf32, #tpu.memory_space<vmem>>, vector<32x324xf32>
    %c0_51 = arith.constant 0 : index
    %c41_52 = arith.constant 41 : index
    %45 = vector.load %arg27[%c0_51, %c41_52] : memref<32x372xf32, #tpu.memory_space<vmem>>, vector<32x324xf32>
    %c0_53 = arith.constant 0 : index
    %c42_54 = arith.constant 42 : index
    %46 = vector.load %arg27[%c0_53, %c42_54] : memref<32x372xf32, #tpu.memory_space<vmem>>, vector<32x324xf32>
    %c0_55 = arith.constant 0 : index
    %c43_56 = arith.constant 43 : index
    %47 = vector.load %arg27[%c0_55, %c43_56] : memref<32x372xf32, #tpu.memory_space<vmem>>, vector<32x324xf32>
    %48 = tpu.concatenate %39, %40, %41, %42, %43, %44, %45, %46, %47 in 0 : vector<32x324xf32>, vector<32x324xf32>, vector<32x324xf32>, vector<32x324xf32>, vector<32x324xf32>, vector<32x324xf32>, vector<32x324xf32>, vector<32x324xf32>, vector<32x324xf32> -> vector<288x324xf32>
    %c0_57 = arith.constant 0 : index
    %c0_58 = arith.constant 0 : index
    %49 = vector.load %arg11[%c0_57, %c0_58] : memref<32x288xf32, #tpu.memory_space<vmem>>, vector<32x288xf32>
    %cst_59 = arith.constant dense<0.000000e+00> : vector<32x324xf32>
    %50 = tpu.matmul %49, %48, %cst_59 {dimension_numbers = #tpu.dot_dimension_numbers<[1], [0], [0], [1], [0, 0, 1, 1], [], []>} : vector<32x288xf32>, vector<288x324xf32>, vector<32x324xf32> -> vector<32x324xf32>
    %c0_60 = arith.constant 0 : index
    %c0_61 = arith.constant 0 : index
    %51 = vector.load %arg12[%c0_60, %c0_61] : memref<32x1xf32, #tpu.memory_space<vmem>>, vector<32x1xf32>
    %52 = vector.broadcast %51 : vector<32x1xf32> to vector<32x324xf32>
    %53 = arith.addf %50, %52 : vector<32x324xf32>
    %cst_62 = arith.constant 0.000000e+00 : f32
    %54 = vector.broadcast %cst_62 : f32 to vector<32x324xf32>
    %55 = arith.cmpf oge, %53, %54 : vector<32x324xf32>
    %c0_63 = arith.constant 0 : index
    %c0_64 = arith.constant 0 : index
    %56 = vector.load %arg13[%c0_63, %c0_64] : memref<32x1xf32, #tpu.memory_space<vmem>>, vector<32x1xf32>
    %57 = vector.broadcast %56 : vector<32x1xf32> to vector<32x324xf32>
    %58 = arith.mulf %57, %53 : vector<32x324xf32>
    %59 = arith.select %55, %53, %58 : vector<32x324xi1>, vector<32x324xf32>
    %60 = vector.broadcast %0 : vector<1x324xf32> to vector<32x324xf32>
    %61 = arith.mulf %59, %60 : vector<32x324xf32>
    %c0_65 = arith.constant 0 : index
    %c24_66 = arith.constant 24 : index
    %62 = vector.load %arg27[%c0_65, %c24_66] : memref<32x372xf32, #tpu.memory_space<vmem>>, vector<32x324xf32>
    tpu.vector_store %arg27[%c0_65, %c24_66], %61 {strides = array<i32>} : memref<32x372xf32, #tpu.memory_space<vmem>>, vector<32x324xf32>,
    %c0_67 = arith.constant 0 : index
    %c5_68 = arith.constant 5 : index
    %63 = vector.load %arg27[%c0_67, %c5_68] : memref<32x372xf32, #tpu.memory_space<vmem>>, vector<32x324xf32>
    %c0_69 = arith.constant 0 : index
    %c6_70 = arith.constant 6 : index
    %64 = vector.load %arg27[%c0_69, %c6_70] : memref<32x372xf32, #tpu.memory_space<vmem>>, vector<32x324xf32>
    %c0_71 = arith.constant 0 : index
    %c7_72 = arith.constant 7 : index
    %65 = vector.load %arg27[%c0_71, %c7_72] : memref<32x372xf32, #tpu.memory_space<vmem>>, vector<32x324xf32>
    %c0_73 = arith.constant 0 : index
    %c23_74 = arith.constant 23 : index
    %66 = vector.load %arg27[%c0_73, %c23_74] : memref<32x372xf32, #tpu.memory_space<vmem>>, vector<32x324xf32>
    %c0_75 = arith.constant 0 : index
    %c24_76 = arith.constant 24 : index
    %67 = vector.load %arg27[%c0_75, %c24_76] : memref<32x372xf32, #tpu.memory_space<vmem>>, vector<32x324xf32>
    %c0_77 = arith.constant 0 : index
    %c25_78 = arith.constant 25 : index
    %68 = vector.load %arg27[%c0_77, %c25_78] : memref<32x372xf32, #tpu.memory_space<vmem>>, vector<32x324xf32>
    %c0_79 = arith.constant 0 : index
    %c41_80 = arith.constant 41 : index
    %69 = vector.load %arg27[%c0_79, %c41_80] : memref<32x372xf32, #tpu.memory_space<vmem>>, vector<32x324xf32>
    %c0_81 = arith.constant 0 : index
    %c42_82 = arith.constant 42 : index
    %70 = vector.load %arg27[%c0_81, %c42_82] : memref<32x372xf32, #tpu.memory_space<vmem>>, vector<32x324xf32>
    %c0_83 = arith.constant 0 : index
    %c43_84 = arith.constant 43 : index
    %71 = vector.load %arg27[%c0_83, %c43_84] : memref<32x372xf32, #tpu.memory_space<vmem>>, vector<32x324xf32>
    %72 = tpu.concatenate %63, %64, %65, %66, %67, %68, %69, %70, %71 in 0 : vector<32x324xf32>, vector<32x324xf32>, vector<32x324xf32>, vector<32x324xf32>, vector<32x324xf32>, vector<32x324xf32>, vector<32x324xf32>, vector<32x324xf32>, vector<32x324xf32> -> vector<288x324xf32>
    %c0_85 = arith.constant 0 : index
    %c0_86 = arith.constant 0 : index
    %73 = vector.load %arg14[%c0_85, %c0_86] : memref<1x288xf32, #tpu.memory_space<vmem>>, vector<1x288xf32>
    %cst_87 = arith.constant dense<0.000000e+00> : vector<1x324xf32>
    %74 = tpu.matmul %73, %72, %cst_87 {dimension_numbers = #tpu.dot_dimension_numbers<[1], [0], [0], [1], [0, 0, 1, 1], [], []>} : vector<1x288xf32>, vector<288x324xf32>, vector<1x324xf32> -> vector<1x324xf32>
    %c0_88 = arith.constant 0 : index
    %c0_89 = arith.constant 0 : index
    %75 = vector.load %arg15[%c0_88, %c0_89] : memref<1x1xf32, #tpu.memory_space<vmem>>, vector<1x1xf32>
    %76 = vector.broadcast %75 : vector<1x1xf32> to vector<1x324xf32>
    %77 = arith.addf %74, %76 : vector<1x324xf32>
    %78 = arith.addf %77, %10 : vector<1x324xf32>
    %79 = arith.mulf %78, %0 : vector<1x324xf32>
    %c0_90 = arith.constant 0 : index
    %c0_91 = arith.constant 0 : index
    %c0_92 = arith.constant 0 : index
    %80 = vector.load %arg25[%c0_90, %c0_91, %c0_92] : memref<1x1x324xf32, #tpu.memory_space<vmem>>, vector<1x1x324xf32>
    %81 = vector.shape_cast %80 : vector<1x1x324xf32> to vector<1x324xf32>
    %82 = vector.shape_cast %79 : vector<1x324xf32> to vector<1x1x324xf32>
    tpu.vector_store %arg25[%c0_90, %c0_91, %c0_92], %82 {strides = array<i32>} : memref<1x1x324xf32, #tpu.memory_space<vmem>>, vector<1x1x324xf32>,
    %c0_93 = arith.constant 0 : index
    %c0_94 = arith.constant 0 : index
    %83 = vector.load %arg6[%c0_93, %c0_94] : memref<324x324xf32, #tpu.memory_space<vmem>>, vector<324x324xf32>
    %cst_95 = arith.constant dense<0.000000e+00> : vector<1x324xf32>
    %84 = tpu.matmul %79, %83, %cst_95 {dimension_numbers = #tpu.dot_dimension_numbers<[1], [0], [0], [1], [0, 0, 1, 1], [], []>} : vector<1x324xf32>, vector<324x324xf32>, vector<1x324xf32> -> vector<1x324xf32>
    %c0_96 = arith.constant 0 : index
    %c0_97 = arith.constant 0 : index
    %c0_98 = arith.constant 0 : index
    %85 = vector.load %arg2[%c0_96, %c0_97, %c0_98] : memref<1x1x324xf32, #tpu.memory_space<vmem>>, vector<1x1x324xf32>
    %86 = vector.shape_cast %85 : vector<1x1x324xf32> to vector<1x324xf32>
    %87 = tpu.concatenate %86, %84 in 0 : vector<1x324xf32>, vector<1x324xf32> -> vector<2x324xf32>
    %c0_99 = arith.constant 0 : index
    %c24_100 = arith.constant 24 : index
    %88 = vector.load %arg26[%c0_99, %c24_100] : memref<3x372xf32, #tpu.memory_space<vmem>>, vector<2x324xf32>
    tpu.vector_store %arg26[%c0_99, %c24_100], %87 {strides = array<i32>} : memref<3x372xf32, #tpu.memory_space<vmem>>, vector<2x324xf32>,
    %c0_101 = arith.constant 0 : index
    %c5_102 = arith.constant 5 : index
    %89 = vector.load %arg26[%c0_101, %c5_102] : memref<3x372xf32, #tpu.memory_space<vmem>>, vector<2x324xf32>
    %c0_103 = arith.constant 0 : index
    %c6_104 = arith.constant 6 : index
    %90 = vector.load %arg26[%c0_103, %c6_104] : memref<3x372xf32, #tpu.memory_space<vmem>>, vector<2x324xf32>
    %c0_105 = arith.constant 0 : index
    %c7_106 = arith.constant 7 : index
    %91 = vector.load %arg26[%c0_105, %c7_106] : memref<3x372xf32, #tpu.memory_space<vmem>>, vector<2x324xf32>
    %c0_107 = arith.constant 0 : index
    %c23_108 = arith.constant 23 : index
    %92 = vector.load %arg26[%c0_107, %c23_108] : memref<3x372xf32, #tpu.memory_space<vmem>>, vector<2x324xf32>
    %c0_109 = arith.constant 0 : index
    %c24_110 = arith.constant 24 : index
    %93 = vector.load %arg26[%c0_109, %c24_110] : memref<3x372xf32, #tpu.memory_space<vmem>>, vector<2x324xf32>
    %c0_111 = arith.constant 0 : index
    %c25_112 = arith.constant 25 : index
    %94 = vector.load %arg26[%c0_111, %c25_112] : memref<3x372xf32, #tpu.memory_space<vmem>>, vector<2x324xf32>
    %c0_113 = arith.constant 0 : index
    %c41_114 = arith.constant 41 : index
    %95 = vector.load %arg26[%c0_113, %c41_114] : memref<3x372xf32, #tpu.memory_space<vmem>>, vector<2x324xf32>
    %c0_115 = arith.constant 0 : index
    %c42_116 = arith.constant 42 : index
    %96 = vector.load %arg26[%c0_115, %c42_116] : memref<3x372xf32, #tpu.memory_space<vmem>>, vector<2x324xf32>
    %c0_117 = arith.constant 0 : index
    %c43_118 = arith.constant 43 : index
    %97 = vector.load %arg26[%c0_117, %c43_118] : memref<3x372xf32, #tpu.memory_space<vmem>>, vector<2x324xf32>
    %98 = tpu.concatenate %89, %90, %91, %92, %93, %94, %95, %96, %97 in 0 : vector<2x324xf32>, vector<2x324xf32>, vector<2x324xf32>, vector<2x324xf32>, vector<2x324xf32>, vector<2x324xf32>, vector<2x324xf32>, vector<2x324xf32>, vector<2x324xf32> -> vector<18x324xf32>
    %c0_119 = arith.constant 0 : index
    %c0_120 = arith.constant 0 : index
    %99 = vector.load %arg16[%c0_119, %c0_120] : memref<32x18xf32, #tpu.memory_space<vmem>>, vector<32x18xf32>
    %cst_121 = arith.constant dense<0.000000e+00> : vector<32x324xf32>
    %100 = tpu.matmul %99, %98, %cst_121 {dimension_numbers = #tpu.dot_dimension_numbers<[1], [0], [0], [1], [0, 0, 1, 1], [], []>} : vector<32x18xf32>, vector<18x324xf32>, vector<32x324xf32> -> vector<32x324xf32>
    %c0_122 = arith.constant 0 : index
    %c0_123 = arith.constant 0 : index
    %101 = vector.load %arg17[%c0_122, %c0_123] : memref<32x1xf32, #tpu.memory_space<vmem>>, vector<32x1xf32>
    %102 = vector.broadcast %101 : vector<32x1xf32> to vector<32x324xf32>
    %103 = arith.addf %100, %102 : vector<32x324xf32>
    %cst_124 = arith.constant 0.000000e+00 : f32
    %104 = vector.broadcast %cst_124 : f32 to vector<32x324xf32>
    %105 = arith.cmpf oge, %103, %104 : vector<32x324xf32>
    %c0_125 = arith.constant 0 : index
    %c0_126 = arith.constant 0 : index
    %106 = vector.load %arg18[%c0_125, %c0_126] : memref<32x1xf32, #tpu.memory_space<vmem>>, vector<32x1xf32>
    %107 = vector.broadcast %106 : vector<32x1xf32> to vector<32x324xf32>
    %108 = arith.mulf %107, %103 : vector<32x324xf32>
    %109 = arith.select %105, %103, %108 : vector<32x324xi1>, vector<32x324xf32>
    %110 = vector.broadcast %0 : vector<1x324xf32> to vector<32x324xf32>
    %111 = arith.mulf %109, %110 : vector<32x324xf32>
    %c0_127 = arith.constant 0 : index
    %c24_128 = arith.constant 24 : index
    %112 = vector.load %arg27[%c0_127, %c24_128] : memref<32x372xf32, #tpu.memory_space<vmem>>, vector<32x324xf32>
    tpu.vector_store %arg27[%c0_127, %c24_128], %111 {strides = array<i32>} : memref<32x372xf32, #tpu.memory_space<vmem>>, vector<32x324xf32>,
    %c0_129 = arith.constant 0 : index
    %c5_130 = arith.constant 5 : index
    %113 = vector.load %arg27[%c0_129, %c5_130] : memref<32x372xf32, #tpu.memory_space<vmem>>, vector<32x324xf32>
    %c0_131 = arith.constant 0 : index
    %c6_132 = arith.constant 6 : index
    %114 = vector.load %arg27[%c0_131, %c6_132] : memref<32x372xf32, #tpu.memory_space<vmem>>, vector<32x324xf32>
    %c0_133 = arith.constant 0 : index
    %c7_134 = arith.constant 7 : index
    %115 = vector.load %arg27[%c0_133, %c7_134] : memref<32x372xf32, #tpu.memory_space<vmem>>, vector<32x324xf32>
    %c0_135 = arith.constant 0 : index
    %c23_136 = arith.constant 23 : index
    %116 = vector.load %arg27[%c0_135, %c23_136] : memref<32x372xf32, #tpu.memory_space<vmem>>, vector<32x324xf32>
    %c0_137 = arith.constant 0 : index
    %c24_138 = arith.constant 24 : index
    %117 = vector.load %arg27[%c0_137, %c24_138] : memref<32x372xf32, #tpu.memory_space<vmem>>, vector<32x324xf32>
    %c0_139 = arith.constant 0 : index
    %c25_140 = arith.constant 25 : index
    %118 = vector.load %arg27[%c0_139, %c25_140] : memref<32x372xf32, #tpu.memory_space<vmem>>, vector<32x324xf32>
    %c0_141 = arith.constant 0 : index
    %c41_142 = arith.constant 41 : index
    %119 = vector.load %arg27[%c0_141, %c41_142] : memref<32x372xf32, #tpu.memory_space<vmem>>, vector<32x324xf32>
    %c0_143 = arith.constant 0 : index
    %c42_144 = arith.constant 42 : index
    %120 = vector.load %arg27[%c0_143, %c42_144] : memref<32x372xf32, #tpu.memory_space<vmem>>, vector<32x324xf32>
    %c0_145 = arith.constant 0 : index
    %c43_146 = arith.constant 43 : index
    %121 = vector.load %arg27[%c0_145, %c43_146] : memref<32x372xf32, #tpu.memory_space<vmem>>, vector<32x324xf32>
    %122 = tpu.concatenate %113, %114, %115, %116, %117, %118, %119, %120, %121 in 0 : vector<32x324xf32>, vector<32x324xf32>, vector<32x324xf32>, vector<32x324xf32>, vector<32x324xf32>, vector<32x324xf32>, vector<32x324xf32>, vector<32x324xf32>, vector<32x324xf32> -> vector<288x324xf32>
    %c0_147 = arith.constant 0 : index
    %c0_148 = arith.constant 0 : index
    %123 = vector.load %arg19[%c0_147, %c0_148] : memref<32x288xf32, #tpu.memory_space<vmem>>, vector<32x288xf32>
    %cst_149 = arith.constant dense<0.000000e+00> : vector<32x324xf32>
    %124 = tpu.matmul %123, %122, %cst_149 {dimension_numbers = #tpu.dot_dimension_numbers<[1], [0], [0], [1], [0, 0, 1, 1], [], []>} : vector<32x288xf32>, vector<288x324xf32>, vector<32x324xf32> -> vector<32x324xf32>
    %c0_150 = arith.constant 0 : index
    %c0_151 = arith.constant 0 : index
    %125 = vector.load %arg20[%c0_150, %c0_151] : memref<32x1xf32, #tpu.memory_space<vmem>>, vector<32x1xf32>
    %126 = vector.broadcast %125 : vector<32x1xf32> to vector<32x324xf32>
    %127 = arith.addf %124, %126 : vector<32x324xf32>
    %cst_152 = arith.constant 0.000000e+00 : f32
    %128 = vector.broadcast %cst_152 : f32 to vector<32x324xf32>
    %129 = arith.cmpf oge, %127, %128 : vector<32x324xf32>
    %c0_153 = arith.constant 0 : index
    %c0_154 = arith.constant 0 : index
    %130 = vector.load %arg21[%c0_153, %c0_154] : memref<32x1xf32, #tpu.memory_space<vmem>>, vector<32x1xf32>
    %131 = vector.broadcast %130 : vector<32x1xf32> to vector<32x324xf32>
    %132 = arith.mulf %131, %127 : vector<32x324xf32>
    %133 = arith.select %129, %127, %132 : vector<32x324xi1>, vector<32x324xf32>
    %134 = vector.broadcast %0 : vector<1x324xf32> to vector<32x324xf32>
    %135 = arith.mulf %133, %134 : vector<32x324xf32>
    %c0_155 = arith.constant 0 : index
    %c24_156 = arith.constant 24 : index
    %136 = vector.load %arg27[%c0_155, %c24_156] : memref<32x372xf32, #tpu.memory_space<vmem>>, vector<32x324xf32>
    tpu.vector_store %arg27[%c0_155, %c24_156], %135 {strides = array<i32>} : memref<32x372xf32, #tpu.memory_space<vmem>>, vector<32x324xf32>,
    %c0_157 = arith.constant 0 : index
    %c5_158 = arith.constant 5 : index
    %137 = vector.load %arg27[%c0_157, %c5_158] : memref<32x372xf32, #tpu.memory_space<vmem>>, vector<32x324xf32>
    %c0_159 = arith.constant 0 : index
    %c6_160 = arith.constant 6 : index
    %138 = vector.load %arg27[%c0_159, %c6_160] : memref<32x372xf32, #tpu.memory_space<vmem>>, vector<32x324xf32>
    %c0_161 = arith.constant 0 : index
    %c7_162 = arith.constant 7 : index
    %139 = vector.load %arg27[%c0_161, %c7_162] : memref<32x372xf32, #tpu.memory_space<vmem>>, vector<32x324xf32>
    %c0_163 = arith.constant 0 : index
    %c23_164 = arith.constant 23 : index
    %140 = vector.load %arg27[%c0_163, %c23_164] : memref<32x372xf32, #tpu.memory_space<vmem>>, vector<32x324xf32>
    %c0_165 = arith.constant 0 : index
    %c24_166 = arith.constant 24 : index
    %141 = vector.load %arg27[%c0_165, %c24_166] : memref<32x372xf32, #tpu.memory_space<vmem>>, vector<32x324xf32>
    %c0_167 = arith.constant 0 : index
    %c25_168 = arith.constant 25 : index
    %142 = vector.load %arg27[%c0_167, %c25_168] : memref<32x372xf32, #tpu.memory_space<vmem>>, vector<32x324xf32>
    %c0_169 = arith.constant 0 : index
    %c41_170 = arith.constant 41 : index
    %143 = vector.load %arg27[%c0_169, %c41_170] : memref<32x372xf32, #tpu.memory_space<vmem>>, vector<32x324xf32>
    %c0_171 = arith.constant 0 : index
    %c42_172 = arith.constant 42 : index
    %144 = vector.load %arg27[%c0_171, %c42_172] : memref<32x372xf32, #tpu.memory_space<vmem>>, vector<32x324xf32>
    %c0_173 = arith.constant 0 : index
    %c43_174 = arith.constant 43 : index
    %145 = vector.load %arg27[%c0_173, %c43_174] : memref<32x372xf32, #tpu.memory_space<vmem>>, vector<32x324xf32>
    %146 = tpu.concatenate %137, %138, %139, %140, %141, %142, %143, %144, %145 in 0 : vector<32x324xf32>, vector<32x324xf32>, vector<32x324xf32>, vector<32x324xf32>, vector<32x324xf32>, vector<32x324xf32>, vector<32x324xf32>, vector<32x324xf32>, vector<32x324xf32> -> vector<288x324xf32>
    %c0_175 = arith.constant 0 : index
    %c0_176 = arith.constant 0 : index
    %147 = vector.load %arg22[%c0_175, %c0_176] : memref<1x288xf32, #tpu.memory_space<vmem>>, vector<1x288xf32>
    %cst_177 = arith.constant dense<0.000000e+00> : vector<1x324xf32>
    %148 = tpu.matmul %147, %146, %cst_177 {dimension_numbers = #tpu.dot_dimension_numbers<[1], [0], [0], [1], [0, 0, 1, 1], [], []>} : vector<1x288xf32>, vector<288x324xf32>, vector<1x324xf32> -> vector<1x324xf32>
    %c0_178 = arith.constant 0 : index
    %c0_179 = arith.constant 0 : index
    %149 = vector.load %arg23[%c0_178, %c0_179] : memref<1x1xf32, #tpu.memory_space<vmem>>, vector<1x1xf32>
    %150 = vector.broadcast %149 : vector<1x1xf32> to vector<1x324xf32>
    %151 = arith.addf %148, %150 : vector<1x324xf32>
    %152 = arith.addf %151, %86 : vector<1x324xf32>
    %153 = arith.mulf %152, %0 : vector<1x324xf32>
    %c0_180 = arith.constant 0 : index
    %c0_181 = arith.constant 0 : index
    %c0_182 = arith.constant 0 : index
    %154 = vector.load %arg24[%c0_180, %c0_181, %c0_182] : memref<1x1x324xf32, #tpu.memory_space<vmem>>, vector<1x1x324xf32>
    %155 = vector.shape_cast %154 : vector<1x1x324xf32> to vector<1x324xf32>
    %156 = vector.shape_cast %153 : vector<1x324xf32> to vector<1x1x324xf32>
    tpu.vector_store %arg24[%c0_180, %c0_181, %c0_182], %156 {strides = array<i32>} : memref<1x1x324xf32, #tpu.memory_space<vmem>>, vector<1x1x324xf32>,
    return
  }
  func.func @transform_0(%arg0: i32) -> (i32, i32, i32) {
    %c0_i32 = arith.constant 0 : i32
    %c0_i32_0 = arith.constant 0 : i32
    %c0_i32_1 = arith.constant 0 : i32
    return %arg0, %c0_i32, %c0_i32_0 : i32, i32, i32
  }
  func.func @transform_1(%arg0: i32) -> (i32, i32, i32) {
    %c0_i32 = arith.constant 0 : i32
    %c0_i32_0 = arith.constant 0 : i32
    %c0_i32_1 = arith.constant 0 : i32
    return %arg0, %c0_i32, %c0_i32_0 : i32, i32, i32
  }
  func.func @transform_2(%arg0: i32) -> (i32, i32, i32) {
    %c0_i32 = arith.constant 0 : i32
    %c0_i32_0 = arith.constant 0 : i32
    %c0_i32_1 = arith.constant 0 : i32
    return %arg0, %c0_i32, %c0_i32_0 : i32, i32, i32
  }
  func.func @transform_3(%arg0: i32) -> (i32, i32, i32) {
    %c0_i32 = arith.constant 0 : i32
    %c0_i32_0 = arith.constant 0 : i32
    %c0_i32_1 = arith.constant 0 : i32
    return %arg0, %c0_i32, %c0_i32_0 : i32, i32, i32
  }
  func.func @transform_4(%arg0: i32) -> (i32, i32) {
    %c0_i32 = arith.constant 0 : i32
    %c0_i32_0 = arith.constant 0 : i32
    %c0_i32_1 = arith.constant 0 : i32
    return %c0_i32, %c0_i32_0 : i32, i32
  }
  func.func @transform_5(%arg0: i32) -> (i32, i32) {
    %c0_i32 = arith.constant 0 : i32
    %c0_i32_0 = arith.constant 0 : i32
    %c0_i32_1 = arith.constant 0 : i32
    return %c0_i32, %c0_i32_0 : i32, i32
  }
  func.func @transform_6(%arg0: i32) -> (i32, i32) {
    %c0_i32 = arith.constant 0 : i32
    %c0_i32_0 = arith.constant 0 : i32
    %c0_i32_1 = arith.constant 0 : i32
    return %c0_i32, %c0_i32_0 : i32, i32
  }
  func.func @transform_7(%arg0: i32) -> (i32, i32) {
    %c0_i32 = arith.constant 0 : i32
    %c0_i32_0 = arith.constant 0 : i32
    %c0_i32_1 = arith.constant 0 : i32
    return %c0_i32, %c0_i32_0 : i32, i32
  }
  func.func @transform_8(%arg0: i32) -> (i32, i32) {
    %c0_i32 = arith.constant 0 : i32
    %c0_i32_0 = arith.constant 0 : i32
    %c0_i32_1 = arith.constant 0 : i32
    return %c0_i32, %c0_i32_0 : i32, i32
  }
  func.func @transform_9(%arg0: i32) -> (i32, i32) {
    %c0_i32 = arith.constant 0 : i32
    %c0_i32_0 = arith.constant 0 : i32
    %c0_i32_1 = arith.constant 0 : i32
    return %c0_i32, %c0_i32_0 : i32, i32
  }
  func.func @transform_10(%arg0: i32) -> (i32, i32) {
    %c0_i32 = arith.constant 0 : i32
    %c0_i32_0 = arith.constant 0 : i32
    %c0_i32_1 = arith.constant 0 : i32
    return %c0_i32, %c0_i32_0 : i32, i32
  }
  func.func @transform_11(%arg0: i32) -> (i32, i32) {
    %c0_i32 = arith.constant 0 : i32
    %c0_i32_0 = arith.constant 0 : i32
    %c0_i32_1 = arith.constant 0 : i32
    return %c0_i32, %c0_i32_0 : i32, i32
  }
  func.func @transform_12(%arg0: i32) -> (i32, i32) {
    %c0_i32 = arith.constant 0 : i32
    %c0_i32_0 = arith.constant 0 : i32
    %c0_i32_1 = arith.constant 0 : i32
    return %c0_i32, %c0_i32_0 : i32, i32
  }
  func.func @transform_13(%arg0: i32) -> (i32, i32) {
    %c0_i32 = arith.constant 0 : i32
    %c0_i32_0 = arith.constant 0 : i32
    %c0_i32_1 = arith.constant 0 : i32
    return %c0_i32, %c0_i32_0 : i32, i32
  }
  func.func @transform_14(%arg0: i32) -> (i32, i32) {
    %c0_i32 = arith.constant 0 : i32
    %c0_i32_0 = arith.constant 0 : i32
    %c0_i32_1 = arith.constant 0 : i32
    return %c0_i32, %c0_i32_0 : i32, i32
  }
  func.func @transform_15(%arg0: i32) -> (i32, i32) {
    %c0_i32 = arith.constant 0 : i32
    %c0_i32_0 = arith.constant 0 : i32
    %c0_i32_1 = arith.constant 0 : i32
    return %c0_i32, %c0_i32_0 : i32, i32
  }
  func.func @transform_16(%arg0: i32) -> (i32, i32) {
    %c0_i32 = arith.constant 0 : i32
    %c0_i32_0 = arith.constant 0 : i32
    %c0_i32_1 = arith.constant 0 : i32
    return %c0_i32, %c0_i32_0 : i32, i32
  }
  func.func @transform_17(%arg0: i32) -> (i32, i32) {
    %c0_i32 = arith.constant 0 : i32
    %c0_i32_0 = arith.constant 0 : i32
    %c0_i32_1 = arith.constant 0 : i32
    return %c0_i32, %c0_i32_0 : i32, i32
  }
  func.func @transform_18(%arg0: i32) -> (i32, i32) {
    %c0_i32 = arith.constant 0 : i32
    %c0_i32_0 = arith.constant 0 : i32
    %c0_i32_1 = arith.constant 0 : i32
    return %c0_i32, %c0_i32_0 : i32, i32
  }
  func.func @transform_19(%arg0: i32) -> (i32, i32) {
    %c0_i32 = arith.constant 0 : i32
    %c0_i32_0 = arith.constant 0 : i32
    %c0_i32_1 = arith.constant 0 : i32
    return %c0_i32, %c0_i32_0 : i32, i32
  }
  func.func @transform_20(%arg0: i32) -> (i32, i32) {
    %c0_i32 = arith.constant 0 : i32
    %c0_i32_0 = arith.constant 0 : i32
    %c0_i32_1 = arith.constant 0 : i32
    return %c0_i32, %c0_i32_0 : i32, i32
  }
  func.func @transform_21(%arg0: i32) -> (i32, i32) {
    %c0_i32 = arith.constant 0 : i32
    %c0_i32_0 = arith.constant 0 : i32
    %c0_i32_1 = arith.constant 0 : i32
    return %c0_i32, %c0_i32_0 : i32, i32
  }
  func.func @transform_22(%arg0: i32) -> (i32, i32) {
    %c0_i32 = arith.constant 0 : i32
    %c0_i32_0 = arith.constant 0 : i32
    %c0_i32_1 = arith.constant 0 : i32
    return %c0_i32, %c0_i32_0 : i32, i32
  }
  func.func @transform_23(%arg0: i32) -> (i32, i32, i32) {
    %c0_i32 = arith.constant 0 : i32
    %c0_i32_0 = arith.constant 0 : i32
    %c0_i32_1 = arith.constant 0 : i32
    return %arg0, %c0_i32, %c0_i32_0 : i32, i32, i32
  }
  func.func @transform_24(%arg0: i32) -> (i32, i32, i32) {
    %c0_i32 = arith.constant 0 : i32
    %c0_i32_0 = arith.constant 0 : i32
    %c0_i32_1 = arith.constant 0 : i32
    return %arg0, %c0_i32, %c0_i32_0 : i32, i32, i32
  }
}

</mosaic_0001>

<bundles_post_ra>
// kernel: squeeze.7
= control target key start
LH: loop header
LB: loop body
LE: loop exit
PB: predicated region body
PF: predicated region fallthrough
CT: control target
= control target key end

     0   :  { %s94_s8 = smov 112   ;;  %s95_s11 = smov 80   ;;  %vm3_vm0 = vcmask 130048   ;;  %vm9_vm1 = vcmask 1048448   ;;  %vm15_vm2 = vcmask 917248   ;;  %vm21_vm3 = vcmask 786048   ;;  %s147_s0 = inlined_call_operand.vmem [shape: f32[2,16,16], index: 0, kind: input, shape index: {}]   ;;  %s148_s1 = inlined_call_operand.vmem [shape: f32[2,1,256], index: 1, kind: output, shape index: {}]  }
   0x1   :  { %v77_v0 = vld [vmem:[%s147_s0 + $0x7] ss:$8 sm:$0xf]   ;;  %v79_v1 = vld [vmem:[%s147_s0 + $0x5] ss:$8 sm:$0xf]  }
   0x2   :  { %7 = vrot.lane.b32.xlu0 %v77_v0, %s94_s8  ;;  %19 = vrot.lane.b32.xlu1 %v79_v1, %s95_s11  ;;  %v78_v2 = vld [vmem:[%s147_s0 + $0x6] ss:$8 sm:$0xf]   ;;  %v80_v3 = vld [vmem:[%s147_s0 + $0x4] ss:$8 sm:$0xf]  }
   0x3   :  { %s96_s16 = smov 96   ;;  %v2_v4 = vld [vmem:[%s147_s0] ss:$8 sm:$0xf]   ;;  %s97_s19 = smov 64   ;;  %vm27_vm4 = vcmask 654848  }
   0x4   :  { %v81_v5 = vld [vmem:[%s147_s0 + $0x3] ss:$8 sm:$0xf]   ;;  %4 = vst.msk [vmem:[#allocation0] ss:$8 sm:$0xf] %vm3_vm0, %v2_v4  }
   0x5   :  { %v82_v6 = vld [vmem:[%s147_s0 + $0x2] ss:$8 sm:$0xf]   ;;  %s98_s24 = smov 48   ;;  %s99_s25 = smov 32   ;;  %vm33_vm5 = vcmask 523648  }
   0x6   :  { %13 = vrot.lane.b32.xlu0 %v78_v2, %s96_s16  ;;  %25 = vrot.lane.b32.xlu1 %v80_v3, %s97_s19  ;;  %v83_v7 = vld [vmem:[%s147_s0 + $0x1] ss:$8 sm:$0xf]   ;;  %s100_s0 = smov 16   ;;  %vm39_vm6 = vcmask 392448   ;;  %vm45_vm7 = vcmask 261248  }
   0xa   :  { %31 = vrot.lane.b32.xlu0 %v81_v5, %s98_s24  ;;  %37 = vrot.lane.b32.xlu1 %v82_v6, %s99_s25 }
   0xe   :  { %43 = vrot.lane.b32.xlu0 %v83_v7, %s100_s0 }
  0x74   :  { %v8_v8 = vpop.permute.xlu0 %7   ;;  %v20_v9 = vpop.permute.xlu1 %19  }
  0x75   :  { %10 = vst.msk [vmem:[#allocation0] ss:$8 sm:$0xf] %vm9_vm1, %v8_v8  }
  0x78   :  { %v14_v10 = vpop.permute.xlu0 %13   ;;  %v26_v11 = vpop.permute.xlu1 %25  }
  0x79   :  { %16 = vst.msk [vmem:[#allocation0] ss:$8 sm:$0xf] %vm15_vm2, %v14_v10  }
  0x7a   :  { %22 = vst.msk [vmem:[#allocation0] ss:$8 sm:$0xf] %vm21_vm3, %v20_v9  }
  0x7b   :  { %28 = vst.msk [vmem:[#allocation0] ss:$8 sm:$0xf] %vm27_vm4, %v26_v11  }
  0x7c   :  { %v32_v12 = vpop.permute.xlu0 %31   ;;  %v38_v13 = vpop.permute.xlu1 %37  }
  0x7d   :  { %34 = vst.msk [vmem:[#allocation0] ss:$8 sm:$0xf] %vm33_vm5, %v32_v12  }
  0x7e   :  { %40 = vst.msk [vmem:[#allocation0] ss:$8 sm:$0xf] %vm39_vm6, %v38_v13  }
  0x80   :  { %v44_v14 = vpop.permute.xlu0 %43  }
  0x81   :  { %46 = vst.msk [vmem:[#allocation0] ss:$8 sm:$0xf] %vm45_vm7, %v44_v14  }
  0x88   :  { %v51_v15 = vld [vmem:[#allocation0] sm:$0x1]  ;;  %v56_v16 = vld [vmem:[#allocation0 + $0x8] sm:$0x1]  ;;  %v62_v17 = vld [vmem:[#allocation0 + $0x10] sm:$0x1] }
  0x89   :  { %54 = vst [vmem:[%s148_s1] sm:$0x1] %v51_v15  ;;  %84 = vst [vmem:[%s148_s1 + $0x1] sm:$0x1] %v56_v16  ;;  %v69_v18 = vld [vmem:[#allocation0 + $0x18] sm:$0x1] }
  0x8a   :  { %85 = vst [vmem:[%s148_s1 + $0x2] sm:$0x1] %v62_v17  ;;  %86 = vst [vmem:[%s148_s1 + $0x3] sm:$0x1] %v69_v18 }

// kernel: iteration_forward.1
= control target key start
LH: loop header
LB: loop body
LE: loop exit
PB: predicated region body
PF: predicated region fallthrough
CT: control target
= control target key end

     0   :  { %s13269_s0 = inlined_call_operand.vmem [shape: f32[2,1,256], index: 0, kind: input, shape index: {}]   ;;  %s13270_s1 = inlined_call_operand.vmem [shape: f32[2,1,324], index: 1, kind: input, shape index: {}]   ;;  %s13271_s2 = inlined_call_operand.vmem [shape: f32[2,1,324], index: 2, kind: input, shape index: {}]   ;;  %s13272_s3 = inlined_call_operand.vmem [shape: f32[2,1,324], index: 3, kind: input, shape index: {}]   ;;  %s13273_s4 = inlined_call_operand.vmem [shape: f32[256,324], index: 4, kind: input, shape index: {}]   ;;  %s13274_s5 = inlined_call_operand.hbm [shape: f32[324,324], index: 5, kind: input, shape index: {}]   ;;  %s13275_s6 = inlined_call_operand.vmem [shape: f32[1,324], index: 6, kind: input, shape index: {}]   ;;  %s13276_s7 = inlined_call_operand.vmem [shape: f32[32,27], index: 7, kind: input, shape index: {}]   ;;  %s13277_s8 = inlined_call_operand.vmem [shape: f32[32,1], index: 8, kind: input, shape index: {}]   ;;  %s13278_s9 = inlined_call_operand.vmem [shape: f32[32,1], index: 9, kind: input, shape index: {}]   ;;  %s13279_s10 = inlined_call_operand.vmem [shape: f32[32,288], index: 10, kind: input, shape index: {}]   ;;  %s13280_s11 = inlined_call_operand.vmem [shape: f32[32,1], index: 11, kind: input, shape index: {}]   ;;  %s13281_s12 = inlined_call_operand.vmem [shape: f32[32,1], index: 12, kind: input, shape index: {}]   ;;  %s13282_s13 = inlined_call_operand.vmem [shape: f32[1,288], index: 13, kind: input, shape index: {}]   ;;  %s13283_s14 = inlined_call_operand.<no memory space> [shape: f32[1,1], index: 14, kind: input, shape index: {}]   ;;  %s13284_s15 = inlined_call_operand.vmem [shape: f32[32,18], index: 15, kind: input, shape index: {}]   ;;  %s13285_s16 = inlined_call_operand.vmem [shape: f32[32,1], index: 16, kind: input, shape index: {}]   ;;  %s13286_s17 = inlined_call_operand.vmem [shape: f32[32,1], index: 17, kind: input, shape index: {}]   ;;  %s13287_s18 = inlined_call_operand.hbm [shape: f32[32,288], index: 18, kind: input, shape index: {}]   ;;  %s13288_s19 = inlined_call_operand.vmem [shape: f32[32,1], index: 19, kind: input, shape index: {}]   ;;  %s13289_s20 = inlined_call_operand.vmem [shape: f32[32,1], index: 20, kind: input, shape index: {}]   ;;  %s13290_s21 = inlined_call_operand.vmem [shape: f32[1,288], index: 21, kind: input, shape index: {}]   ;;  %s13291_s23 = inlined_call_operand.vmem [shape: f32[2,1,324], index: 23, kind: output, shape index: {0}]   ;;  %s13292_s24 = inlined_call_operand.vmem [shape: f32[2,1,324], index: 24, kind: output, shape index: {1}]   ;;  %s13293_s22 = inlined_call_operand.<no memory space> [shape: f32[1,1], index: 22, kind: input, shape index: {}]  }
   0x1   :  { %13426 = sst [smem:[#allocation43_spill]] %s13269_s0  ;;  %v30_v0 = vstv %s13283_s14  ;;  %v32_v1 = vstv %s13293_s22 }
   0x2   :  { %13427 = sst [smem:[#allocation44_spill]] %s13270_s1  ;;  %31 = vst [vmem:[#allocation4] sm:$0x1] %v30_v0  ;;  %33 = vst [vmem:[#allocation5] sm:$0x1] %v32_v1 }
   0x3   :  { %13428 = sst [smem:[#allocation45_spill]] %s13271_s2 }
   0x4   :  { %13429 = sst [smem:[#allocation46_spill]] %s13272_s3 }
   0x5   :  { %13430 = sst [smem:[#allocation47_spill]] %s13273_s4 }
   0x6   :  { %13431 = sst [smem:[#allocation48_spill]] %s13274_s5 }
   0x7   :  { %13432 = sst [smem:[#allocation49_spill]] %s13275_s6 }
   0x8   :  { %13433 = sst [smem:[#allocation50_spill]] %s13276_s7 }
   0x9   :  { %13434 = sst [smem:[#allocation51_spill]] %s13277_s8 }
   0xa   :  { %13435 = sst [smem:[#allocation52_spill]] %s13278_s9 }
   0xb   :  { %13436 = sst [smem:[#allocation53_spill]] %s13279_s10 }
   0xc   :  { %13437 = sst [smem:[#allocation54_spill]] %s13280_s11 }
   0xd   :  { %13438 = sst [smem:[#allocation55_spill]] %s13281_s12 }
   0xe   :  { %13439 = sst [smem:[#allocation56_spill]] %s13282_s13 }
   0xf   :  { %13440 = sst [smem:[#allocation57_spill]] %s13287_s18 }
  0x10   :  { %34 = vsyncpa [#allocation7], 0 }
  0x11   :  { %35 = vsyncpa [#allocation9], 0  ;;  %s8042_s6 = smov 0  }
  0x12 LB: > { %s8048_s2 = sadd.s32 4294967295, %s7891_s6   ;;  %p7332_p0 = scmp.ge.s32.totalorder %s7891_s6, 1  ;;  %s7891_s6 = sphi %s8042_s6, %s41_s6  }
  0x13   : > { %p601_p1 = scmp.lt.s32.totalorder %s7891_s6, 3  ;;  %s7893_s14 = smov [#allocation6]  }
  0x14   : > { %s616_s22 = sshll.u32 %s7893_s14, 4  ;;  %p7789_p3 = scmp.eq.s32.totalorder %s8048_s2, 0  ;;  %s617_s22 = int_to_ptr.vmem [resolvable:$true] %s616_s22 }
  0x15   : > { %p8052_p2 = pnand %p7332_p0, %p601_p1  ;;  %s7894_s0 = smov [#allocation8]  }
  0x16   : > { %s665_s7 = sshll.u32 %s7894_s0, 4  ;;  %s7836_s3 = scalar_lea.vmem %s617_s22, 15744  ;;  %s666_s7 = int_to_ptr.vmem [resolvable:$true] %s665_s7 }
  0x17   : > { %p7782_p4 = pneg %p8052_p2  ;;  %p7837_p7 = scmp.ne.s32.totalorder %s617_s22, %s7836_s3 }
  0x18   : > { %p7844_p10 = scmp.lt.s32.totalorder %s617_s22, %s617_s22  ;;  %p7845_p11 = scmp.lt.s32.totalorder %s7836_s3, %s7836_s3 }
  0x19   : > { %p8061_p5 = pnand %p7789_p3, %p7782_p4 }
  0x1a   : > { %p7846_p12 = por %p7845_p11, %p7844_p10 }
  0x1b   : > { %p7827_p6 = pneg %p8061_p5 }
  0x1d   : > { %p7839_p8 = pnand %p7837_p7, %p7827_p6 }
  0x1f   : > { %p7840_p9 = pneg %p7839_p8 }
  0x21   : > { %p7847_p13 = pnand %p7846_p12, %p7840_p9 }
  0x23   : > { %7850 = shalt.err (!%p7847_p13)
}
  0x24   : > { %s7895_s25 = smov 384   ;;  %s7896_s8 = smov 24  }
  0x25   : > { %s13443_s5 = sld [smem:[#allocation48_spill]]  ;;  %s7862_s26 = scalar_lea.vmem %s666_s7, 1536 }
  0x26   : > { %p7863_p0 = scmp.ne.s32.totalorder %s666_s7, %s7862_s26  ;;  %p7870_p7 = scmp.lt.s32.totalorder %s666_s7, %s666_s7 }
  0x27   : > { %p7871_p8 = scmp.lt.s32.totalorder %s7862_s26, %s7862_s26 }
  0x28   : > { %p7865_p1 = pnand %p7863_p0, %p7827_p6 }
  0x29   : > { %p7872_p10 = por %p7871_p8, %p7870_p7 }
  0x2a   : > { %p7866_p4 = pneg %p7865_p1 }
  0x2b   : > { %7785 = dma.hbm_to_vmem [thread:$0]  (!%p8061_p5), %s13443_s5, 15744, %s617_s22, [#allocation7], %s7895_s25, %s7895_s25, %s7896_s8  }
  0x2c   : > { %p7873_p9 = pnand %p7872_p10, %p7866_p4 }
  0x2e   : > { %7876 = shalt.err (!%p7873_p9)
}
  0x2f   : > { %s13444_s18 = sld [smem:[#allocation57_spill]] }
  0x31   : > { %721 = sbr.rel (%p8052_p2) target bundleno = 5220 (0x1464), region = 112 }
  0x35   : > { %7788 = dma.hbm_to_vmem [thread:$0]  (!%p8061_p5), %s13444_s18, 1536, %s666_s7, [#allocation9], %s7895_s25, %s7895_s25, %s7896_s8  }
  0x36   : > { %7882 = dma.done.wait (%p7789_p3), [#allocation7], 15744  }
  0x37   : > { %7884 = vsyncadd (%p7789_p3), [#allocation7], 4294951552 }
  0x38   : > { %7886 = dma.done.wait (%p7789_p3), [#allocation9], 1536  }
  0x39   : > { %7888 = vsyncadd (%p7789_p3), [#allocation9], 4294965760  ;;  %s13445_s0 = sld [smem:[#allocation47_spill]]  ;;  %p805_p2 = scmp.lt.s32.totalorder %s8048_s2, 1  ;;  %v13314_v47 = vlaneseq  ;;  %vm831_vm0 = vcmask 944128   ;;  %vm13313_vm1 = vcmask 1040384  }
  0x3a   : > { %s13447_s25 = sld [smem:[#allocation43_spill]]  ;;  %vm13312_vm2 = vcmask 1041408   ;;  %vm1160_vm3 = vcmask 1042624   ;;  %vm1161_vm4 = vcmask 1046532   ;;  %vm1155_vm5 = vcmask 195584   ;;  %s13301_s27 = smov 90  }
  0x3b   : > { %s13757_s2 = smov (!%p805_p2, %s8048_s2), 1  ;;  %v8260_v56 = vshrl.u32 %v13314_v47, 7  ;;  %s13450_s3 = sld [smem:[#allocation45_spill]]  ;;  %vm1162_vm6 = vmor %vm1161_vm4, %vm1160_vm3  ;;  %vm1164_vm7 = vcmask 747520   ;;  %vm1282_vm8 = vcmask 736256   ;;  %vm13353_vm9 = vcmask 1043456  }
  0x3c   : > { %s7339_s29 = sshll.u32 %s13757_s2, 1  ;;  %s13451_s5 = sld [smem:[#allocation46_spill]]  ;;  %vm1300_vm10 = vcmask 1046528   ;;  %vm1307_vm11 = vcmask 1044480   ;;  %vm1211_vm12 = vcmask 900096   ;;  %vm1196_vm13 = vcmask 1031168  }
  0x3d   : > { %13446 = vst [vmem:[#allocation12_spill] sm:$0xff] %v8260_v56  ;;  %v8290_v1 = vsub.s32 1, %v8260_v56  ;;  %s13297_s28 = smov 109   ;;  %s13299_s14 = smov 108   ;;  %vm13380_vm14 = vcmask 891904   ;;  %vm1255_vm15 = vcmask 752640  }
  0x3e   : > { %s13303_s22 = smov 92   ;;  %s13305_s7 = smov 126   ;;  %vm1270_vm3 = vcmask 744448   ;;  %vm1181_vm4 = vcmask 1039360  }
  0x3f   : > { %v893_v2 = vld [vmem:[%s13445_s0 + $0x170] sm:$0xff]  ;;  %v892_v3 = vld [vmem:[%s13445_s0 + $0x168] sm:$0xff]  ;;  %v890_v4 = vld [vmem:[%s13445_s0 + $0x158] sm:$0xff]  ;;  %13448 = vst [vmem:[#allocation13_spill] sm:$0xff] %v8290_v1  ;;  %s13309_s30 = smov 91   ;;  %s13457_s9 = sld [smem:[#allocation52_spill]] }
  0x40   : > { %954 = vmatprep.subr.mxu0 %v893_v2  ;;  %v889_v5 = vld [vmem:[%s13445_s0 + $0x150] sm:$0xff]  ;;  %v887_v6 = vld [vmem:[%s13445_s0 + $0x140] sm:$0xff]  ;;  %v886_v7 = vld [vmem:[%s13445_s0 + $0x138] sm:$0xff]  ;;  %s808_s8 = scalar_lea.vmem %s13447_s25, %s7339_s29  ;;  %s8410_s29 = smul.u32 3, %s13757_s2 }
  0x41   : > { %955 = vmatpush1.msra.mxu0 %v892_v3  ;;  %v884_v8 = vld [vmem:[%s13445_s0 + $0x128] sm:$0xff]  ;;  %v883_v9 = vld [vmem:[%s13445_s0 + $0x120] sm:$0xff]  ;;  %v881_v10 = vld [vmem:[%s13445_s0 + $0x110] sm:$0xff]  ;;  %s13342_s2 = smov 24   ;;  %s13464_s4 = smov 126  }
  0x42   : > { %956 = vmatprep.subr.mxu0 %v890_v4  ;;  %v880_v11 = vld [vmem:[%s13445_s0 + $0x108] sm:$0xff]  ;;  %v878_v12 = vld [vmem:[%s13445_s0 + $0xf8] sm:$0xff]  ;;  %v877_v13 = vld [vmem:[%s13445_s0 + $0xf0] sm:$0xff]  ;;  %s816_s25 = scalar_lea.vmem %s13450_s3, %s8410_s29  ;;  %s820_s26 = scalar_lea.vmem %s13451_s5, %s8410_s29 }
  0x43   : > { %957 = vmatpush1.msra.mxu0 %v889_v5  ;;  %v875_v14 = vld [vmem:[%s13445_s0 + $0xe0] sm:$0xff]  ;;  %v874_v15 = vld [vmem:[%s13445_s0 + $0xd8] sm:$0xff]  ;;  %v872_v17 = vld [vmem:[%s13445_s0 + $0xc8] sm:$0xff]  ;;  %s13338_s3 = smov 127   ;;  %s13456_s5 = sld [smem:[#allocation51_spill]] }
  0x44   : > { %958 = vmatprep.subr.mxu0 %v887_v6  ;;  %v942_v16 = vld [vmem:[%s13445_s0 + $0x2f8] sm:$0xff]  ;;  %v871_v19 = vld [vmem:[%s13445_s0 + $0xc0] sm:$0xff]  ;;  %v869_v22 = vld [vmem:[%s13445_s0 + $0xb0] sm:$0xff]  ;;  %s13465_s1 = smov 92   ;;  %s13483_s10 = sld [smem:[#allocation53_spill]] }
  0x45   : > { %959 = vmatpush1.msra.mxu0 %v886_v7  ;;  %7389 = vmatprep.subr.mxu1 %v942_v16  ;;  %v894_v18 = vld [vmem:[%s13445_s0 + $0x178] sm:$0xff]  ;;  %v939_v20 = vld [vmem:[%s13445_s0 + $0x2e0] sm:$0xff]  ;;  %v936_v23 = vld [vmem:[%s13445_s0 + $0x2c8] sm:$0xff]  ;;  %v8330_v16 = vsub.s32 0, %v8260_v56  ;;  %s13487_s11 = sld [smem:[#allocation54_spill]] }
  0x46   : > { %960 = vmatprep.subr.mxu0 %v884_v8  ;;  %7390 = vmatpush3.msra.mxu1 %v894_v18  ;;  %v891_v21 = vld [vmem:[%s13445_s0 + $0x160] sm:$0xff]  ;;  %v868_v24 = vld [vmem:[%s13445_s0 + $0xa8] sm:$0xff]  ;;  %v933_v26 = vld [vmem:[%s13445_s0 + $0x2b0] sm:$0xff]  ;;  %s13488_s12 = sld [smem:[#allocation55_spill]] }
  0x47   : > { %961 = vmatpush1.msra.mxu0 %v883_v9  ;;  %7391 = vmatprep.subr.mxu1 %v939_v20  ;;  %v888_v25 = vld [vmem:[%s13445_s0 + $0x148] sm:$0xff]  ;;  %v866_v27 = vld [vmem:[%s13445_s0 + $0x98] sm:$0xff]  ;;  %v885_v28 = vld [vmem:[%s13445_s0 + $0x130] sm:$0xff]  ;;  %13449 = vst [vmem:[#allocation14_spill] sm:$0xff] %v8330_v16  ;;  %s13536_s13 = sld [smem:[#allocation56_spill]] }
  0x48   : > { %962 = vmatprep.subr.mxu0 %v881_v10  ;;  %7392 = vmatpush3.msra.mxu1 %v891_v21  ;;  %v865_v29 = vld [vmem:[%s13445_s0 + $0x90] sm:$0xff]  ;;  %v930_v30 = vld [vmem:[%s13445_s0 + $0x298] sm:$0xff]  ;;  %v863_v31 = vld [vmem:[%s13445_s0 + $0x80] sm:$0xff] }
  0x49   : > { %963 = vmatpush1.msra.mxu0 %v880_v11  ;;  %7393 = vmatprep.subr.mxu1 %v936_v23  ;;  %v882_v32 = vld [vmem:[%s13445_s0 + $0x118] sm:$0xff]  ;;  %v927_v34 = vld [vmem:[%s13445_s0 + $0x280] sm:$0xff]  ;;  %v860_v35 = vld [vmem:[%s13445_s0 + $0x68] sm:$0xff] }
  0x4a   : > { %964 = vmatprep.subr.mxu0 %v878_v12  ;;  %7394 = vmatpush3.msra.mxu1 %v888_v25  ;;  %v862_v33 = vld [vmem:[%s13445_s0 + $0x78] sm:$0xff]  ;;  %v879_v36 = vld [vmem:[%s13445_s0 + $0x100] sm:$0xff]  ;;  %v924_v38 = vld [vmem:[%s13445_s0 + $0x268] sm:$0xff] }
  0x4b   : > { %965 = vmatpush1.msra.mxu0 %v877_v13  ;;  %7395 = vmatprep.subr.mxu1 %v933_v26  ;;  %v859_v37 = vld [vmem:[%s13445_s0 + $0x60] sm:$0xff]  ;;  %v857_v39 = vld [vmem:[%s13445_s0 + $0x50] sm:$0xff]  ;;  %v876_v40 = vld [vmem:[%s13445_s0 + $0xe8] sm:$0xff] }
  0x4c   : > { %966 = vmatprep.subr.mxu0 %v875_v14  ;;  %7396 = vmatpush3.msra.mxu1 %v885_v28  ;;  %v856_v41 = vld [vmem:[%s13445_s0 + $0x48] sm:$0xff]  ;;  %v921_v42 = vld [vmem:[%s13445_s0 + $0x250] sm:$0xff]  ;;  %v854_v43 = vld [vmem:[%s13445_s0 + $0x38] sm:$0xff] }
  0x4d   : > { %967 = vmatpush1.msra.mxu0 %v874_v15  ;;  %7397 = vmatprep.subr.mxu1 %v930_v30  ;;  %v873_v44 = vld [vmem:[%s13445_s0 + $0xd0] sm:$0xff]  ;;  %v918_v46 = vld [vmem:[%s13445_s0 + $0x238] sm:$0xff]  ;;  %v851_v48 = vld [vmem:[%s13445_s0 + $0x20] sm:$0xff] }
  0x4e   : > { %968 = vmatprep.subr.mxu0 %v872_v17  ;;  %7398 = vmatpush3.msra.mxu1 %v882_v32  ;;  %v853_v45 = vld [vmem:[%s13445_s0 + $0x30] sm:$0xff]  ;;  %v870_v49 = vld [vmem:[%s13445_s0 + $0xb8] sm:$0xff]  ;;  %v915_v51 = vld [vmem:[%s13445_s0 + $0x220] sm:$0xff] }
  0x4f   : > { %969 = vmatpush1.msra.mxu0 %v871_v19  ;;  %7399 = vmatprep.subr.mxu1 %v927_v34  ;;  %v850_v50 = vld [vmem:[%s13445_s0 + $0x18] sm:$0xff]  ;;  %v848_v52 = vld [vmem:[%s13445_s0 + $0x8] sm:$0xff]  ;;  %v867_v53 = vld [vmem:[%s13445_s0 + $0xa0] sm:$0xff] }
  0x50   : > { %970 = vmatprep.subr.mxu0 %v869_v22  ;;  %7400 = vmatpush3.msra.mxu1 %v879_v36  ;;  %v847_v54 = vld [vmem:[%s13445_s0] sm:$0xff]  ;;  %v912_v55 = vld [vmem:[%s13445_s0 + $0x208] sm:$0xff]  ;;  %v941_v57 = vld [vmem:[%s13445_s0 + $0x2f0] sm:$0xff] }
  0x51   : > { %971 = vmatpush1.msra.mxu0 %v868_v24  ;;  %7401 = vmatprep.subr.mxu1 %v924_v38  ;;  %v864_v58 = vld [vmem:[%s13445_s0 + $0x88] sm:$0xff]  ;;  %v909_v60 = vld [vmem:[%s13445_s0 + $0x1f0] sm:$0xff]  ;;  %v938_v61 = vld [vmem:[%s13445_s0 + $0x2d8] sm:$0xff] }
  0x52   : > { %972 = vmatprep.subr.mxu0 %v866_v27  ;;  %7402 = vmatpush3.msra.mxu1 %v876_v40  ;;  %v940_v59 = vld [vmem:[%s13445_s0 + $0x2e8] sm:$0xff]  ;;  %v861_v62 = vld [vmem:[%s13445_s0 + $0x70] sm:$0xff]  ;;  %v906_v0 = vld [vmem:[%s13445_s0 + $0x1d8] sm:$0xff] }
  0x53   : > { %973 = vmatpush1.msra.mxu0 %v865_v29  ;;  %7403 = vmatprep.subr.mxu1 %v921_v42  ;;  %v937_v63 = vld [vmem:[%s13445_s0 + $0x2d0] sm:$0xff]  ;;  %v935_v2 = vld [vmem:[%s13445_s0 + $0x2c0] sm:$0xff]  ;;  %v858_v3 = vld [vmem:[%s13445_s0 + $0x58] sm:$0xff] }
  0x54   : > { %974 = vmatprep.subr.mxu0 %v863_v31  ;;  %7404 = vmatpush3.msra.mxu1 %v873_v44  ;;  %v846_v4 = vld [vmem:[%s808_s8] sm:$0x3]  ;;  %v934_v5 = vld [vmem:[%s13445_s0 + $0x2b8] sm:$0xff]  ;;  %v932_v7 = vld [vmem:[%s13445_s0 + $0x2a8] sm:$0xff]  ;;  %s13340_s8 = smov 110  }
  0x55   : > { %975 = vmatpush1.msra.mxu0 %v862_v33  ;;  %7405 = vmatprep.subr.mxu1 %v918_v46  ;;  %v903_v6 = vld [vmem:[%s13445_s0 + $0x1c0] sm:$0xff]  ;;  %v900_v10 = vld [vmem:[%s13445_s0 + $0x1a8] sm:$0xff]  ;;  %v951_v11 = vrot.slane %v846_v4, %v8290_v1  ;;  %v929_v12 = vld [vmem:[%s13445_s0 + $0x290] sm:$0xff]  ;;  %v947_v23 = vrot.slane %v846_v4, %v8330_v16 }
  0x56   : > { %976 = vmatprep.subr.mxu0 %v860_v35  ;;  %7406 = vmatpush3.msra.mxu1 %v870_v49  ;;  %v855_v8 = vld [vmem:[%s13445_s0 + $0x40] sm:$0xff]  ;;  %v928_v13 = vld [vmem:[%s13445_s0 + $0x288] sm:$0xff]  ;;  %v926_v15 = vld [vmem:[%s13445_s0 + $0x278] sm:$0xff] }
  0x57   : > { %977 = vmatpush1.msra.mxu0 %v859_v37  ;;  %7407 = vmatprep.subr.mxu1 %v915_v51  ;;  %v931_v9 = vld [vmem:[%s13445_s0 + $0x2a0] sm:$0xff]  ;;  %v852_v14 = vld [vmem:[%s13445_s0 + $0x28] sm:$0xff]  ;;  %v897_v17 = vld [vmem:[%s13445_s0 + $0x190] sm:$0xff] }
  0x58   : > { %978 = vmatprep.subr.mxu0 %v857_v39  ;;  %7408 = vmatpush3.msra.mxu1 %v867_v53  ;;  %v925_v18 = vld [vmem:[%s13445_s0 + $0x270] sm:$0xff]  ;;  %v923_v20 = vld [vmem:[%s13445_s0 + $0x260] sm:$0xff]  ;;  %v922_v21 = vld [vmem:[%s13445_s0 + $0x258] sm:$0xff] }
  0x59   : > { %979 = vmatpush1.msra.mxu0 %v856_v41  ;;  %7409 = vmatprep.subr.mxu1 %v912_v55  ;;  %v849_v19 = vld [vmem:[%s13445_s0 + $0x10] sm:$0xff]  ;;  %v920_v22 = vld [vmem:[%s13445_s0 + $0x248] sm:$0xff]  ;;  %v919_v24 = vld [vmem:[%s13445_s0 + $0x240] sm:$0xff]  ;;  %v13315_v41 = vmov 0.0  }
  0x5a   : > { %980 = vmatprep.subr.mxu0 %v854_v43  ;;  %7410 = vmatpush3.msra.mxu1 %v864_v58  ;;  %v917_v25 = vld [vmem:[%s13445_s0 + $0x230] sm:$0xff]  ;;  %v916_v26 = vld [vmem:[%s13445_s0 + $0x228] sm:$0xff]  ;;  %v914_v27 = vld [vmem:[%s13445_s0 + $0x218] sm:$0xff]  ;;  %830 = vst [vmem:[#allocation2] sm:$0x77] %v13315_v41 }
  0x5b   : > { %981 = vmatpush1.msra.mxu0 %v853_v45  ;;  %7411 = vmatprep.subr.mxu1 %v909_v60  ;;  %v913_v28 = vld [vmem:[%s13445_s0 + $0x210] sm:$0xff]  ;;  %v911_v29 = vld [vmem:[%s13445_s0 + $0x200] sm:$0xff]  ;;  %v910_v30 = vld [vmem:[%s13445_s0 + $0x1f8] sm:$0xff]  ;;  %833 = vst [vmem:[#allocation3] sm:$0xff] %v13315_v41 }
  0x5c   : > { %982 = vmatprep.subr.mxu0 %v851_v48  ;;  %7412 = vmatpush3.msra.mxu1 %v861_v62  ;;  %v908_v31 = vld [vmem:[%s13445_s0 + $0x1e8] sm:$0xff]  ;;  %v907_v32 = vld [vmem:[%s13445_s0 + $0x1e0] sm:$0xff]  ;;  %v905_v33 = vld [vmem:[%s13445_s0 + $0x1d0] sm:$0xff]  ;;  %837 = vst [vmem:[#allocation3 + $0x18] sm:$0xff] %v13315_v41 }
  0x5d   : > { %983 = vmatpush1.msra.mxu0 %v850_v50  ;;  %7413 = vmatprep.subr.mxu1 %v906_v0  ;;  %v904_v34 = vld [vmem:[%s13445_s0 + $0x1c8] sm:$0xff]  ;;  %v902_v35 = vld [vmem:[%s13445_s0 + $0x1b8] sm:$0xff]  ;;  %v901_v36 = vld [vmem:[%s13445_s0 + $0x1b0] sm:$0xff]  ;;  %840 = vst [vmem:[#allocation3 + $0x30] sm:$0xff] %v13315_v41 }
  0x5e   : > { %984 = vmatprep.subr.mxu0 %v848_v52  ;;  %7414 = vmatpush3.msra.mxu1 %v858_v3  ;;  %v899_v37 = vld [vmem:[%s13445_s0 + $0x1a0] sm:$0xff]  ;;  %v898_v38 = vld [vmem:[%s13445_s0 + $0x198] sm:$0xff]  ;;  %v896_v39 = vld [vmem:[%s13445_s0 + $0x188] sm:$0xff]  ;;  %843 = vst [vmem:[#allocation3 + $0x48] sm:$0xff] %v13315_v41  ;;  %v8428_v52 = vsub.s32 2, %v8260_v56 }
  0x5f   : > { %985 = vmatpush1.msra.mxu0 %v847_v54  ;;  %7415 = vmatprep.subr.mxu1 %v903_v6  ;;  %v895_v40 = vld [vmem:[%s13445_s0 + $0x180] sm:$0xff]  ;;  %832 = vst.msk [vmem:[#allocation2 + $0x8] sm:$0x7] %vm831_vm0, %v13315_v41  ;;  %vm13379_vm0 = vcmask 883712   ;;  %s13519_s0 = smov 127  }
  0x60   : > { %986 = vmatprep.subr.mxu0 %v941_v57  ;;  %7416 = vmatpush3.msra.mxu1 %v855_v8  ;;  %v1095_v43 = vld [vmem:[%s816_s25] sm:$0x7]  ;;  %13454 = vst [vmem:[#allocation17_spill] sm:$0xff] %v8428_v52  ;;  %s13307_s25 = smov 123  }
  0x61   : > { %987 = vmatpush2.msra.mxu0 %v940_v59  ;;  %7417 = vmatprep.subr.mxu1 %v900_v10  ;;  %v1096_v45 = vld [vmem:[%s820_s26] sm:$0x7]  ;;  %v8421_v46 = vrot.slane %v1095_v43, %v8330_v16  ;;  %v8425_v51 = vrot.slane %v1095_v43, %v8290_v1  ;;  %s13467_s26 = smov 108  }
  0x62   : > { %988 = vmatprep.subr.mxu0 %v938_v61  ;;  %1018 = vmatprep.mubr.f32.mxu0 %v951_v11  ;;  %v1126_v54 = vrot.slane %v1096_v45, %v8330_v16  ;;  %v1130_v55 = vrot.slane %v1096_v45, %v8290_v1  ;;  %v8437_v61 = vrot.slane %v1095_v43, %v8428_v52 }
  0x63   : > { %989 = vmatpush2.msra.mxu0 %v937_v63  ;;  %7418 = vmatpush3.msra.mxu1 %v852_v14  ;;  %13452 = vst [vmem:[#allocation15_spill] sm:$0xff] %v8421_v46  ;;  %13453 = vst [vmem:[#allocation16_spill] sm:$0xff] %v8425_v51 }
  0x64   : > { %990 = vmatprep.subr.mxu0 %v935_v2  ;;  %7419 = vmatprep.subr.mxu1 %v897_v17  ;;  %13455 = vst [vmem:[#allocation18_spill] sm:$0xff] %v8437_v61  ;;  %v1134_v2 = vrot.slane %v1096_v45, %v8428_v52 }
  0x65   : > { %991 = vmatpush2.msra.mxu0 %v934_v5  ;;  %7420 = vmatpush3.msra.mxu1 %v849_v19 }
  0x66   : > { %992 = vmatprep.subr.mxu0 %v932_v7  ;;  %1089 = vmatprep.mubr.f32.mxu1 %v951_v11 }
  0x67   : > { %993 = vmatpush2.msra.mxu0 %v931_v9  ;;  %1090 = vmatmul.mubr.f32.vlgmr.msra.gmra.mxu1 %v947_v23 }
  0x68   : > { %994 = vmatprep.subr.mxu0 %v929_v12  ;;  %1485 = vmatprep.mubr.f32.mxu1 %v13315_v41 }
  0x69   : > { %995 = vmatpush2.msra.mxu0 %v928_v13 }
  0x6a   : > { %996 = vmatprep.subr.mxu0 %v926_v15 }
  0x6b   : > { %997 = vmatpush2.msra.mxu0 %v925_v18 }
  0x6c   : > { %998 = vmatprep.subr.mxu0 %v923_v20 }
  0x6d   : > { %999 = vmatpush2.msra.mxu0 %v922_v21 }
  0x6e   : > { %1000 = vmatprep.subr.mxu0 %v920_v22 }
  0x6f   : > { %1001 = vmatpush2.msra.mxu0 %v919_v24 }
  0x70   : > { %1002 = vmatprep.subr.mxu0 %v917_v25 }
  0x71   : > { %1003 = vmatpush2.msra.mxu0 %v916_v26 }
  0x72   : > { %1004 = vmatprep.subr.mxu0 %v914_v27 }
  0x73   : > { %1005 = vmatpush2.msra.mxu0 %v913_v28 }
  0x74   : > { %1006 = vmatprep.subr.mxu0 %v911_v29 }
  0x75   : > { %1007 = vmatpush2.msra.mxu0 %v910_v30 }
  0x76   : > { %1008 = vmatprep.subr.mxu0 %v908_v31 }
  0x77   : > { %1009 = vmatpush2.msra.mxu0 %v907_v32 }
  0x78   : > { %1010 = vmatprep.subr.mxu0 %v905_v33 }
  0x79   : > { %1011 = vmatpush2.msra.mxu0 %v904_v34 }
  0x7a   : > { %1012 = vmatprep.subr.mxu0 %v902_v35 }
  0x7b   : > { %1013 = vmatpush2.msra.mxu0 %v901_v36 }
  0x7c   : > { %1014 = vmatprep.subr.mxu0 %v899_v37 }
  0x7d   : > { %1015 = vmatpush2.msra.mxu0 %v898_v38 }
  0x7e   : > { %1016 = vmatprep.subr.mxu0 %v896_v39 }
  0x7f   : > { %1017 = vmatpush2.msra.mxu0 %v895_v40 }
  0x80   : > { %1019 = vmatmul.mubr.f32.vlgmr.msra.gmra.mxu0 %v947_v23 }
  0x81   : > { %1473 = vmatprep.mubr.f32.mxu0 %v13315_v41 }
 0x127   : > { %v7421_v42 = vpop.f32.mrf.mxu1 }
 0x129   : > { %v7422_v44 = vpop.f32.mrf.mxu1 }
 0x12a   : > { %v7423_v50 = vadd.f32 %v7422_v44, %v7421_v42 }
 0x12c   : > { %v1118_v59 = vrot.slane %v7423_v50, 7 }
 0x12e   : > { %v1141_v3 = vsel %vm13313_vm1, %v8437_v61, %v1118_v59 }
 0x12f   : > { %v1145_v4 = vsel %vm13312_vm2, %v1141_v3, %v1134_v2 }
 0x140   : > { %v1020_v48 = vpop.f32.mrf.mxu0 }
 0x141   : > { %v1116_v49 = vrot.slane %v1020_v48, 7 }
 0x142   : > { %v1022_v53 = vpop.f32.mrf.mxu0 }
 0x143   : > { %v1117_v57 = vrot.slane %v1022_v53, 7  ;;  %v1139_v58 = vsel %vm13313_vm1, %v8421_v46, %v1116_v49 }
 0x144   : > { %v1143_v62 = vsel %vm13312_vm2, %v1139_v58, %v1126_v54 }
 0x145   : > { %v1140_v60 = vsel %vm13313_vm1, %v8425_v51, %v1117_v57 }
 0x146   : > { %v1144_v63 = vsel %vm13312_vm2, %v1140_v60, %v1130_v55 }
 0x147   : > { %v1149_v0 = vcombine.low %v1143_v62, %v1144_v63 }
 0x149   : > { %1150 = vrot.lane.b32.xlu0 %v1149_v0, %s13342_s2 }
 0x14d   : > { %1152 = vrot.lane.b32.xlu0 %v1145_v4, %s13342_s2 }
 0x1bb   : > { %v1151_v5 = vpop.permute.xlu0 %1150 }
 0x1bc   : > { %v1154_v6 = vrot.slane %v1151_v5, 4 }
 0x1be   : > { %v1156_v7 = vsel %vm1155_vm5, %v1154_v6, %v1151_v5 }
 0x1bf   : > { %1163 = vst.msk [vmem:[#allocation2] sm:$0x77] %vm1162_vm6, %v1156_v7  ;;  %v1153_v8 = vpop.permute.xlu0 %1152  ;;  %vm1285_vm6 = vcmask 1042432  }
 0x1c0   : > { %v1157_v9 = vsel %vm1155_vm5, %v1154_v6, %v1153_v8 }
 0x1c1   : > { %1165 = vst.msk [vmem:[#allocation2 + $0x8] sm:$0x7] %vm1164_vm7, %v1157_v9  ;;  %vm13311_vm7 = vcmask 1045504  }
 0x1c6   : > { %v8449_v10 = vld [vmem:[#allocation2] sm:$0x77] }
 0x1c7   : > { %1276 = vrot.lane.b32.xlu0 %v8449_v10, %s13301_s27  ;;  %v8459_v12 = vcombine.high %v8449_v10, %v8449_v10  ;;  %v1231_v13 = vrot.slane %v8449_v10, 1  ;;  %v1202_v15 = vrot.slane %v8449_v10, 7  ;;  %v1217_v20 = vcombine.low %v8449_v10, %v8449_v10 }
 0x1c8   : > { %v8453_v11 = vld [vmem:[#allocation2 + $0x8] sm:$0x7]  ;;  %v1246_v23 = vrot.slane %v8449_v10, 6  ;;  %v1187_v27 = vrot.slane %v8449_v10, 2  ;;  %v1261_v29 = vrot.slane %v8449_v10, 3  ;;  %v1172_v33 = vrot.slane %v8449_v10, 5 }
 0x1c9   : > { %1280 = vrot.lane.b32.xlu1 %v8453_v11, %s13301_s27  ;;  %v1233_v14 = vrot.slane %v8453_v11, 1  ;;  %v1248_v17 = vrot.slane %v8453_v11, 6  ;;  %v1218_v18 = vcombine.low %v8453_v11, %v8453_v11  ;;  %v1189_v19 = vrot.slane %v8453_v11, 2 }
 0x1ca   : > { %v1204_v21 = vrot.slane %v8453_v11, 7  ;;  %v1247_v22 = vrot.slane %v8459_v12, 6  ;;  %v1188_v24 = vrot.slane %v8459_v12, 2  ;;  %v1263_v25 = vrot.slane %v8453_v11, 3 }
 0x1cb   : > { %1278 = vrot.lane.b32.xlu0 %v8459_v12, %s13301_s27  ;;  %v1203_v26 = vrot.slane %v8459_v12, 7  ;;  %v1262_v28 = vrot.slane %v8459_v12, 3  ;;  %v1174_v30 = vrot.slane %v8453_v11, 5  ;;  %v1232_v31 = vrot.slane %v8459_v12, 1  ;;  %s13468_s27 = smov 109  }
 0x1cc   : > { %v1173_v32 = vrot.slane %v8459_v12, 5 }
 0x1cd   : > { %1221 = vrot.lane.b32.xlu1 %v8449_v10, %s13297_s28 }
 0x1cf   : > { %1234 = vrot.lane.b32.xlu0 %v1231_v13, %s13299_s14 }
 0x1d1   : > { %1238 = vrot.lane.b32.xlu1 %v1233_v14, %s13299_s14 }
 0x1d3   : > { %1205 = vrot.lane.b32.xlu0 %v1202_v15, %s13340_s8 }
 0x1d5   : > { %1253 = vrot.lane.b32.xlu1 %v1248_v17, %s13303_s22 }
 0x1d7   : > { %1223 = vrot.lane.b32.xlu0 %v1218_v18, %s13297_s28 }
 0x1d9   : > { %1194 = vrot.lane.b32.xlu1 %v1189_v19, %s13305_s7 }
 0x1db   : > { %1219 = vrot.lane.b32.xlu0 %v1217_v20, %s13297_s28  ;;  %s13466_s28 = smov 90  }
 0x1dd   : > { %1209 = vrot.lane.b32.xlu1 %v1204_v21, %s13340_s8 }
 0x1df   : > { %1251 = vrot.lane.b32.xlu0 %v1247_v22, %s13303_s22 }
 0x1e1   : > { %1249 = vrot.lane.b32.xlu1 %v1246_v23, %s13303_s22  ;;  %s13515_s22 = smov 24  }
 0x1e3   : > { %1192 = vrot.lane.b32.xlu0 %v1188_v24, %s13305_s7 }
 0x1e5   : > { %1268 = vrot.lane.b32.xlu1 %v1263_v25, %s13309_s30 }
 0x1e7   : > { %1207 = vrot.lane.b32.xlu0 %v1203_v26, %s13340_s8 }
 0x1e9   : > { %1190 = vrot.lane.b32.xlu1 %v1187_v27, %s13305_s7  ;;  %s13459_s7 = sld [smem:[#allocation49_spill]] }
 0x1eb   : > { %1266 = vrot.lane.b32.xlu0 %v1262_v28, %s13309_s30 }
 0x1ed   : > { %1264 = vrot.lane.b32.xlu1 %v1261_v29, %s13309_s30  ;;  %s13458_s30 = sld [smem:[#allocation50_spill]] }
 0x1ef   : > { %1179 = vrot.lane.b32.xlu0 %v1174_v30, %s13338_s3 }
 0x1f1   : > { %1236 = vrot.lane.b32.xlu1 %v1232_v31, %s13299_s14  ;;  %s13469_s14 = smov 123  }
 0x1f5   : > { %1177 = vrot.lane.b32.xlu1 %v1173_v32, %s13338_s3 }
 0x1f9   : > { %1175 = vrot.lane.b32.xlu1 %v1172_v33, %s13338_s3 }
 0x239   : > { %v1277_v34 = vpop.permute.xlu0 %1276 }
 0x23b   : > { %v1281_v35 = vpop.permute.xlu1 %1280 }
 0x23c   : > { %1370 = vrot.lane.b32.xlu1 %v1281_v35, %s13307_s25 }
 0x23d   : > { %v1279_v36 = vpop.permute.xlu0 %1278 }
 0x23e   : > { %v1284_v37 = vsel %vm1282_vm8, %v1279_v36, %v1281_v35  ;;  %v1283_v40 = vsel %vm1282_vm8, %v1277_v34, %v1279_v36 }
 0x23f   : > { %v1222_v38 = vpop.permute.xlu1 %1221  ;;  %1368 = vrot.lane.b32.xlu0 %v1284_v37, %s13307_s25 }
 0x241   : > { %v1235_v39 = vpop.permute.xlu0 %1234 }
 0x243   : > { %v1239_v42 = vpop.permute.xlu1 %1238  ;;  %1366 = vrot.lane.b32.xlu0 %v1283_v40, %s13307_s25 }
 0x245   : > { %v1206_v43 = vpop.permute.xlu0 %1205 }
 0x247   : > { %v1254_v44 = vpop.permute.xlu1 %1253 }
 0x248   : > { %v1306_v60 = vsel %vm13312_vm2, %v1239_v42, %v1254_v44 }
 0x249   : > { %v1224_v45 = vpop.permute.xlu0 %1223 }
 0x24a   : > { %v1227_v9 = vsel %vm13380_vm14, %v1222_v38, %v1224_v45 }
 0x24b   : > { %v8512_v48 = vpop.permute.xlu1 %1194 }
 0x24d   : > { %v1220_v49 = vpop.permute.xlu0 %1219 }
 0x24e   : > { %v1226_v26 = vsel %vm13380_vm14, %v1220_v49, %v1222_v38  ;;  %v1597_v49 = vld [vmem:[%s13457_s9 + $0x10] sm:$0xff] }
 0x24f   : > { %v1210_v50 = vpop.permute.xlu1 %1209 }
 0x250   : > { %v1295_v53 = vsel %vm13313_vm1, %v8512_v48, %v1210_v50 }
 0x251   : > { %v1252_v54 = vpop.permute.xlu0 %1251  ;;  %v1299_v55 = vsel %vm13353_vm9, %v1295_v53, %v1224_v45  ;;  %v1598_v45 = vld [vmem:[%s13457_s9 + $0x18] sm:$0xff]  ;;  %v1596_v53 = vld [vmem:[%s13457_s9 + $0x8] sm:$0xff] }
 0x252   : > { %v1303_v57 = vsel %vm1300_vm10, %v1299_v55, %v1239_v42  ;;  %v1257_v13 = vsel %vm1255_vm15, %v1252_v54, %v1254_v44  ;;  %v7908_v44 = vmov 0  }
 0x253   : > { %v1250_v58 = vpop.permute.xlu1 %1249  ;;  %1358 = vrot.lane.b32.xlu1 %v1303_v57, %s13307_s25  ;;  %7819 = vset.pattern.permute.xlu0 %v7908_v44 }
 0x254   : > { %v1256_v24 = vsel %vm1255_vm15, %v1250_v58, %v1252_v54  ;;  %7820 = vset.pattern.permute.xlu1 %v7908_v44 }
 0x255   : > { %v1193_v59 = vpop.permute.xlu0 %1192 }
 0x256   : > { %v1198_v5 = vsel %vm1196_vm13, %v1193_v59, %v8512_v48 }
 0x257   : > { %v1269_v62 = vpop.permute.xlu1 %1268 }
 0x258   : > { %v1310_v63 = vsel %vm1307_vm11, %v1306_v60, %v1269_v62 }
 0x259   : > { %1364 = vrot.lane.b32.xlu0 %v1310_v63, %s13307_s25  ;;  %v1208_v0 = vpop.permute.xlu0 %1207 }
 0x25a   : > { %v1213_v3 = vsel %vm1211_vm12, %v1208_v0, %v1210_v50  ;;  %v1212_v15 = vsel %vm1211_vm12, %v1206_v43, %v1208_v0  ;;  %v1317_v43 = vld [vmem:[%s13456_s5 + $0x10] sm:$0xff]  ;;  %v1595_v50 = vld [vmem:[%s13457_s9] sm:$0xff] }
 0x25b   : > { %v1191_v2 = vpop.permute.xlu1 %1190  ;;  %v1294_v6 = vsel %vm13313_vm1, %v1198_v5, %v1213_v3 }
 0x25c   : > { %v1197_v8 = vsel %vm1196_vm13, %v1191_v2, %v1193_v59  ;;  %v1298_v19 = vsel %vm13353_vm9, %v1294_v6, %v1227_v9 }
 0x25d   : > { %v1267_v7 = vpop.permute.xlu0 %1266  ;;  %v1293_v20 = vsel %vm13313_vm1, %v1197_v8, %v1212_v15  ;;  %v1311_v15 = vld [vmem:[%s13458_s30] sm:$0xff] }
 0x25e   : > { %v1272_v21 = vsel %vm1270_vm3, %v1267_v7, %v1269_v62  ;;  %v1297_v31 = vsel %vm13353_vm9, %v1293_v20, %v1226_v26  ;;  %v1314_v20 = vld [vmem:[%s13458_s30 + $0x18] sm:$0xff] }
 0x25f   : > { %v1265_v4 = vpop.permute.xlu1 %1264 }
 0x260   : > { %v1271_v32 = vsel %vm1270_vm3, %v1265_v4, %v1267_v7 }
 0x261   : > { %v1180_v27 = vpop.permute.xlu0 %1179 }
 0x262   : > { %v1288_v34 = vsel %vm1285_vm6, %v8453_v11, %v1180_v27 }
 0x263   : > { %v1237_v14 = vpop.permute.xlu1 %1236 }
 0x264   : > { %v1241_v17 = vsel %vm13379_vm0, %v1235_v39, %v1237_v14  ;;  %v1242_v18 = vsel %vm13379_vm0, %v1237_v14, %v1239_v42  ;;  %v1292_v39 = vsel %vm13311_vm7, %v1288_v34, %v8512_v48  ;;  %v1315_v48 = vld [vmem:[%s13456_s5] sm:$0xff] }
 0x265   : > { %v1302_v22 = vsel %vm1300_vm10, %v1298_v19, %v1242_v18  ;;  %v1305_v23 = vsel %vm13312_vm2, %v1242_v18, %v1257_v13  ;;  %v1304_v29 = vsel %vm13312_vm2, %v1241_v17, %v1256_v24  ;;  %v1301_v33 = vsel %vm1300_vm10, %v1297_v31, %v1241_v17  ;;  %v1313_v17 = vld [vmem:[%s13458_s30 + $0x10] sm:$0xff]  ;;  %v1312_v19 = vld [vmem:[%s13458_s30 + $0x8] sm:$0xff] }
 0x266   : > { %1356 = vrot.lane.b32.xlu0 %v1302_v22, %s13307_s25  ;;  %v1309_v25 = vsel %vm1307_vm11, %v1305_v23, %v1272_v21  ;;  %v1308_v35 = vsel %vm1307_vm11, %v1304_v29, %v1271_v32  ;;  %vm1372_vm10 = vcmask 1006592   ;;  %vm1390_vm11 = vcmask 220160  }
 0x267   : > { %1362 = vrot.lane.b32.xlu1 %v1309_v25, %s13307_s25  ;;  %v1178_v28 = vpop.permute.xlu1 %1177 }
 0x268   : > { %v1183_v30 = vsel %vm1181_vm4, %v1178_v28, %v1180_v27 }
 0x269   : > { %v1287_v37 = vsel %vm1285_vm6, %v8459_v12, %v1183_v30  ;;  %v1318_v12 = vld [vmem:[%s13456_s5 + $0x18] sm:$0xff] }
 0x26a   : > { %1354 = vrot.lane.b32.xlu0 %v1301_v33, %s13307_s25  ;;  %v1291_v11 = vsel %vm13311_vm7, %v1287_v37, %v1198_v5 }
 0x26b   : > { %1360 = vrot.lane.b32.xlu1 %v1308_v35, %s13307_s25  ;;  %v1176_v36 = vpop.permute.xlu1 %1175 }
 0x26c   : > { %v1182_v38 = vsel %vm1181_vm4, %v1176_v36, %v1178_v28  ;;  %v8634_v28 = vld [vmem:[%s13459_s7] sm:$0x7]  ;;  %s13518_s7 = smov 110  }
 0x26d   : > { %v1286_v40 = vsel %vm1285_vm6, %v8449_v10, %v1182_v38  ;;  %v1316_v10 = vld [vmem:[%s13456_s5 + $0x8] sm:$0xff]  ;;  %v8642_v35 = vrot.slane %v8634_v28, %v8330_v16 }
 0x26e   : > { %1352 = vrot.lane.b32.xlu0 %v1292_v39, %s13307_s25  ;;  %v1290_v42 = vsel %vm13311_vm7, %v1286_v40, %v1197_v8 }
 0x26f   : > { %1350 = vrot.lane.b32.xlu1 %v1291_v11, %s13307_s25  ;;  %13460 = vst [vmem:[#allocation19_spill] sm:$0xff] %v8642_v35 }
 0x272   : > { %1336 = vperm.xlu0 %7819, %v1318_v12   ;;  %v8647_v12 = vrot.slane %v8634_v28, %v8290_v1 }
 0x273   : > { %1348 = vrot.lane.b32.xlu1 %v1290_v42, %s13307_s25  ;;  %s13463_s25 = smov 91  }
 0x274   : > { %13461 = vst [vmem:[#allocation20_spill] sm:$0xff] %v8647_v12 }
 0x276   : > { %1326 = vperm.xlu0 %7819, %v1316_v10  }
 0x277   : > { %1331 = vperm.xlu1 %7820, %v1317_v43  }
 0x27a   : > { %1321 = vperm.xlu0 %7819, %v1315_v48  }
 0x27b   : > { %1616 = vperm.xlu1 %7820, %v1598_v45  }
 0x27e   : > { %1601 = vperm.xlu0 %7819, %v1595_v50  }
 0x27f   : > { %1611 = vperm.xlu1 %7820, %v1597_v49  }
 0x283   : > { %1606 = vperm.xlu1 %7820, %v1596_v53  }
 0x2ae   : > { %v1371_v54 = vpop.permute.xlu1 %1370 }
 0x2b1   : > { %v1369_v55 = vpop.permute.xlu0 %1368 }
 0x2b2   : > { %v1380_v57 = vsel %vm1372_vm10, %v1369_v55, %v1371_v54 }
 0x2b3   : > { %7340 = vmatprep.subr.msk.mxu0 %vm1285_vm6, %v1380_v57  ;;  %7765 = vmatprep.subr.msk.mxu1 %vm1285_vm6, %v1380_v57 }
 0x2b5   : > { %v1367_v58 = vpop.permute.xlu0 %1366 }
 0x2b6   : > { %v1379_v59 = vsel %vm1372_vm10, %v1367_v58, %v1369_v55 }
 0x2b7   : > { %7341 = vmatpush1.msk.msra.mxu0 %vm1285_vm6, %v1379_v59  ;;  %7769 = vmatpush1.msk.msra.mxu1 %vm1285_vm6, %v1379_v59 }
 0x2c5   : > { %v1359_v62 = vpop.permute.xlu1 %1358 }
 0x2cb   : > { %v1365_v60 = vpop.permute.xlu0 %1364 }
 0x2d8   : > { %v1357_v63 = vpop.permute.xlu0 %1356 }
 0x2d9   : > { %v1363_v0 = vpop.permute.xlu1 %1362  ;;  %v1376_v6 = vsel %vm1372_vm10, %v1357_v63, %v1359_v62 }
 0x2da   : > { %v1378_v2 = vsel %vm1372_vm10, %v1363_v0, %v1365_v60 }
 0x2db   : > { %1435 = vmatprep.subr.mxu0 %v1378_v2  ;;  %7766 = vmatprep.subr.mxu1 %v1378_v2 }
 0x2dc   : > { %v1355_v3 = vpop.permute.xlu0 %1354 }
 0x2dd   : > { %v1361_v4 = vpop.permute.xlu1 %1360  ;;  %v1375_v7 = vsel %vm1372_vm10, %v1355_v3, %v1357_v63 }
 0x2de   : > { %v1377_v5 = vsel %vm1372_vm10, %v1361_v4, %v1363_v0 }
 0x2df   : > { %1436 = vmatpush1.msra.mxu0 %v1377_v5  ;;  %7770 = vmatpush1.msra.mxu1 %v1377_v5 }
 0x2e0   : > { %v1353_v8 = vpop.permute.xlu0 %1352  ;;  %1437 = vmatprep.subr.mxu0 %v1376_v6  ;;  %7767 = vmatprep.subr.mxu1 %v1376_v6 }
 0x2e1   : > { %1438 = vmatpush1.msra.mxu0 %v1375_v7  ;;  %7771 = vmatpush1.msra.mxu1 %v1375_v7  ;;  %v1351_v9 = vpop.permute.xlu1 %1350 }
 0x2e2   : > { %v1374_v13 = vsel %vm1372_vm10, %v1351_v9, %v1353_v8 }
 0x2e3   : > { %1439 = vmatprep.subr.mxu0 %v1374_v13  ;;  %7768 = vmatprep.subr.mxu1 %v1374_v13 }
 0x2e5   : > { %v1349_v14 = vpop.permute.xlu1 %1348 }
 0x2e6   : > { %v1373_v18 = vsel %vm1372_vm10, %v1349_v14, %v1351_v9 }
 0x2e7   : > { %1440 = vmatpush1.msra.mxu0 %v1373_v18  ;;  %7772 = vmatpush1.msra.mxu1 %v1373_v18 }
 0x2e8   : > { %7342 = vmatmul.mubr.msk.f32.vlgmr.msra.gmra.mxu0 %vm1390_vm11, %v1311_v15  ;;  %7344 = vmatmul.mubr.msk.f32.vlgmr.msra.gmra.mxu1 %vm1390_vm11, %v1313_v17 }
 0x2e9   : > { %7668 = vmatprep.subr.msk.mxu1 %vm1285_vm6, %v1371_v54  ;;  %1479 = vmatprep.mubr.f32.mxu0 %v13315_v41 }
 0x2ea   : > { %7669 = vmatpush3.msk.msra.mxu1 %vm1285_vm6, %v1371_v54  ;;  %1491 = vmatprep.mubr.f32.mxu1 %v13315_v41 }
 0x2eb   : > { %7670 = vmatprep.subr.mxu1 %v1365_v60 }
 0x2ec   : > { %7671 = vmatpush3.msra.mxu1 %v1365_v60  ;;  %7343 = vmatmul.mubr.msk.f32.gmra.mxu0 %vm1390_vm11, %v1312_v19 }
 0x2ed   : > { %7345 = vmatmul.mubr.msk.f32.gmra.mxu1 %vm1390_vm11, %v1314_v20  ;;  %7672 = vmatprep.subr.mxu1 %v1359_v62  ;;  %v8625_v21 = vpop.permute.xlu0 %1336 }
 0x2ee   : > { %7673 = vmatpush3.msra.mxu1 %v1359_v62  ;;  %7676 = vmatprep.mubr.msk.f32.mxu1 %vm1390_vm11, %v1311_v15 }
 0x2ef   : > { %7674 = vmatprep.subr.mxu1 %v1353_v8  ;;  %2618 = vmatprep.mubr.f32.mxu0 %v13315_v41 }
 0x2f0   : > { %7675 = vmatpush3.msra.mxu1 %v1353_v8 }
 0x2f1   : > { %7677 = vmatmul.mubr.msk.f32.vlgmr.msra.gmra.mxu1 %vm1390_vm11, %v1312_v19  ;;  %v1327_v23 = vpop.permute.xlu0 %1326 }
 0x2f2   : > { %7679 = vmatprep.mubr.msk.f32.mxu1 %vm1390_vm11, %v1313_v17  ;;  %v8627_v22 = vpop.permute.xlu1 %1331 }
 0x2f5   : > { %7680 = vmatmul.mubr.msk.f32.gmra.mxu1 %vm1390_vm11, %v1314_v20  ;;  %v1322_v25 = vpop.permute.xlu0 %1321 }
 0x2f6   : > { %v8629_v24 = vpop.permute.xlu1 %1616 }
 0x2f9   : > { %v1602_v36 = vpop.permute.xlu0 %1601 }
 0x2fa   : > { %v8636_v29 = vpop.permute.xlu1 %1611 }
 0x2fe   : > { %v1607_v2 = vpop.permute.xlu1 %1606 }
 0x3a8   : > { %v1475_v26 = vpop.f32.mrf.mxu0  ;;  %v1487_v27 = vpop.f32.mrf.mxu1 }
 0x3a9   : > { %v1476_v30 = vadd.f32 %v1475_v26, %v1322_v25  ;;  %v1488_v31 = vadd.f32 %v1487_v27, %v8627_v22 }
 0x3aa   : > { %v1477_v32 = vpop.f32.mrf.mxu0  ;;  %v1489_v33 = vpop.f32.mrf.mxu1 }
 0x3ab   : > { %vm1589_vm6 = vcmp.ge.f32.partialorder %v1488_v31, 0.0  ;;  %v1625_v34 = vmul.f32 %v8636_v29, %v1488_v31  ;;  %v1478_v37 = vadd.f32 %v1477_v32, %v1322_v25  ;;  %v1490_v38 = vadd.f32 %v1489_v33, %v8627_v22 }
 0x3ac   : > { %v1481_v39 = vpop.f32.mrf.mxu0  ;;  %v1619_v11 = vmul.f32 %v1602_v36, %v1476_v30  ;;  %vm1583_vm11 = vcmp.ge.f32.partialorder %v1476_v30, 0.0 }
 0x3ad   : > { %v1493_v40 = vpop.f32.mrf.mxu1  ;;  %v1637_v42 = vsel %vm1589_vm6, %v1488_v31, %v1625_v34  ;;  %vm1590_vm7 = vcmp.ge.f32.partialorder %v1490_v38, 0.0  ;;  %v1626_v43 = vmul.f32 %v8636_v29, %v1490_v38  ;;  %v1620_v10 = vmul.f32 %v1602_v36, %v1478_v37 }
 0x3ae   : > { %v1483_v44 = vpop.f32.mrf.mxu0  ;;  %v1494_v45 = vadd.f32 %v1493_v40, %v8625_v21  ;;  %vm1584_vm2 = vcmp.ge.f32.partialorder %v1478_v37, 0.0  ;;  %v1665_v50 = vmul.f32 %v8642_v35, %v1637_v42  ;;  %v1631_v57 = vsel %vm1583_vm11, %v1476_v30, %v1619_v11 }
 0x3af   : > { %v1495_v48 = vpop.f32.mrf.mxu1  ;;  %v1638_v53 = vsel %vm1590_vm7, %v1490_v38, %v1626_v43  ;;  %v1484_v54 = vadd.f32 %v1483_v44, %v1327_v23  ;;  %v1482_v60 = vadd.f32 %v1481_v39, %v1327_v23  ;;  %v1632_v0 = vsel %vm1584_vm2, %v1478_v37, %v1620_v10 }
 0x3b0   : > { %v1496_v49 = vadd.f32 %v1495_v48, %v8625_v21  ;;  %1695 = vrot.lane.b32.xlu0 %v1665_v50, %s13342_s2  ;;  %v1666_v59 = vmul.f32 %v8647_v12, %v1638_v53  ;;  %v1628_v62 = vmul.f32 %v8629_v24, %v1494_v45  ;;  %vm1592_vm1 = vcmp.ge.f32.partialorder %v1494_v45, 0.0 }
 0x3b1   : > { %v7678_v55 = vpop.f32.mrf.mxu1  ;;  %v1659_v3 = vmul.f32 %v8642_v35, %v1631_v57  ;;  %v1623_v4 = vmul.f32 %v1607_v2, %v1484_v54  ;;  %vm1587_vm7 = vcmp.ge.f32.partialorder %v1484_v54, 0.0  ;;  %v1660_v8 = vmul.f32 %v8647_v12, %v1632_v0 }
 0x3b2   : > { %vm1593_vm6 = vcmp.ge.f32.partialorder %v1496_v49, 0.0  ;;  %v1629_v58 = vmul.f32 %v8629_v24, %v1496_v49  ;;  %1697 = vrot.lane.b32.xlu1 %v1666_v59, %s13342_s2  ;;  %v1622_v9 = vmul.f32 %v1607_v2, %v1482_v60  ;;  %v1570_v13 = vadd.f32 %v7678_v55, %v1327_v23 }
 0x3b3   : > { %v1564_v63 = vpop.f32.mrf.mxu1  ;;  %v1640_v15 = vsel %vm1592_vm1, %v1494_v45, %v1628_v62  ;;  %vm835_vm2 = vcmask 949248   ;;  %vm1586_vm11 = vcmp.ge.f32.partialorder %v1482_v60, 0.0  ;;  %v1635_v20 = vsel %vm1587_vm7, %v1484_v54, %v1623_v4 }
 0x3b4   : > { %v1565_v5 = vadd.f32 %v1564_v63, %v1322_v25  ;;  %v1641_v7 = vsel %vm1593_vm6, %v1496_v49, %v1629_v58  ;;  %1683 = vrot.lane.b32.xlu0 %v1659_v3, %s13342_s2  ;;  %836 = vst.msk [vmem:[#allocation3 + $0x10] sm:$0xff] %vm835_vm2, %v13315_v41  ;;  %839 = vst.msk [vmem:[#allocation3 + $0x28] sm:$0xff] %vm835_vm2, %v13315_v41  ;;  %v1668_v23 = vmul.f32 %v8642_v35, %v1640_v15 }
 0x3b5   : > { %v7681_v6 = vpop.f32.mrf.mxu1  ;;  %v1669_v17 = vmul.f32 %v8647_v12, %v1641_v7  ;;  %842 = vst.msk [vmem:[#allocation3 + $0x40] sm:$0xff] %vm835_vm2, %v13315_v41  ;;  %845 = vst.msk [vmem:[#allocation3 + $0x58] sm:$0xff] %vm835_vm2, %v13315_v41  ;;  %v1624_v25 = vmul.f32 %v1607_v2, %v1570_v13  ;;  %v1634_v27 = vsel %vm1586_vm11, %v1482_v60, %v1622_v9  ;;  %vm1588_vm6 = vcmp.ge.f32.partialorder %v1570_v13, 0.0 }
 0x3b6   : > { %1685 = vrot.lane.b32.xlu1 %v1660_v8, %s13342_s2  ;;  %v1621_v18 = vmul.f32 %v1602_v36, %v1565_v5  ;;  %vm1585_vm1 = vcmp.ge.f32.partialorder %v1565_v5, 0.0  ;;  %v1580_v26 = vadd.f32 %v7681_v6, %v8625_v21  ;;  %v1663_v30 = vmul.f32 %v8647_v12, %v1635_v20 }
 0x3b7   : > { %v1574_v14 = vpop.f32.mrf.mxu1  ;;  %v1662_v33 = vmul.f32 %v8642_v35, %v1634_v27  ;;  %v1636_v34 = vsel %vm1588_vm6, %v1570_v13, %v1624_v25  ;;  %vm13378_vm11 = vcmask 1047744  }
 0x3b8   : > { %v1575_v19 = vadd.f32 %v1574_v14, %v8627_v22  ;;  %1703 = vrot.lane.b32.xlu0 %v1669_v17, %s13342_s2  ;;  %v1633_v32 = vsel %vm1585_vm1, %v1565_v5, %v1621_v18  ;;  %v8677_v22 = vrot.slane %v8634_v28, %v8428_v52  ;;  %v1630_v21 = vmul.f32 %v8629_v24, %v1580_v26 }
 0x3b9   : > { %vm1594_vm2 = vcmp.ge.f32.partialorder %v1580_v26, 0.0  ;;  %vm13354_vm1 = vcmask 261120  }
 0x3ba   : > { %1701 = vrot.lane.b32.xlu1 %v1668_v23, %s13342_s2  ;;  %v1627_v31 = vmul.f32 %v8636_v29, %v1575_v19  ;;  %13462 = vst [vmem:[#allocation21_spill] sm:$0xff] %v8677_v22  ;;  %vm1591_vm7 = vcmp.ge.f32.partialorder %v1575_v19, 0.0  ;;  %v1661_v36 = vmul.f32 %v8677_v22, %v1633_v32  ;;  %v1664_v29 = vmul.f32 %v8677_v22, %v1636_v34 }
 0x3bb   : > { %v1642_v28 = vsel %vm1594_vm2, %v1580_v26, %v1630_v21 }
 0x3bc   : > { %1691 = vrot.lane.b32.xlu0 %v1663_v30, %s13342_s2  ;;  %v1639_v37 = vsel %vm1591_vm7, %v1575_v19, %v1627_v31  ;;  %v1670_v24 = vmul.f32 %v8677_v22, %v1642_v28 }
 0x3bd   : > { %v1667_v38 = vmul.f32 %v8677_v22, %v1639_v37 }
 0x3be   : > { %1689 = vrot.lane.b32.xlu1 %v1662_v33, %s13342_s2 }
 0x3c0   : > { %1687 = vrot.lane.b32.xlu0 %v1661_v36, %s13342_s2 }
 0x3c2   : > { %1693 = vrot.lane.b32.xlu1 %v1664_v29, %s13342_s2 }
 0x3c4   : > { %1699 = vrot.lane.b32.xlu0 %v1667_v38, %s13342_s2 }
 0x3c6   : > { %1705 = vrot.lane.b32.xlu1 %v1670_v24, %s13342_s2 }
 0x422   : > { %v1696_v39 = vpop.permute.xlu0 %1695 }
 0x423   : > { %1734 = vst.msk [vmem:[#allocation3 + $0x30] sm:$0xff] %vm13378_vm11, %v1696_v39 }
 0x424   : > { %v1698_v11 = vpop.permute.xlu1 %1697 }
 0x425   : > { %v1711_v62 = vsel %vm1155_vm5, %v1696_v39, %v1698_v11 }
 0x426   : > { %v1684_v40 = vpop.permute.xlu0 %1683 }
 0x427   : > { %1728 = vst.msk [vmem:[#allocation3] sm:$0xff] %vm13378_vm11, %v1684_v40 }
 0x428   : > { %v1686_v42 = vpop.permute.xlu1 %1685 }
 0x429   : > { %v1707_v63 = vsel %vm1155_vm5, %v1684_v40, %v1686_v42 }
 0x42a   : > { %v8693_v43 = vpop.permute.xlu0 %1703  ;;  %v1746_v44 = vld [vmem:[#allocation3 + $0x30] sm:$0xff] }
 0x42b   : > { %1840 = vrot.lane.b32.xlu0 %v1746_v44, %s13340_s8 }
 0x42c   : > { %v8696_v10 = vpop.permute.xlu1 %1701 }
 0x42d   : > { %1737 = vst.msk [vmem:[#allocation3 + $0x48] sm:$0xff] %vm13378_vm11, %v8696_v10  ;;  %v1713_v3 = vsel %vm1155_vm5, %v8696_v10, %v8693_v43 }
 0x42e   : > { %v8700_v45 = vpop.permute.xlu0 %1691  ;;  %v1740_v48 = vld [vmem:[#allocation3] sm:$0xff] }
 0x42f   : > { %1764 = vrot.lane.b32.xlu1 %v1740_v48, %s13338_s3  ;;  %1828 = vrot.lane.b32.xlu0 %v1740_v48, %s13340_s8 }
 0x430   : > { %v8704_v49 = vpop.permute.xlu1 %1689 }
 0x431   : > { %1731 = vst.msk [vmem:[#allocation3 + $0x18] sm:$0xff] %vm13378_vm11, %v8704_v49  ;;  %v1709_v4 = vsel %vm1155_vm5, %v8704_v49, %v8700_v45 }
 0x432   : > { %v1688_v50 = vpop.permute.xlu0 %1687 }
 0x433   : > { %v1708_v53 = vsel %vm1155_vm5, %v1686_v42, %v1688_v50  ;;  %1968 = vrot.lane.b32.xlu1 %v1746_v44, %s13463_s25  ;;  %1808 = vrot.lane.b32.xlu0 %v1746_v44, %s13464_s4 }
 0x434   : > { %1730 = vst.msk [vmem:[#allocation3 + $0x10] sm:$0xff] %vm1255_vm15, %v1708_v53  ;;  %v1694_v54 = vpop.permute.xlu1 %1693  ;;  %v1749_v0 = vld [vmem:[#allocation3 + $0x48] sm:$0xff] }
 0x435   : > { %v1710_v55 = vsel %vm1155_vm5, %v8700_v45, %v1694_v54 }
 0x436   : > { %1733 = vst.msk [vmem:[#allocation3 + $0x28] sm:$0xff] %vm1255_vm15, %v1710_v55  ;;  %v1700_v57 = vpop.permute.xlu0 %1699 }
 0x437   : > { %v1712_v58 = vsel %vm1155_vm5, %v1698_v11, %v1700_v57  ;;  %1956 = vrot.lane.b32.xlu1 %v1740_v48, %s13463_s25  ;;  %1796 = vrot.lane.b32.xlu0 %v1740_v48, %s13464_s4 }
 0x438   : > { %1736 = vst.msk [vmem:[#allocation3 + $0x40] sm:$0xff] %vm1255_vm15, %v1712_v58  ;;  %v1706_v59 = vpop.permute.xlu1 %1705  ;;  %v1743_v2 = vld [vmem:[#allocation3 + $0x18] sm:$0xff] }
 0x439   : > { %v1714_v60 = vsel %vm1155_vm5, %v8693_v43, %v1706_v59 }
 0x43a   : > { %1739 = vst.msk [vmem:[#allocation3 + $0x58] sm:$0xff] %vm1255_vm15, %v1714_v60 }
 0x43b   : > { %1936 = vrot.lane.b32.xlu1 %v1746_v44, %s13465_s1  ;;  %1776 = vrot.lane.b32.xlu0 %v1746_v44, %s13338_s3  ;;  %v1742_v26 = vld [vmem:[#allocation3 + $0x10] sm:$0xff] }
 0x43d   : > { %v8788_v8 = vld [vmem:[#allocation3 + $0x28] sm:$0xff] }
 0x43f   : > { %1924 = vrot.lane.b32.xlu1 %v1740_v48, %s13465_s1  ;;  %2000 = vrot.lane.b32.xlu0 %v1746_v44, %s13466_s28  ;;  %v1748_v50 = vld [vmem:[#allocation3 + $0x40] sm:$0xff] }
 0x441   : > { %v1751_v24 = vld [vmem:[#allocation3 + $0x58] sm:$0xff] }
 0x443   : > { %1904 = vrot.lane.b32.xlu1 %v1746_v44, %s13467_s26  ;;  %1988 = vrot.lane.b32.xlu0 %v1740_v48, %s13466_s28 }
 0x447   : > { %1892 = vrot.lane.b32.xlu1 %v1740_v48, %s13467_s26  ;;  %1860 = vrot.lane.b32.xlu0 %v1740_v48, %s13468_s27 }
 0x44b   : > { %1872 = vrot.lane.b32.xlu1 %v1746_v44, %s13468_s27  ;;  %1842 = vrot.lane.b32.xlu0 %v1711_v62, %s13340_s8 }
 0x44f   : > { %2068 = vrot.lane.b32.xlu1 %v1746_v44, %s13469_s14  ;;  %1830 = vrot.lane.b32.xlu0 %v1707_v63, %s13340_s8 }
 0x453   : > { %2056 = vrot.lane.b32.xlu1 %v1740_v48, %s13469_s14  ;;  %1810 = vrot.lane.b32.xlu0 %v1711_v62, %s13464_s4 }
 0x457   : > { %1766 = vrot.lane.b32.xlu1 %v1707_v63, %s13338_s3  ;;  %1798 = vrot.lane.b32.xlu0 %v1707_v63, %s13464_s4 }
 0x45b   : > { %2002 = vrot.lane.b32.xlu1 %v1711_v62, %s13466_s28  ;;  %1778 = vrot.lane.b32.xlu0 %v1711_v62, %s13338_s3 }
 0x45f   : > { %2070 = vrot.lane.b32.xlu1 %v1711_v62, %s13469_s14  ;;  %1990 = vrot.lane.b32.xlu0 %v1707_v63, %s13466_s28 }
 0x463   : > { %2058 = vrot.lane.b32.xlu1 %v1707_v63, %s13469_s14  ;;  %1970 = vrot.lane.b32.xlu0 %v1711_v62, %s13463_s25 }
 0x467   : > { %1846 = vrot.lane.b32.xlu1 %v1749_v0, %s13340_s8  ;;  %1958 = vrot.lane.b32.xlu0 %v1707_v63, %s13463_s25 }
 0x46b   : > { %1834 = vrot.lane.b32.xlu1 %v1743_v2, %s13340_s8  ;;  %1938 = vrot.lane.b32.xlu0 %v1711_v62, %s13465_s1 }
 0x46f   : > { %1814 = vrot.lane.b32.xlu1 %v1749_v0, %s13464_s4  ;;  %1926 = vrot.lane.b32.xlu0 %v1707_v63, %s13465_s1 }
 0x473   : > { %1802 = vrot.lane.b32.xlu1 %v1743_v2, %s13464_s4  ;;  %1906 = vrot.lane.b32.xlu0 %v1711_v62, %s13467_s26 }
 0x477   : > { %1782 = vrot.lane.b32.xlu1 %v1749_v0, %s13338_s3  ;;  %1894 = vrot.lane.b32.xlu0 %v1707_v63, %s13467_s26 }
 0x47b   : > { %1770 = vrot.lane.b32.xlu1 %v1743_v2, %s13338_s3  ;;  %1874 = vrot.lane.b32.xlu0 %v1711_v62, %s13468_s27 }
 0x47f   : > { %1994 = vrot.lane.b32.xlu1 %v1743_v2, %s13466_s28  ;;  %1862 = vrot.lane.b32.xlu0 %v1707_v63, %s13468_s27 }
 0x483   : > { %1866 = vrot.lane.b32.xlu1 %v1743_v2, %s13468_s27  ;;  %2006 = vrot.lane.b32.xlu0 %v1749_v0, %s13466_s28 }
 0x487   : > { %2074 = vrot.lane.b32.xlu1 %v1749_v0, %s13469_s14  ;;  %1974 = vrot.lane.b32.xlu0 %v1749_v0, %s13463_s25 }
 0x48b   : > { %2062 = vrot.lane.b32.xlu1 %v1743_v2, %s13469_s14  ;;  %1962 = vrot.lane.b32.xlu0 %v1743_v2, %s13463_s25 }
 0x48f   : > { %1942 = vrot.lane.b32.xlu0 %v1749_v0, %s13465_s1  ;;  %1848 = vrot.lane.b32.xlu1 %v1713_v3, %s13340_s8 }
 0x493   : > { %1930 = vrot.lane.b32.xlu0 %v1743_v2, %s13465_s1  ;;  %1836 = vrot.lane.b32.xlu1 %v1709_v4, %s13340_s8 }
 0x497   : > { %1910 = vrot.lane.b32.xlu0 %v1749_v0, %s13467_s26  ;;  %1816 = vrot.lane.b32.xlu1 %v1713_v3, %s13464_s4 }
 0x49b   : > { %1898 = vrot.lane.b32.xlu0 %v1743_v2, %s13467_s26  ;;  %1804 = vrot.lane.b32.xlu1 %v1709_v4, %s13464_s4 }
 0x49d   : > { %v8780_v5 = vpop.permute.xlu0 %1840 }
 0x49f   : > { %1878 = vrot.lane.b32.xlu0 %v1749_v0, %s13468_s27  ;;  %1784 = vrot.lane.b32.xlu1 %v1713_v3, %s13338_s3 }
 0x4a1   : > { %v8784_v6 = vpop.permute.xlu1 %1764  ;;  %v8786_v7 = vpop.permute.xlu0 %1828 }
 0x4a3   : > { %1838 = vrot.lane.b32.xlu0 %v8788_v8, %s13340_s8  ;;  %1772 = vrot.lane.b32.xlu1 %v1709_v4, %s13338_s3 }
 0x4a5   : > { %v8793_v9 = vpop.permute.xlu1 %1968  ;;  %v8795_v13 = vpop.permute.xlu0 %1808 }
 0x4a7   : > { %1806 = vrot.lane.b32.xlu0 %v8788_v8, %s13464_s4  ;;  %2008 = vrot.lane.b32.xlu1 %v1713_v3, %s13466_s28 }
 0x4a9   : > { %v8800_v14 = vpop.permute.xlu1 %1956  ;;  %v8802_v15 = vpop.permute.xlu0 %1796 }
 0x4ab   : > { %1774 = vrot.lane.b32.xlu0 %v8788_v8, %s13338_s3  ;;  %1996 = vrot.lane.b32.xlu1 %v1709_v4, %s13466_s28 }
 0x4ad   : > { %v8807_v17 = vpop.permute.xlu1 %1936  ;;  %v8809_v18 = vpop.permute.xlu0 %1776 }
 0x4af   : > { %1998 = vrot.lane.b32.xlu0 %v8788_v8, %s13466_s28  ;;  %1976 = vrot.lane.b32.xlu1 %v1713_v3, %s13463_s25 }
 0x4b1   : > { %v8814_v19 = vpop.permute.xlu1 %1924  ;;  %v8816_v20 = vpop.permute.xlu0 %2000 }
 0x4b3   : > { %2066 = vrot.lane.b32.xlu0 %v8788_v8, %s13469_s14  ;;  %1964 = vrot.lane.b32.xlu1 %v1709_v4, %s13463_s25 }
 0x4b5   : > { %v8821_v23 = vpop.permute.xlu1 %1904  ;;  %v8823_v25 = vpop.permute.xlu0 %1988 }
 0x4b7   : > { %1944 = vrot.lane.b32.xlu1 %v1713_v3, %s13465_s1  ;;  %1768 = vrot.lane.b32.xlu0 %v1742_v26, %s13338_s3 }
 0x4b9   : > { %v8827_v27 = vpop.permute.xlu1 %1892  ;;  %v8829_v30 = vpop.permute.xlu0 %1860 }
 0x4bb   : > { %1932 = vrot.lane.b32.xlu1 %v1709_v4, %s13465_s1  ;;  %1960 = vrot.lane.b32.xlu0 %v1742_v26, %s13463_s25 }
 0x4bd   : > { %v8833_v31 = vpop.permute.xlu1 %1872  ;;  %v8835_v32 = vpop.permute.xlu0 %1842 }
 0x4bf   : > { %1912 = vrot.lane.b32.xlu1 %v1713_v3, %s13467_s26  ;;  %1928 = vrot.lane.b32.xlu0 %v1742_v26, %s13465_s1 }
 0x4c1   : > { %v8839_v33 = vpop.permute.xlu1 %2068  ;;  %v8841_v21 = vpop.permute.xlu0 %1830 }
 0x4c2   : > { %13470 = vst [vmem:[#allocation22_spill] sm:$0xff] %v8839_v33 }
 0x4c3   : > { %1900 = vrot.lane.b32.xlu1 %v1709_v4, %s13467_s26  ;;  %1896 = vrot.lane.b32.xlu0 %v1742_v26, %s13467_s26 }
 0x4c5   : > { %v8845_v34 = vpop.permute.xlu1 %2056  ;;  %v8847_v36 = vpop.permute.xlu0 %1810 }
 0x4c6   : > { %13471 = vst [vmem:[#allocation23_spill] sm:$0xff] %v8845_v34  ;;  %v1824_v47 = vsel %vm1196_vm13, %v8795_v13, %v8847_v36 }
 0x4c7   : > { %1880 = vrot.lane.b32.xlu1 %v1713_v3, %s13468_s27  ;;  %1864 = vrot.lane.b32.xlu0 %v1742_v26, %s13468_s27 }
 0x4c9   : > { %v8851_v37 = vpop.permute.xlu1 %1766  ;;  %v8853_v29 = vpop.permute.xlu0 %1798 }
 0x4cb   : > { %1868 = vrot.lane.b32.xlu1 %v1709_v4, %s13468_s27  ;;  %2060 = vrot.lane.b32.xlu0 %v1742_v26, %s13469_s14 }
 0x4cd   : > { %v8857_v28 = vpop.permute.xlu1 %2002  ;;  %v8859_v38 = vpop.permute.xlu0 %1778 }
 0x4cf   : > { %2076 = vrot.lane.b32.xlu1 %v1713_v3, %s13469_s14  ;;  %1850 = vrot.lane.b32.xlu0 %v1751_v24, %s13340_s8 }
 0x4d1   : > { %v8863_v39 = vpop.permute.xlu1 %2070  ;;  %v8865_v11 = vpop.permute.xlu0 %1990 }
 0x4d2   : > { %13472 = vst [vmem:[#allocation24_spill] sm:$0xff] %v8863_v39 }
 0x4d3   : > { %2064 = vrot.lane.b32.xlu1 %v1709_v4, %s13469_s14  ;;  %1818 = vrot.lane.b32.xlu0 %v1751_v24, %s13464_s4  ;;  %v1852_v4 = vsel %vm1211_vm12, %v8786_v7, %v8841_v21  ;;  %v1820_v7 = vsel %vm1196_vm13, %v8802_v15, %v8853_v29  ;;  %v2016_v15 = vsel %vm1282_vm8, %v8816_v20, %v8857_v28 }
 0x4d5   : > { %v8869_v40 = vpop.permute.xlu1 %2058  ;;  %v8871_v42 = vpop.permute.xlu0 %1970 }
 0x4d6   : > { %13473 = vst [vmem:[#allocation25_spill] sm:$0xff] %v8869_v40 }
 0x4d7   : > { %1966 = vrot.lane.b32.xlu1 %v8788_v8, %s13463_s25  ;;  %1786 = vrot.lane.b32.xlu0 %v1751_v24, %s13338_s3 }
 0x4d9   : > { %v8876_v43 = vpop.permute.xlu1 %1846  ;;  %v8878_v44 = vpop.permute.xlu0 %1958 }
 0x4da   : > { %v1980_v61 = vsel %vm1270_vm3, %v8800_v14, %v8878_v44 }
 0x4db   : > { %1934 = vrot.lane.b32.xlu1 %v8788_v8, %s13465_s1  ;;  %2010 = vrot.lane.b32.xlu0 %v1751_v24, %s13466_s28 }
 0x4dd   : > { %v8883_v10 = vpop.permute.xlu1 %1834  ;;  %v8885_v45 = vpop.permute.xlu0 %1938 }
 0x4df   : > { %1902 = vrot.lane.b32.xlu1 %v8788_v8, %s13467_s26  ;;  %2078 = vrot.lane.b32.xlu0 %v1751_v24, %s13469_s14 }
 0x4e1   : > { %v8890_v48 = vpop.permute.xlu1 %1814  ;;  %v8892_v49 = vpop.permute.xlu0 %1926 }
 0x4e3   : > { %1870 = vrot.lane.b32.xlu1 %v8788_v8, %s13468_s27  ;;  %2004 = vrot.lane.b32.xlu0 %v1748_v50, %s13466_s28 }
 0x4e5   : > { %v8897_v53 = vpop.permute.xlu1 %1802  ;;  %v8899_v54 = vpop.permute.xlu0 %1906 }
 0x4e7   : > { %1832 = vrot.lane.b32.xlu1 %v1742_v26, %s13340_s8  ;;  %1972 = vrot.lane.b32.xlu0 %v1748_v50, %s13463_s25 }
 0x4e9   : > { %v8903_v55 = vpop.permute.xlu1 %1782  ;;  %v8905_v57 = vpop.permute.xlu0 %1894 }
 0x4eb   : > { %1800 = vrot.lane.b32.xlu1 %v1742_v26, %s13464_s4  ;;  %1940 = vrot.lane.b32.xlu0 %v1748_v50, %s13465_s1 }
 0x4ed   : > { %v8909_v58 = vpop.permute.xlu1 %1770  ;;  %v8911_v59 = vpop.permute.xlu0 %1874 }
 0x4ef   : > { %1992 = vrot.lane.b32.xlu1 %v1742_v26, %s13466_s28  ;;  %1908 = vrot.lane.b32.xlu0 %v1748_v50, %s13467_s26 }
 0x4f1   : > { %v8915_v60 = vpop.permute.xlu1 %1994  ;;  %v8917_v62 = vpop.permute.xlu0 %1862 }
 0x4f3   : > { %1978 = vrot.lane.b32.xlu1 %v1751_v24, %s13463_s25  ;;  %1876 = vrot.lane.b32.xlu0 %v1748_v50, %s13468_s27 }
 0x4f5   : > { %v8921_v63 = vpop.permute.xlu1 %1866  ;;  %v2007_v0 = vpop.permute.xlu0 %2006 }
 0x4f7   : > { %1946 = vrot.lane.b32.xlu1 %v1751_v24, %s13465_s1  ;;  %2072 = vrot.lane.b32.xlu0 %v1748_v50, %s13469_s14 }
 0x4f9   : > { %v8925_v2 = vpop.permute.xlu1 %2074  ;;  %v8927_v3 = vpop.permute.xlu0 %1974 }
 0x4fb   : > { %1914 = vrot.lane.b32.xlu1 %v1751_v24, %s13467_s26  ;;  %2128 = vrot.lane.b32.xlu0 %v1852_v4, %s13469_s14 }
 0x4fd   : > { %v8934_v8 = vpop.permute.xlu1 %2062  ;;  %v8936_v26 = vpop.permute.xlu0 %1962 }
 0x4fe   : > { %13474 = vst [vmem:[#allocation26_spill] sm:$0xff] %v8934_v8 }
 0x4ff   : > { %1882 = vrot.lane.b32.xlu1 %v1751_v24, %s13468_s27  ;;  %2116 = vrot.lane.b32.xlu0 %v1824_v47, %s13469_s14  ;;  %v1792_v47 = vsel %vm1181_vm4, %v8809_v18, %v8859_v38  ;;  %v1856_v18 = vsel %vm1211_vm12, %v8780_v5, %v8835_v32  ;;  %v1984_v5 = vsel %vm1270_vm3, %v8793_v9, %v8871_v42 }
 0x501   : > { %v8943_v41 = vpop.permute.xlu1 %1848  ;;  %v8945_v56 = vpop.permute.xlu0 %1942 }
 0x503   : > { %1844 = vrot.lane.b32.xlu1 %v1748_v50, %s13340_s8  ;;  %2104 = vrot.lane.b32.xlu0 %v1820_v7, %s13469_s14  ;;  %s828_s8 = scalar_lea.vmem %s13292_s24, %s8410_s29 }
 0x505   : > { %v8952_v4 = vpop.permute.xlu1 %1836  ;;  %v8954_v51 = vpop.permute.xlu0 %1930 }
 0x507   : > { %1812 = vrot.lane.b32.xlu1 %v1748_v50, %s13464_s4  ;;  %2092 = vrot.lane.b32.xlu0 %v1792_v47, %s13469_s14  ;;  %v2012_v47 = vsel %vm1282_vm8, %v8823_v25, %v8865_v11 }
 0x509   : > { %v8961_v13 = vpop.permute.xlu1 %1816  ;;  %v8963_v24 = vpop.permute.xlu0 %1910 }
 0x50b   : > { %1780 = vrot.lane.b32.xlu1 %v1748_v50, %s13338_s3  ;;  %2260 = vrot.lane.b32.xlu0 %v2016_v15, %s13469_s14  ;;  %v1788_v15 = vsel %vm1181_vm4, %v8784_v6, %v8851_v37 }
 0x50d   : > { %v8970_v7 = vpop.permute.xlu1 %1804  ;;  %v8972_v46 = vpop.permute.xlu0 %1898 }
 0x50f   : > { %2140 = vrot.lane.b32.xlu1 %v1856_v18, %s13469_s14  ;;  %2248 = vrot.lane.b32.xlu0 %v2012_v47, %s13469_s14  ;;  %v1854_v47 = vsel %vm1211_vm12, %v8883_v10, %v8952_v4 }
 0x511   : > { %v8982_v20 = vpop.permute.xlu1 %1784  ;;  %v8984_v50 = vpop.permute.xlu0 %1878 }
 0x513   : > { %2080 = vrot.lane.b32.xlu1 %v1788_v15, %s13469_s14  ;;  %2236 = vrot.lane.b32.xlu0 %v1984_v5, %s13469_s14  ;;  %v1826_v15 = vsel %vm1196_vm13, %v8890_v48, %v8961_v13  ;;  %v1952_v5 = vsel %vm1255_vm15, %v8807_v17, %v8885_v45 }
 0x515   : > { %v1773_v25 = vpop.permute.xlu1 %1772  ;;  %v1839_v18 = vpop.permute.xlu0 %1838 }
 0x517   : > { %2134 = vrot.lane.b32.xlu1 %v1854_v47, %s13469_s14  ;;  %2224 = vrot.lane.b32.xlu0 %v1980_v61, %s13469_s14  ;;  %v1822_v61 = vsel %vm1196_vm13, %v8897_v53, %v8970_v7  ;;  %v1858_v47 = vsel %vm1211_vm12, %v8876_v43, %v8943_v41 }
 0x519   : > { %v9002_v6 = vpop.permute.xlu1 %2008  ;;  %v1807_v9 = vpop.permute.xlu0 %1806 }
 0x51b   : > { %2122 = vrot.lane.b32.xlu1 %v1826_v15, %s13469_s14  ;;  %2212 = vrot.lane.b32.xlu0 %v1952_v5, %s13469_s14  ;;  %v1794_v15 = vsel %vm1181_vm4, %v8903_v55, %v8982_v20  ;;  %v2018_v5 = vsel %vm1282_vm8, %v2007_v0, %v9002_v6 }
 0x51d   : > { %v1997_v14 = vpop.permute.xlu1 %1996  ;;  %v1775_v10 = vpop.permute.xlu0 %1774 }
 0x51e   : > { %v1791_v12 = vsel %vm1181_vm4, %v1773_v25, %v1775_v10 }
 0x51f   : > { %2110 = vrot.lane.b32.xlu1 %v1822_v61, %s13469_s14  ;;  %2146 = vrot.lane.b32.xlu0 %v1858_v47, %s13469_s14  ;;  %v1790_v61 = vsel %vm1181_vm4, %v8909_v58, %v1773_v25  ;;  %v2014_v47 = vsel %vm1282_vm8, %v8915_v60, %v1997_v14 }
 0x521   : > { %v9020_v48 = vpop.permute.xlu1 %1976  ;;  %v1999_v17 = vpop.permute.xlu0 %1998 }
 0x523   : > { %2098 = vrot.lane.b32.xlu1 %v1794_v15, %s13469_s14  ;;  %2266 = vrot.lane.b32.xlu0 %v2018_v5, %s13469_s14  ;;  %v1986_v15 = vsel %vm1270_vm3, %v8927_v3, %v9020_v48 }
 0x525   : > { %v1965_v53 = vpop.permute.xlu1 %1964  ;;  %v9029_v43 = vpop.permute.xlu0 %2066 }
 0x526   : > { %13475 = vst [vmem:[#allocation27_spill] sm:$0xff] %v9029_v43  ;;  %v1982_v60 = vsel %vm1270_vm3, %v8936_v26, %v1965_v53 }
 0x527   : > { %2086 = vrot.lane.b32.xlu1 %v1790_v61, %s13469_s14  ;;  %2254 = vrot.lane.b32.xlu0 %v2014_v47, %s13469_s14 }
 0x529   : > { %v9037_v55 = vpop.permute.xlu1 %1944  ;;  %v9039_v0 = vpop.permute.xlu0 %1768 }
 0x52a   : > { %v1954_v3 = vsel %vm1255_vm15, %v8945_v56, %v9037_v55  ;;  %v1855_v56 = vsel %vm1211_vm12, %v8952_v4, %v1839_v18  ;;  %v1789_v33 = vsel %vm1181_vm4, %v8851_v37, %v9039_v0 }
 0x52b   : > { %2242 = vrot.lane.b32.xlu1 %v1986_v15, %s13469_s14  ;;  %2138 = vrot.lane.b32.xlu0 %v1839_v18, %s13469_s14 }
 0x52d   : > { %v1933_v58 = vpop.permute.xlu1 %1932  ;;  %v9046_v5 = vpop.permute.xlu0 %1960 }
 0x52e   : > { %v1950_v26 = vsel %vm1255_vm15, %v8954_v51, %v1933_v58  ;;  %v1823_v51 = vsel %vm1196_vm13, %v8970_v7, %v1807_v9 }
 0x52f   : > { %2230 = vrot.lane.b32.xlu1 %v1982_v60, %s13469_s14  ;;  %2114 = vrot.lane.b32.xlu0 %v1807_v9, %s13469_s14 }
 0x531   : > { %v9052_v61 = vpop.permute.xlu1 %1912  ;;  %v9054_v47 = vpop.permute.xlu0 %1928 }
 0x533   : > { %2218 = vrot.lane.b32.xlu1 %v1954_v3, %s13469_s14  ;;  %2090 = vrot.lane.b32.xlu0 %v1775_v10, %s13469_s14 }
 0x535   : > { %v9061_v15 = vpop.permute.xlu1 %1900  ;;  %v9063_v16 = vpop.permute.xlu0 %1896 }
 0x537   : > { %2206 = vrot.lane.b32.xlu1 %v1950_v26, %s13469_s14  ;;  %2258 = vrot.lane.b32.xlu0 %v1999_v17, %s13469_s14 }
 0x539   : > { %v9069_v60 = vpop.permute.xlu1 %1880  ;;  %v9071_v52 = vpop.permute.xlu0 %1864 }
 0x53b   : > { %2136 = vrot.lane.b32.xlu1 %v1855_v56, %s13469_s14  ;;  %v2015_v56 = vsel %vm1282_vm8, %v1997_v14, %v1999_v17 }
 0x53d   : > { %v9076_v3 = vpop.permute.xlu1 %1868  ;;  %v9078_v1 = vpop.permute.xlu0 %2060 }
 0x53e   : > { %13476 = vst [vmem:[#allocation28_spill] sm:$0xff] %v9078_v1 }
 0x53f   : > { %2112 = vrot.lane.b32.xlu1 %v1823_v51, %s13469_s14 }
 0x541   : > { %v9083_v26 = vpop.permute.xlu1 %2076  ;;  %v9085_v35 = vpop.permute.xlu0 %1850 }
 0x543   : > { %2088 = vrot.lane.b32.xlu1 %v1791_v12, %s13469_s14 }
 0x545   : > { %v9089_v4 = vpop.permute.xlu1 %2064  ;;  %v1819_v18 = vpop.permute.xlu0 %1818 }
 0x546   : > { %13477 = vst [vmem:[#allocation29_spill] sm:$0xff] %v9089_v4 }
 0x547   : > { %2256 = vrot.lane.b32.xlu1 %v2015_v56, %s13469_s14 }
 0x549   : > { %v1967_v22 = vpop.permute.xlu1 %1966  ;;  %v1787_v34 = vpop.permute.xlu0 %1786 }
 0x54a   : > { %2234 = vrot.lane.b32.xlu0 %v1967_v22, %s13469_s14  ;;  %v1983_v7 = vsel %vm1270_vm3, %v1965_v53, %v1967_v22 }
 0x54b   : > { %2232 = vrot.lane.b32.xlu1 %v1983_v7, %s13469_s14 }
 0x54d   : > { %v1935_v9 = vpop.permute.xlu1 %1934  ;;  %v2011_v51 = vpop.permute.xlu0 %2010 }
 0x54e   : > { %2210 = vrot.lane.b32.xlu0 %v1935_v9, %s13469_s14  ;;  %v1951_v12 = vsel %vm1255_vm15, %v1933_v58, %v1935_v9 }
 0x54f   : > { %2208 = vrot.lane.b32.xlu1 %v1951_v12, %s13469_s14 }
 0x551   : > { %v9099_v25 = vpop.permute.xlu1 %1902  ;;  %v9101_v14 = vpop.permute.xlu0 %2078 }
 0x552   : > { %2084 = vrot.lane.b32.xlu0 %v9039_v0, %s13469_s14 }
 0x555   : > { %v9105_v10 = vpop.permute.xlu1 %1870  ;;  %v9107_v22 = vpop.permute.xlu0 %2004 }
 0x559   : > { %v1833_v17 = vpop.permute.xlu1 %1832  ;;  %v9109_v53 = vpop.permute.xlu0 %1972 }
 0x55a   : > { %2132 = vrot.lane.b32.xlu1 %v1833_v17, %s13469_s14  ;;  %v1853_v1 = vsel %vm1211_vm12, %v8841_v21, %v1833_v17 }
 0x55d   : > { %v1801_v56 = vpop.permute.xlu1 %1800  ;;  %v9112_v58 = vpop.permute.xlu0 %1940 }
 0x55e   : > { %2108 = vrot.lane.b32.xlu1 %v1801_v56, %s13469_s14  ;;  %v1821_v43 = vsel %vm1196_vm13, %v8853_v29, %v1801_v56  ;;  %v2019_v56 = vsel %vm1282_vm8, %v9002_v6, %v2011_v51 }
 0x561   : > { %v1993_v7 = vpop.permute.xlu1 %1992  ;;  %v9115_v9 = vpop.permute.xlu0 %1908 }
 0x562   : > { %2252 = vrot.lane.b32.xlu0 %v1993_v7, %s13469_s14  ;;  %2228 = vrot.lane.b32.xlu1 %v9046_v5, %s13469_s14  ;;  %v2013_v39 = vsel %vm1282_vm8, %v8865_v11, %v1993_v7  ;;  %v1827_v11 = vsel %vm1196_vm13, %v8961_v13, %v1819_v18 }
 0x565   : > { %v1979_v12 = vpop.permute.xlu1 %1978  ;;  %v9120_v40 = vpop.permute.xlu0 %1876 }
 0x566   : > { %2130 = vrot.lane.b32.xlu0 %v1853_v1, %s13469_s14  ;;  %2204 = vrot.lane.b32.xlu1 %v9054_v47, %s13469_s14  ;;  %v1981_v1 = vsel %vm1270_vm3, %v8878_v44, %v9046_v5  ;;  %v1795_v5 = vsel %vm1181_vm4, %v8982_v20, %v1787_v34 }
 0x569   : > { %v1947_v8 = vpop.permute.xlu1 %1946  ;;  %v9127_v4 = vpop.permute.xlu0 %2072 }
 0x56a   : > { %2106 = vrot.lane.b32.xlu0 %v1821_v43, %s13469_s14  ;;  %2082 = vrot.lane.b32.xlu1 %v1789_v33, %s13469_s14  ;;  %v1949_v33 = vsel %vm1255_vm15, %v8892_v49, %v9054_v47  ;;  %v1955_v6 = vsel %vm1255_vm15, %v9037_v55, %v1947_v8 }
 0x56d   : > { %v1915_v21 = vpop.permute.xlu1 %1914  ;;  %v9136_v17 = vpop.permute.xlu0 %2128 }
 0x56e   : > { %2226 = vrot.lane.b32.xlu0 %v1981_v1, %s13469_s14  ;;  %2250 = vrot.lane.b32.xlu1 %v2013_v39, %s13469_s14 }
 0x571   : > { %v9145_v29 = vpop.permute.xlu1 %1882  ;;  %v9147_v37 = vpop.permute.xlu0 %2116 }
 0x572   : > { %2202 = vrot.lane.b32.xlu0 %v1949_v33, %s13469_s14  ;;  %2150 = vrot.lane.b32.xlu1 %v9085_v35, %s13469_s14 }
 0x575   : > { %v1845_v44 = vpop.permute.xlu1 %1844  ;;  %v9155_v43 = vpop.permute.xlu0 %2104 }
 0x576   : > { %2124 = vrot.lane.b32.xlu1 %v1827_v11, %s13469_s14  ;;  %2126 = vrot.lane.b32.xlu0 %v1819_v18, %s13469_s14  ;;  %v1987_v18 = vsel %vm1270_vm3, %v9020_v48, %v1979_v12 }
 0x579   : > { %v1813_v39 = vpop.permute.xlu1 %1812  ;;  %v9161_v0 = vpop.permute.xlu0 %2092 }
 0x57a   : > { %2100 = vrot.lane.b32.xlu1 %v1795_v5, %s13469_s14  ;;  %2102 = vrot.lane.b32.xlu0 %v1787_v34, %s13469_s14 }
 0x57d   : > { %v1781_v47 = vpop.permute.xlu1 %1780  ;;  %v9169_v7 = vpop.permute.xlu0 %2260 }
 0x57e   : > { %2268 = vrot.lane.b32.xlu1 %v2019_v56, %s13469_s14  ;;  %2270 = vrot.lane.b32.xlu0 %v2011_v51, %s13469_s14 }
 0x581   : > { %v9173_v13 = vpop.permute.xlu1 %2140  ;;  %v9179_v34 = vpop.permute.xlu0 %2248 }
 0x582   : > { %2244 = vrot.lane.b32.xlu1 %v1987_v18, %s13469_s14  ;;  %2246 = vrot.lane.b32.xlu0 %v1979_v12, %s13469_s14  ;;  %v1859_v12 = vsel %vm1211_vm12, %v8943_v41, %v9085_v35  ;;  %v1857_v35 = vsel %vm1211_vm12, %v8835_v32, %v1845_v44  ;;  %v1948_v18 = vsel %vm1255_vm15, %v8814_v19, %v8892_v49 }
 0x583   : > { %v1922_v49 = vsel %vm13379_vm0, %v8963_v24, %v9052_v61  ;;  %v1920_v24 = vsel %vm13379_vm0, %v8821_v23, %v8899_v54 }
 0x585   : > { %v9181_v20 = vpop.permute.xlu1 %2080  ;;  %v9189_v1 = vpop.permute.xlu0 %2236 }
 0x586   : > { %2220 = vrot.lane.b32.xlu1 %v1955_v6, %s13469_s14  ;;  %2222 = vrot.lane.b32.xlu0 %v1947_v8, %s13469_s14  ;;  %v1923_v6 = vsel %vm13379_vm0, %v9052_v61, %v1915_v21  ;;  %v1919_v61 = vsel %vm13379_vm0, %v9061_v15, %v9099_v25 }
 0x589   : > { %v9187_v51 = vpop.permute.xlu1 %2134  ;;  %v9200_v55 = vpop.permute.xlu0 %2224 }
 0x58a   : > { %2144 = vrot.lane.b32.xlu1 %v1845_v44, %s13469_s14  ;;  %2198 = vrot.lane.b32.xlu0 %v1915_v21, %s13469_s14  ;;  %13478 = vst [vmem:[#allocation30_spill] sm:$0xff] %v9200_v55  ;;  %v1825_v44 = vsel %vm1196_vm13, %v8847_v36, %v1813_v39 }
 0x58d   : > { %v9193_v48 = vpop.permute.xlu1 %2122  ;;  %v9209_v11 = vpop.permute.xlu0 %2212 }
 0x58e   : > { %2120 = vrot.lane.b32.xlu1 %v1813_v39, %s13469_s14  ;;  %2148 = vrot.lane.b32.xlu0 %v1859_v12, %s13469_s14  ;;  %13479 = vst [vmem:[#allocation31_spill] sm:$0xff] %v9209_v11  ;;  %v2017_v12 = vsel %vm1282_vm8, %v8857_v28, %v9107_v22 }
 0x591   : > { %v9202_v8 = vpop.permute.xlu1 %2110  ;;  %v9222_v5 = vpop.permute.xlu0 %2146 }
 0x592   : > { %2096 = vrot.lane.b32.xlu1 %v1781_v47, %s13469_s14  ;;  %2264 = vrot.lane.b32.xlu0 %v9107_v22, %s13469_s14  ;;  %v1793_v22 = vsel %vm1181_vm4, %v8859_v38, %v1781_v47  ;;  %v1918_v47 = vsel %vm13379_vm0, %v8972_v46, %v9061_v15  ;;  %v1985_v46 = vsel %vm1270_vm3, %v8871_v42, %v9109_v53 }
 0x593   : > { %v1891_v15 = vsel %vm13380_vm14, %v9069_v60, %v9145_v29  ;;  %v1890_v42 = vsel %vm13380_vm14, %v8984_v50, %v9069_v60  ;;  %v1887_v60 = vsel %vm13380_vm14, %v9076_v3, %v9105_v10 }
 0x595   : > { %v9207_v33 = vpop.permute.xlu1 %2098 }
 0x596   : > { %2240 = vrot.lane.b32.xlu0 %v9109_v53, %s13469_s14  ;;  %2216 = vrot.lane.b32.xlu1 %v9112_v58, %s13469_s14  ;;  %v9314_v53 = vld [vmem:[%s13483_s10 + $0x8] sm:$0xff] }
 0x597   : > { %13484 = vst [vmem:[#allocation35_spill] sm:$0xff] %v9314_v53  ;;  %2529 = vmatprep.mubr.f32.mxu1 %v9314_v53 }
 0x599   : > { %v9215_v41 = vpop.permute.xlu1 %2086 }
 0x59a   : > { %2142 = vrot.lane.b32.xlu0 %v1857_v35, %s13469_s14  ;;  %2192 = vrot.lane.b32.xlu1 %v9115_v9, %s13469_s14  ;;  %v9240_v35 = vpop.permute.xlu0 %2266 }
 0x59d   : > { %v9224_v56 = vpop.permute.xlu1 %2242 }
 0x59e   : > { %2200 = vrot.lane.b32.xlu0 %v1948_v18, %s13469_s14  ;;  %2196 = vrot.lane.b32.xlu1 %v1923_v6, %s13469_s14  ;;  %v9252_v36 = vpop.permute.xlu0 %2254 }
 0x5a1   : > { %v9233_v32 = vpop.permute.xlu1 %2230 }
 0x5a2   : > { %13480 = vst [vmem:[#allocation32_spill] sm:$0xff] %v9233_v32  ;;  %2118 = vrot.lane.b32.xlu0 %v1825_v44, %s13469_s14  ;;  %2262 = vrot.lane.b32.xlu1 %v2017_v12, %s13469_s14  ;;  %v9269_v39 = vpop.permute.xlu0 %2138  ;;  %v1916_v44 = vsel %vm13379_vm0, %v8827_v27, %v8905_v57  ;;  %v1953_v27 = vsel %vm1255_vm15, %v8885_v45, %v9112_v58 }
 0x5a3   : > { %v1921_v45 = vsel %vm13379_vm0, %v8899_v54, %v9115_v9  ;;  %v1885_v58 = vsel %vm13380_vm14, %v8917_v62, %v9071_v52  ;;  %v1888_v54 = vsel %vm13380_vm14, %v8833_v31, %v8911_v59  ;;  %v2032_v31 = vld [vmem:[%s13487_s11] sm:$0xff] }
 0x5a5   : > { %v9244_v19 = vpop.permute.xlu1 %2218 }
 0x5a6   : > { %13481 = vst [vmem:[#allocation33_spill] sm:$0xff] %v9244_v19  ;;  %2186 = vrot.lane.b32.xlu0 %v9099_v25, %s13469_s14  ;;  %2194 = vrot.lane.b32.xlu1 %v1922_v49, %s13469_s14  ;;  %v9281_v23 = vpop.permute.xlu0 %2114  ;;  %v1917_v25 = vsel %vm13379_vm0, %v8905_v57, %v9063_v16 }
 0x5a9   : > { %v9254_v28 = vpop.permute.xlu1 %2206 }
 0x5aa   : > { %13482 = vst [vmem:[#allocation34_spill] sm:$0xff] %v9254_v28  ;;  %2094 = vrot.lane.b32.xlu0 %v1793_v22, %s13469_s14  ;;  %2180 = vrot.lane.b32.xlu1 %v9063_v16, %s13469_s14  ;;  %v9297_v6 = vpop.permute.xlu0 %2090 }
 0x5ad   : > { %v9261_v21 = vpop.permute.xlu1 %2136 }
 0x5ae   : > { %2188 = vrot.lane.b32.xlu0 %v1920_v24, %s13469_s14  ;;  %2184 = vrot.lane.b32.xlu1 %v1919_v61, %s13469_s14  ;;  %v1889_v61 = vsel %vm13380_vm14, %v8911_v59, %v9120_v40 }
 0x5b1   : > { %v9273_v38 = vpop.permute.xlu1 %2112 }
 0x5b2   : > { %2174 = vrot.lane.b32.xlu0 %v9145_v29, %s13469_s14  ;;  %2182 = vrot.lane.b32.xlu1 %v1918_v47, %s13469_s14  ;;  %v9316_v29 = vpop.permute.xlu0 %2258 }
 0x5b5   : > { %v9286_v18 = vpop.permute.xlu1 %2088 }
 0x5b6   : > { %2178 = vrot.lane.b32.xlu0 %v1917_v25, %s13469_s14  ;;  %2168 = vrot.lane.b32.xlu1 %v9120_v40, %s13469_s14  ;;  %v2826_v40 = vld [vmem:[%s13488_s12 + $0x8] sm:$0xff] }
 0x5b9   : > { %v9301_v16 = vpop.permute.xlu1 %2256 }
 0x5ba   : > { %2238 = vrot.lane.b32.xlu0 %v1985_v46, %s13469_s14  ;;  %2172 = vrot.lane.b32.xlu1 %v1891_v15, %s13469_s14  ;;  %v1886_v46 = vsel %vm13380_vm14, %v8921_v63, %v9076_v3  ;;  %v2034_v63 = vld [vmem:[%s13487_s11 + $0x10] sm:$0xff] }
 0x5bc   : > { %v9327_v50 = vpop.permute.xlu0 %2234 }
 0x5bd   : > { %v9322_v57 = vpop.permute.xlu1 %2232 }
 0x5be   : > { %2176 = vrot.lane.b32.xlu0 %v1916_v44, %s13469_s14  ;;  %2170 = vrot.lane.b32.xlu1 %v1890_v42, %s13469_s14  ;;  %13485 = vst [vmem:[#allocation36_spill] sm:$0xff] %v9322_v57  ;;  %v1884_v44 = vsel %vm13380_vm14, %v8829_v30, %v8917_v62  ;;  %v2827_v30 = vld [vmem:[%s13488_s12 + $0x10] sm:$0xff] }
 0x5c0   : > { %v9343_v49 = vpop.permute.xlu0 %2210 }
 0x5c1   : > { %v9335_v12 = vpop.permute.xlu1 %2208 }
 0x5c2   : > { %2214 = vrot.lane.b32.xlu0 %v1953_v27, %s13469_s14  ;;  %2156 = vrot.lane.b32.xlu1 %v9071_v52, %s13469_s14  ;;  %13486 = vst [vmem:[#allocation37_spill] sm:$0xff] %v9335_v12  ;;  %v2033_v52 = vld [vmem:[%s13487_s11 + $0x8] sm:$0xff]  ;;  %v2828_v27 = vld [vmem:[%s13488_s12 + $0x18] sm:$0xff] }
 0x5c4   : > { %v9359_v9 = vpop.permute.xlu0 %2084 }
 0x5c6   : > { %2162 = vrot.lane.b32.xlu0 %v9105_v10, %s13469_s14  ;;  %2160 = vrot.lane.b32.xlu1 %v1887_v60, %s13469_s14  ;;  %v2035_v10 = vld [vmem:[%s13487_s11 + $0x18] sm:$0xff] }
 0x5ca   : > { %2190 = vrot.lane.b32.xlu0 %v1921_v45, %s13469_s14  ;;  %2154 = vrot.lane.b32.xlu1 %v1885_v58, %s13469_s14 }
 0x5cc   : > { %v9350_v22 = vpop.permute.xlu1 %2132 }
 0x5ce   : > { %2164 = vrot.lane.b32.xlu0 %v1888_v54, %s13469_s14  ;;  %2053 = vperm.xlu1 %7820, %v2035_v10   ;;  %v2825_v10 = vld [vmem:[%s13488_s12] sm:$0xff] }
 0x5d0   : > { %v9361_v24 = vpop.permute.xlu1 %2108 }
 0x5d2   : > { %2166 = vrot.lane.b32.xlu0 %v1889_v61, %s13469_s14  ;;  %2043 = vperm.xlu1 %7820, %v2033_v52  }
 0x5d4   : > { %v9370_v47 = vpop.permute.xlu1 %2228  ;;  %v9372_v25 = vpop.permute.xlu0 %2252 }
 0x5d6   : > { %2038 = vperm.xlu1 %7820, %v2032_v31   ;;  %2158 = vrot.lane.b32.xlu0 %v1886_v46, %s13469_s14 }
 0x5d8   : > { %v9381_v59 = vpop.permute.xlu1 %2204  ;;  %v2131_v15 = vpop.permute.xlu0 %2130 }
 0x5d9   : > { %v2297_v57 = vsel %vm1372_vm10, %v2131_v15, %v9350_v22 }
 0x5da   : > { %2836 = vperm.xlu1 %7820, %v2826_v40   ;;  %2152 = vrot.lane.b32.xlu0 %v1884_v44, %s13469_s14 }
 0x5dc   : > { %v9390_v3 = vpop.permute.xlu1 %2082  ;;  %v9392_v42 = vpop.permute.xlu0 %2106 }
 0x5de   : > { %2048 = vperm.xlu0 %7819, %v2034_v63  }
 0x5e0   : > { %v9397_v60 = vpop.permute.xlu1 %2250  ;;  %v9399_v45 = vpop.permute.xlu0 %2226 }
 0x5e1   : > { %13489 = vst [vmem:[#allocation38_spill] sm:$0xff] %v9399_v45 }
 0x5e2   : > { %2846 = vperm.xlu0 %7819, %v2828_v27  }
 0x5e4   : > { %v9404_v62 = vpop.permute.xlu1 %2150  ;;  %v9406_v58 = vpop.permute.xlu0 %2202 }
 0x5e5   : > { %13490 = vst [vmem:[#allocation39_spill] sm:$0xff] %v9406_v58 }
 0x5e6   : > { %2841 = vperm.xlu0 %7819, %v2827_v30  }
 0x5e8   : > { %v2125_v54 = vpop.permute.xlu1 %2124  ;;  %v9411_v52 = vpop.permute.xlu0 %2126 }
 0x5ea   : > { %2831 = vperm.xlu0 %7819, %v2825_v10  }
 0x5ec   : > { %v9413_v61 = vpop.permute.xlu1 %2100  ;;  %v9415_v31 = vpop.permute.xlu0 %2102 }
 0x5f0   : > { %v2269_v46 = vpop.permute.xlu1 %2268  ;;  %v9417_v40 = vpop.permute.xlu0 %2270 }
 0x5f1   : > { %13491 = vst [vmem:[#allocation40_spill] sm:$0xff] %v9417_v40  ;;  %v2343_v44 = vsel %vm1372_vm10, %v2269_v46, %v9417_v40  ;;  %v2342_v63 = vsel %vm1372_vm10, %v9240_v35, %v2269_v46 }
 0x5f2   : > { %2578 = vmatprep.subr.mxu0 %v2343_v44 }
 0x5f3   : > { %2579 = vmatpush1.msra.mxu0 %v2342_v63 }
 0x5f4   : > { %v9423_v27 = vpop.permute.xlu1 %2244  ;;  %v9425_v30 = vpop.permute.xlu0 %2246 }
 0x5f8   : > { %v9427_v10 = vpop.permute.xlu1 %2220  ;;  %v9429_v53 = vpop.permute.xlu0 %2222 }
 0x5f9   : > { %13492 = vst [vmem:[#allocation41_spill] sm:$0xff] %v9427_v10 }
 0x5fc   : > { %v9431_v58 = vpop.permute.xlu1 %2144  ;;  %v9433_v28 = vpop.permute.xlu0 %2198 }
 0x600   : > { %v9435_v12 = vpop.permute.xlu1 %2120  ;;  %v2149_v40 = vpop.permute.xlu0 %2148 }
 0x601   : > { %v2303_v35 = vsel %vm1372_vm10, %v2149_v40, %v9404_v62  ;;  %v2302_v46 = vsel %vm1372_vm10, %v9222_v5, %v2149_v40  ;;  %v2299_v5 = vsel %vm1372_vm10, %v9261_v21, %v9269_v39 }
 0x602   : > { %2465 = vmatprep.subr.mxu1 %v2303_v35 }
 0x603   : > { %2466 = vmatpush1.msra.mxu1 %v2302_v46  ;;  %v2298_v46 = vsel %vm1372_vm10, %v9187_v51, %v9261_v21 }
 0x604   : > { %v9441_v44 = vpop.permute.xlu1 %2096  ;;  %v9443_v63 = vpop.permute.xlu0 %2264 }
 0x608   : > { %v9445_v11 = vpop.permute.xlu1 %2216  ;;  %v9447_v19 = vpop.permute.xlu0 %2240 }
 0x60c   : > { %v9449_v10 = vpop.permute.xlu1 %2192  ;;  %v2143_v55 = vpop.permute.xlu0 %2142 }
 0x60d   : > { %v2301_v45 = vsel %vm1372_vm10, %v2143_v55, %v9431_v58  ;;  %v2300_v32 = vsel %vm1372_vm10, %v9173_v13, %v2143_v55  ;;  %v2296_v13 = vsel %vm1372_vm10, %v9136_v17, %v2131_v15  ;;  %v2295_v55 = vsel %vm1372_vm10, %v2125_v54, %v9411_v52 }
 0x60e   : > { %2467 = vmatprep.subr.mxu1 %v2301_v45  ;;  %v2339_v15 = vsel %vm1372_vm10, %v9301_v16, %v9316_v29 }
 0x60f   : > { %2468 = vmatpush1.msra.mxu1 %v2300_v32 }
 0x610   : > { %v9458_v40 = vpop.permute.xlu1 %2196  ;;  %2469 = vmatprep.subr.mxu1 %v2299_v5  ;;  %v9460_v35 = vpop.permute.xlu0 %2200  ;;  %v2294_v5 = vsel %vm1372_vm10, %v9193_v48, %v2125_v54  ;;  %v2291_v48 = vsel %vm1372_vm10, %v9273_v38, %v9281_v23 }
 0x611   : > { %2470 = vmatpush1.msra.mxu1 %v2298_v46  ;;  %v2338_v46 = vsel %vm1372_vm10, %v9252_v36, %v9301_v16  ;;  %v2336_v36 = vsel %vm1372_vm10, %v9179_v34, %v9397_v60 }
 0x612   : > { %2471 = vmatprep.subr.mxu1 %v2297_v57 }
 0x613   : > { %2472 = vmatpush1.msra.mxu1 %v2296_v13  ;;  %v2289_v13 = vsel %vm1372_vm10, %v9392_v42, %v9361_v24 }
 0x614   : > { %v2263_v32 = vpop.permute.xlu1 %2262  ;;  %2473 = vmatprep.subr.mxu1 %v2295_v55  ;;  %v2119_v45 = vpop.permute.xlu0 %2118  ;;  %v2337_v55 = vsel %vm1372_vm10, %v9397_v60, %v9372_v25  ;;  %v2283_v60 = vsel %vm1372_vm10, %v9286_v18, %v9297_v6 }
 0x615   : > { %2474 = vmatpush1.msra.mxu1 %v2294_v5  ;;  %v2293_v51 = vsel %vm1372_vm10, %v2119_v45, %v9435_v12  ;;  %v2341_v21 = vsel %vm1372_vm10, %v2263_v32, %v9443_v63  ;;  %v2292_v17 = vsel %vm1372_vm10, %v9147_v37, %v2119_v45  ;;  %v2340_v57 = vsel %vm1372_vm10, %v9169_v7, %v2263_v32  ;;  %v9506_v32 = vld [vmem:[%s13483_s10 + $0x10] sm:$0xff] }
 0x616   : > { %2475 = vmatprep.subr.mxu1 %v2293_v51  ;;  %2580 = vmatprep.subr.mxu0 %v2341_v21  ;;  %v2290_v7 = vsel %vm1372_vm10, %v9202_v8, %v9273_v38  ;;  %v2288_v8 = vsel %vm1372_vm10, %v9155_v43, %v9392_v42  ;;  %v2287_v38 = vsel %vm1372_vm10, %v9413_v61, %v9415_v31 }
 0x617   : > { %2476 = vmatpush1.msra.mxu1 %v2292_v17  ;;  %2581 = vmatpush1.msra.mxu0 %v2340_v57  ;;  %v2286_v43 = vsel %vm1372_vm10, %v9207_v33, %v9413_v61  ;;  %v13497_v57 = vld [vmem:[#allocation26_spill] sm:$0xff] }
 0x618   : > { %v9487_v54 = vpop.permute.xlu1 %2194  ;;  %2477 = vmatprep.subr.mxu1 %v2291_v48  ;;  %2582 = vmatprep.subr.mxu0 %v2339_v15  ;;  %v9489_v37 = vpop.permute.xlu0 %2186  ;;  %v13498_v48 = vld [vmem:[#allocation28_spill] sm:$0xff]  ;;  %v13499_v15 = vld [vmem:[#allocation25_spill] sm:$0xff] }
 0x619   : > { %2478 = vmatpush1.msra.mxu1 %v2290_v7  ;;  %2583 = vmatpush1.msra.mxu0 %v2338_v46  ;;  %v2273_v7 = vsel %vm1372_vm10, %v13499_v15, %v13498_v48  ;;  %v13500_v46 = vld [vmem:[#allocation23_spill] sm:$0xff] }
 0x61a   : > { %2479 = vmatprep.subr.mxu1 %v2289_v13  ;;  %2584 = vmatprep.subr.mxu0 %v2337_v55  ;;  %v2335_v55 = vsel %vm1372_vm10, %v9423_v27, %v9425_v30 }
 0x61b   : > { %2480 = vmatpush1.msra.mxu1 %v2288_v8  ;;  %2585 = vmatpush1.msra.mxu0 %v2336_v36 }
 0x61c   : > { %v9517_v16 = vpop.permute.xlu1 %2180  ;;  %2481 = vmatprep.subr.mxu1 %v2287_v38  ;;  %7351 = vmatmul.mubr.msk.f32.vlgmr.msra.gmra.mxu0 %vm13354_vm1, %v9506_v32  ;;  %v2095_v45 = vpop.permute.xlu0 %2094 }
 0x61d   : > { %7432 = vmatprep.subr.mxu0 %v9425_v30  ;;  %2482 = vmatpush1.msra.mxu1 %v2286_v43  ;;  %v2285_v34 = vsel %vm1372_vm10, %v2095_v45, %v9441_v44  ;;  %v2284_v42 = vsel %vm1372_vm10, %v9161_v0, %v2095_v45  ;;  %v2282_v0 = vsel %vm1372_vm10, %v9215_v41, %v9286_v18  ;;  %v9606_v30 = vld [vmem:[%s13483_s10 + $0x28] sm:$0xff]  ;;  %v13504_v43 = vld [vmem:[#allocation38_spill] sm:$0xff] }
 0x61e   : > { %7433 = vmatpush3.msra.mxu0 %v9404_v62  ;;  %2483 = vmatprep.subr.mxu1 %v2285_v34  ;;  %v2281_v62 = vsel %vm1372_vm10, %v9390_v3, %v9359_v9  ;;  %v2279_v41 = vsel %vm1372_vm10, %v9083_v26, %v9101_v14  ;;  %v2329_v34 = vsel %vm1372_vm10, %v13504_v43, %v9370_v47 }
 0x61f   : > { %7434 = vmatprep.subr.mxu0 %v9447_v19  ;;  %2484 = vmatpush1.msra.mxu1 %v2284_v42 }
 0x620   : > { %7435 = vmatpush3.msra.mxu0 %v9431_v58  ;;  %v9535_v33 = vpop.permute.xlu1 %2184  ;;  %2485 = vmatprep.subr.mxu1 %v2283_v60  ;;  %v9537_v61 = vpop.permute.xlu0 %2188  ;;  %v2280_v58 = vsel %vm1372_vm10, %v9181_v20, %v9390_v3  ;;  %v13493_v20 = vld [vmem:[#allocation24_spill] sm:$0xff] }
 0x621   : > { %7436 = vmatprep.subr.mxu0 %v9327_v50  ;;  %2486 = vmatpush1.msra.mxu1 %v2282_v0  ;;  %v2277_v3 = vsel %vm1372_vm10, %v13493_v20, %v9127_v4 }
 0x622   : > { %7437 = vmatpush3.msra.mxu0 %v9269_v39  ;;  %2487 = vmatprep.subr.mxu1 %v2281_v62  ;;  %v2278_v39 = vsel %vm1372_vm10, %v8925_v2, %v9083_v26  ;;  %v13495_v2 = vld [vmem:[#allocation27_spill] sm:$0xff]  ;;  %v13496_v26 = vld [vmem:[#allocation29_spill] sm:$0xff] }
 0x623   : > { %7438 = vmatprep.subr.mxu0 %v9370_v47  ;;  %2488 = vmatpush1.msra.mxu1 %v2280_v58  ;;  %v2275_v21 = vsel %vm1372_vm10, %v13496_v26, %v13495_v2  ;;  %v13506_v47 = vld [vmem:[#allocation41_spill] sm:$0xff] }
 0x624   : > { %7439 = vmatpush3.msra.mxu0 %v9350_v22  ;;  %2489 = vmatprep.subr.mxu1 %v2279_v41  ;;  %v9555_v18 = vpop.permute.xlu0 %2174  ;;  %v9560_v5 = vpop.permute.xlu1 %2182  ;;  %v13494_v22 = vld [vmem:[#allocation22_spill] sm:$0xff]  ;;  %v2327_v0 = vsel %vm1372_vm10, %v13506_v47, %v9429_v53  ;;  %v13507_v62 = vld [vmem:[#allocation33_spill] sm:$0xff] }
 0x625   : > { %7440 = vmatprep.subr.mxu0 %v9429_v53  ;;  %2490 = vmatpush1.msra.mxu1 %v2278_v39  ;;  %v2276_v51 = vsel %vm1372_vm10, %v13494_v22, %v13493_v20  ;;  %v2326_v58 = vsel %vm1372_vm10, %v13507_v62, %v13506_v47  ;;  %v13508_v39 = vld [vmem:[#allocation31_spill] sm:$0xff] }
 0x626   : > { %7441 = vmatpush3.msra.mxu0 %v9411_v52  ;;  %2491 = vmatprep.subr.mxu1 %v2277_v3  ;;  %v2274_v52 = vsel %vm1372_vm10, %v13497_v57, %v13496_v26  ;;  %v9658_v53 = vld [vmem:[%s13483_s10 + $0x58] sm:$0xff] }
 0x627   : > { %7442 = vmatprep.subr.mxu0 %v9445_v11  ;;  %2492 = vmatpush1.msra.mxu1 %v2276_v51  ;;  %v13511_v51 = vld [vmem:[#allocation39_spill] sm:$0xff] }
 0x628   : > { %7443 = vmatpush3.msra.mxu0 %v9435_v12  ;;  %2493 = vmatprep.subr.mxu1 %v2275_v21  ;;  %v9575_v17 = vpop.permute.xlu0 %2178  ;;  %v2272_v12 = vsel %vm1372_vm10, %v13500_v46, %v13499_v15  ;;  %v9588_v13 = vpop.permute.xlu1 %2168  ;;  %v2321_v26 = vsel %vm1372_vm10, %v13511_v51, %v9381_v59  ;;  %v2320_v57 = vsel %vm1372_vm10, %v9460_v35, %v13511_v51 }
 0x629   : > { %7444 = vmatprep.subr.mxu0 %v9343_v49  ;;  %2494 = vmatpush1.msra.mxu1 %v2274_v52  ;;  %v2318_v35 = vsel %vm1372_vm10, %v9487_v54, %v9458_v40  ;;  %v13512_v52 = vld [vmem:[#allocation35_spill] sm:$0xff] }
 0x62a   : > { %7445 = vmatpush3.msra.mxu0 %v9281_v23  ;;  %2495 = vmatprep.subr.mxu1 %v2273_v7  ;;  %v2334_v23 = vsel %vm1372_vm10, %v9224_v56, %v9423_v27  ;;  %v13502_v56 = vld [vmem:[#allocation36_spill] sm:$0xff]  ;;  %v2023_v54 = vld [vmem:[%s13483_s10 + $0x18] sm:$0xff] }
 0x62b   : > { %7446 = vmatprep.subr.mxu0 %v9381_v59  ;;  %2496 = vmatpush1.msra.mxu1 %v2272_v12  ;;  %v2020_v59 = vld [vmem:[%s13483_s10] sm:$0xff]  ;;  %v2027_v12 = vld [vmem:[%s13483_s10 + $0x38] sm:$0xff] }
 0x62c   : > { %7447 = vmatpush3.msra.mxu0 %v9361_v24  ;;  %2497 = vmatprep.subr.mxu1 %v2335_v55  ;;  %v2239_v8 = vpop.permute.xlu0 %2238  ;;  %v13501_v24 = vmov 0.0   ;;  %v9618_v27 = vpop.permute.xlu1 %2172  ;;  %v13513_v7 = vld [vmem:[#allocation40_spill] sm:$0xff] }
 0x62d   : > { %7448 = vmatprep.subr.mxu0 %v9433_v28  ;;  %2498 = vmatpush2.msra.mxu1 %v2334_v23  ;;  %v2333_v36 = vsel %vm1372_vm10, %v2239_v8, %v9447_v19  ;;  %v2332_v38 = vsel %vm1372_vm10, %v9189_v1, %v2239_v8  ;;  %v2331_v1 = vsel %vm1372_vm10, %v13502_v56, %v9327_v50  ;;  %v9631_v50 = vld [vmem:[%s13483_s10 + $0x40] sm:$0xff] }
 0x62e   : > { %7449 = vmatpush3.msra.mxu0 %v9415_v31  ;;  %2499 = vmatprep.subr.mxu1 %v2333_v36  ;;  %v13503_v31 = vld [vmem:[#allocation32_spill] sm:$0xff] }
 0x62f   : > { %2624 = vmatprep.mubr.f32.mxu0 %v13501_v24  ;;  %7450 = vmatprep.subr.mxu0 %v9449_v10  ;;  %v2330_v45 = vsel %vm1372_vm10, %v13503_v31, %v13502_v56  ;;  %v2029_v36 = vld [vmem:[%s13483_s10 + $0x48] sm:$0xff] }
 0x630   : > { %2500 = vmatpush2.msra.mxu1 %v2332_v38  ;;  %7352 = vmatmul.mubr.msk.f32.gmra.mxu0 %vm13354_vm1, %v9606_v30  ;;  %v9616_v19 = vpop.permute.xlu0 %2176  ;;  %v9650_v41 = vpop.permute.xlu1 %2170 }
 0x631   : > { %7451 = vmatpush3.msra.mxu0 %v9441_v44  ;;  %2501 = vmatprep.subr.mxu1 %v2331_v1  ;;  %v13505_v44 = vld [vmem:[#allocation30_spill] sm:$0xff] }
 0x632   : > { %7452 = vmatprep.subr.mxu0 %v9489_v37  ;;  %2502 = vmatpush2.msra.mxu1 %v2330_v45  ;;  %v2328_v42 = vsel %vm1372_vm10, %v13505_v44, %v13504_v43 }
 0x633   : > { %7453 = vmatpush3.msra.mxu0 %v9297_v6  ;;  %2503 = vmatprep.subr.mxu1 %v2329_v34 }
 0x634   : > { %2630 = vmatprep.mubr.f32.mxu0 %v13501_v24  ;;  %7454 = vmatprep.subr.mxu0 %v9517_v16  ;;  %v2215_v60 = vpop.permute.xlu0 %2214 }
 0x635   : > { %2504 = vmatpush2.msra.mxu1 %v2328_v42  ;;  %7353 = vmatmul.mubr.msk.f32.gmra.mxu0 %vm13354_vm1, %v9631_v50  ;;  %v2325_v6 = vsel %vm1372_vm10, %v2215_v60, %v9445_v11  ;;  %v2324_v20 = vsel %vm1372_vm10, %v13508_v39, %v2215_v60 }
 0x636   : > { %7455 = vmatpush3.msra.mxu0 %v9359_v9  ;;  %2505 = vmatprep.subr.mxu1 %v2327_v0  ;;  %v13509_v9 = vld [vmem:[#allocation37_spill] sm:$0xff] }
 0x637   : > { %7456 = vmatprep.subr.mxu0 %v9555_v18  ;;  %2506 = vmatpush2.msra.mxu1 %v2326_v58  ;;  %v2323_v3 = vsel %vm1372_vm10, %v13509_v9, %v9343_v49  ;;  %v9681_v49 = vpop.permute.xlu1 %2156 }
 0x638   : > { %7457 = vmatpush3.msra.mxu0 %v9101_v14  ;;  %2507 = vmatprep.subr.mxu1 %v2325_v6  ;;  %v9661_v11 = vpop.permute.xlu0 %2162  ;;  %v13510_v14 = vld [vmem:[#allocation34_spill] sm:$0xff] }
 0x639   : > { %2636 = vmatprep.mubr.f32.mxu0 %v13501_v24  ;;  %7458 = vmatprep.subr.mxu0 %v9588_v13  ;;  %v2322_v22 = vsel %vm1372_vm10, %v13510_v14, %v13509_v9 }
 0x63a   : > { %2508 = vmatpush2.msra.mxu1 %v2324_v20  ;;  %7354 = vmatmul.mubr.msk.f32.gmra.mxu0 %vm13354_vm1, %v9658_v53 }
 0x63b   : > { %7459 = vmatpush3.msra.mxu0 %v9127_v4  ;;  %2509 = vmatprep.subr.mxu1 %v2323_v3  ;;  %v2319_v4 = vsel %vm1372_vm10, %v9458_v40, %v9433_v28  ;;  %v2024_v40 = vld [vmem:[%s13483_s10 + $0x20] sm:$0xff]  ;;  %v2161_v46 = vpop.permute.xlu1 %2160 }
 0x63c   : > { %2510 = vmatpush2.msra.mxu1 %v2322_v22  ;;  %7460 = vmatprep.subr.mxu0 %v9661_v11  ;;  %v2191_v21 = vpop.permute.xlu0 %2190  ;;  %v2307_v23 = vsel %vm1372_vm10, %v2161_v46, %v9661_v11 }
 0x63d   : > { %2511 = vmatprep.subr.mxu1 %v2321_v26  ;;  %7461 = vmatpush3.msra.mxu0 %v13495_v2  ;;  %v2317_v2 = vsel %vm1372_vm10, %v2191_v21, %v9449_v10  ;;  %v2316_v28 = vsel %vm1372_vm10, %v9537_v61, %v2191_v21  ;;  %v2315_v10 = vsel %vm1372_vm10, %v9535_v33, %v9489_v37 }
 0x63e   : > { %2512 = vmatpush2.msra.mxu1 %v2320_v57  ;;  %7462 = vmatprep.subr.mxu0 %v9681_v49  ;;  %v2314_v61 = vsel %vm1372_vm10, %v9560_v5, %v9535_v33  ;;  %v2313_v37 = vsel %vm1372_vm10, %v9575_v17, %v9517_v16  ;;  %v2312_v33 = vsel %vm1372_vm10, %v9616_v19, %v9575_v17  ;;  %v2026_v16 = vld [vmem:[%s13483_s10 + $0x30] sm:$0xff] }
 0x63f   : > { %2513 = vmatprep.subr.mxu1 %v2319_v4  ;;  %7463 = vmatpush3.msra.mxu0 %v13498_v48  ;;  %v2310_v17 = vsel %vm1372_vm10, %v9650_v41, %v9618_v27  ;;  %v2155_v8 = vpop.permute.xlu1 %2154 }
 0x640   : > { %2707 = vmatprep.mubr.f32.mxu0 %v13512_v52  ;;  %2514 = vmatpush2.msra.mxu1 %v2318_v35  ;;  %v2165_v15 = vpop.permute.xlu0 %2164 }
 0x641   : > { %2708 = vmatmul.mubr.f32.vlgmr.msra.gmra.mxu0 %v2020_v59  ;;  %7682 = vmatprep.subr.mxu0 %v13513_v7 }
 0x642   : > { %2515 = vmatprep.subr.mxu1 %v2317_v2  ;;  %7683 = vmatpush3.msra.mxu0 %v13513_v7 }
 0x643   : > { %2516 = vmatpush2.msra.mxu1 %v2316_v28  ;;  %7684 = vmatprep.subr.mxu0 %v9443_v63 }
 0x644   : > { %2517 = vmatprep.subr.mxu1 %v2315_v10  ;;  %2712 = vmatprep.mubr.f32.mxu0 %v2024_v40  ;;  %v2167_v48 = vpop.permute.xlu0 %2166 }
 0x645   : > { %7685 = vmatpush3.msra.mxu0 %v9443_v63  ;;  %2518 = vmatpush2.msra.mxu1 %v2314_v61  ;;  %v2311_v63 = vsel %vm1372_vm10, %v9618_v27, %v9555_v18  ;;  %v2309_v5 = vsel %vm1372_vm10, %v2167_v48, %v9588_v13  ;;  %v2030_v18 = vld [vmem:[%s13483_s10 + $0x50] sm:$0xff] }
 0x646   : > { %2713 = vmatmul.mubr.f32.gmra.mxu0 %v2023_v54  ;;  %7686 = vmatprep.subr.mxu0 %v9316_v29 }
 0x647   : > { %2519 = vmatprep.subr.mxu1 %v2313_v37  ;;  %7687 = vmatpush3.msra.mxu0 %v9316_v29  ;;  %v2308_v29 = vsel %vm1372_vm10, %v2165_v15, %v2167_v48 }
 0x648   : > { %2520 = vmatpush2.msra.mxu1 %v2312_v33  ;;  %7688 = vmatprep.subr.mxu0 %v9372_v25  ;;  %v2159_v55 = vpop.permute.xlu0 %2158 }
 0x649   : > { %2521 = vmatprep.subr.mxu1 %v2311_v63  ;;  %2717 = vmatprep.mubr.f32.mxu0 %v2027_v12  ;;  %v2306_v13 = vsel %vm1372_vm10, %v2159_v55, %v2161_v46  ;;  %v13514_v63 = vld [vmem:[#allocation21_spill] sm:$0xff] }
 0x64a   : > { %7689 = vmatpush3.msra.mxu0 %v9372_v25  ;;  %2522 = vmatpush2.msra.mxu1 %v2310_v17  ;;  %v2305_v25 = vsel %vm1372_vm10, %v2155_v8, %v9681_v49 }
 0x64b   : > { %2718 = vmatmul.mubr.f32.gmra.mxu0 %v2026_v16  ;;  %2523 = vmatprep.subr.mxu1 %v2309_v5 }
 0x64c   : > { %2524 = vmatpush2.msra.mxu1 %v2308_v29  ;;  %2722 = vmatprep.mubr.f32.mxu0 %v2030_v18  ;;  %v2153_v38 = vpop.permute.xlu0 %2152 }
 0x64d   : > { %2525 = vmatprep.subr.mxu1 %v2307_v23  ;;  %v2304_v56 = vsel %vm1372_vm10, %v2153_v38, %v2155_v8 }
 0x64e   : > { %2526 = vmatpush2.msra.mxu1 %v2306_v13 }
 0x64f   : > { %2723 = vmatmul.mubr.f32.gmra.mxu0 %v2029_v36  ;;  %2527 = vmatprep.subr.mxu1 %v2305_v25 }
 0x650   : > { %7690 = vmatprep.mubr.msk.f32.mxu0 %vm13354_vm1, %v9506_v32  ;;  %2528 = vmatpush2.msra.mxu1 %v2304_v56 }
 0x651   : > { %2530 = vmatmul.mubr.f32.vlgmr.msra.gmra.mxu1 %v2020_v59 }
 0x652   : > { %2535 = vmatprep.mubr.f32.mxu1 %v2024_v40 }
 0x653   : > { %7691 = vmatmul.mubr.msk.f32.vlgmr.msra.gmra.mxu0 %vm13354_vm1, %v9606_v30 }
 0x654   : > { %7693 = vmatprep.mubr.msk.f32.mxu0 %vm13354_vm1, %v9631_v50  ;;  %v9772_v50 = vpop.permute.xlu1 %2053 }
 0x655   : > { %2536 = vmatmul.mubr.f32.gmra.mxu1 %v2023_v54 }
 0x656   : > { %2541 = vmatprep.mubr.f32.mxu1 %v2027_v12 }
 0x657   : > { %7694 = vmatmul.mubr.msk.f32.gmra.mxu0 %vm13354_vm1, %v9658_v53 }
 0x658   : > { %v2044_v47 = vpop.permute.xlu1 %2043 }
 0x659   : > { %2542 = vmatmul.mubr.f32.gmra.mxu1 %v2026_v16  ;;  %v9774_v42 = vpop.permute.xlu0 %2048 }
 0x65a   : > { %2547 = vmatprep.mubr.f32.mxu1 %v2030_v18 }
 0x65c   : > { %v2039_v41 = vpop.permute.xlu1 %2038 }
 0x65d   : > { %2548 = vmatmul.mubr.f32.gmra.mxu1 %v2029_v36  ;;  %v9776_v62 = vpop.permute.xlu0 %2846 }
 0x65e   : > { %3792 = vmatprep.mubr.f32.mxu1 %v13501_v24 }
 0x660   : > { %v2837_v57 = vpop.permute.xlu1 %2836 }
 0x661   : > { %v9778_v3 = vpop.permute.xlu0 %2841 }
 0x665   : > { %v2832_v46 = vpop.permute.xlu0 %2831 }
 0x6dc   : > { %v2620_v32 = vpop.f32.mrf.mxu0 }
 0x6de   : > { %v2622_v1 = vpop.f32.mrf.mxu0 }
 0x6f0   : > { %v2626_v19 = vpop.f32.mrf.mxu0 }
 0x6f2   : > { %v9762_v27 = vpop.f32.mrf.mxu0 }
 0x6f5   : > { %v9764_v31 = vpop.f32.mrf.mxu0 }
 0x6f7   : > { %v9766_v30 = vpop.f32.mrf.mxu0 }
 0x6fa   : > { %v9768_v45 = vpop.f32.mrf.mxu0 }
 0x6fc   : > { %v9770_v43 = vpop.f32.mrf.mxu0 }
 0x701   : > { %v7464_v34 = vpop.f32.mrf.mxu0 }
 0x703   : > { %v7465_v44 = vpop.f32.mrf.mxu0 }
 0x704   : > { %v7466_v53 = vadd.f32 %v7465_v44, %v7464_v34 }
 0x706   : > { %v7467_v60 = vpop.f32.mrf.mxu0  ;;  %v2710_v35 = vadd.f32 %v7466_v53, %v2039_v41 }
 0x708   : > { %v7468_v0 = vpop.f32.mrf.mxu0 }
 0x709   : > { %v7469_v39 = vadd.f32 %v7468_v0, %v7467_v60 }
 0x70b   : > { %v7470_v6 = vpop.f32.mrf.mxu0  ;;  %v2715_v22 = vadd.f32 %v7469_v39, %v2044_v47 }
 0x70d   : > { %v7471_v58 = vpop.f32.mrf.mxu0 }
 0x70e   : > { %v7472_v59 = vadd.f32 %v7471_v58, %v7470_v6 }
 0x70f   : > { %v7473_v20 = vpop.f32.mrf.mxu0 }
 0x710   : > { %v2720_v55 = vadd.f32 %v7472_v59, %v9774_v42 }
 0x711   : > { %v7474_v11 = vpop.f32.mrf.mxu0  ;;  %v2531_v9 = vpop.f32.mrf.mxu1 }
 0x712   : > { %v7475_v14 = vadd.f32 %v7474_v11, %v7473_v20  ;;  %v2532_v26 = vadd.f32 %v2531_v9, %v2039_v41 }
 0x713   : > { %v7692_v51 = vpop.f32.mrf.mxu0  ;;  %v2533_v21 = vpop.f32.mrf.mxu1 }
 0x714   : > { %v2800_v49 = vadd.f32 %v7692_v51, %v2715_v22  ;;  %v2534_v4 = vadd.f32 %v2533_v21, %v2039_v41  ;;  %v2725_v15 = vadd.f32 %v7475_v14, %v9772_v50  ;;  %v2621_v7 = vadd.f32 %v2620_v32, %v2532_v26  ;;  %v13516_v22 = vld [vmem:[#allocation20_spill] sm:$0xff] }
 0x715   : > { %v2794_v2 = vpop.f32.mrf.mxu0  ;;  %v2537_v52 = vpop.f32.mrf.mxu1 }
 0x716   : > { %vm2818_vm6 = vcmp.ge.f32.partialorder %v2800_v49, 0.0  ;;  %v2854_v28 = vmul.f32 %v2837_v57, %v2800_v49  ;;  %v2795_v40 = vadd.f32 %v2794_v2, %v2710_v35  ;;  %v2623_v10 = vadd.f32 %v2622_v1, %v2534_v4 }
 0x717   : > { %v7695_v54 = vpop.f32.mrf.mxu0  ;;  %v2538_v61 = vadd.f32 %v2537_v52, %v2044_v47  ;;  %v2539_v48 = vpop.f32.mrf.mxu1  ;;  %vm2813_vm9 = vcmp.ge.f32.partialorder %v2621_v7, 0.0  ;;  %v2849_v56 = vmul.f32 %v2832_v46, %v2621_v7 }
 0x718   : > { %v2866_v37 = vsel %vm2818_vm6, %v2800_v49, %v2854_v28  ;;  %v2810_v12 = vadd.f32 %v7695_v54, %v2725_v15  ;;  %v2540_v33 = vadd.f32 %v2539_v48, %v2044_v47  ;;  %vm2815_vm7 = vcmp.ge.f32.partialorder %v2795_v40, 0.0 }
 0x719   : > { %v2878_v16 = vmul.f32 %v2866_v37, %v13514_v63  ;;  %v2851_v5 = vmul.f32 %v2832_v46, %v2795_v40  ;;  %v2804_v17 = vpop.f32.mrf.mxu0  ;;  %v2543_v29 = vpop.f32.mrf.mxu1  ;;  %v2850_v18 = vmul.f32 %v2832_v46, %v2623_v10  ;;  %v2627_v13 = vadd.f32 %v2626_v19, %v2538_v61 }
 0x71a   : > { %vm2824_vm2 = vcmp.ge.f32.partialorder %v2810_v12, 0.0  ;;  %v2860_v8 = vmul.f32 %v9776_v62, %v2810_v12  ;;  %vm2814_vm1 = vcmp.ge.f32.partialorder %v2623_v10, 0.0  ;;  %v2805_v36 = vadd.f32 %v2804_v17, %v2720_v55 }
 0x71b   : > { %v2863_v23 = vsel %vm2815_vm7, %v2795_v40, %v2851_v5  ;;  %2907 = vrot.lane.b32.xlu1 %v2878_v16, %s13515_s22  ;;  %v2545_v38 = vpop.f32.mrf.mxu1  ;;  %v2629_v1 = vadd.f32 %v9762_v27, %v2540_v33  ;;  %v2544_v19 = vadd.f32 %v2543_v29, %v9774_v42  ;;  %v2862_v47 = vsel %vm2814_vm1, %v2623_v10, %v2850_v18 }
 0x71c   : > { %v2875_v25 = vmul.f32 %v2863_v23, %v13514_v63  ;;  %v2872_v32 = vsel %vm2824_vm2, %v2810_v12, %v2860_v8  ;;  %vm2821_vm6 = vcmp.ge.f32.partialorder %v2805_v36, 0.0  ;;  %v2857_v44 = vmul.f32 %v9778_v3, %v2805_v36 }
 0x71d   : > { %v2884_v34 = vmul.f32 %v2872_v32, %v13514_v63  ;;  %v2549_v60 = vpop.f32.mrf.mxu1  ;;  %v2852_v0 = vmul.f32 %v2837_v57, %v2627_v13  ;;  %v2546_v6 = vadd.f32 %v2545_v38, %v9774_v42  ;;  %vm2816_vm7 = vcmp.ge.f32.partialorder %v2627_v13, 0.0 }
 0x71e   : > { %2901 = vrot.lane.b32.xlu0 %v2875_v25, %s13515_s22  ;;  %v2869_v58 = vsel %vm2821_vm6, %v2805_v36, %v2857_v44  ;;  %v2550_v27 = vadd.f32 %v2549_v60, %v9772_v50  ;;  %v2861_v39 = vsel %vm2813_vm9, %v2621_v7, %v2849_v56  ;;  %v2853_v53 = vmul.f32 %v2837_v57, %v2629_v1  ;;  %v13517_v57 = vld [vmem:[#allocation19_spill] sm:$0xff] }
 0x71f   : > { %2919 = vrot.lane.b32.xlu1 %v2884_v34, %s13515_s22  ;;  %v2551_v41 = vpop.f32.mrf.mxu1  ;;  %v2881_v20 = vmul.f32 %v2869_v58, %v13514_v63  ;;  %v2633_v11 = vadd.f32 %v9764_v31, %v2544_v19  ;;  %v2635_v9 = vadd.f32 %v9766_v30, %v2546_v6  ;;  %v2874_v42 = vmul.f32 %v2862_v47, %v13516_v22 }
 0x720   : > { %v2552_v14 = vadd.f32 %v2551_v41, %v9772_v50  ;;  %v2864_v51 = vsel %vm2816_vm7, %v2627_v13, %v2852_v0  ;;  %vm2817_vm1 = vcmp.ge.f32.partialorder %v2629_v1, 0.0  ;;  %v2639_v26 = vadd.f32 %v9768_v45, %v2550_v27 }
 0x721   : > { %vm2820_vm2 = vcmp.ge.f32.partialorder %v2635_v9, 0.0  ;;  %v2856_v21 = vmul.f32 %v9778_v3, %v2635_v9  ;;  %v2873_v49 = vmul.f32 %v2861_v39, %v13517_v57  ;;  %v2865_v31 = vsel %vm2817_vm1, %v2629_v1, %v2853_v53 }
 0x722   : > { %2913 = vrot.lane.b32.xlu0 %v2881_v20, %s13515_s22  ;;  %v2855_v30 = vmul.f32 %v9778_v3, %v2633_v11  ;;  %v2641_v50 = vadd.f32 %v9770_v43, %v2552_v14  ;;  %v2876_v4 = vmul.f32 %v2864_v51, %v13517_v57  ;;  %vm2819_vm9 = vcmp.ge.f32.partialorder %v2633_v11, 0.0 }
 0x723   : > { %2899 = vrot.lane.b32.xlu1 %v2874_v42, %s13515_s22  ;;  %v2868_v59 = vsel %vm2820_vm2, %v2635_v9, %v2856_v21  ;;  %v2858_v45 = vmul.f32 %v9776_v62, %v2639_v26  ;;  %vm2822_vm6 = vcmp.ge.f32.partialorder %v2639_v26, 0.0  ;;  %v2877_v35 = vmul.f32 %v2865_v31, %v13516_v22 }
 0x724   : > { %v2867_v2 = vsel %vm2819_vm9, %v2633_v11, %v2855_v30  ;;  %v2859_v52 = vmul.f32 %v9776_v62, %v2641_v50  ;;  %v2880_v3 = vmul.f32 %v2868_v59, %v13516_v22  ;;  %vm2823_vm7 = vcmp.ge.f32.partialorder %v2641_v50, 0.0 }
 0x725   : > { %v2870_v28 = vsel %vm2822_vm6, %v2639_v26, %v2858_v45  ;;  %v2879_v43 = vmul.f32 %v2867_v2, %v13517_v57  ;;  %vm13548_vm1 = vcmask 261120   ;;  %vm13377_vm2 = vmmov 0  }
 0x726   : > { %2897 = vrot.lane.b32.xlu0 %v2873_v49, %s13515_s22  ;;  %v2871_v15 = vsel %vm2823_vm7, %v2641_v50, %v2859_v52  ;;  %v2882_v7 = vmul.f32 %v2870_v28, %v13517_v57  ;;  %vm13568_vm9 = vmmov %vm13548_vm1  ;;  %vm13569_vm6 = vcmask 1043456  }
 0x727   : > { %2903 = vrot.lane.b32.xlu1 %v2876_v4, %s13515_s22  ;;  %v2883_v40 = vmul.f32 %v2871_v15, %v13516_v22  ;;  %vm13570_vm7 = vmmov %vm13569_vm6 }
 0x72a   : > { %2905 = vrot.lane.b32.xlu0 %v2877_v35, %s13515_s22 }
 0x72b   : > { %2911 = vrot.lane.b32.xlu1 %v2880_v3, %s13515_s22 }
 0x72e   : > { %2909 = vrot.lane.b32.xlu0 %v2879_v43, %s13515_s22 }
 0x72f   : > { %2915 = vrot.lane.b32.xlu1 %v2882_v7, %s13515_s22 }
 0x732   : > { %2917 = vrot.lane.b32.xlu0 %v2883_v40, %s13515_s22 }
 0x78d   : > { %v2908_v62 = vpop.permute.xlu1 %2907 }
 0x790   : > { %v2902_v10 = vpop.permute.xlu0 %2901 }
 0x791   : > { %v2920_v54 = vpop.permute.xlu1 %2919 }
 0x794   : > { %v2914_v61 = vpop.permute.xlu0 %2913 }
 0x795   : > { %v2900_v48 = vpop.permute.xlu1 %2899 }
 0x796   : > { %v2922_v46 = vsel %vm1155_vm5, %v2900_v48, %v2902_v10 }
 0x797   : > { %2943 = vst.msk [vmem:[#allocation3 + $0x10] sm:$0xff] %vm1255_vm15, %v2922_v46 }
 0x798   : > { %v2898_v37 = vpop.permute.xlu0 %2897 }
 0x799   : > { %2941 = vst.msk [vmem:[#allocation3] sm:$0xff] %vm13378_vm11, %v2898_v37  ;;  %v2904_v12 = vpop.permute.xlu1 %2903  ;;  %v2921_v36 = vsel %vm1155_vm5, %v2898_v37, %v2900_v48 }
 0x79a   : > { %2944 = vst.msk [vmem:[#allocation3 + $0x18] sm:$0xff] %vm13378_vm11, %v2904_v12 }
 0x79c   : > { %v2906_v33 = vpop.permute.xlu0 %2905 }
 0x79d   : > { %v2924_v16 = vsel %vm1155_vm5, %v2906_v33, %v2908_v62  ;;  %v9827_v5 = vpop.permute.xlu1 %2911  ;;  %v2923_v56 = vsel %vm1155_vm5, %v2904_v12, %v2906_v33 }
 0x79e   : > { %2946 = vst.msk [vmem:[#allocation3 + $0x28] sm:$0xff] %vm1255_vm15, %v2924_v16  ;;  %v2926_v55 = vsel %vm1155_vm5, %v9827_v5, %v2914_v61  ;;  %v2955_v13 = vld [vmem:[#allocation3 + $0x10] sm:$0xff] }
 0x79f   : > { %2949 = vst.msk [vmem:[#allocation3 + $0x40] sm:$0xff] %vm1255_vm15, %v2926_v55 }
 0x7a0   : > { %v9833_v17 = vpop.permute.xlu0 %2909  ;;  %v9835_v29 = vld [vmem:[#allocation3] sm:$0xff] }
 0x7a1   : > { %2947 = vst.msk [vmem:[#allocation3 + $0x30] sm:$0xff] %vm13378_vm11, %v9833_v17  ;;  %3105 = vrot.lane.b32.xlu1 %v9835_v29, %s13467_s26  ;;  %3201 = vrot.lane.b32.xlu0 %v9835_v29, %s13466_s28  ;;  %v9843_v18 = vpop.permute.xlu1 %2915  ;;  %v2956_v38 = vld [vmem:[#allocation3 + $0x18] sm:$0xff]  ;;  %v2925_v39 = vsel %vm1155_vm5, %v9833_v17, %v9827_v5 }
 0x7a2   : > { %2950 = vst.msk [vmem:[#allocation3 + $0x48] sm:$0xff] %vm13378_vm11, %v9843_v18  ;;  %vm4440_vm11 = vcmask 746496  }
 0x7a4   : > { %v9847_v8 = vpop.permute.xlu0 %2917 }
 0x7a5   : > { %v2928_v23 = vsel %vm1155_vm5, %v9847_v8, %v2920_v54  ;;  %3205 = vrot.lane.b32.xlu1 %v2955_v13, %s13466_s28  ;;  %3041 = vrot.lane.b32.xlu0 %v9835_v29, %s13518_s7  ;;  %v2958_v25 = vld [vmem:[#allocation3 + $0x28] sm:$0xff]  ;;  %v2927_v2 = vsel %vm1155_vm5, %v9843_v18, %v9847_v8 }
 0x7a6   : > { %2952 = vst.msk [vmem:[#allocation3 + $0x58] sm:$0xff] %vm1255_vm15, %v2928_v23  ;;  %v2961_v44 = vld [vmem:[#allocation3 + $0x40] sm:$0xff] }
 0x7a8   : > { %v2959_v32 = vld [vmem:[#allocation3 + $0x30] sm:$0xff] }
 0x7a9   : > { %3173 = vrot.lane.b32.xlu1 %v2955_v13, %s13463_s25  ;;  %3009 = vrot.lane.b32.xlu0 %v9835_v29, %s13464_s4  ;;  %v2962_v59 = vld [vmem:[#allocation3 + $0x48] sm:$0xff] }
 0x7ad   : > { %3045 = vrot.lane.b32.xlu1 %v2955_v13, %s13518_s7  ;;  %2977 = vrot.lane.b32.xlu0 %v9835_v29, %s13519_s0  ;;  %v2964_v28 = vld [vmem:[#allocation3 + $0x58] sm:$0xff] }
 0x7b1   : > { %3141 = vrot.lane.b32.xlu1 %v2955_v13, %s13465_s1  ;;  %3169 = vrot.lane.b32.xlu0 %v9835_v29, %s13463_s25 }
 0x7b5   : > { %3013 = vrot.lane.b32.xlu1 %v2955_v13, %s13464_s4  ;;  %3137 = vrot.lane.b32.xlu0 %v9835_v29, %s13465_s1 }
 0x7b9   : > { %3109 = vrot.lane.b32.xlu1 %v2955_v13, %s13467_s26  ;;  %3073 = vrot.lane.b32.xlu0 %v9835_v29, %s13468_s27 }
 0x7bd   : > { %2981 = vrot.lane.b32.xlu1 %v2955_v13, %s13519_s0  ;;  %3203 = vrot.lane.b32.xlu0 %v2921_v36, %s13466_s28 }
 0x7c1   : > { %3171 = vrot.lane.b32.xlu1 %v2921_v36, %s13463_s25  ;;  %3043 = vrot.lane.b32.xlu0 %v2921_v36, %s13518_s7 }
 0x7c5   : > { %3139 = vrot.lane.b32.xlu1 %v2921_v36, %s13465_s1  ;;  %3011 = vrot.lane.b32.xlu0 %v2921_v36, %s13464_s4 }
 0x7c9   : > { %3075 = vrot.lane.b32.xlu1 %v2921_v36, %s13468_s27  ;;  %2979 = vrot.lane.b32.xlu0 %v2921_v36, %s13519_s0 }
 0x7cd   : > { %3263 = vrot.lane.b32.xlu1 %v2955_v13, %s13469_s14  ;;  %3077 = vrot.lane.b32.xlu0 %v2955_v13, %s13468_s27 }
 0x7d1   : > { %3261 = vrot.lane.b32.xlu1 %v2921_v36, %s13469_s14  ;;  %3107 = vrot.lane.b32.xlu0 %v2921_v36, %s13467_s26 }
 0x7d5   : > { %3207 = vrot.lane.b32.xlu1 %v2956_v38, %s13466_s28  ;;  %3047 = vrot.lane.b32.xlu0 %v2956_v38, %s13518_s7 }
 0x7d9   : > { %3015 = vrot.lane.b32.xlu0 %v2956_v38, %s13464_s4  ;;  %3209 = vrot.lane.b32.xlu1 %v2923_v56, %s13466_s28 }
 0x7dd   : > { %2983 = vrot.lane.b32.xlu0 %v2956_v38, %s13519_s0  ;;  %3179 = vrot.lane.b32.xlu1 %v2958_v25, %s13463_s25 }
 0x7e1   : > { %3175 = vrot.lane.b32.xlu0 %v2956_v38, %s13463_s25  ;;  %3051 = vrot.lane.b32.xlu1 %v2958_v25, %s13518_s7 }
 0x7e5   : > { %3143 = vrot.lane.b32.xlu0 %v2956_v38, %s13465_s1  ;;  %3147 = vrot.lane.b32.xlu1 %v2958_v25, %s13465_s1 }
 0x7e9   : > { %3111 = vrot.lane.b32.xlu0 %v2956_v38, %s13467_s26  ;;  %3019 = vrot.lane.b32.xlu1 %v2958_v25, %s13464_s4 }
 0x7ed   : > { %3079 = vrot.lane.b32.xlu0 %v2956_v38, %s13468_s27  ;;  %3115 = vrot.lane.b32.xlu1 %v2958_v25, %s13467_s26 }
 0x7f1   : > { %3265 = vrot.lane.b32.xlu0 %v2956_v38, %s13469_s14  ;;  %2987 = vrot.lane.b32.xlu1 %v2958_v25, %s13519_s0 }
 0x7f5   : > { %3211 = vrot.lane.b32.xlu0 %v2958_v25, %s13466_s28  ;;  %3083 = vrot.lane.b32.xlu1 %v2958_v25, %s13468_s27 }
 0x7f9   : > { %3049 = vrot.lane.b32.xlu0 %v2923_v56, %s13518_s7  ;;  %3177 = vrot.lane.b32.xlu1 %v2923_v56, %s13463_s25 }
 0x7fd   : > { %3017 = vrot.lane.b32.xlu0 %v2923_v56, %s13464_s4  ;;  %3145 = vrot.lane.b32.xlu1 %v2923_v56, %s13465_s1 }
 0x801   : > { %2985 = vrot.lane.b32.xlu0 %v2923_v56, %s13519_s0  ;;  %3113 = vrot.lane.b32.xlu1 %v2923_v56, %s13467_s26 }
 0x805   : > { %3081 = vrot.lane.b32.xlu1 %v2923_v56, %s13468_s27  ;;  %3213 = vrot.lane.b32.xlu0 %v2959_v32, %s13466_s28 }
 0x809   : > { %3269 = vrot.lane.b32.xlu1 %v2958_v25, %s13469_s14  ;;  %3053 = vrot.lane.b32.xlu0 %v2959_v32, %s13518_s7 }
 0x80d   : > { %3267 = vrot.lane.b32.xlu1 %v2923_v56, %s13469_s14  ;;  %3021 = vrot.lane.b32.xlu0 %v2959_v32, %s13464_s4 }
 0x811   : > { %3117 = vrot.lane.b32.xlu1 %v2959_v32, %s13467_s26  ;;  %2989 = vrot.lane.b32.xlu0 %v2959_v32, %s13519_s0 }
 0x813   : > { %v9916_v1 = vpop.permute.xlu1 %3105  ;;  %v9918_v34 = vpop.permute.xlu0 %3201 }
 0x815   : > { %3217 = vrot.lane.b32.xlu1 %v2961_v44, %s13466_s28  ;;  %3181 = vrot.lane.b32.xlu0 %v2959_v32, %s13463_s25 }
 0x817   : > { %v9922_v19 = vpop.permute.xlu1 %3205  ;;  %v9924_v60 = vpop.permute.xlu0 %3041 }
 0x819   : > { %3185 = vrot.lane.b32.xlu1 %v2961_v44, %s13463_s25  ;;  %3149 = vrot.lane.b32.xlu0 %v2959_v32, %s13465_s1 }
 0x81b   : > { %v9928_v47 = vpop.permute.xlu1 %3173  ;;  %v9930_v0 = vpop.permute.xlu0 %3009 }
 0x81d   : > { %3057 = vrot.lane.b32.xlu1 %v2961_v44, %s13518_s7  ;;  %3085 = vrot.lane.b32.xlu0 %v2959_v32, %s13468_s27 }
 0x81f   : > { %v9934_v6 = vpop.permute.xlu1 %3045  ;;  %v9936_v58 = vpop.permute.xlu0 %2977 }
 0x821   : > { %3153 = vrot.lane.b32.xlu1 %v2961_v44, %s13465_s1  ;;  %3271 = vrot.lane.b32.xlu0 %v2959_v32, %s13469_s14 }
 0x823   : > { %v9940_v27 = vpop.permute.xlu1 %3141  ;;  %v9942_v41 = vpop.permute.xlu0 %3169 }
 0x825   : > { %3025 = vrot.lane.b32.xlu1 %v2961_v44, %s13464_s4  ;;  %3215 = vrot.lane.b32.xlu0 %v2925_v39, %s13466_s28 }
 0x827   : > { %v9949_v20 = vpop.permute.xlu1 %3013  ;;  %v9951_v53 = vpop.permute.xlu0 %3137 }
 0x829   : > { %3121 = vrot.lane.b32.xlu1 %v2961_v44, %s13467_s26  ;;  %3055 = vrot.lane.b32.xlu0 %v2925_v39, %s13518_s7 }
 0x82b   : > { %v9955_v11 = vpop.permute.xlu1 %3109  ;;  %v9957_v9 = vpop.permute.xlu0 %3073 }
 0x82c   : > { %13520 = vst [vmem:[#allocation24_spill] sm:$0xff] %v9957_v9 }
 0x82d   : > { %2993 = vrot.lane.b32.xlu1 %v2961_v44, %s13519_s0  ;;  %3023 = vrot.lane.b32.xlu0 %v2925_v39, %s13464_s4 }
 0x82f   : > { %v9961_v14 = vpop.permute.xlu1 %2981  ;;  %v9963_v42 = vpop.permute.xlu0 %3203 }
 0x830   : > { %v3226_v63 = vsel %vm1282_vm8, %v9963_v42, %v9922_v19 }
 0x831   : > { %3183 = vrot.lane.b32.xlu1 %v2925_v39, %s13463_s25  ;;  %2991 = vrot.lane.b32.xlu0 %v2925_v39, %s13519_s0 }
 0x833   : > { %v9967_v51 = vpop.permute.xlu1 %3171  ;;  %v9969_v26 = vpop.permute.xlu0 %3043 }
 0x834   : > { %v3065_v24 = vsel %vm1211_vm12, %v9924_v60, %v9969_v26 }
 0x835   : > { %3151 = vrot.lane.b32.xlu1 %v2925_v39, %s13465_s1  ;;  %3089 = vrot.lane.b32.xlu0 %v2961_v44, %s13468_s27 }
 0x837   : > { %v9973_v21 = vpop.permute.xlu1 %3139  ;;  %v9975_v49 = vpop.permute.xlu0 %3011 }
 0x839   : > { %3275 = vrot.lane.b32.xlu1 %v2961_v44, %s13469_s14  ;;  %3119 = vrot.lane.b32.xlu0 %v2925_v39, %s13467_s26 }
 0x83b   : > { %v9979_v31 = vpop.permute.xlu1 %3075  ;;  %v9981_v30 = vpop.permute.xlu0 %2979 }
 0x83c   : > { %13521 = vst [vmem:[#allocation22_spill] sm:$0xff] %v9979_v31 }
 0x83d   : > { %3273 = vrot.lane.b32.xlu1 %v2925_v39, %s13469_s14  ;;  %3087 = vrot.lane.b32.xlu0 %v2925_v39, %s13468_s27 }
 0x83f   : > { %v9985_v50 = vpop.permute.xlu1 %3263  ;;  %v9987_v4 = vpop.permute.xlu0 %3077 }
 0x840   : > { %13522 = vst [vmem:[#allocation27_spill] sm:$0xff] %v9985_v50  ;;  %13523 = vst [vmem:[#allocation29_spill] sm:$0xff] %v9987_v4 }
 0x841   : > { %3219 = vrot.lane.b32.xlu1 %v2962_v59, %s13466_s28  ;;  %3059 = vrot.lane.b32.xlu0 %v2962_v59, %s13518_s7 }
 0x843   : > { %v9991_v45 = vpop.permute.xlu1 %3261  ;;  %v9993_v35 = vpop.permute.xlu0 %3107 }
 0x844   : > { %13524 = vst [vmem:[#allocation26_spill] sm:$0xff] %v9991_v45 }
 0x845   : > { %3027 = vrot.lane.b32.xlu0 %v2962_v59, %s13464_s4  ;;  %3221 = vrot.lane.b32.xlu1 %v2927_v2, %s13466_s28 }
 0x847   : > { %v10000_v52 = vpop.permute.xlu1 %3207  ;;  %v10002_v3 = vpop.permute.xlu0 %3047 }
 0x849   : > { %2995 = vrot.lane.b32.xlu0 %v2962_v59, %s13519_s0  ;;  %3191 = vrot.lane.b32.xlu1 %v2964_v28, %s13463_s25 }
 0x84b   : > { %v10006_v43 = vpop.permute.xlu1 %3209  ;;  %v10008_v15 = vpop.permute.xlu0 %3015 }
 0x84d   : > { %3187 = vrot.lane.b32.xlu0 %v2962_v59, %s13463_s25  ;;  %3063 = vrot.lane.b32.xlu1 %v2964_v28, %s13518_s7 }
 0x84f   : > { %v10012_v7 = vpop.permute.xlu1 %3179  ;;  %v10014_v40 = vpop.permute.xlu0 %2983 }
 0x851   : > { %3155 = vrot.lane.b32.xlu0 %v2962_v59, %s13465_s1  ;;  %3159 = vrot.lane.b32.xlu1 %v2964_v28, %s13465_s1 }
 0x853   : > { %v10018_v62 = vpop.permute.xlu1 %3051  ;;  %v10020_v10 = vpop.permute.xlu0 %3175 }
 0x855   : > { %3123 = vrot.lane.b32.xlu0 %v2962_v59, %s13467_s26  ;;  %3031 = vrot.lane.b32.xlu1 %v2964_v28, %s13464_s4 }
 0x857   : > { %v10024_v54 = vpop.permute.xlu1 %3147  ;;  %v10026_v61 = vpop.permute.xlu0 %3143 }
 0x859   : > { %3091 = vrot.lane.b32.xlu0 %v2962_v59, %s13468_s27  ;;  %3127 = vrot.lane.b32.xlu1 %v2964_v28, %s13467_s26 }
 0x85b   : > { %v10030_v48 = vpop.permute.xlu1 %3019  ;;  %v10032_v46 = vpop.permute.xlu0 %3111 }
 0x85d   : > { %3277 = vrot.lane.b32.xlu0 %v2962_v59, %s13469_s14  ;;  %2999 = vrot.lane.b32.xlu1 %v2964_v28, %s13519_s0 }
 0x85f   : > { %v10036_v37 = vpop.permute.xlu1 %3115  ;;  %v10038_v12 = vpop.permute.xlu0 %3079 }
 0x861   : > { %3223 = vrot.lane.b32.xlu0 %v2964_v28, %s13466_s28  ;;  %3095 = vrot.lane.b32.xlu1 %v2964_v28, %s13468_s27 }
 0x863   : > { %v10042_v33 = vpop.permute.xlu1 %2987  ;;  %v10044_v16 = vpop.permute.xlu0 %3265 }
 0x864   : > { %13525 = vst [vmem:[#allocation28_spill] sm:$0xff] %v10044_v16 }
 0x865   : > { %3189 = vrot.lane.b32.xlu1 %v2927_v2, %s13463_s25  ;;  %3061 = vrot.lane.b32.xlu0 %v2927_v2, %s13518_s7 }
 0x867   : > { %v10048_v5 = vpop.permute.xlu1 %3083  ;;  %v10050_v55 = vpop.permute.xlu0 %3211 }
 0x868   : > { %v3228_v16 = vsel %vm1282_vm8, %v10006_v43, %v10050_v55 }
 0x869   : > { %3157 = vrot.lane.b32.xlu1 %v2927_v2, %s13465_s1  ;;  %3029 = vrot.lane.b32.xlu0 %v2927_v2, %s13464_s4 }
 0x86b   : > { %v10054_v17 = vpop.permute.xlu1 %3177  ;;  %v10056_v18 = vpop.permute.xlu0 %3049 }
 0x86d   : > { %3125 = vrot.lane.b32.xlu1 %v2927_v2, %s13467_s26  ;;  %2997 = vrot.lane.b32.xlu0 %v2927_v2, %s13519_s0 }
 0x86f   : > { %v10060_v8 = vpop.permute.xlu1 %3145  ;;  %v10062_v13 = vpop.permute.xlu0 %3017 }
 0x871   : > { %3093 = vrot.lane.b32.xlu1 %v2927_v2, %s13468_s27  ;;  %3455 = vrot.lane.b32.xlu0 %v9922_v19, %s13469_s14  ;;  %v3033_v19 = vsel %vm1196_vm13, %v9930_v0, %v9975_v49 }
 0x873   : > { %v10067_v23 = vpop.permute.xlu1 %3113  ;;  %v10069_v36 = vpop.permute.xlu0 %2985 }
 0x875   : > { %3281 = vrot.lane.b32.xlu1 %v2964_v28, %s13469_s14  ;;  %3431 = vrot.lane.b32.xlu0 %v9928_v47, %s13469_s14  ;;  %v3225_v28 = vsel %vm1282_vm8, %v9918_v34, %v9963_v42 }
 0x877   : > { %v10074_v38 = vpop.permute.xlu1 %3081  ;;  %v10076_v56 = vpop.permute.xlu0 %3213 }
 0x879   : > { %3279 = vrot.lane.b32.xlu1 %v2927_v2, %s13469_s14  ;;  %3407 = vrot.lane.b32.xlu0 %v9940_v27, %s13469_s14 }
 0x87b   : > { %v10081_v25 = vpop.permute.xlu1 %3269  ;;  %v10083_v32 = vpop.permute.xlu0 %3053 }
 0x87c   : > { %13526 = vst [vmem:[#allocation25_spill] sm:$0xff] %v10081_v25 }
 0x87d   : > { %3335 = vrot.lane.b32.xlu1 %v9934_v6, %s13469_s14  ;;  %3383 = vrot.lane.b32.xlu0 %v9955_v11, %s13469_s14 }
 0x87f   : > { %v10089_v44 = vpop.permute.xlu1 %3267  ;;  %v10091_v39 = vpop.permute.xlu0 %3021 }
 0x880   : > { %13527 = vst [vmem:[#allocation23_spill] sm:$0xff] %v10089_v44  ;;  %v3068_v44 = vsel %vm1211_vm12, %v10056_v18, %v10018_v62 }
 0x881   : > { %3311 = vrot.lane.b32.xlu1 %v9949_v20, %s13469_s14  ;;  %3359 = vrot.lane.b32.xlu0 %v9987_v4, %s13469_s14 }
 0x883   : > { %v10097_v59 = vpop.permute.xlu1 %3117  ;;  %v10099_v2 = vpop.permute.xlu0 %2989 }
 0x885   : > { %3287 = vrot.lane.b32.xlu1 %v9961_v14, %s13469_s14  ;;  %3451 = vrot.lane.b32.xlu0 %v3225_v28, %s13469_s14  ;;  %v3066_v28 = vsel %vm1211_vm12, %v9969_v26, %v9934_v6  ;;  %v3001_v6 = vsel %vm1181_vm4, %v9936_v58, %v9981_v30  ;;  %v3002_v26 = vsel %vm1181_vm4, %v9981_v30, %v9961_v14 }
 0x887   : > { %v10107_v22 = vpop.permute.xlu1 %3217  ;;  %v10109_v57 = vpop.permute.xlu0 %3181 }
 0x889   : > { %3453 = vrot.lane.b32.xlu1 %v3226_v63, %s13469_s14  ;;  %3331 = vrot.lane.b32.xlu0 %v3065_v24, %s13469_s14  ;;  %v3034_v24 = vsel %vm1196_vm13, %v9975_v49, %v9949_v20 }
 0x88b   : > { %v10119_v34 = vpop.permute.xlu1 %3185  ;;  %v10121_v45 = vpop.permute.xlu0 %3149 }
 0x88d   : > { %3333 = vrot.lane.b32.xlu1 %v3066_v28, %s13469_s14  ;;  %3307 = vrot.lane.b32.xlu0 %v3033_v19, %s13469_s14 }
 0x88f   : > { %v10131_v60 = vpop.permute.xlu1 %3057  ;;  %v10133_v63 = vpop.permute.xlu0 %3085 }
 0x891   : > { %3309 = vrot.lane.b32.xlu1 %v3034_v24, %s13469_s14  ;;  %3283 = vrot.lane.b32.xlu0 %v3001_v6, %s13469_s14  ;;  %v3227_v6 = vsel %vm1282_vm8, %v10000_v52, %v10006_v43  ;;  %v3036_v43 = vsel %vm1196_vm13, %v10062_v13, %v10030_v48 }
 0x893   : > { %v10143_v0 = vpop.permute.xlu1 %3153  ;;  %v10145_v42 = vpop.permute.xlu0 %3271 }
 0x894   : > { %13528 = vst [vmem:[#allocation36_spill] sm:$0xff] %v10145_v42 }
 0x895   : > { %3285 = vrot.lane.b32.xlu1 %v3002_v26, %s13469_s14  ;;  %3437 = vrot.lane.b32.xlu0 %v10012_v7, %s13469_s14 }
 0x897   : > { %v3026_v20 = vpop.permute.xlu1 %3025  ;;  %v10153_v49 = vpop.permute.xlu0 %3215 }
 0x899   : > { %3341 = vrot.lane.b32.xlu0 %v10018_v62, %s13469_s14  ;;  %3461 = vrot.lane.b32.xlu1 %v10050_v55, %s13469_s14  ;;  %v3035_v55 = vsel %vm1196_vm13, %v10008_v15, %v10062_v13 }
 0x89b   : > { %v10159_v58 = vpop.permute.xlu1 %3121  ;;  %v3056_v28 = vpop.permute.xlu0 %3055 }
 0x89d   : > { %3413 = vrot.lane.b32.xlu0 %v10024_v54, %s13469_s14  ;;  %3317 = vrot.lane.b32.xlu1 %v10030_v48, %s13469_s14 }
 0x89f   : > { %v2994_v14 = vpop.permute.xlu1 %2993  ;;  %v10165_v30 = vpop.permute.xlu0 %3023 }
 0x8a1   : > { %3389 = vrot.lane.b32.xlu0 %v10036_v37, %s13469_s14  ;;  %3293 = vrot.lane.b32.xlu1 %v10042_v33, %s13469_s14 }
 0x8a3   : > { %v10171_v19 = vpop.permute.xlu1 %3183  ;;  %v10173_v24 = vpop.permute.xlu0 %2991 }
 0x8a4   : > { %v3198_v4 = vsel %vm1270_vm3, %v10171_v19, %v10119_v34 }
 0x8a5   : > { %3365 = vrot.lane.b32.xlu0 %v10048_v5, %s13469_s14  ;;  %3457 = vrot.lane.b32.xlu1 %v3227_v6, %s13469_s14  ;;  %v3067_v6 = vsel %vm1211_vm12, %v10002_v3, %v10056_v18  ;;  %v3004_v3 = vsel %vm1181_vm4, %v10069_v36, %v10042_v33 }
 0x8a7   : > { %v10181_v26 = vpop.permute.xlu1 %3151  ;;  %v10183_v50 = vpop.permute.xlu0 %3089 }
 0x8a9   : > { %3459 = vrot.lane.b32.xlu0 %v3228_v16, %s13469_s14  ;;  %3339 = vrot.lane.b32.xlu1 %v3068_v44, %s13469_s14  ;;  %v3003_v44 = vsel %vm1181_vm4, %v10014_v40, %v10069_v36  ;;  %v3230_v40 = vsel %vm1282_vm8, %v10153_v49, %v10107_v22 }
 0x8ab   : > { %v10193_v52 = vpop.permute.xlu1 %3275  ;;  %v10195_v25 = vpop.permute.xlu0 %3119 }
 0x8ac   : > { %13529 = vst [vmem:[#allocation32_spill] sm:$0xff] %v10193_v52 }
 0x8ad   : > { %3337 = vrot.lane.b32.xlu0 %v3067_v6, %s13469_s14  ;;  %3315 = vrot.lane.b32.xlu1 %v3036_v43, %s13469_s14 }
 0x8af   : > { %v10205_v62 = vpop.permute.xlu1 %3273  ;;  %v10207_v16 = vpop.permute.xlu0 %3087 }
 0x8b0   : > { %13530 = vst [vmem:[#allocation38_spill] sm:$0xff] %v10205_v62 }
 0x8b1   : > { %3313 = vrot.lane.b32.xlu0 %v3035_v55, %s13469_s14  ;;  %3291 = vrot.lane.b32.xlu1 %v3004_v3, %s13469_s14  ;;  %v3070_v55 = vsel %vm1211_vm12, %v3056_v28, %v10131_v60 }
 0x8b3   : > { %v10217_v48 = vpop.permute.xlu1 %3219  ;;  %v10219_v18 = vpop.permute.xlu0 %3059 }
 0x8b5   : > { %3323 = vrot.lane.b32.xlu1 %v3026_v20, %s13469_s14  ;;  %3289 = vrot.lane.b32.xlu0 %v3003_v44, %s13469_s14  ;;  %v3069_v44 = vsel %vm1211_vm12, %v10083_v32, %v3056_v28  ;;  %v3006_v28 = vsel %vm1181_vm4, %v10173_v24, %v2994_v14 }
 0x8b7   : > { %v10226_v15 = vpop.permute.xlu1 %3221  ;;  %v10228_v13 = vpop.permute.xlu0 %3027 }
 0x8b9   : > { %3299 = vrot.lane.b32.xlu1 %v2994_v14, %s13469_s14  ;;  %3467 = vrot.lane.b32.xlu0 %v10107_v22, %s13469_s14  ;;  %v3037_v14 = vsel %vm1196_vm13, %v10091_v39, %v10165_v30 }
 0x8bb   : > { %v10233_v33 = vpop.permute.xlu1 %3191  ;;  %v10235_v6 = vpop.permute.xlu0 %2995 }
 0x8bd   : > { %3443 = vrot.lane.b32.xlu0 %v10119_v34, %s13469_s14  ;;  %3465 = vrot.lane.b32.xlu1 %v3230_v40, %s13469_s14 }
 0x8bf   : > { %v10243_v36 = vpop.permute.xlu1 %3063  ;;  %v10245_v43 = vpop.permute.xlu0 %3187 }
 0x8c1   : > { %3347 = vrot.lane.b32.xlu0 %v10131_v60, %s13469_s14  ;;  %3345 = vrot.lane.b32.xlu1 %v3070_v55, %s13469_s14  ;;  %v3038_v60 = vsel %vm1196_vm13, %v10165_v30, %v3026_v20 }
 0x8c3   : > { %v10252_v3 = vpop.permute.xlu1 %3159  ;;  %v10254_v22 = vpop.permute.xlu0 %3155 }
 0x8c5   : > { %3419 = vrot.lane.b32.xlu0 %v10143_v0, %s13469_s14  ;;  %3343 = vrot.lane.b32.xlu1 %v3069_v44, %s13469_s14 }
 0x8c7   : > { %v10261_v40 = vpop.permute.xlu1 %3031  ;;  %v10263_v42 = vpop.permute.xlu0 %3123 }
 0x8c9   : > { %3395 = vrot.lane.b32.xlu0 %v10159_v58, %s13469_s14  ;;  %3321 = vrot.lane.b32.xlu1 %v3038_v60, %s13469_s14  ;;  %v3229_v60 = vsel %vm1282_vm8, %v10076_v56, %v10153_v49  ;;  %v3005_v56 = vsel %vm1181_vm4, %v10099_v2, %v10173_v24 }
 0x8cb   : > { %v10270_v55 = vpop.permute.xlu1 %3127  ;;  %v10272_v32 = vpop.permute.xlu0 %3091 }
 0x8cd   : > { %3297 = vrot.lane.b32.xlu1 %v3006_v28, %s13469_s14  ;;  %3371 = vrot.lane.b32.xlu0 %v10183_v50, %s13469_s14 }
 0x8cf   : > { %v10279_v44 = vpop.permute.xlu1 %2999  ;;  %v10281_v20 = vpop.permute.xlu0 %3277 }
 0x8d0   : > { %13531 = vst [vmem:[#allocation30_spill] sm:$0xff] %v10281_v20 }
 0x8d1   : > { %3463 = vrot.lane.b32.xlu0 %v3229_v60, %s13469_s14 }
 0x8d3   : > { %v10287_v62 = vpop.permute.xlu1 %3095  ;;  %v3224_v52 = vpop.permute.xlu0 %3223 }
 0x8d4   : > { %3473 = vrot.lane.b32.xlu1 %v3224_v52, %s13469_s14  ;;  %v3232_v9 = vsel %vm1282_vm8, %v10226_v15, %v3224_v52  ;;  %v3197_v52 = vsel %vm1270_vm3, %v10109_v57, %v10171_v19 }
 0x8d5   : > { %3319 = vrot.lane.b32.xlu0 %v3037_v14, %s13469_s14 }
 0x8d7   : > { %v10294_v28 = vpop.permute.xlu1 %3189  ;;  %v3062_v20 = vpop.permute.xlu0 %3061 }
 0x8d8   : > { %3449 = vrot.lane.b32.xlu1 %v10233_v33, %s13469_s14  ;;  %v3071_v19 = vsel %vm1211_vm12, %v10219_v18, %v3062_v20 }
 0x8d9   : > { %3295 = vrot.lane.b32.xlu0 %v3005_v56, %s13469_s14 }
 0x8db   : > { %v10302_v49 = vpop.permute.xlu1 %3157  ;;  %v3030_v60 = vpop.permute.xlu0 %3029 }
 0x8dc   : > { %3353 = vrot.lane.b32.xlu1 %v10243_v36, %s13469_s14  ;;  %v3039_v18 = vsel %vm1196_vm13, %v10228_v13, %v3030_v60 }
 0x8dd   : > { %3425 = vrot.lane.b32.xlu0 %v10252_v3, %s13469_s14 }
 0x8df   : > { %v10308_v39 = vpop.permute.xlu1 %3125  ;;  %v2998_v30 = vpop.permute.xlu0 %2997 }
 0x8e0   : > { %3329 = vrot.lane.b32.xlu1 %v10261_v40, %s13469_s14 }
 0x8e1   : > { %3401 = vrot.lane.b32.xlu0 %v10270_v55, %s13469_s14 }
 0x8e3   : > { %v10314_v2 = vpop.permute.xlu1 %3093  ;;  %v10316_v24 = vpop.permute.xlu0 %3455 }
 0x8e4   : > { %13532 = vst [vmem:[#allocation41_spill] sm:$0xff] %v10316_v24  ;;  %3305 = vrot.lane.b32.xlu1 %v10279_v44, %s13469_s14 }
 0x8e5   : > { %3377 = vrot.lane.b32.xlu0 %v10287_v62, %s13469_s14 }
 0x8e7   : > { %v10322_v14 = vpop.permute.xlu1 %3281  ;;  %v10324_v56 = vpop.permute.xlu0 %3431 }
 0x8e8   : > { %13533 = vst [vmem:[#allocation33_spill] sm:$0xff] %v10322_v14  ;;  %3441 = vrot.lane.b32.xlu1 %v3198_v4, %s13469_s14  ;;  %v3196_v14 = vsel %vm1270_vm3, %v10054_v17, %v10012_v7 }
 0x8e9   : > { %3471 = vrot.lane.b32.xlu0 %v3232_v9, %s13469_s14  ;;  %v3231_v9 = vsel %vm1282_vm8, %v10217_v48, %v10226_v15  ;;  %v3195_v48 = vsel %vm1270_vm3, %v10020_v10, %v10054_v17  ;;  %v3194_v17 = vsel %vm1270_vm3, %v9967_v51, %v9928_v47  ;;  %v3165_v47 = vsel %vm1255_vm15, %v10121_v45, %v10181_v26 }
 0x8eb   : > { %v10333_v24 = vpop.permute.xlu1 %3279  ;;  %v10335_v31 = vpop.permute.xlu0 %3407 }
 0x8ec   : > { %13534 = vst [vmem:[#allocation31_spill] sm:$0xff] %v10333_v24  ;;  %3435 = vrot.lane.b32.xlu1 %v3196_v14, %s13469_s14 }
 0x8ed   : > { %3259 = vrot.lane.b32.xlu0 %v9835_v29, %s13469_s14  ;;  %v3072_v29 = vsel %vm1211_vm12, %v3062_v20, %v10243_v36  ;;  %v3193_v36 = vsel %vm1270_vm3, %v9942_v41, %v9967_v51 }
 0x8ef   : > { %v10343_v34 = vpop.permute.xlu1 %3335  ;;  %v10345_v4 = vpop.permute.xlu0 %3383 }
 0x8f0   : > { %3469 = vrot.lane.b32.xlu1 %v3231_v9, %s13469_s14 }
 0x8f1   : > { %3439 = vrot.lane.b32.xlu0 %v3197_v52, %s13469_s14  ;;  %v3040_v52 = vsel %vm1196_vm13, %v3030_v60, %v10261_v40  ;;  %v3007_v40 = vsel %vm1181_vm4, %v10235_v6, %v2998_v30  ;;  %v13537_v6 = vld [vmem:[#allocation13_spill] sm:$0xff] }
 0x8f3   : > { %v10355_v7 = vpop.permute.xlu1 %3311  ;;  %v10357_v14 = vpop.permute.xlu0 %3359 }
 0x8f4   : > { %13535 = vst [vmem:[#allocation37_spill] sm:$0xff] %v10357_v14  ;;  %3351 = vrot.lane.b32.xlu1 %v3072_v29, %s13469_s14  ;;  %v3166_v29 = vsel %vm1255_vm15, %v10181_v26, %v10143_v0  ;;  %v3163_v0 = vsel %vm1255_vm15, %v10026_v61, %v10060_v8  ;;  %v10424_v26 = vld [vmem:[%s13536_s13] sm:$0x7]  ;;  %v3161_v61 = vsel %vm1255_vm15, %v9951_v53, %v9973_v21 }
 0x8f5   : > { %3433 = vrot.lane.b32.xlu0 %v3195_v48, %s13469_s14  ;;  %v3008_v48 = vsel %vm1181_vm4, %v2998_v30, %v10279_v44  ;;  %v3164_v30 = vsel %vm1255_vm15, %v10060_v8, %v10024_v54  ;;  %v3133_v54 = vsel %vm13379_vm0, %v10097_v59, %v10195_v25 }
 0x8f7   : > { %v10366_v15 = vpop.permute.xlu1 %3287  ;;  %v10368_v57 = vpop.permute.xlu0 %3451 }
 0x8f8   : > { %3349 = vrot.lane.b32.xlu1 %v3071_v19, %s13469_s14  ;;  %v10428_v19 = vrot.slane %v10424_v26, %v13537_v6 }
 0x8f9   : > { %3427 = vrot.lane.b32.xlu0 %v3193_v36, %s13469_s14 }
 0x8fa   : > { %3721 = vmatprep.mubr.f32.mxu0 %v10428_v19 }
 0x8fb   : > { %v10377_v9 = vpop.permute.xlu1 %3453  ;;  %v10379_v10 = vpop.permute.xlu0 %3331 }
 0x8fc   : > { %3429 = vrot.lane.b32.xlu1 %v3194_v17, %s13469_s14 }
 0x8fd   : > { %3325 = vrot.lane.b32.xlu0 %v3039_v18, %s13469_s14 }
 0x8ff   : > { %v10388_v20 = vpop.permute.xlu1 %3333  ;;  %v10390_v41 = vpop.permute.xlu0 %3307 }
 0x900   : > { %3327 = vrot.lane.b32.xlu1 %v3040_v52, %s13469_s14  ;;  %v3162_v52 = vsel %vm1255_vm15, %v9973_v21, %v9940_v27  ;;  %v3199_v27 = vsel %vm1270_vm3, %v10245_v43, %v10294_v28 }
 0x901   : > { %3415 = vrot.lane.b32.xlu0 %v3165_v47, %s13469_s14  ;;  %v3134_v47 = vsel %vm13379_vm0, %v10195_v25, %v10159_v58  ;;  %v3131_v25 = vsel %vm13379_vm0, %v10032_v46, %v10067_v23 }
 0x903   : > { %v10399_v51 = vpop.permute.xlu1 %3309  ;;  %v10401_v13 = vpop.permute.xlu0 %3283 }
 0x904   : > { %3417 = vrot.lane.b32.xlu1 %v3166_v29, %s13469_s14  ;;  %v3200_v29 = vsel %vm1270_vm3, %v10294_v28, %v10233_v33  ;;  %v3167_v33 = vsel %vm1255_vm15, %v10254_v22, %v10302_v49 }
 0x905   : > { %3301 = vrot.lane.b32.xlu0 %v3007_v40, %s13469_s14  ;;  %v3132_v40 = vsel %vm13379_vm0, %v10067_v23, %v10036_v37  ;;  %v3129_v37 = vsel %vm13379_vm0, %v9916_v1, %v9993_v35 }
 0x907   : > { %v10410_v60 = vpop.permute.xlu1 %3285  ;;  %v10412_v45 = vpop.permute.xlu0 %3437 }
 0x908   : > { %3303 = vrot.lane.b32.xlu1 %v3008_v48, %s13469_s14  ;;  %v3168_v48 = vsel %vm1255_vm15, %v10302_v49, %v10252_v3  ;;  %v3135_v3 = vsel %vm13379_vm0, %v10263_v42, %v10308_v39 }
 0x909   : > { %3409 = vrot.lane.b32.xlu0 %v3163_v0, %s13469_s14  ;;  %v3130_v0 = vsel %vm13379_vm0, %v9993_v35, %v9955_v11  ;;  %v3101_v11 = vsel %vm13380_vm14, %v10133_v63, %v10207_v16 }
 0x90b   : > { %v10430_v36 = vpop.permute.xlu1 %3461  ;;  %v10432_v44 = vpop.permute.xlu0 %3341 }
 0x90c   : > { %3411 = vrot.lane.b32.xlu1 %v3164_v30, %s13469_s14  ;;  %v3136_v30 = vsel %vm13379_vm0, %v10308_v39, %v10270_v55  ;;  %v3103_v55 = vsel %vm13380_vm14, %v10272_v32, %v10314_v2 }
 0x90d   : > { %3403 = vrot.lane.b32.xlu0 %v3161_v61, %s13469_s14  ;;  %v3102_v61 = vsel %vm13380_vm14, %v10207_v16, %v10183_v50  ;;  %v3099_v50 = vsel %vm13380_vm14, %v10038_v12, %v10074_v38 }
 0x90f   : > { %v10443_v17 = vpop.permute.xlu1 %3317  ;;  %v10445_v18 = vpop.permute.xlu0 %3413 }
 0x910   : > { %3405 = vrot.lane.b32.xlu1 %v3162_v52, %s13469_s14  ;;  %v3104_v52 = vsel %vm13380_vm14, %v10314_v2, %v10287_v62  ;;  %v13541_v62 = vld [vmem:[#allocation24_spill] sm:$0xff] }
 0x911   : > { %3391 = vrot.lane.b32.xlu0 %v3133_v54, %s13469_s14  ;;  %v3100_v54 = vsel %vm13380_vm14, %v10074_v38, %v10048_v5 }
 0x913   : > { %v10455_v53 = vpop.permute.xlu1 %3293  ;;  %v10457_v8 = vpop.permute.xlu0 %3389 }
 0x914   : > { %3393 = vrot.lane.b32.xlu1 %v3134_v47, %s13469_s14  ;;  %v13540_v47 = vld [vmem:[#allocation22_spill] sm:$0xff] }
 0x915   : > { %3445 = vrot.lane.b32.xlu0 %v3199_v27, %s13469_s14  ;;  %v3097_v2 = vsel %vm13380_vm14, %v13541_v62, %v13540_v47 }
 0x917   : > { %v10467_v21 = vpop.permute.xlu1 %3457  ;;  %v10469_v59 = vpop.permute.xlu0 %3365 }
 0x918   : > { %13538 = vst [vmem:[#allocation34_spill] sm:$0xff] %v10469_v59  ;;  %3447 = vrot.lane.b32.xlu1 %v3200_v29, %s13469_s14  ;;  %v13542_v29 = vld [vmem:[#allocation29_spill] sm:$0xff] }
 0x919   : > { %3385 = vrot.lane.b32.xlu0 %v3131_v25, %s13469_s14  ;;  %v3098_v25 = vsel %vm13380_vm14, %v13540_v47, %v13542_v29 }
 0x91b   : > { %v10479_v58 = vpop.permute.xlu1 %3339  ;;  %v10481_v43 = vpop.permute.xlu0 %3459 }
 0x91c   : > { %3387 = vrot.lane.b32.xlu1 %v3132_v40, %s13469_s14  ;;  %v3234_v40 = vld [vmem:[#allocation4] sm:$0x1] }
 0x91d   : > { %3421 = vrot.lane.b32.xlu0 %v3167_v33, %s13469_s14 }
 0x91f   : > { %v10491_v28 = vpop.permute.xlu1 %3315  ;;  %v10493_v46 = vpop.permute.xlu0 %3337 }
 0x920   : > { %3423 = vrot.lane.b32.xlu1 %v3168_v48, %s13469_s14 }
 0x921   : > { %3379 = vrot.lane.b32.xlu0 %v3129_v37, %s13469_s14 }
 0x923   : > { %v10503_v23 = vpop.permute.xlu1 %3291  ;;  %v10505_v22 = vpop.permute.xlu0 %3313 }
 0x924   : > { %3381 = vrot.lane.b32.xlu1 %v3130_v0, %s13469_s14 }
 0x925   : > { %3397 = vrot.lane.b32.xlu0 %v3135_v3, %s13469_s14 }
 0x927   : > { %v10515_v49 = vpop.permute.xlu1 %3323  ;;  %v10517_v1 = vpop.permute.xlu0 %3289 }
 0x928   : > { %3399 = vrot.lane.b32.xlu1 %v3136_v30, %s13469_s14 }
 0x929   : > { %3367 = vrot.lane.b32.xlu0 %v3101_v11, %s13469_s14 }
 0x92b   : > { %v10527_v35 = vpop.permute.xlu1 %3299  ;;  %v10529_v42 = vpop.permute.xlu0 %3467 }
 0x92c   : > { %13539 = vst [vmem:[#allocation39_spill] sm:$0xff] %v10529_v42  ;;  %3369 = vrot.lane.b32.xlu1 %v3102_v61, %s13469_s14 }
 0x92d   : > { %3373 = vrot.lane.b32.xlu0 %v3103_v55, %s13469_s14 }
 0x92f   : > { %v3466_v39 = vpop.permute.xlu1 %3465  ;;  %v10539_v63 = vpop.permute.xlu0 %3443 }
 0x930   : > { %3375 = vrot.lane.b32.xlu1 %v3104_v52, %s13469_s14 }
 0x931   : > { %3361 = vrot.lane.b32.xlu0 %v3099_v50, %s13469_s14 }
 0x933   : > { %v10549_v16 = vpop.permute.xlu1 %3345  ;;  %v10551_v32 = vpop.permute.xlu0 %3347 }
 0x934   : > { %3363 = vrot.lane.b32.xlu1 %v3100_v54, %s13469_s14 }
 0x935   : > { %3355 = vrot.lane.b32.xlu0 %v3097_v2, %s13469_s14 }
 0x937   : > { %v3344_v27 = vpop.permute.xlu1 %3343  ;;  %v10561_v12 = vpop.permute.xlu0 %3419 }
 0x938   : > { %3357 = vrot.lane.b32.xlu1 %v3098_v25, %s13469_s14 }
 0x93b   : > { %v10567_v33 = vpop.permute.xlu0 %3395  ;;  %v10569_v5 = vpop.permute.xlu1 %3321 }
 0x93c   : > { %3237 = vperm.xlu1 %7820, %v3234_v40  }
 0x93f   : > { %v10571_v38 = vpop.permute.xlu0 %3371  ;;  %v10573_v48 = vpop.permute.xlu1 %3297 }
 0x940   : > { %13543 = vst [vmem:[#allocation35_spill] sm:$0xff] %v10571_v38  ;;  %v3544_v38 = vsel %vm1372_vm10, %v3466_v39, %v10529_v42 }
 0x943   : > { %v3464_v37 = vpop.permute.xlu0 %3463 }
 0x946   : > { %v10575_v0 = vpop.permute.xlu1 %3473 }
 0x947   : > { %v10577_v3 = vpop.permute.xlu0 %3319 }
 0x94a   : > { %v10579_v30 = vpop.permute.xlu1 %3449 }
 0x94b   : > { %v10581_v11 = vpop.permute.xlu0 %3295 }
 0x94e   : > { %v3354_v61 = vpop.permute.xlu1 %3353 }
 0x94f   : > { %v10583_v55 = vpop.permute.xlu0 %3425 }
 0x952   : > { %v10585_v52 = vpop.permute.xlu1 %3329 }
 0x953   : > { %v10587_v50 = vpop.permute.xlu0 %3401 }
 0x956   : > { %v10589_v54 = vpop.permute.xlu1 %3305 }
 0x957   : > { %v10591_v47 = vpop.permute.xlu0 %3377 }
 0x95a   : > { %v10593_v62 = vpop.permute.xlu1 %3441 }
 0x95b   : > { %13544 = vst [vmem:[#allocation40_spill] sm:$0xff] %v10593_v62  ;;  %v3472_v2 = vpop.permute.xlu0 %3471  ;;  %v3543_v62 = vsel %vm1372_vm10, %v3464_v37, %v3466_v39  ;;  %v13547_v39 = vld [vmem:[#allocation41_spill] sm:$0xff]  ;;  %v3539_v37 = vsel %vm1372_vm10, %v10368_v57, %v10377_v9  ;;  %v3503_v57 = vsel %vm1372_vm10, %v3344_v27, %v10549_v16  ;;  %v3500_v27 = vsel %vm1372_vm10, %v10388_v20, %v10343_v34 }
 0x95c   : > { %v3546_v29 = vsel %vm1372_vm10, %v3472_v2, %v10575_v0 }
 0x95d   : > { %3752 = vmatprep.subr.mxu1 %v3546_v29  ;;  %v3542_v29 = vsel %vm1372_vm10, %v10481_v43, %v10430_v36 }
 0x95e   : > { %v10597_v25 = vpop.permute.xlu1 %3435 }
 0x95f   : > { %13545 = vst [vmem:[#allocation22_spill] sm:$0xff] %v10597_v25  ;;  %v10599_v40 = vpop.permute.xlu0 %3259 }
 0x962   : > { %v3470_v6 = vpop.permute.xlu1 %3469 }
 0x963   : > { %v3545_v14 = vsel %vm1372_vm10, %v3470_v6, %v3472_v2  ;;  %v10602_v59 = vpop.permute.xlu0 %3439  ;;  %v13546_v2 = vld [vmem:[#allocation17_spill] sm:$0xff] }
 0x964   : > { %3753 = vmatpush1.msra.mxu1 %v3545_v14  ;;  %v3541_v14 = vsel %vm1372_vm10, %v10467_v21, %v10481_v43  ;;  %v10618_v42 = vrot.slane %v10424_v26, %v13546_v2  ;;  %v3504_v43 = vsel %vm1372_vm10, %v10549_v16, %v10551_v32 }
 0x965   : > { %3754 = vmatprep.subr.mxu1 %v3544_v38  ;;  %v3540_v38 = vsel %vm1372_vm10, %v10377_v9, %v13547_v39  ;;  %v3502_v9 = vsel %vm1372_vm10, %v10479_v58, %v10432_v44 }
 0x966   : > { %v3352_v24 = vpop.permute.xlu1 %3351  ;;  %3755 = vmatpush1.msra.mxu1 %v3543_v62 }
 0x967   : > { %3756 = vmatprep.subr.mxu1 %v3542_v29  ;;  %v10610_v25 = vpop.permute.xlu0 %3433  ;;  %v3506_v6 = vsel %vm1372_vm10, %v3352_v24, %v3354_v61 }
 0x968   : > { %3657 = vmatprep.subr.mxu0 %v3506_v6  ;;  %3757 = vmatpush1.msra.mxu1 %v3541_v14  ;;  %v3493_v14 = vsel %vm1372_vm10, %v10505_v22, %v10491_v28 }
 0x969   : > { %3758 = vmatprep.subr.mxu1 %v3540_v38  ;;  %v3486_v38 = vsel %vm1372_vm10, %v10503_v23, %v10455_v53 }
 0x96a   : > { %v3350_v62 = vpop.permute.xlu1 %3349  ;;  %3759 = vmatpush1.msra.mxu1 %v3539_v37  ;;  %v3485_v37 = vsel %vm1372_vm10, %v10517_v1, %v10503_v23  ;;  %v13549_v23 = vld [vmem:[#allocation33_spill] sm:$0xff]  ;;  %v13550_v1 = vld [vmem:[#allocation31_spill] sm:$0xff] }
 0x96b   : > { %v3505_v29 = vsel %vm1372_vm10, %v3350_v62, %v3352_v24  ;;  %7484 = vmatprep.subr.mxu1 %v10579_v30  ;;  %v10628_v21 = vpop.permute.xlu0 %3427  ;;  %7359 = vmatmul.mubr.msk.f32.vlgmr.msra.gmra.mxu1 %vm13548_vm1, %v10618_v42  ;;  %v3482_v62 = vsel %vm1372_vm10, %v13550_v1, %v13549_v23  ;;  %vm4100_vm1 = vcmask 556032  }
 0x96c   : > { %3658 = vmatpush1.msra.mxu0 %v3505_v29  ;;  %7485 = vmatpush3.msra.mxu1 %v3354_v61  ;;  %v3501_v61 = vsel %vm1372_vm10, %v10493_v46, %v10479_v58  ;;  %v13551_v29 = vld [vmem:[#allocation30_spill] sm:$0xff] }
 0x96d   : > { %3659 = vmatprep.subr.mxu0 %v3504_v43  ;;  %7486 = vmatprep.subr.mxu1 %v10539_v63  ;;  %v13552_v43 = vld [vmem:[#allocation35_spill] sm:$0xff] }
 0x96e   : > { %v10638_v24 = vpop.permute.xlu1 %3429  ;;  %3660 = vmatpush1.msra.mxu0 %v3503_v57  ;;  %7487 = vmatpush3.msra.mxu1 %v10551_v32  ;;  %v3499_v32 = vsel %vm1372_vm10, %v10379_v10, %v10388_v20  ;;  %v3495_v10 = vsel %vm1372_vm10, %v10577_v3, %v10569_v5  ;;  %v3491_v3 = vsel %vm1372_vm10, %v10390_v41, %v10399_v51 }
 0x96f   : > { %3661 = vmatprep.subr.mxu0 %v3502_v9  ;;  %7488 = vmatprep.subr.mxu1 %v10412_v45  ;;  %v3326_v16 = vpop.permute.xlu0 %3325  ;;  %v3487_v41 = vsel %vm1372_vm10, %v10581_v11, %v10573_v48  ;;  %v3483_v11 = vsel %vm1372_vm10, %v10401_v13, %v10410_v60  ;;  %v13553_v13 = vld [vmem:[#allocation32_spill] sm:$0xff] }
 0x970   : > { %3662 = vmatpush1.msra.mxu0 %v3501_v61  ;;  %7489 = vmatpush3.msra.mxu1 %v10432_v44  ;;  %v13555_v61 = vld [vmem:[#allocation36_spill] sm:$0xff] }
 0x971   : > { %3663 = vmatprep.subr.mxu0 %v3500_v27  ;;  %7490 = vmatprep.subr.mxu1 %v10324_v56  ;;  %v13556_v27 = vld [vmem:[#allocation34_spill] sm:$0xff] }
 0x972   : > { %v3328_v6 = vpop.permute.xlu1 %3327  ;;  %3664 = vmatpush1.msra.mxu0 %v3499_v32  ;;  %7491 = vmatpush3.msra.mxu1 %v10343_v34  ;;  %v3496_v34 = vsel %vm1372_vm10, %v10569_v5, %v10515_v49 }
 0x973   : > { %7492 = vmatprep.subr.mxu1 %v10583_v55  ;;  %v10658_v58 = vpop.permute.xlu0 %3415  ;;  %v3498_v44 = vsel %vm1372_vm10, %v3328_v6, %v10585_v52  ;;  %v3497_v46 = vsel %vm1372_vm10, %v3326_v16, %v3328_v6  ;;  %3863 = vmatprep.mubr.f32.mxu1 %v10428_v19  ;;  %v13557_v6 = vld [vmem:[#allocation25_spill] sm:$0xff] }
 0x974   : > { %3665 = vmatprep.subr.mxu0 %v3498_v44  ;;  %7493 = vmatpush3.msra.mxu1 %v10585_v52  ;;  %v3494_v52 = vsel %vm1372_vm10, %v10491_v28, %v10443_v17  ;;  %v13558_v44 = vld [vmem:[#allocation23_spill] sm:$0xff] }
 0x975   : > { %3666 = vmatpush1.msra.mxu0 %v3497_v46  ;;  %7494 = vmatprep.subr.mxu1 %v10561_v12  ;;  %v3478_v46 = vsel %vm1372_vm10, %v13558_v44, %v13557_v6 }
 0x976   : > { %v10672_v20 = vpop.permute.xlu1 %3417  ;;  %3667 = vmatprep.subr.mxu0 %v3496_v34  ;;  %7495 = vmatpush3.msra.mxu1 %v10515_v49  ;;  %v3492_v49 = vsel %vm1372_vm10, %v10399_v51, %v10355_v7  ;;  %v13559_v34 = vld [vmem:[#allocation14_spill] sm:$0xff] }
 0x977   : > { %3668 = vmatpush1.msra.mxu0 %v3495_v10  ;;  %7496 = vmatprep.subr.mxu1 %v10445_v18  ;;  %v3302_v19 = vpop.permute.xlu0 %3301  ;;  %v10754_v10 = vrot.slane %v10424_v26, %v13559_v34 }
 0x978   : > { %3669 = vmatprep.subr.mxu0 %v3494_v52  ;;  %7497 = vmatpush3.msra.mxu1 %v10443_v17 }
 0x979   : > { %3670 = vmatpush1.msra.mxu0 %v3493_v14  ;;  %7498 = vmatprep.subr.mxu1 %v10335_v31  ;;  %v13561_v14 = vld [vmem:[#allocation37_spill] sm:$0xff] }
 0x97a   : > { %v3304_v5 = vpop.permute.xlu1 %3303  ;;  %3671 = vmatprep.subr.mxu0 %v3492_v49  ;;  %7499 = vmatpush3.msra.mxu1 %v10355_v7  ;;  %v3488_v7 = vsel %vm1372_vm10, %v10573_v48, %v10527_v35  ;;  %v13562_v49 = vld [vmem:[#allocation27_spill] sm:$0xff] }
 0x97b   : > { %3672 = vmatpush1.msra.mxu0 %v3491_v3  ;;  %7500 = vmatprep.subr.mxu1 %v10587_v50  ;;  %v10692_v28 = vpop.permute.xlu0 %3409  ;;  %v3490_v17 = vsel %vm1372_vm10, %v3304_v5, %v10589_v54  ;;  %v3489_v22 = vsel %vm1372_vm10, %v3302_v19, %v3304_v5  ;;  %v13560_v19 = vld [vmem:[#allocation28_spill] sm:$0xff]  ;;  %v13563_v5 = vld [vmem:[#allocation26_spill] sm:$0xff] }
 0x97c   : > { %3673 = vmatprep.subr.mxu0 %v3490_v17  ;;  %7501 = vmatpush3.msra.mxu1 %v10589_v54  ;;  %v3477_v52 = vsel %vm1372_vm10, %v13560_v19, %v13558_v44  ;;  %v3476_v3 = vsel %vm1372_vm10, %v13563_v5, %v13562_v49  ;;  %v3475_v17 = vsel %vm1372_vm10, %v10599_v40, %v13563_v5  ;;  %v13565_v40 = vld [vmem:[#allocation40_spill] sm:$0xff]  ;;  %v4019_v5 = vld [vmem:[#allocation6 + $0x150] sm:$0xff] }
 0x97d   : > { %3674 = vmatpush1.msra.mxu0 %v3489_v22  ;;  %7502 = vmatprep.subr.mxu1 %v10567_v33 }
 0x97e   : > { %v10705_v51 = vpop.permute.xlu1 %3411  ;;  %3675 = vmatprep.subr.mxu0 %v3488_v7  ;;  %7503 = vmatpush3.msra.mxu1 %v10527_v35  ;;  %v3484_v35 = vsel %vm1372_vm10, %v10410_v60, %v10366_v15  ;;  %v13554_v60 = vld [vmem:[#allocation38_spill] sm:$0xff] }
 0x97f   : > { %3676 = vmatpush1.msra.mxu0 %v3487_v41  ;;  %7504 = vmatprep.subr.mxu1 %v10457_v8  ;;  %v10709_v54 = vpop.permute.xlu0 %3403  ;;  %v3480_v57 = vsel %vm1372_vm10, %v13554_v60, %v13553_v13  ;;  %v3479_v16 = vsel %vm1372_vm10, %v13555_v61, %v13554_v60 }
 0x980   : > { %3677 = vmatprep.subr.mxu0 %v3486_v38  ;;  %7505 = vmatpush3.msra.mxu1 %v10455_v53  ;;  %v13564_v38 = vmov 0.0  }
 0x981   : > { %3678 = vmatpush1.msra.mxu0 %v3485_v37  ;;  %7506 = vmatprep.subr.mxu1 %v10345_v4  ;;  %v3536_v37 = vsel %vm1372_vm10, %v13565_v40, %v10539_v63 }
 0x982   : > { %v10722_v48 = vpop.permute.xlu1 %3405  ;;  %3679 = vmatprep.subr.mxu0 %v3484_v35  ;;  %7507 = vmatpush3.msra.mxu1 %v10366_v15  ;;  %v3481_v15 = vsel %vm1372_vm10, %v13551_v29, %v13550_v1  ;;  %v3535_v35 = vsel %vm1372_vm10, %v10602_v59, %v13565_v40  ;;  %v13567_v1 = vld [vmem:[#allocation22_spill] sm:$0xff]  ;;  %v3532_v59 = vsel %vm1372_vm10, %v10638_v24, %v10324_v56 }
 0x983   : > { %3680 = vmatpush1.msra.mxu0 %v3483_v11  ;;  %7508 = vmatprep.subr.mxu1 %v10591_v47  ;;  %v10729_v53 = vpop.permute.xlu0 %3391  ;;  %v3533_v63 = vsel %vm1372_vm10, %v10610_v25, %v13567_v1  ;;  %v3528_v29 = vsel %vm1372_vm10, %v10672_v20, %v10561_v12  ;;  %v3524_v12 = vsel %vm1372_vm10, %v10722_v48, %v10335_v31  ;;  %v4010_v40 = vld [vmem:[#allocation6 + $0x108] sm:$0xff] }
 0x984   : > { %3681 = vmatprep.subr.mxu0 %v3482_v62  ;;  %7509 = vmatpush3.msra.mxu1 %v13549_v23 }
 0x985   : > { %3682 = vmatpush1.msra.mxu0 %v3481_v15  ;;  %7510 = vmatprep.subr.mxu1 %v13552_v43 }
 0x986   : > { %v10742_v9 = vpop.permute.xlu1 %3393  ;;  %3683 = vmatprep.subr.mxu0 %v3480_v57  ;;  %7511 = vmatpush3.msra.mxu1 %v13553_v13 }
 0x987   : > { %3684 = vmatpush1.msra.mxu0 %v3479_v16  ;;  %7512 = vmatprep.subr.mxu1 %v13556_v27  ;;  %v3446_v32 = vpop.permute.xlu0 %3445  ;;  %v3519_v31 = vsel %vm1372_vm10, %v10729_v53, %v10742_v9 }
 0x988   : > { %3685 = vmatprep.subr.mxu0 %v3478_v46  ;;  %7513 = vmatpush3.msra.mxu1 %v13557_v6 }
 0x989   : > { %3686 = vmatpush1.msra.mxu0 %v3477_v52  ;;  %7514 = vmatprep.subr.mxu1 %v13561_v14  ;;  %v4023_v52 = vld [vmem:[#allocation6 + $0x170] sm:$0xff] }
 0x98a   : > { %v3448_v26 = vpop.permute.xlu1 %3447  ;;  %3687 = vmatprep.subr.mxu0 %v3476_v3  ;;  %7515 = vmatpush3.msra.mxu1 %v13562_v49  ;;  %v4020_v49 = vld [vmem:[#allocation6 + $0x158] sm:$0xff] }
 0x98b   : > { %3688 = vmatpush1.msra.mxu0 %v3475_v17  ;;  %3864 = vmatmul.mubr.f32.vlgmr.msra.gmra.mxu1 %v10754_v10  ;;  %v10769_v22 = vpop.permute.xlu0 %3385  ;;  %v3538_v7 = vsel %vm1372_vm10, %v3448_v26, %v10579_v30  ;;  %v3537_v41 = vsel %vm1372_vm10, %v3446_v32, %v3448_v26  ;;  %v13566_v30 = vld [vmem:[#allocation39_spill] sm:$0xff]  ;;  %v4016_v3 = vld [vmem:[#allocation6 + $0x138] sm:$0xff]  ;;  %v4014_v17 = vld [vmem:[#allocation6 + $0x128] sm:$0xff] }
 0x98c   : > { %7696 = vmatprep.subr.mxu1 %v13564_v38  ;;  %3689 = vmatprep.subr.mxu0 %v3538_v7  ;;  %v4098_v26 = vld [vmem:[#allocation6 + $0x3c8] sm:$0xf]  ;;  %v4097_v7 = vld [vmem:[#allocation6 + $0x3c0] sm:$0xf] }
 0x98d   : > { %7697 = vmatpush3.msra.mxu1 %v10575_v0  ;;  %3690 = vmatpush2.msra.mxu0 %v3537_v41  ;;  %v3534_v0 = vsel %vm1372_vm10, %v13567_v1, %v10412_v45  ;;  %v3531_v45 = vsel %vm1372_vm10, %v10628_v21, %v10638_v24  ;;  %v3527_v21 = vsel %vm1372_vm10, %v10658_v58, %v10672_v20  ;;  %v4095_v41 = vld [vmem:[#allocation6 + $0x3b0] sm:$0xff]  ;;  %v4001_v1 = vld [vmem:[#allocation6 + $0xc0] sm:$0xff] }
 0x98e   : > { %7698 = vmatprep.subr.mxu1 %v13564_v38  ;;  %v3388_v11 = vpop.permute.xlu1 %3387  ;;  %3691 = vmatprep.subr.mxu0 %v3536_v37  ;;  %v3523_v58 = vsel %vm1372_vm10, %v10709_v54, %v10722_v48  ;;  %v4008_v37 = vld [vmem:[#allocation6 + $0xf8] sm:$0xff] }
 0x98f   : > { %7699 = vmatpush3.msra.mxu1 %v13566_v30  ;;  %3692 = vmatpush2.msra.mxu0 %v3535_v35  ;;  %v3422_v23 = vpop.permute.xlu0 %3421  ;;  %v3517_v48 = vsel %vm1372_vm10, %v10769_v22, %v3388_v11  ;;  %v4011_v22 = vld [vmem:[#allocation6 + $0x110] sm:$0xff]  ;;  %v4004_v30 = vld [vmem:[#allocation6 + $0xd8] sm:$0xff] }
 0x990   : > { %7700 = vmatprep.subr.mxu1 %v13564_v38  ;;  %3693 = vmatprep.subr.mxu0 %v3534_v0  ;;  %v4007_v35 = vld [vmem:[#allocation6 + $0xf0] sm:$0xff] }
 0x991   : > { %7701 = vmatpush3.msra.mxu1 %v10430_v36  ;;  %3694 = vmatpush2.msra.mxu0 %v3533_v63  ;;  %v3999_v0 = vld [vmem:[#allocation6 + $0xb0] sm:$0xff]  ;;  %v3998_v63 = vld [vmem:[#allocation6 + $0xa8] sm:$0xff] }
 0x992   : > { %7702 = vmatprep.subr.mxu1 %v13564_v38  ;;  %v3424_v62 = vpop.permute.xlu1 %3423  ;;  %3695 = vmatprep.subr.mxu0 %v3532_v59  ;;  %v4092_v59 = vld [vmem:[#allocation6 + $0x398] sm:$0xff] }
 0x993   : > { %7703 = vmatpush3.msra.mxu1 %v13547_v39  ;;  %7704 = vmatprep.mubr.msk.f32.mxu1 %vm13377_vm2, %v13564_v38  ;;  %v3380_v36 = vpop.permute.xlu0 %3379  ;;  %v3530_v25 = vsel %vm1372_vm10, %v3424_v62, %v10583_v55  ;;  %v3529_v56 = vsel %vm1372_vm10, %v3422_v23, %v3424_v62  ;;  %v3526_v55 = vsel %vm1372_vm10, %v10705_v51, %v10445_v18  ;;  %v4002_v23 = vld [vmem:[#allocation6 + $0xc8] sm:$0xff]  ;;  %v3996_v62 = vld [vmem:[#allocation6 + $0x98] sm:$0xff] }
 0x994   : > { %3696 = vmatpush2.msra.mxu0 %v3531_v45  ;;  %7705 = vmatmul.mubr.msk.f32.vlgmr.msra.gmra.mxu1 %vm13568_vm9, %v10618_v42  ;;  %v3525_v42 = vsel %vm1372_vm10, %v10692_v28, %v10705_v51  ;;  %v3520_v51 = vsel %vm1372_vm10, %v10742_v9, %v10567_v33  ;;  %v4091_v45 = vld [vmem:[#allocation6 + $0x390] sm:$0xff]  ;;  %vm13579_vm9 = vmmov %vm13569_vm6 }
 0x995   : > { %3697 = vmatprep.subr.mxu0 %v3530_v25  ;;  %4112 = vmatprep.subr.mxu1 %v4023_v52  ;;  %v4089_v25 = vld [vmem:[#allocation6 + $0x380] sm:$0xff]  ;;  %v4056_v52 = vld [vmem:[#allocation6 + $0x278] sm:$0xff] }
 0x996   : > { %3698 = vmatpush2.msra.mxu0 %v3529_v56  ;;  %v3382_v39 = vpop.permute.xlu1 %3381  ;;  %v3993_v56 = vld [vmem:[#allocation6 + $0x80] sm:$0xff] }
 0x997   : > { %3699 = vmatprep.subr.mxu0 %v3528_v29  ;;  %v3398_v24 = vpop.permute.xlu0 %3397  ;;  %v3516_v57 = vsel %vm1372_vm10, %v3382_v39, %v10345_v4  ;;  %v3515_v33 = vsel %vm1372_vm10, %v3380_v36, %v3382_v39  ;;  %v3995_v36 = vld [vmem:[#allocation6 + $0x90] sm:$0xff]  ;;  %v4088_v39 = vld [vmem:[#allocation6 + $0x378] sm:$0xff] }
 0x998   : > { %3700 = vmatpush2.msra.mxu0 %v3527_v21  ;;  %v3992_v29 = vld [vmem:[#allocation6 + $0x78] sm:$0xff]  ;;  %v4086_v21 = vld [vmem:[#allocation6 + $0x368] sm:$0xff] }
 0x999   : > { %3701 = vmatprep.subr.mxu0 %v3526_v55  ;;  %v4085_v55 = vld [vmem:[#allocation6 + $0x360] sm:$0xff] }
 0x99a   : > { %3702 = vmatpush2.msra.mxu0 %v3525_v42  ;;  %v3400_v15 = vpop.permute.xlu1 %3399  ;;  %v3989_v42 = vld [vmem:[#allocation6 + $0x60] sm:$0xff] }
 0x99b   : > { %3703 = vmatprep.subr.mxu0 %v3524_v12  ;;  %v3368_v20 = vpop.permute.xlu0 %3367  ;;  %v3522_v18 = vsel %vm1372_vm10, %v3400_v15, %v10587_v50  ;;  %v3521_v13 = vsel %vm1372_vm10, %v3398_v24, %v3400_v15  ;;  %v3518_v50 = vsel %vm1372_vm10, %v3388_v11, %v10457_v8  ;;  %v4005_v11 = vld [vmem:[#allocation6 + $0xe0] sm:$0xff]  ;;  %v3990_v24 = vld [vmem:[#allocation6 + $0x68] sm:$0xff]  ;;  %v4083_v15 = vld [vmem:[#allocation6 + $0x350] sm:$0xff] }
 0x99c   : > { %3704 = vmatpush2.msra.mxu0 %v3523_v58  ;;  %v3987_v12 = vld [vmem:[#allocation6 + $0x50] sm:$0xff]  ;;  %v4082_v58 = vld [vmem:[#allocation6 + $0x348] sm:$0xff] }
 0x99d   : > { %3705 = vmatprep.subr.mxu0 %v3522_v18  ;;  %v4080_v18 = vld [vmem:[#allocation6 + $0x338] sm:$0xff] }
 0x99e   : > { %3706 = vmatpush2.msra.mxu0 %v3521_v13  ;;  %v3370_v28 = vpop.permute.xlu1 %3369  ;;  %v3984_v13 = vld [vmem:[#allocation6 + $0x38] sm:$0xff] }
 0x99f   : > { %3707 = vmatprep.subr.mxu0 %v3520_v51  ;;  %v3374_v54 = vpop.permute.xlu0 %3373  ;;  %v3512_v16 = vsel %vm1372_vm10, %v3370_v28, %v13552_v43  ;;  %v3511_v32 = vsel %vm1372_vm10, %v3368_v20, %v3370_v28  ;;  %v4022_v43 = vld [vmem:[#allocation6 + $0x168] sm:$0xff]  ;;  %v4079_v28 = vld [vmem:[#allocation6 + $0x330] sm:$0xff] }
 0x9a0   : > { %3708 = vmatpush2.msra.mxu0 %v3519_v31  ;;  %4113 = vmatpush1.msra.mxu1 %v4022_v43  ;;  %v3986_v20 = vld [vmem:[#allocation6 + $0x48] sm:$0xff]  ;;  %v3983_v51 = vld [vmem:[#allocation6 + $0x30] sm:$0xff]  ;;  %v4077_v31 = vld [vmem:[#allocation6 + $0x320] sm:$0xff] }
 0x9a1   : > { %3709 = vmatprep.subr.mxu0 %v3518_v50  ;;  %4114 = vmatprep.subr.mxu1 %v4020_v49  ;;  %v4076_v50 = vld [vmem:[#allocation6 + $0x318] sm:$0xff]  ;;  %v4055_v43 = vld [vmem:[#allocation6 + $0x270] sm:$0xff]  ;;  %v4053_v49 = vld [vmem:[#allocation6 + $0x260] sm:$0xff] }
 0x9a2   : > { %3710 = vmatpush2.msra.mxu0 %v3517_v48  ;;  %v3376_v60 = vpop.permute.xlu1 %3375  ;;  %4115 = vmatpush1.msra.mxu1 %v4019_v5  ;;  %v3980_v48 = vld [vmem:[#allocation6 + $0x18] sm:$0xff] }
 0x9a3   : > { %3711 = vmatprep.subr.mxu0 %v3516_v57  ;;  %v3514_v53 = vsel %vm1372_vm10, %v3376_v60, %v10591_v47  ;;  %v3513_v9 = vsel %vm1372_vm10, %v3374_v54, %v3376_v60  ;;  %v3362_v61 = vpop.permute.xlu0 %3361  ;;  %v3981_v54 = vld [vmem:[#allocation6 + $0x20] sm:$0xff]  ;;  %v4074_v60 = vld [vmem:[#allocation6 + $0x308] sm:$0xff]  ;;  %v4052_v5 = vld [vmem:[#allocation6 + $0x258] sm:$0xff] }
 0x9a4   : > { %3712 = vmatpush2.msra.mxu0 %v3515_v33  ;;  %v3978_v57 = vld [vmem:[#allocation6 + $0x8] sm:$0xff]  ;;  %v4073_v33 = vld [vmem:[#allocation6 + $0x300] sm:$0xff] }
 0x9a5   : > { %3713 = vmatprep.subr.mxu0 %v3514_v53  ;;  %v3977_v53 = vld [vmem:[#allocation6] sm:$0xff] }
 0x9a6   : > { %3714 = vmatpush2.msra.mxu0 %v3513_v9  ;;  %v3364_v8 = vpop.permute.xlu1 %3363  ;;  %v4072_v9 = vld [vmem:[#allocation6 + $0x2f8] sm:$0xff] }
 0x9a7   : > { %3715 = vmatprep.subr.mxu0 %v3512_v16  ;;  %v3510_v4 = vsel %vm1372_vm10, %v3364_v8, %v13556_v27  ;;  %v3509_v6 = vsel %vm1372_vm10, %v3362_v61, %v3364_v8  ;;  %v3356_v47 = vpop.permute.xlu0 %3355  ;;  %v4017_v27 = vld [vmem:[#allocation6 + $0x140] sm:$0xff]  ;;  %v4071_v61 = vld [vmem:[#allocation6 + $0x2f0] sm:$0xff]  ;;  %v4070_v8 = vld [vmem:[#allocation6 + $0x2e8] sm:$0xff] }
 0x9a8   : > { %3716 = vmatpush2.msra.mxu0 %v3511_v32  ;;  %4116 = vmatprep.subr.mxu1 %v4017_v27  ;;  %v4068_v16 = vld [vmem:[#allocation6 + $0x2d8] sm:$0xff]  ;;  %v4067_v32 = vld [vmem:[#allocation6 + $0x2d0] sm:$0xff]  ;;  %v4050_v27 = vld [vmem:[#allocation6 + $0x248] sm:$0xff] }
 0x9a9   : > { %3717 = vmatprep.subr.mxu0 %v3510_v4  ;;  %4117 = vmatpush1.msra.mxu1 %v4016_v3  ;;  %v4065_v4 = vld [vmem:[#allocation6 + $0x2c0] sm:$0xff] }
 0x9aa   : > { %3718 = vmatpush2.msra.mxu0 %v3509_v6  ;;  %v3358_v44 = vpop.permute.xlu1 %3357  ;;  %4118 = vmatprep.subr.mxu1 %v4014_v17  ;;  %v4064_v6 = vld [vmem:[#allocation6 + $0x2b8] sm:$0xff]  ;;  %v4049_v3 = vld [vmem:[#allocation6 + $0x240] sm:$0xff]  ;;  %v4047_v17 = vld [vmem:[#allocation6 + $0x230] sm:$0xff] }
 0x9ab   : > { %v3508_v46 = vsel %vm1372_vm10, %v3358_v44, %v13561_v14  ;;  %v3507_v19 = vsel %vm1372_vm10, %v3356_v47, %v3358_v44  ;;  %v4013_v14 = vld [vmem:[#allocation6 + $0x120] sm:$0xff]  ;;  %v4062_v47 = vld [vmem:[#allocation6 + $0x2a8] sm:$0xff] }
 0x9ac   : > { %3719 = vmatprep.subr.mxu0 %v3508_v46  ;;  %4119 = vmatpush1.msra.mxu1 %v4013_v14  ;;  %v4061_v44 = vld [vmem:[#allocation6 + $0x2a0] sm:$0xff]  ;;  %v4059_v46 = vld [vmem:[#allocation6 + $0x290] sm:$0xff]  ;;  %v4046_v14 = vld [vmem:[#allocation6 + $0x228] sm:$0xff] }
 0x9ad   : > { %3720 = vmatpush2.msra.mxu0 %v3507_v19  ;;  %4120 = vmatprep.subr.mxu1 %v4011_v22  ;;  %v4058_v19 = vld [vmem:[#allocation6 + $0x288] sm:$0xff]  ;;  %v4043_v22 = vld [vmem:[#allocation6 + $0x210] sm:$0xff] }
 0x9ae   : > { %3722 = vmatmul.mubr.f32.vlgmr.msra.gmra.mxu0 %v10754_v10  ;;  %7361 = vmatprep.subr.msk.mxu0 %vm13569_vm6, %v4098_v26  ;;  %v4094_v10 = vld [vmem:[#allocation6 + $0x3a8] sm:$0xff]  ;;  %v4044_v26 = vld [vmem:[#allocation6 + $0x218] sm:$0xff] }
 0x9af   : > { %4247 = vmatprep.mubr.f32.mxu0 %v13564_v38  ;;  %7362 = vmatpush1.msk.msra.mxu0 %vm13570_vm7, %v4097_v7  ;;  %v4041_v7 = vld [vmem:[#allocation6 + $0x200] sm:$0xff]  ;;  %vm13588_vm7 = vcmask 1040384  }
 0x9b0   : > { %4199 = vmatprep.subr.mxu0 %v4095_v41  ;;  %4121 = vmatpush1.msra.mxu1 %v4010_v40  ;;  %v4040_v41 = vld [vmem:[#allocation6 + $0x1f8] sm:$0xff]  ;;  %v4038_v40 = vld [vmem:[#allocation6 + $0x1e8] sm:$0xff] }
 0x9b1   : > { %4200 = vmatpush1.msra.mxu0 %v4094_v10  ;;  %4122 = vmatprep.subr.mxu1 %v4008_v37  ;;  %v4037_v10 = vld [vmem:[#allocation6 + $0x1e0] sm:$0xff]  ;;  %v4035_v37 = vld [vmem:[#allocation6 + $0x1d0] sm:$0xff] }
 0x9b2   : > { %4123 = vmatpush1.msra.mxu1 %v4007_v35  ;;  %4201 = vmatprep.subr.mxu0 %v4092_v59  ;;  %v4034_v35 = vld [vmem:[#allocation6 + $0x1c8] sm:$0xff] }
 0x9b3   : > { %4124 = vmatprep.subr.mxu1 %v4005_v11  ;;  %4202 = vmatpush1.msra.mxu0 %v4091_v45  ;;  %v4032_v11 = vld [vmem:[#allocation6 + $0x1b8] sm:$0xff] }
 0x9b4   : > { %4125 = vmatpush1.msra.mxu1 %v4004_v30  ;;  %4203 = vmatprep.subr.mxu0 %v4089_v25  ;;  %v4031_v30 = vld [vmem:[#allocation6 + $0x1b0] sm:$0xff] }
 0x9b5   : > { %4126 = vmatprep.subr.mxu1 %v4002_v23  ;;  %4204 = vmatpush1.msra.mxu0 %v4088_v39  ;;  %v4029_v23 = vld [vmem:[#allocation6 + $0x1a0] sm:$0xff] }
 0x9b6   : > { %4127 = vmatpush1.msra.mxu1 %v4001_v1  ;;  %4205 = vmatprep.subr.mxu0 %v4086_v21  ;;  %v4028_v1 = vld [vmem:[#allocation6 + $0x198] sm:$0xff] }
 0x9b7   : > { %4128 = vmatprep.subr.mxu1 %v3999_v0  ;;  %4206 = vmatpush1.msra.mxu0 %v4085_v55  ;;  %v4026_v0 = vld [vmem:[#allocation6 + $0x188] sm:$0xff]  ;;  %v3238_v25 = vpop.permute.xlu1 %3237 }
 0x9b8   : > { %4129 = vmatpush1.msra.mxu1 %v3998_v63  ;;  %4207 = vmatprep.subr.mxu0 %v4083_v15  ;;  %v4025_v63 = vld [vmem:[#allocation6 + $0x180] sm:$0xff]  ;;  %v3243_v39 = vrot.slane %v3238_v25, %v13559_v34 }
 0x9b9   : > { %4130 = vmatprep.subr.mxu1 %v3996_v62  ;;  %4208 = vmatpush1.msra.mxu0 %v4082_v58 }
 0x9ba   : > { %4131 = vmatpush1.msra.mxu1 %v3995_v36  ;;  %4209 = vmatprep.subr.mxu0 %v4080_v18  ;;  %v4069_v18 = vld [vmem:[#allocation6 + $0x2e0] sm:$0xff] }
 0x9bb   : > { %4132 = vmatprep.subr.mxu1 %v3993_v56  ;;  %4210 = vmatpush1.msra.mxu0 %v4079_v28  ;;  %v4066_v28 = vld [vmem:[#allocation6 + $0x2c8] sm:$0xff] }
 0x9bc   : > { %4133 = vmatpush1.msra.mxu1 %v3992_v29  ;;  %4211 = vmatprep.subr.mxu0 %v4077_v31  ;;  %v4063_v31 = vld [vmem:[#allocation6 + $0x2b0] sm:$0xff] }
 0x9bd   : > { %4134 = vmatprep.subr.mxu1 %v3990_v24  ;;  %4212 = vmatpush1.msra.mxu0 %v4076_v50  ;;  %v4060_v50 = vld [vmem:[#allocation6 + $0x298] sm:$0xff] }
 0x9be   : > { %4135 = vmatpush1.msra.mxu1 %v3989_v42  ;;  %4213 = vmatprep.subr.mxu0 %v4074_v60  ;;  %v13571_v42 = vld [vmem:[#allocation18_spill] sm:$0xff]  ;;  %v4057_v60 = vld [vmem:[#allocation6 + $0x280] sm:$0xff] }
 0x9bf   : > { %4136 = vmatprep.subr.mxu1 %v3987_v12  ;;  %4214 = vmatpush1.msra.mxu0 %v4073_v33  ;;  %v13572_v12 = vld [vmem:[#allocation21_spill] sm:$0xff]  ;;  %v4054_v33 = vld [vmem:[#allocation6 + $0x268] sm:$0xff] }
 0x9c0   : > { %4137 = vmatpush1.msra.mxu1 %v3986_v20  ;;  %7524 = vmatprep.subr.mxu0 %v4072_v9  ;;  %v4024_v20 = vld [vmem:[#allocation6 + $0x178] sm:$0xff]  ;;  %v4051_v9 = vld [vmem:[#allocation6 + $0x250] sm:$0xff] }
 0x9c1   : > { %4138 = vmatprep.subr.mxu1 %v3984_v13  ;;  %v4021_v13 = vld [vmem:[#allocation6 + $0x160] sm:$0xff] }
 0x9c2   : > { %4139 = vmatpush1.msra.mxu1 %v3983_v51  ;;  %v4018_v51 = vld [vmem:[#allocation6 + $0x148] sm:$0xff] }
 0x9c3   : > { %4140 = vmatprep.subr.mxu1 %v3981_v54  ;;  %v4015_v54 = vld [vmem:[#allocation6 + $0x130] sm:$0xff] }
 0x9c4   : > { %4141 = vmatpush1.msra.mxu1 %v3980_v48  ;;  %v4012_v48 = vld [vmem:[#allocation6 + $0x118] sm:$0xff] }
 0x9c5   : > { %4142 = vmatprep.subr.mxu1 %v3978_v57  ;;  %v4009_v57 = vld [vmem:[#allocation6 + $0x100] sm:$0xff] }
 0x9c6   : > { %4143 = vmatpush1.msra.mxu1 %v3977_v53  ;;  %v4006_v53 = vld [vmem:[#allocation6 + $0xe8] sm:$0xff] }
 0x9c7   : > { %4144 = vmatprep.subr.mxu1 %v4071_v61  ;;  %v4003_v61 = vld [vmem:[#allocation6 + $0xd0] sm:$0xff] }
 0x9c8   : > { %4145 = vmatpush2.msra.mxu1 %v4070_v8  ;;  %v4048_v8 = vld [vmem:[#allocation6 + $0x238] sm:$0xff] }
 0x9c9   : > { %4146 = vmatprep.subr.mxu1 %v4068_v16  ;;  %v4000_v16 = vld [vmem:[#allocation6 + $0xb8] sm:$0xff] }
 0x9ca   : > { %4147 = vmatpush2.msra.mxu1 %v4067_v32  ;;  %v4045_v32 = vld [vmem:[#allocation6 + $0x220] sm:$0xff] }
 0x9cb   : > { %4148 = vmatprep.subr.mxu1 %v4065_v4  ;;  %v3997_v4 = vld [vmem:[#allocation6 + $0xa0] sm:$0xff] }
 0x9cc   : > { %4149 = vmatpush2.msra.mxu1 %v4064_v6  ;;  %v4042_v6 = vld [vmem:[#allocation6 + $0x208] sm:$0xff] }
 0x9cd   : > { %4150 = vmatprep.subr.mxu1 %v4062_v47  ;;  %v3994_v47 = vld [vmem:[#allocation6 + $0x88] sm:$0xff] }
 0x9ce   : > { %4151 = vmatpush2.msra.mxu1 %v4061_v44 }
 0x9cf   : > { %4152 = vmatprep.subr.mxu1 %v4059_v46  ;;  %v4039_v46 = vld [vmem:[#allocation6 + $0x1f0] sm:$0xff] }
 0x9d0   : > { %4153 = vmatpush2.msra.mxu1 %v4058_v19  ;;  %v7910_v19 = vmov 1966171168  }
 0x9d1   : > { %4154 = vmatprep.subr.mxu1 %v4056_v52  ;;  %v3950_v52 = vunpack.c.l.s4 %v7910_v19 }
 0x9d2   : > { %4155 = vmatpush2.msra.mxu1 %v4055_v43 }
 0x9d3   : > { %4156 = vmatprep.subr.mxu1 %v4053_v49  ;;  %v3991_v49 = vld [vmem:[#allocation6 + $0x70] sm:$0xff] }
 0x9d4   : > { %4157 = vmatpush2.msra.mxu1 %v4052_v5 }
 0x9d5   : > { %4158 = vmatprep.subr.mxu1 %v4050_v27  ;;  %v4036_v27 = vld [vmem:[#allocation6 + $0x1d8] sm:$0xff] }
 0x9d6   : > { %4159 = vmatpush2.msra.mxu1 %v4049_v3 }
 0x9d7   : > { %4160 = vmatprep.subr.mxu1 %v4047_v17 }
 0x9d8   : > { %4161 = vmatpush2.msra.mxu1 %v4046_v14  ;;  %v3988_v14 = vld [vmem:[#allocation6 + $0x58] sm:$0xff] }
 0x9d9   : > { %4162 = vmatprep.subr.mxu1 %v4044_v26  ;;  %v4033_v26 = vld [vmem:[#allocation6 + $0x1c0] sm:$0xff] }
 0x9da   : > { %4163 = vmatpush2.msra.mxu1 %v4043_v22  ;;  %v3951_v22 = vunpack.c.0.s8 %v3950_v52 }
 0x9db   : > { %4164 = vmatprep.subr.mxu1 %v4041_v7  ;;  %v13573_v7 = vld [vmem:[#allocation15_spill] sm:$0xff] }
 0x9dc   : > { %4165 = vmatpush2.msra.mxu1 %v4040_v41 }
 0x9dd   : > { %4166 = vmatprep.subr.mxu1 %v4038_v40 }
 0x9de   : > { %4167 = vmatpush2.msra.mxu1 %v4037_v10  ;;  %v3985_v10 = vld [vmem:[#allocation6 + $0x40] sm:$0xff] }
 0x9df   : > { %4168 = vmatprep.subr.mxu1 %v4035_v37  ;;  %v4030_v37 = vld [vmem:[#allocation6 + $0x1a8] sm:$0xff] }
 0x9e0   : > { %4169 = vmatpush2.msra.mxu1 %v4034_v35  ;;  %v13574_v35 = vld [vmem:[#allocation16_spill] sm:$0xff] }
 0x9e1   : > { %4170 = vmatprep.subr.mxu1 %v4032_v11 }
 0x9e2   : > { %4171 = vmatpush2.msra.mxu1 %v4031_v30  ;;  %v3982_v30 = vld [vmem:[#allocation6 + $0x28] sm:$0xff] }
 0x9e3   : > { %4172 = vmatprep.subr.mxu1 %v4029_v23  ;;  %v4027_v23 = vld [vmem:[#allocation6 + $0x190] sm:$0xff] }
 0x9e4   : > { %4173 = vmatpush2.msra.mxu1 %v4028_v1  ;;  %v13575_v1 = vld [vmem:[#allocation12_spill] sm:$0xff] }
 0x9e5   : > { %4174 = vmatprep.subr.mxu1 %v4026_v0  ;;  %v10873_v0 = vsub.s32 %v3951_v22, %v13575_v1 }
 0x9e6   : > { %4175 = vmatpush2.msra.mxu1 %v4025_v63  ;;  %v13577_v63 = vld [vmem:[#allocation19_spill] sm:$0xff] }
 0x9e7   : > { %13576 = vst [vmem:[#allocation24_spill] sm:$0xff] %v10873_v0 }
 0xa2b   : > { %v10857_v59 = vpop.f32.mrf.mxu1 }
 0xa2d   : > { %v10859_v62 = vpop.f32.mrf.mxu1 }
 0xa4b   : > { %v7516_v45 = vpop.f32.mrf.mxu1 }
 0xa4d   : > { %v7517_v36 = vpop.f32.mrf.mxu1 }
 0xa4e   : > { %v7518_v56 = vadd.f32 %v7517_v36, %v7516_v45  ;;  %v3979_v45 = vld [vmem:[#allocation6 + $0x10] sm:$0xff]  ;;  %v13578_v36 = vld [vmem:[#allocation20_spill] sm:$0xff] }
 0xa50   : > { %v3866_v29 = vadd.f32 %v7518_v56, %v3243_v39  ;;  %v4099_v56 = vld [vmem:[#allocation6 + $0x3d0] sm:$0xf] }
 0xa54   : > { %v3935_v21 = vpop.f32.mrf.mxu1 }
 0xa55   : > { %v3936_v24 = vadd.f32 %v3935_v21, %v3866_v29  ;;  %v4096_v21 = vld [vmem:[#allocation6 + $0x3b8] sm:$0xff] }
 0xa56   : > { %v7706_v55 = vpop.f32.mrf.mxu1 }
 0xa57   : > { %v3941_v15 = vadd.f32 %v3936_v24, %v13571_v42  ;;  %v13580_v55 = vlaneseq  ;;  %v13581_v42 = vmov 0 }
 0xa59   : > { %v10864_v58 = vmul.f32 %v3941_v15, %v13572_v12  ;;  %vm10890_vm6 = vcmp.lt.s32.totalorder %v13580_v55, 324  ;;  %v4093_v15 = vld [vmem:[#allocation6 + $0x3a0] sm:$0xff] }
 0xa5a   : > { %v13582_v42 = vsel %vm10890_vm6, 4294967295, %v13581_v42 }
 0xa5b   : > { %7363 = vmatmul.mubr.msk.f32.vlgmr.msra.gmra.mxu0 %vm4100_vm1, %v10864_v58  ;;  %13583 = vst [vmem:[#allocation29_spill] sm:$0xff] %v13582_v42 }
 0xa5c   : > { %7525 = vmatpush3.msra.mxu0 %v4024_v20 }
 0xa5d   : > { %7526 = vmatprep.subr.mxu0 %v4069_v18  ;;  %v4090_v18 = vld [vmem:[#allocation6 + $0x388] sm:$0xff] }
 0xa5e   : > { %7527 = vmatpush3.msra.mxu0 %v4021_v13  ;;  %v4087_v13 = vld [vmem:[#allocation6 + $0x370] sm:$0xff] }
 0xa5f   : > { %7528 = vmatprep.subr.mxu0 %v4066_v28  ;;  %v4084_v28 = vld [vmem:[#allocation6 + $0x358] sm:$0xff] }
 0xa60   : > { %7529 = vmatpush3.msra.mxu0 %v4018_v51  ;;  %v4081_v51 = vld [vmem:[#allocation6 + $0x340] sm:$0xff] }
 0xa61   : > { %7530 = vmatprep.subr.mxu0 %v4063_v31  ;;  %v4078_v31 = vld [vmem:[#allocation6 + $0x328] sm:$0xff] }
 0xa62   : > { %7531 = vmatpush3.msra.mxu0 %v4015_v54  ;;  %v4075_v54 = vld [vmem:[#allocation6 + $0x310] sm:$0xff] }
 0xa63   : > { %7532 = vmatprep.subr.mxu0 %v4060_v50 }
 0xa64   : > { %7533 = vmatpush3.msra.mxu0 %v4012_v48 }
 0xa65   : > { %7534 = vmatprep.subr.mxu0 %v4057_v60 }
 0xa66   : > { %7535 = vmatpush3.msra.mxu0 %v4009_v57 }
 0xa67   : > { %7536 = vmatprep.subr.mxu0 %v4054_v33 }
 0xa68   : > { %7537 = vmatpush3.msra.mxu0 %v4006_v53 }
 0xa69   : > { %7538 = vmatprep.subr.mxu0 %v4051_v9 }
 0xa6a   : > { %7539 = vmatpush3.msra.mxu0 %v4003_v61 }
 0xa6b   : > { %7540 = vmatprep.subr.mxu0 %v4048_v8 }
 0xa6c   : > { %7541 = vmatpush3.msra.mxu0 %v4000_v16  ;;  %v13586_v16 = vld [vmem:[#allocation13_spill] sm:$0xff] }
 0xa6d   : > { %7542 = vmatprep.subr.mxu0 %v4045_v32 }
 0xa6e   : > { %7543 = vmatpush3.msra.mxu0 %v3997_v4  ;;  %v3723_v44 = vpop.f32.mrf.mxu0 }
 0xa6f   : > { %7544 = vmatprep.subr.mxu0 %v4042_v6  ;;  %v3724_v43 = vadd.f32 %v3723_v44, %v3243_v39 }
 0xa70   : > { %7545 = vmatpush3.msra.mxu0 %v3994_v47  ;;  %v3725_v5 = vpop.f32.mrf.mxu0 }
 0xa71   : > { %v3795_v3 = vadd.f32 %v10857_v59, %v3724_v43  ;;  %7546 = vmatprep.subr.mxu0 %v4039_v46  ;;  %v3726_v17 = vadd.f32 %v3725_v5, %v3243_v39  ;;  %v3962_v39 = vrot.slane %v10864_v58, %v10873_v0 }
 0xa72   : > { %7547 = vmatpush3.msra.mxu0 %v3991_v49 }
 0xa73   : > { %v3939_v41 = vadd.f32 %v3795_v3, %v13573_v7  ;;  %v3797_v40 = vadd.f32 %v10859_v62, %v3726_v17  ;;  %7548 = vmatprep.subr.mxu0 %v4036_v27 }
 0xa74   : > { %7549 = vmatpush3.msra.mxu0 %v3988_v14 }
 0xa75   : > { %v3940_v11 = vadd.f32 %v3797_v40, %v13574_v35  ;;  %7550 = vmatprep.subr.mxu0 %v4033_v26  ;;  %v3942_v59 = vmul.f32 %v3939_v41, %v13577_v63 }
 0xa76   : > { %7551 = vmatpush3.msra.mxu0 %v3985_v10 }
 0xa77   : > { %7552 = vmatprep.subr.mxu0 %v4030_v37  ;;  %v3943_v25 = vmul.f32 %v3940_v11, %v13578_v36 }
 0xa78   : > { %7553 = vmatpush3.msra.mxu0 %v3982_v30 }
 0xa79   : > { %7554 = vmatprep.subr.mxu0 %v4027_v23  ;;  %v3948_v62 = vcombine.low %v3942_v59, %v3943_v25  ;;  %4176 = vmatprep.mubr.f32.mxu1 %v3943_v25 }
 0xa7a   : > { %7555 = vmatpush3.msra.mxu0 %v3979_v45  ;;  %4318 = vmatprep.mubr.f32.mxu0 %v3943_v25 }
 0xa7b   : > { %v3955_v29 = vrot.slane %v3948_v62, %v10873_v0  ;;  %7707 = vmatprep.subr.mxu0 %v13564_v38  ;;  %4177 = vmatmul.mubr.f32.vlgmr.msra.gmra.mxu1 %v3942_v59 }
 0xa7c   : > { %4319 = vmatmul.mubr.f32.vlgmr.msra.gmra.mxu0 %v3942_v59  ;;  %4706 = vmatprep.mubr.f32.mxu1 %v13564_v38 }
 0xa7d   : > { %v3963_v24 = vcombine.low %v3955_v29, %v3962_v39  ;;  %7708 = vmatpush3.msk.msra.mxu0 %vm13579_vm9, %v4099_v56  ;;  %7725 = vmatprep.mubr.msk.f32.mxu0 %vm13377_vm2, %v13564_v38 }
 0xa7e   : > { %7709 = vmatprep.subr.mxu0 %v13564_v38 }
 0xa7f   : > { %v3970_v20 = vrot.slane %v3963_v24, %v10873_v0  ;;  %7710 = vmatpush3.msra.mxu0 %v4096_v21 }
 0xa80   : > { %7711 = vmatprep.subr.mxu0 %v13564_v38 }
 0xa81   : > { %3976 = vst.msk [vmem:[%s828_s8] sm:$0x7] %vm10890_vm6, %v3970_v20  ;;  %7712 = vmatpush3.msra.mxu0 %v4093_v15  ;;  %s13584_s8 = sld [smem:[#allocation44_spill]] }
 0xa82   : > { %7713 = vmatprep.subr.mxu0 %v13564_v38 }
 0xa83   : > { %7714 = vmatpush3.msra.mxu0 %v4090_v18 }
 0xa84   : > { %7715 = vmatprep.subr.mxu0 %v13564_v38 }
 0xa85   : > { %7716 = vmatpush3.msra.mxu0 %v4087_v13 }
 0xa86   : > { %7717 = vmatprep.subr.mxu0 %v13564_v38 }
 0xa87   : > { %7718 = vmatpush3.msra.mxu0 %v4084_v28  ;;  %s812_s5 = scalar_lea.vmem %s13584_s8, %s8410_s29 }
 0xa88   : > { %7719 = vmatprep.subr.mxu0 %v13564_v38  ;;  %v4394_v60 = vld [vmem:[%s812_s5] sm:$0x7] }
 0xa89   : > { %7720 = vmatpush3.msra.mxu0 %v4081_v51  ;;  %v10912_v9 = vrot.slane %v4394_v60, %v13559_v34  ;;  %v10915_v32 = vrot.slane %v4394_v60, %v13586_v16  ;;  %v10923_v49 = vrot.slane %v4394_v60, %v13546_v2 }
 0xa8a   : > { %7721 = vmatprep.subr.mxu0 %v13564_v38 }
 0xa8b   : > { %7722 = vmatpush3.msra.mxu0 %v4078_v31  ;;  %13585 = vst [vmem:[#allocation41_spill] sm:$0xff] %v10912_v9  ;;  %13587 = vst [vmem:[#allocation33_spill] sm:$0xff] %v10915_v32 }
 0xa8c   : > { %7723 = vmatprep.subr.mxu0 %v13564_v38  ;;  %13590 = vst [vmem:[#allocation31_spill] sm:$0xff] %v10923_v49 }
 0xa8d   : > { %7724 = vmatpush3.msra.mxu0 %v4075_v54 }
 0xa8e   : > { %7726 = vmatmul.mubr.msk.f32.vlgmr.msra.gmra.mxu0 %vm4100_vm1, %v10864_v58  ;;  %vm13589_vm1 = vmmov %vm13588_vm7 }
 0xa8f   : > { %vm13591_vm9 = vmmov %vm13589_vm1 }
 0xb1b   : > { %v4249_v50 = vpop.f32.mrf.mxu0 }
 0xb1d   : > { %v4251_v33 = vpop.f32.mrf.mxu0 }
 0xb3b   : > { %v4178_v48 = vpop.f32.mrf.mxu1 }
 0xb3c   : > { %v4250_v57 = vadd.f32 %v4249_v50, %v4178_v48  ;;  %v7556_v44 = vpop.f32.mrf.mxu0 }
 0xb3d   : > { %v4180_v53 = vpop.f32.mrf.mxu1 }
 0xb3e   : > { %v4414_v61 = vrot.slane %v4250_v57, 7  ;;  %v4252_v8 = vadd.f32 %v4251_v33, %v4180_v53  ;;  %v7557_v46 = vpop.f32.mrf.mxu0 }
 0xb3f   : > { %v7558_v19 = vadd.f32 %v7557_v46, %v7556_v44  ;;  %v10998_v44 = vld [vmem:[%s13284_s15] sm:$0xff] }
 0xb40   : > { %v4415_v4 = vrot.slane %v4252_v8, 7  ;;  %v4420_v58 = vsel %vm13588_vm7, %v10912_v9, %v4414_v61  ;;  %vm4436_vm7 = vcmask 1041600  }
 0xb42   : > { %v4421_v6 = vsel %vm13589_vm1, %v10915_v32, %v4415_v4  ;;  %vm4437_vm1 = vcmask 1045508  }
 0xb43   : > { %v4426_v47 = vcombine.low %v4420_v58, %v4421_v6  ;;  %vm4438_vm2 = vmor %vm4437_vm1, %vm4436_vm7  ;;  %vm4623_vm7 = vcmask 146432  }
 0xb44   : > { %7734 = vmatprep.mubr.msk.f32.mxu0 %vm4623_vm7, %v10998_v44 }
 0xb45   : > { %4427 = vrot.lane.b32.xlu0 %v4426_v47, %s13515_s22 }
 0xb4e   : > { %v4390_v52 = vpop.f32.mrf.mxu0 }
 0xb4f   : > { %v4391_v43 = vadd.f32 %v7558_v19, %v4390_v52 }
 0xb50   : > { %v7727_v5 = vpop.f32.mrf.mxu0 }
 0xb51   : > { %v4416_v27 = vrot.slane %v4391_v43, 7 }
 0xb53   : > { %v4422_v3 = vsel %vm13591_vm9, %v10923_v49, %v4416_v27  ;;  %vm13594_vm9 = vcmask 1045504  }
 0xb54   : > { %4429 = vrot.lane.b32.xlu1 %v4422_v3, %s13515_s22 }
 0xbb7   : > { %v4428_v17 = vpop.permute.xlu0 %4427 }
 0xbb8   : > { %v4431_v14 = vrot.slane %v4428_v17, 4 }
 0xbba   : > { %v4432_v26 = vsel %vm1155_vm5, %v4431_v14, %v4428_v17 }
 0xbbb   : > { %4439 = vst.msk [vmem:[#allocation2] sm:$0x33] %vm4438_vm2, %v4432_v26  ;;  %vm13593_vm2 = vcmask 1043456  }
 0xbc2   : > { %v10929_v22 = vld [vmem:[#allocation2] sm:$0x33] }
 0xbc3   : > { %4533 = vrot.lane.b32.xlu1 %v10929_v22, %s13466_s28  ;;  %4489 = vrot.lane.b32.xlu0 %v10929_v22, %s13468_s27  ;;  %v4448_v40 = vrot.slane %v10929_v22, 6  ;;  %v10943_v10 = vcombine.high %v10929_v22, %v10929_v22  ;;  %v4475_v37 = vrot.slane %v10929_v22, 2  ;;  %v4462_v35 = vcombine.low %v10929_v22, %v10929_v22 }
 0xbc5   : > { %v4476_v11 = vrot.slane %v10943_v10, 2  ;;  %v4449_v23 = vrot.slane %v10943_v10, 6 }
 0xbc6   : > { %v4430_v7 = vpop.permute.xlu1 %4429 }
 0xbc7   : > { %v4433_v41 = vsel %vm1155_vm5, %v4431_v14, %v4430_v7  ;;  %4466 = vrot.lane.b32.xlu1 %v10929_v22, %s13464_s4  ;;  %4513 = vrot.lane.b32.xlu0 %v10929_v22, %s13465_s1 }
 0xbc8   : > { %4441 = vst.msk [vmem:[#allocation2 + $0x8] sm:$0x3] %vm4440_vm11, %v4433_v41  ;;  %vm13592_vm11 = vcmask 1041408  }
 0xbc9   : > { %vm13595_vm1 = vmmov %vm13592_vm11 }
 0xbcb   : > { %4500 = vrot.lane.b32.xlu1 %v4448_v40, %s13467_s26  ;;  %4491 = vrot.lane.b32.xlu0 %v10943_v10, %s13468_s27 }
 0xbcf   : > { %4522 = vrot.lane.b32.xlu1 %v4475_v37, %s13463_s25  ;;  %4535 = vrot.lane.b32.xlu0 %v10943_v10, %s13466_s28  ;;  %v10959_v30 = vld [vmem:[#allocation2 + $0x8] sm:$0x3] }
 0xbd0   : > { %v4450_v1 = vrot.slane %v10959_v30, 6  ;;  %v4463_v59 = vcombine.low %v10959_v30, %v10959_v30  ;;  %v4477_v45 = vrot.slane %v10959_v30, 2 }
 0xbd3   : > { %4511 = vrot.lane.b32.xlu0 %v4462_v35, %s13465_s1  ;;  %4524 = vrot.lane.b32.xlu1 %v4476_v11, %s13463_s25 }
 0xbd7   : > { %4451 = vrot.lane.b32.xlu0 %v4448_v40, %s13519_s0  ;;  %4480 = vrot.lane.b32.xlu1 %v4476_v11, %s13518_s7 }
 0xbdb   : > { %4464 = vrot.lane.b32.xlu0 %v4462_v35, %s13464_s4  ;;  %4493 = vrot.lane.b32.xlu1 %v10959_v30, %s13468_s27 }
 0xbdf   : > { %4537 = vrot.lane.b32.xlu1 %v10959_v30, %s13466_s28  ;;  %4502 = vrot.lane.b32.xlu0 %v4449_v23, %s13467_s26 }
 0xbe3   : > { %4504 = vrot.lane.b32.xlu1 %v4450_v1, %s13467_s26  ;;  %4453 = vrot.lane.b32.xlu0 %v4449_v23, %s13519_s0 }
 0xbe7   : > { %4515 = vrot.lane.b32.xlu1 %v4463_v59, %s13465_s1  ;;  %4526 = vrot.lane.b32.xlu0 %v4477_v45, %s13463_s25 }
 0xbeb   : > { %4455 = vrot.lane.b32.xlu1 %v4450_v1, %s13519_s0  ;;  %4468 = vrot.lane.b32.xlu0 %v4463_v59, %s13464_s4 }
 0xbef   : > { %4478 = vrot.lane.b32.xlu1 %v4475_v37, %s13518_s7  ;;  %4482 = vrot.lane.b32.xlu0 %v4477_v45, %s13518_s7 }
 0xc35   : > { %v4534_v25 = vpop.permute.xlu1 %4533  ;;  %v4490_v62 = vpop.permute.xlu0 %4489 }
 0xc39   : > { %v10980_v56 = vpop.permute.xlu1 %4466  ;;  %v4514_v39 = vpop.permute.xlu0 %4513 }
 0xc3d   : > { %v4501_v29 = vpop.permute.xlu1 %4500  ;;  %v4492_v21 = vpop.permute.xlu0 %4491 }
 0xc3e   : > { %v4495_v48 = vsel %vm13380_vm14, %v4490_v62, %v4492_v21 }
 0xc41   : > { %v4523_v24 = vpop.permute.xlu1 %4522  ;;  %v4536_v55 = vpop.permute.xlu0 %4535 }
 0xc42   : > { %v4539_v15 = vsel %vm1282_vm8, %v4534_v25, %v4536_v55 }
 0xc43   : > { %4605 = vrot.lane.b32.xlu0 %v4539_v15, %s13469_s14 }
 0xc45   : > { %v4512_v20 = vpop.permute.xlu0 %4511  ;;  %v4525_v18 = vpop.permute.xlu1 %4524 }
 0xc46   : > { %v4517_v33 = vsel %vm1255_vm15, %v4512_v20, %v4514_v39  ;;  %v4528_v61 = vsel %vm1270_vm3, %v4523_v24, %v4525_v18  ;;  %v4566_v24 = vld [vmem:[%s13285_s16 + $0x18] sm:$0xff] }
 0xc47   : > { %v4831_v20 = vld [vmem:[%s13286_s17 + $0x18] sm:$0xff] }
 0xc49   : > { %v4452_v13 = vpop.permute.xlu0 %4451  ;;  %v4481_v28 = vpop.permute.xlu1 %4480 }
 0xc4d   : > { %v4465_v51 = vpop.permute.xlu0 %4464  ;;  %v4494_v31 = vpop.permute.xlu1 %4493 }
 0xc4e   : > { %v4496_v46 = vsel %vm13380_vm14, %v4492_v21, %v4494_v31  ;;  %vm13598_vm14 = vmmov %vm13594_vm9 }
 0xc51   : > { %v4538_v54 = vpop.permute.xlu1 %4537  ;;  %v4503_v50 = vpop.permute.xlu0 %4502 }
 0xc52   : > { %v4506_v60 = vsel %vm13379_vm0, %v4501_v29, %v4503_v50  ;;  %v4540_v57 = vsel %vm1282_vm8, %v4536_v55, %v4538_v54  ;;  %v4470_v55 = vsel %vm1196_vm13, %v4465_v51, %v10980_v56  ;;  %v4563_v51 = vld [vmem:[%s13285_s16] sm:$0xff] }
 0xc53   : > { %v4550_v53 = vsel %vm13592_vm11, %v4495_v48, %v4506_v60  ;;  %4607 = vrot.lane.b32.xlu0 %v4540_v57, %s13469_s14  ;;  %vm13596_vm11 = vmmov %vm13595_vm1 }
 0xc54   : > { %v4553_v8 = vsel %vm13593_vm2, %v4550_v53, %v4517_v33 }
 0xc55   : > { %v4505_v4 = vpop.permute.xlu1 %4504  ;;  %v4454_v58 = vpop.permute.xlu0 %4453  ;;  %v4556_v6 = vsel %vm13594_vm9, %v4553_v8, %v4528_v61 }
 0xc56   : > { %4599 = vrot.lane.b32.xlu1 %v4556_v6, %s13469_s14  ;;  %v4507_v47 = vsel %vm13379_vm0, %v4503_v50, %v4505_v4  ;;  %v4552_v19 = vsel %vm13595_vm1, %v4494_v31, %v4505_v4  ;;  %vm13597_vm0 = vmmov %vm13593_vm2  ;;  %v4457_v1 = vsel %vm1181_vm4, %v4452_v13, %v4454_v58  ;;  %v4564_v13 = vld [vmem:[%s13285_s16 + $0x8] sm:$0xff]  ;;  %v4828_v31 = vld [vmem:[%s13286_s17] sm:$0xff] }
 0xc57   : > { %v4551_v5 = vsel %vm13596_vm11, %v4496_v46, %v4507_v47  ;;  %vm13599_vm11 = vmmov %vm13595_vm1  ;;  %v4560_v6 = vld [vmem:[%s13284_s15 + $0x8] sm:$0xff]  ;;  %v4561_v46 = vld [vmem:[%s13284_s15 + $0x10] sm:$0xff] }
 0xc59   : > { %v4516_v52 = vpop.permute.xlu1 %4515  ;;  %v4527_v43 = vpop.permute.xlu0 %4526 }
 0xc5a   : > { %v4518_v27 = vsel %vm1255_vm15, %v4514_v39, %v4516_v52  ;;  %v4555_v3 = vsel %vm13593_vm2, %v4552_v19, %v4516_v52  ;;  %v4529_v17 = vsel %vm1270_vm3, %v4525_v18, %v4527_v43  ;;  %4609 = vrot.lane.b32.xlu1 %v4538_v54, %s13469_s14  ;;  %vm13601_vm2 = vmmov %vm13597_vm0  ;;  %v4565_v18 = vld [vmem:[%s13285_s16 + $0x10] sm:$0xff]  ;;  %v4562_v52 = vld [vmem:[%s13284_s15 + $0x18] sm:$0xff] }
 0xc5b   : > { %v4558_v14 = vsel %vm13594_vm9, %v4555_v3, %v4527_v43  ;;  %v4554_v26 = vsel %vm13597_vm0, %v4551_v5, %v4518_v27 }
 0xc5c   : > { %4603 = vrot.lane.b32.xlu0 %v4558_v14, %s13469_s14  ;;  %v4557_v7 = vsel %vm13598_vm14, %v4554_v26, %v4529_v17  ;;  %vm13600_vm14 = vmmov %vm13594_vm9 }
 0xc5d   : > { %v4456_v41 = vpop.permute.xlu1 %4455  ;;  %v4469_v40 = vpop.permute.xlu0 %4468  ;;  %vm13602_vm9 = vmmov %vm13595_vm1 }
 0xc5e   : > { %v4458_v37 = vsel %vm1181_vm4, %v4454_v58, %v4456_v41  ;;  %v4543_v35 = vsel %vm13595_vm1, %v10959_v30, %v4456_v41  ;;  %4601 = vrot.lane.b32.xlu1 %v4557_v7, %s13469_s14  ;;  %v4471_v23 = vsel %vm1196_vm13, %v10980_v56, %v4469_v40  ;;  %v4541_v29 = vsel %vm13602_vm9, %v10929_v22, %v4457_v1  ;;  %vm13603_vm1 = vmmov %vm13600_vm14  ;;  %v4830_v56 = vld [vmem:[%s13286_s17 + $0x10] sm:$0xff] }
 0xc5f   : > { %v4542_v11 = vsel %vm13599_vm11, %v10943_v10, %v4458_v37  ;;  %v4546_v59 = vsel %vm13597_vm0, %v4543_v35, %v4469_v40  ;;  %vm13604_vm11 = vmmov %vm13597_vm0 }
 0xc60   : > { %v4545_v30 = vsel %vm13601_vm2, %v4542_v11, %v4471_v23  ;;  %v4544_v15 = vsel %vm13604_vm11, %v4541_v29, %v4470_v55  ;;  %vm13605_vm0 = vmmov %vm13603_vm1 }
 0xc61   : > { %v4479_v45 = vpop.permute.xlu1 %4478  ;;  %v4483_v25 = vpop.permute.xlu0 %4482  ;;  %vm13607_vm2 = vmmov %vm13602_vm9 }
 0xc62   : > { %v4485_v62 = vsel %vm1211_vm12, %v4481_v28, %v4483_v25  ;;  %v4549_v39 = vsel %vm13600_vm14, %v4546_v59, %v4483_v25  ;;  %v4484_v21 = vsel %vm1211_vm12, %v4479_v45, %v4481_v28  ;;  %v4829_v28 = vld [vmem:[%s13286_s17 + $0x8] sm:$0xff]  ;;  %vm13606_vm14 = vmmov %vm13602_vm9 }
 0xc63   : > { %4597 = vrot.lane.b32.xlu1 %v4549_v39, %s13469_s14  ;;  %v4548_v10 = vsel %vm13603_vm1, %v4545_v30, %v4485_v62  ;;  %v4547_v22 = vsel %vm13605_vm0, %v4544_v15, %v4484_v21  ;;  %vm13608_vm9 = vmmov %vm13607_vm2 }
 0xc64   : > { %4595 = vrot.lane.b32.xlu0 %v4548_v10, %s13469_s14  ;;  %vm13609_vm1 = vmmov %vm13607_vm2 }
 0xc67   : > { %4584 = vperm.xlu1 %7820, %v4566_v24  }
 0xc68   : > { %4593 = vrot.lane.b32.xlu0 %v4547_v22, %s13469_s14 }
 0xc6b   : > { %4849 = vperm.xlu1 %7820, %v4831_v20  }
 0xc6c   : > { %4579 = vperm.xlu0 %7819, %v4565_v18  }
 0xc6f   : > { %4844 = vperm.xlu1 %7820, %v4830_v56  }
 0xc70   : > { %4574 = vperm.xlu0 %7819, %v4564_v13  }
 0xc73   : > { %4839 = vperm.xlu1 %7820, %v4829_v28  }
 0xc74   : > { %4569 = vperm.xlu0 %7819, %v4563_v51  }
 0xc78   : > { %4834 = vperm.xlu0 %7819, %v4828_v31  }
 0xcb5   : > { %v4606_v54 = vpop.permute.xlu0 %4605 }
 0xcc5   : > { %v4608_v48 = vpop.permute.xlu0 %4607 }
 0xcc6   : > { %v4615_v33 = vsel %vm1372_vm10, %v4606_v54, %v4608_v48 }
 0xcc8   : > { %v4600_v50 = vpop.permute.xlu1 %4599 }
 0xccc   : > { %v4610_v60 = vpop.permute.xlu1 %4609 }
 0xccd   : > { %7728 = vmatprep.subr.msk.mxu0 %vm13606_vm14, %v4610_v60  ;;  %v4616_v57 = vsel %vm1372_vm10, %v4608_v48, %v4610_v60 }
 0xcce   : > { %7366 = vmatprep.subr.msk.mxu1 %vm13607_vm2, %v4616_v57  ;;  %7729 = vmatpush3.msk.msra.mxu0 %vm13608_vm9, %v4610_v60  ;;  %v4604_v53 = vpop.permute.xlu0 %4603 }
 0xccf   : > { %7367 = vmatpush1.msk.msra.mxu1 %vm13609_vm1, %v4615_v33  ;;  %7730 = vmatprep.subr.mxu0 %v4604_v53 }
 0xcd0   : > { %v4602_v61 = vpop.permute.xlu1 %4601  ;;  %7731 = vmatpush3.msra.mxu0 %v4604_v53 }
 0xcd1   : > { %v4614_v8 = vsel %vm1372_vm10, %v4602_v61, %v4604_v53  ;;  %v4613_v4 = vsel %vm1372_vm10, %v4600_v50, %v4602_v61 }
 0xcd2   : > { %4670 = vmatprep.subr.mxu1 %v4614_v8 }
 0xcd3   : > { %4671 = vmatpush1.msra.mxu1 %v4613_v4 }
 0xcd5   : > { %v4598_v58 = vpop.permute.xlu1 %4597 }
 0xcd6   : > { %7732 = vmatprep.subr.mxu0 %v4598_v58  ;;  %v4596_v47 = vpop.permute.xlu0 %4595 }
 0xcd7   : > { %7733 = vmatpush3.msra.mxu0 %v4598_v58  ;;  %v4612_v19 = vsel %vm1372_vm10, %v4596_v47, %v4598_v58 }
 0xcd8   : > { %4672 = vmatprep.subr.mxu1 %v4612_v19  ;;  %7735 = vmatmul.mubr.msk.f32.vlgmr.msra.gmra.mxu0 %vm4623_vm7, %v4560_v6 }
 0xcd9   : > { %7737 = vmatprep.mubr.msk.f32.mxu0 %vm4623_vm7, %v4561_v46 }
 0xcda   : > { %v4594_v43 = vpop.permute.xlu0 %4593 }
 0xcdb   : > { %v4611_v5 = vsel %vm1372_vm10, %v4594_v43, %v4596_v47 }
 0xcdc   : > { %4673 = vmatpush1.msra.mxu1 %v4611_v5  ;;  %7738 = vmatmul.mubr.msk.f32.gmra.mxu0 %vm4623_vm7, %v4562_v52 }
 0xcdd   : > { %7368 = vmatmul.mubr.msk.f32.vlgmr.msra.gmra.mxu1 %vm4623_vm7, %v10998_v44  ;;  %5833 = vmatprep.mubr.f32.mxu0 %v13564_v38 }
 0xcde   : > { %4712 = vmatprep.mubr.f32.mxu1 %v13564_v38 }
 0xce1   : > { %7369 = vmatmul.mubr.msk.f32.gmra.mxu1 %vm4623_vm7, %v4560_v6 }
 0xce2   : > { %4718 = vmatprep.mubr.f32.mxu1 %v13564_v38  ;;  %v11092_v27 = vpop.permute.xlu1 %4584 }
 0xce5   : > { %7370 = vmatmul.mubr.msk.f32.gmra.mxu1 %vm4623_vm7, %v4561_v46 }
 0xce6   : > { %4724 = vmatprep.mubr.f32.mxu1 %v13564_v38  ;;  %v11094_v17 = vpop.permute.xlu1 %4849 }
 0xce7   : > { %v4580_v3 = vpop.permute.xlu0 %4579 }
 0xce9   : > { %7371 = vmatmul.mubr.msk.f32.gmra.mxu1 %vm4623_vm7, %v4562_v52 }
 0xcea   : > { %v11096_v14 = vpop.permute.xlu1 %4844 }
 0xceb   : > { %v4575_v44 = vpop.permute.xlu0 %4574 }
 0xcee   : > { %v4840_v40 = vpop.permute.xlu1 %4839 }
 0xcef   : > { %v4570_v26 = vpop.permute.xlu0 %4569 }
 0xcf3   : > { %v4835_v25 = vpop.permute.xlu0 %4834 }
 0xd98   : > { %v7736_v7 = vpop.f32.mrf.mxu0 }
 0xd99   : > { %v4803_v41 = vadd.f32 %v7736_v7, %v4575_v44 }
 0xd9a   : > { %v4797_v37 = vpop.f32.mrf.mxu0 }
 0xd9b   : > { %vm4821_vm11 = vcmp.ge.f32.partialorder %v4803_v41, 0.0  ;;  %v4857_v35 = vmul.f32 %v4840_v40, %v4803_v41  ;;  %v4798_v11 = vadd.f32 %v4797_v37, %v4570_v26 }
 0xd9c   : > { %v7739_v23 = vpop.f32.mrf.mxu0 }
 0xd9d   : > { %v4869_v1 = vsel %vm4821_vm11, %v4803_v41, %v4857_v35  ;;  %v4813_v59 = vadd.f32 %v7739_v23, %v11092_v27  ;;  %v4708_v45 = vpop.f32.mrf.mxu1  ;;  %v4854_v29 = vmul.f32 %v4835_v25, %v4798_v11  ;;  %vm4818_vm14 = vcmp.ge.f32.partialorder %v4798_v11, 0.0 }
 0xd9e   : > { %v4881_v62 = vmul.f32 %v4869_v1, %v13572_v12  ;;  %v4709_v39 = vadd.f32 %v4708_v45, %v4570_v26  ;;  %v4807_v30 = vpop.f32.mrf.mxu0 }
 0xd9f   : > { %vm4827_vm7 = vcmp.ge.f32.partialorder %v4813_v59, 0.0  ;;  %v4863_v10 = vmul.f32 %v11094_v17, %v4813_v59  ;;  %v4710_v21 = vpop.f32.mrf.mxu1  ;;  %v4808_v55 = vadd.f32 %v4807_v30, %v4580_v3  ;;  %v4866_v54 = vsel %vm4818_vm14, %v4798_v11, %v4854_v29 }
 0xda0   : > { %vm4816_vm0 = vcmp.ge.f32.partialorder %v4709_v39, 0.0  ;;  %v4852_v24 = vmul.f32 %v4835_v25, %v4709_v39  ;;  %v4711_v15 = vadd.f32 %v4710_v21, %v4570_v26  ;;  %4910 = vrot.lane.b32.xlu1 %v4881_v62, %s13515_s22  ;;  %v4878_v61 = vmul.f32 %v4866_v54, %v13572_v12 }
 0xda1   : > { %v4875_v22 = vsel %vm4827_vm7, %v4813_v59, %v4863_v10  ;;  %v4714_v20 = vpop.f32.mrf.mxu1  ;;  %v4860_v50 = vmul.f32 %v11096_v14, %v4808_v55  ;;  %vm4824_vm9 = vcmp.ge.f32.partialorder %v4808_v55, 0.0 }
 0xda2   : > { %v4887_v18 = vmul.f32 %v4875_v22, %v13572_v12  ;;  %v4864_v56 = vsel %vm4816_vm0, %v4709_v39, %v4852_v24  ;;  %vm4817_vm2 = vcmp.ge.f32.partialorder %v4711_v15, 0.0  ;;  %v4853_v13 = vmul.f32 %v4835_v25, %v4711_v15 }
 0xda3   : > { %v4876_v28 = vmul.f32 %v4864_v56, %v13577_v63  ;;  %v4715_v51 = vadd.f32 %v4714_v20, %v4575_v44  ;;  %v4716_v31 = vpop.f32.mrf.mxu1  ;;  %v4872_v6 = vsel %vm4824_vm9, %v4808_v55, %v4860_v50  ;;  %vm13610_vm9 = vcmask 1047744  }
 0xda4   : > { %v4865_v48 = vsel %vm4817_vm2, %v4711_v15, %v4853_v13  ;;  %v4717_v60 = vadd.f32 %v4716_v31, %v4575_v44  ;;  %4922 = vrot.lane.b32.xlu1 %v4887_v18, %s13515_s22  ;;  %v4884_v5 = vmul.f32 %v4872_v6, %v13572_v12 }
 0xda5   : > { %v4877_v57 = vmul.f32 %v4865_v48, %v13578_v36  ;;  %vm4819_vm1 = vcmp.ge.f32.partialorder %v4715_v51, 0.0  ;;  %v4855_v33 = vmul.f32 %v4840_v40, %v4715_v51  ;;  %v4720_v53 = vpop.f32.mrf.mxu1  ;;  %4900 = vrot.lane.b32.xlu0 %v4876_v28, %s13515_s22 }
 0xda6   : > { %v4856_v4 = vmul.f32 %v4840_v40, %v4717_v60  ;;  %vm4820_vm11 = vcmp.ge.f32.partialorder %v4717_v60, 0.0  ;;  %v4721_v47 = vadd.f32 %v4720_v53, %v4580_v3 }
 0xda7   : > { %v4867_v8 = vsel %vm4819_vm1, %v4715_v51, %v4855_v33  ;;  %v4722_v58 = vpop.f32.mrf.mxu1  ;;  %vm13611_vm1 = vmmov %vm13610_vm9 }
 0xda8   : > { %4902 = vrot.lane.b32.xlu1 %v4877_v57, %s13515_s22  ;;  %v4723_v46 = vadd.f32 %v4722_v58, %v4580_v3  ;;  %v4879_v52 = vmul.f32 %v4867_v8, %v13577_v63  ;;  %v4868_v44 = vsel %vm4820_vm11, %v4717_v60, %v4856_v4  ;;  %v4858_v41 = vmul.f32 %v11096_v14, %v4721_v47  ;;  %vm13612_vm11 = vmmov %vm13611_vm1 }
 0xda9   : > { %v4726_v19 = vpop.f32.mrf.mxu1  ;;  %4904 = vrot.lane.b32.xlu0 %v4878_v61, %s13515_s22  ;;  %vm4822_vm14 = vcmp.ge.f32.partialorder %v4721_v47, 0.0  ;;  %v4880_v11 = vmul.f32 %v4868_v44, %v13578_v36 }
 0xdaa   : > { %v4727_v43 = vadd.f32 %v4726_v19, %v11092_v27  ;;  %vm4823_vm7 = vcmp.ge.f32.partialorder %v4723_v46, 0.0  ;;  %v4859_v26 = vmul.f32 %v11096_v14, %v4723_v46  ;;  %v4870_v1 = vsel %vm4822_vm14, %v4721_v47, %v4858_v41 }
 0xdab   : > { %v4728_v7 = vpop.f32.mrf.mxu1  ;;  %v4882_v14 = vmul.f32 %v4870_v1, %v13577_v63 }
 0xdac   : > { %vm4825_vm0 = vcmp.ge.f32.partialorder %v4727_v43, 0.0  ;;  %v4861_v40 = vmul.f32 %v11094_v17, %v4727_v43  ;;  %v4729_v3 = vadd.f32 %v4728_v7, %v11092_v27  ;;  %4906 = vrot.lane.b32.xlu1 %v4879_v52, %s13515_s22  ;;  %v4871_v37 = vsel %vm4823_vm7, %v4723_v46, %v4859_v26  ;;  %vm13613_vm7 = vmmov %vm13611_vm1 }
 0xdad   : > { %4916 = vrot.lane.b32.xlu0 %v4884_v5, %s13515_s22  ;;  %v4883_v35 = vmul.f32 %v4871_v37, %v13578_v36 }
 0xdae   : > { %v4873_v23 = vsel %vm4825_vm0, %v4727_v43, %v4861_v40  ;;  %v4862_v59 = vmul.f32 %v11094_v17, %v4729_v3  ;;  %vm4826_vm2 = vcmp.ge.f32.partialorder %v4729_v3, 0.0  ;;  %vm13619_vm0 = vcmask 883712  }
 0xdaf   : > { %v4885_v27 = vmul.f32 %v4873_v23, %v13577_v63  ;;  %vm13621_vm14 = vmmov %vm13619_vm0 }
 0xdb0   : > { %4914 = vrot.lane.b32.xlu1 %v4883_v35, %s13515_s22  ;;  %v4874_v45 = vsel %vm4826_vm2, %v4729_v3, %v4862_v59  ;;  %vm13622_vm2 = vmmov %vm13619_vm0 }
 0xdb1   : > { %4908 = vrot.lane.b32.xlu0 %v4880_v11, %s13515_s22  ;;  %v4886_v25 = vmul.f32 %v4874_v45, %v13578_v36 }
 0xdb4   : > { %4918 = vrot.lane.b32.xlu1 %v4885_v27, %s13515_s22 }
 0xdb5   : > { %4912 = vrot.lane.b32.xlu0 %v4882_v14, %s13515_s22 }
 0xdb9   : > { %4920 = vrot.lane.b32.xlu0 %v4886_v25, %s13515_s22 }
 0xe12   : > { %v4911_v62 = vpop.permute.xlu1 %4910 }
 0xe16   : > { %v4923_v17 = vpop.permute.xlu1 %4922 }
 0xe17   : > { %v4901_v39 = vpop.permute.xlu0 %4900 }
 0xe18   : > { %4944 = vst.msk [vmem:[#allocation3] sm:$0xff] %vm13610_vm9, %v4901_v39  ;;  %vm13623_vm9 = vmmov %vm13619_vm0 }
 0xe1a   : > { %v4903_v30 = vpop.permute.xlu1 %4902 }
 0xe1b   : > { %v4905_v29 = vpop.permute.xlu0 %4904  ;;  %v4924_v13 = vsel %vm1155_vm5, %v4901_v39, %v4903_v30 }
 0xe1c   : > { %v4925_v10 = vsel %vm1155_vm5, %v4903_v30, %v4905_v29 }
 0xe1d   : > { %4946 = vst.msk [vmem:[#allocation3 + $0x10] sm:$0xff] %vm1255_vm15, %v4925_v10 }
 0xe1e   : > { %v4907_v21 = vpop.permute.xlu1 %4906 }
 0xe1f   : > { %4947 = vst.msk [vmem:[#allocation3 + $0x18] sm:$0xff] %vm13611_vm1, %v4907_v21  ;;  %v4917_v24 = vpop.permute.xlu0 %4916  ;;  %v4956_v55 = vld [vmem:[#allocation3] sm:$0xff]  ;;  %vm13626_vm1 = vmmov %vm13619_vm0 }
 0xe20   : > { %5204 = vrot.lane.b32.xlu0 %v4956_v55, %s13466_s28  ;;  %4980 = vrot.lane.b32.xlu1 %v4956_v55, %s13519_s0 }
 0xe22   : > { %v11137_v15 = vpop.permute.xlu1 %4914 }
 0xe23   : > { %v4929_v22 = vsel %vm1155_vm5, %v11137_v15, %v4917_v24  ;;  %v4909_v20 = vpop.permute.xlu0 %4908 }
 0xe24   : > { %4952 = vst.msk [vmem:[#allocation3 + $0x40] sm:$0xff] %vm1255_vm15, %v4929_v22  ;;  %v4927_v18 = vsel %vm1155_vm5, %v4909_v20, %v4911_v62  ;;  %5076 = vrot.lane.b32.xlu0 %v4956_v55, %s13468_s27  ;;  %5044 = vrot.lane.b32.xlu1 %v4956_v55, %s13518_s7  ;;  %v4958_v31 = vld [vmem:[#allocation3 + $0x10] sm:$0xff]  ;;  %v4926_v48 = vsel %vm1155_vm5, %v4907_v21, %v4909_v20 }
 0xe25   : > { %4949 = vst.msk [vmem:[#allocation3 + $0x28] sm:$0xff] %vm1255_vm15, %v4927_v18 }
 0xe26   : > { %v11146_v56 = vpop.permute.xlu1 %4918  ;;  %v4959_v50 = vld [vmem:[#allocation3 + $0x18] sm:$0xff] }
 0xe27   : > { %4953 = vst.msk [vmem:[#allocation3 + $0x48] sm:$0xff] %vm13612_vm11, %v11146_v56  ;;  %v4913_v28 = vpop.permute.xlu0 %4912  ;;  %vm13627_vm11 = vmmov %vm13619_vm0 }
 0xe28   : > { %4950 = vst.msk [vmem:[#allocation3 + $0x30] sm:$0xff] %vm13613_vm7, %v4913_v28  ;;  %5012 = vrot.lane.b32.xlu1 %v4956_v55, %s13464_s4  ;;  %4982 = vrot.lane.b32.xlu0 %v4924_v13, %s13519_s0  ;;  %v4928_v33 = vsel %vm1155_vm5, %v4913_v28, %v11137_v15  ;;  %vm13628_vm7 = vmmov %vm13619_vm0 }
 0xe2b   : > { %v11154_v51 = vpop.permute.xlu0 %4920  ;;  %v4964_v53 = vld [vmem:[#allocation3 + $0x40] sm:$0xff] }
 0xe2c   : > { %v4931_v54 = vsel %vm1155_vm5, %v11154_v51, %v4923_v17  ;;  %5172 = vrot.lane.b32.xlu1 %v4956_v55, %s13463_s25  ;;  %5048 = vrot.lane.b32.xlu0 %v4958_v31, %s13518_s7  ;;  %v4961_v60 = vld [vmem:[#allocation3 + $0x28] sm:$0xff]  ;;  %v4930_v20 = vsel %vm1155_vm5, %v11146_v56, %v11154_v51 }
 0xe2d   : > { %4955 = vst.msk [vmem:[#allocation3 + $0x58] sm:$0xff] %vm1255_vm15, %v4931_v54 }
 0xe2e   : > { %v4965_v14 = vld [vmem:[#allocation3 + $0x48] sm:$0xff] }
 0xe2f   : > { %v4962_v57 = vld [vmem:[#allocation3 + $0x30] sm:$0xff] }
 0xe30   : > { %5140 = vrot.lane.b32.xlu1 %v4956_v55, %s13465_s1  ;;  %5016 = vrot.lane.b32.xlu0 %v4958_v31, %s13464_s4 }
 0xe34   : > { %5108 = vrot.lane.b32.xlu1 %v4956_v55, %s13467_s26  ;;  %5206 = vrot.lane.b32.xlu0 %v4924_v13, %s13466_s28  ;;  %v4967_v29 = vld [vmem:[#allocation3 + $0x58] sm:$0xff] }
 0xe38   : > { %5272 = vrot.lane.b32.xlu1 %v4956_v55, %s13469_s14  ;;  %5176 = vrot.lane.b32.xlu0 %v4958_v31, %s13463_s25 }
 0xe3c   : > { %5174 = vrot.lane.b32.xlu0 %v4924_v13, %s13463_s25  ;;  %4984 = vrot.lane.b32.xlu1 %v4958_v31, %s13519_s0 }
 0xe40   : > { %5144 = vrot.lane.b32.xlu0 %v4958_v31, %s13465_s1  ;;  %5046 = vrot.lane.b32.xlu1 %v4924_v13, %s13518_s7 }
 0xe44   : > { %5142 = vrot.lane.b32.xlu0 %v4924_v13, %s13465_s1  ;;  %5014 = vrot.lane.b32.xlu1 %v4924_v13, %s13464_s4 }
 0xe48   : > { %5112 = vrot.lane.b32.xlu0 %v4958_v31, %s13467_s26  ;;  %5208 = vrot.lane.b32.xlu1 %v4958_v31, %s13466_s28 }
 0xe4c   : > { %5110 = vrot.lane.b32.xlu0 %v4924_v13, %s13467_s26  ;;  %5274 = vrot.lane.b32.xlu1 %v4924_v13, %s13469_s14 }
 0xe50   : > { %5080 = vrot.lane.b32.xlu0 %v4958_v31, %s13468_s27  ;;  %5210 = vrot.lane.b32.xlu1 %v4959_v50, %s13466_s28 }
 0xe54   : > { %5078 = vrot.lane.b32.xlu0 %v4924_v13, %s13468_s27  ;;  %5082 = vrot.lane.b32.xlu1 %v4959_v50, %s13468_s27 }
 0xe58   : > { %5276 = vrot.lane.b32.xlu0 %v4958_v31, %s13469_s14  ;;  %5278 = vrot.lane.b32.xlu1 %v4959_v50, %s13469_s14 }
 0xe5c   : > { %4986 = vrot.lane.b32.xlu0 %v4959_v50, %s13519_s0  ;;  %4988 = vrot.lane.b32.xlu1 %v4926_v48, %s13519_s0 }
 0xe60   : > { %5050 = vrot.lane.b32.xlu0 %v4959_v50, %s13518_s7  ;;  %5054 = vrot.lane.b32.xlu1 %v4961_v60, %s13518_s7 }
 0xe64   : > { %5018 = vrot.lane.b32.xlu0 %v4959_v50, %s13464_s4  ;;  %5022 = vrot.lane.b32.xlu1 %v4961_v60, %s13464_s4 }
 0xe68   : > { %5178 = vrot.lane.b32.xlu0 %v4959_v50, %s13463_s25  ;;  %5212 = vrot.lane.b32.xlu1 %v4926_v48, %s13466_s28 }
 0xe6c   : > { %5146 = vrot.lane.b32.xlu0 %v4959_v50, %s13465_s1  ;;  %5182 = vrot.lane.b32.xlu1 %v4961_v60, %s13463_s25 }
 0xe70   : > { %5114 = vrot.lane.b32.xlu0 %v4959_v50, %s13467_s26  ;;  %5180 = vrot.lane.b32.xlu1 %v4926_v48, %s13463_s25 }
 0xe74   : > { %4990 = vrot.lane.b32.xlu0 %v4961_v60, %s13519_s0  ;;  %5150 = vrot.lane.b32.xlu1 %v4961_v60, %s13465_s1 }
 0xe78   : > { %5052 = vrot.lane.b32.xlu0 %v4926_v48, %s13518_s7  ;;  %5148 = vrot.lane.b32.xlu1 %v4926_v48, %s13465_s1 }
 0xe7c   : > { %5020 = vrot.lane.b32.xlu0 %v4926_v48, %s13464_s4  ;;  %5118 = vrot.lane.b32.xlu1 %v4961_v60, %s13467_s26 }
 0xe80   : > { %5214 = vrot.lane.b32.xlu0 %v4961_v60, %s13466_s28  ;;  %5116 = vrot.lane.b32.xlu1 %v4926_v48, %s13467_s26 }
 0xe84   : > { %5282 = vrot.lane.b32.xlu0 %v4961_v60, %s13469_s14  ;;  %5086 = vrot.lane.b32.xlu1 %v4961_v60, %s13468_s27 }
 0xe88   : > { %5084 = vrot.lane.b32.xlu1 %v4926_v48, %s13468_s27  ;;  %5216 = vrot.lane.b32.xlu0 %v4962_v57, %s13466_s28 }
 0xe8c   : > { %5280 = vrot.lane.b32.xlu1 %v4926_v48, %s13469_s14  ;;  %4994 = vrot.lane.b32.xlu0 %v4928_v33, %s13519_s0 }
 0xe90   : > { %4992 = vrot.lane.b32.xlu1 %v4962_v57, %s13519_s0  ;;  %5060 = vrot.lane.b32.xlu0 %v4964_v53, %s13518_s7 }
 0xe92   : > { %v11214_v61 = vpop.permute.xlu1 %4980  ;;  %v11216_v8 = vpop.permute.xlu0 %5204 }
 0xe94   : > { %5056 = vrot.lane.b32.xlu1 %v4962_v57, %s13518_s7  ;;  %5028 = vrot.lane.b32.xlu0 %v4964_v53, %s13464_s4 }
 0xe96   : > { %v11220_v4 = vpop.permute.xlu1 %5044  ;;  %v11222_v58 = vpop.permute.xlu0 %5076 }
 0xe98   : > { %5024 = vrot.lane.b32.xlu1 %v4962_v57, %s13464_s4  ;;  %5218 = vrot.lane.b32.xlu0 %v4928_v33, %s13466_s28 }
 0xe9a   : > { %v11226_v6 = vpop.permute.xlu1 %5012  ;;  %v11228_v47 = vpop.permute.xlu0 %4982 }
 0xe9c   : > { %5184 = vrot.lane.b32.xlu1 %v4962_v57, %s13463_s25  ;;  %5188 = vrot.lane.b32.xlu0 %v4964_v53, %s13463_s25 }
 0xe9e   : > { %v11232_v46 = vpop.permute.xlu1 %5172  ;;  %v11234_v19 = vpop.permute.xlu0 %5048 }
 0xea0   : > { %5152 = vrot.lane.b32.xlu1 %v4962_v57, %s13465_s1  ;;  %5186 = vrot.lane.b32.xlu0 %v4928_v33, %s13463_s25 }
 0xea2   : > { %v11238_v52 = vpop.permute.xlu1 %5140  ;;  %v11240_v43 = vpop.permute.xlu0 %5016 }
 0xea4   : > { %5120 = vrot.lane.b32.xlu1 %v4962_v57, %s13467_s26  ;;  %5156 = vrot.lane.b32.xlu0 %v4964_v53, %s13465_s1 }
 0xea6   : > { %v11244_v5 = vpop.permute.xlu1 %5108  ;;  %v11246_v44 = vpop.permute.xlu0 %5206 }
 0xea8   : > { %5088 = vrot.lane.b32.xlu1 %v4962_v57, %s13468_s27  ;;  %5154 = vrot.lane.b32.xlu0 %v4928_v33, %s13465_s1 }
 0xeaa   : > { %v11250_v26 = vpop.permute.xlu1 %5272  ;;  %v11252_v7 = vpop.permute.xlu0 %5176 }
 0xeab   : > { %13614 = vst [vmem:[#allocation30_spill] sm:$0xff] %v11250_v26 }
 0xeac   : > { %5284 = vrot.lane.b32.xlu1 %v4962_v57, %s13469_s14  ;;  %5124 = vrot.lane.b32.xlu0 %v4964_v53, %s13467_s26 }
 0xeae   : > { %v11256_v41 = vpop.permute.xlu1 %4984  ;;  %v11258_v40 = vpop.permute.xlu0 %5174 }
 0xeb0   : > { %4996 = vrot.lane.b32.xlu1 %v4964_v53, %s13519_s0  ;;  %5122 = vrot.lane.b32.xlu0 %v4928_v33, %s13467_s26 }
 0xeb2   : > { %v11262_v3 = vpop.permute.xlu1 %5046  ;;  %v11264_v37 = vpop.permute.xlu0 %5144 }
 0xeb3   : > { %v5069_v49 = vsel %vm1211_vm12, %v11262_v3, %v11234_v19 }
 0xeb4   : > { %5058 = vrot.lane.b32.xlu1 %v4928_v33, %s13518_s7  ;;  %5092 = vrot.lane.b32.xlu0 %v4964_v53, %s13468_s27 }
 0xeb6   : > { %v11268_v35 = vpop.permute.xlu1 %5014  ;;  %v11270_v11 = vpop.permute.xlu0 %5142 }
 0xeb8   : > { %5026 = vrot.lane.b32.xlu1 %v4928_v33, %s13464_s4  ;;  %5090 = vrot.lane.b32.xlu0 %v4928_v33, %s13468_s27 }
 0xeba   : > { %v11274_v23 = vpop.permute.xlu1 %5208  ;;  %v11276_v1 = vpop.permute.xlu0 %5112 }
 0xebc   : > { %5220 = vrot.lane.b32.xlu1 %v4964_v53, %s13466_s28  ;;  %5288 = vrot.lane.b32.xlu0 %v4964_v53, %s13469_s14 }
 0xebe   : > { %v11280_v59 = vpop.permute.xlu1 %5274  ;;  %v11282_v27 = vpop.permute.xlu0 %5110 }
 0xebf   : > { %13615 = vst [vmem:[#allocation35_spill] sm:$0xff] %v11280_v59 }
 0xec0   : > { %5286 = vrot.lane.b32.xlu1 %v4928_v33, %s13469_s14  ;;  %5062 = vrot.lane.b32.xlu0 %v4965_v14, %s13518_s7 }
 0xec2   : > { %v11286_v45 = vpop.permute.xlu1 %5210  ;;  %v11288_v25 = vpop.permute.xlu0 %5080 }
 0xec4   : > { %5222 = vrot.lane.b32.xlu1 %v4965_v14, %s13466_s28  ;;  %5030 = vrot.lane.b32.xlu0 %v4965_v14, %s13464_s4 }
 0xec6   : > { %v11292_v62 = vpop.permute.xlu1 %5082  ;;  %v11294_v17 = vpop.permute.xlu0 %5078 }
 0xec8   : > { %5290 = vrot.lane.b32.xlu1 %v4965_v14, %s13469_s14  ;;  %4998 = vrot.lane.b32.xlu0 %v4965_v14, %s13519_s0 }
 0xeca   : > { %v11298_v39 = vpop.permute.xlu1 %5278  ;;  %v11300_v30 = vpop.permute.xlu0 %5276 }
 0xecc   : > { %5190 = vrot.lane.b32.xlu0 %v4965_v14, %s13463_s25  ;;  %5066 = vrot.lane.b32.xlu1 %v4967_v29, %s13518_s7 }
 0xece   : > { %v11304_v10 = vpop.permute.xlu1 %4988  ;;  %v11306_v21 = vpop.permute.xlu0 %4986 }
 0xed0   : > { %5158 = vrot.lane.b32.xlu0 %v4965_v14, %s13465_s1  ;;  %5034 = vrot.lane.b32.xlu1 %v4967_v29, %s13464_s4 }
 0xed2   : > { %v11310_v24 = vpop.permute.xlu1 %5054  ;;  %v11312_v55 = vpop.permute.xlu0 %5050 }
 0xed4   : > { %5126 = vrot.lane.b32.xlu0 %v4965_v14, %s13467_s26  ;;  %5002 = vrot.lane.b32.xlu1 %v4967_v29, %s13519_s0 }
 0xed6   : > { %v11316_v15 = vpop.permute.xlu1 %5022  ;;  %v11318_v22 = vpop.permute.xlu0 %5018 }
 0xed8   : > { %5094 = vrot.lane.b32.xlu0 %v4965_v14, %s13468_s27  ;;  %5224 = vrot.lane.b32.xlu1 %v4930_v20, %s13466_s28 }
 0xeda   : > { %v11325_v18 = vpop.permute.xlu1 %5212  ;;  %v11327_v13 = vpop.permute.xlu0 %5178 }
 0xedc   : > { %5194 = vrot.lane.b32.xlu1 %v4967_v29, %s13463_s25  ;;  %5064 = vrot.lane.b32.xlu0 %v4930_v20, %s13518_s7 }
 0xede   : > { %v11331_v28 = vpop.permute.xlu1 %5182  ;;  %v11333_v31 = vpop.permute.xlu0 %5146 }
 0xee0   : > { %5192 = vrot.lane.b32.xlu1 %v4930_v20, %s13463_s25  ;;  %5032 = vrot.lane.b32.xlu0 %v4930_v20, %s13464_s4 }
 0xee2   : > { %v11337_v56 = vpop.permute.xlu1 %5180  ;;  %v11339_v51 = vpop.permute.xlu0 %5114 }
 0xee4   : > { %5162 = vrot.lane.b32.xlu1 %v4967_v29, %s13465_s1  ;;  %5000 = vrot.lane.b32.xlu0 %v4930_v20, %s13519_s0 }
 0xee6   : > { %v11343_v54 = vpop.permute.xlu1 %5150  ;;  %v11345_v50 = vpop.permute.xlu0 %4990 }
 0xee8   : > { %5160 = vrot.lane.b32.xlu1 %v4930_v20, %s13465_s1  ;;  %5226 = vrot.lane.b32.xlu0 %v4967_v29, %s13466_s28 }
 0xeea   : > { %v11349_v48 = vpop.permute.xlu1 %5148  ;;  %v11351_v60 = vpop.permute.xlu0 %5052 }
 0xeec   : > { %5130 = vrot.lane.b32.xlu1 %v4967_v29, %s13467_s26  ;;  %5294 = vrot.lane.b32.xlu0 %v4967_v29, %s13469_s14 }
 0xeee   : > { %v11355_v57 = vpop.permute.xlu1 %5118  ;;  %v11357_v33 = vpop.permute.xlu0 %5020 }
 0xef0   : > { %5128 = vrot.lane.b32.xlu1 %v4930_v20, %s13467_s26  ;;  %5300 = vrot.lane.b32.xlu0 %v11256_v41, %s13469_s14 }
 0xef2   : > { %v11362_v53 = vpop.permute.xlu1 %5116  ;;  %v11364_v14 = vpop.permute.xlu0 %5214 }
 0xef4   : > { %5098 = vrot.lane.b32.xlu1 %v4967_v29, %s13468_s27  ;;  %5468 = vrot.lane.b32.xlu0 %v11274_v23, %s13469_s14  ;;  %v5068_v29 = vsel %vm1211_vm12, %v11220_v4, %v11262_v3  ;;  %v5036_v3 = vsel %vm1196_vm13, %v11226_v6, %v11268_v35 }
 0xef6   : > { %v11369_v42 = vpop.permute.xlu1 %5086  ;;  %v11371_v0 = vpop.permute.xlu0 %5282 }
 0xef8   : > { %5096 = vrot.lane.b32.xlu1 %v4930_v20, %s13468_s27  ;;  %5346 = vrot.lane.b32.xlu0 %v5069_v49, %s13469_s14  ;;  %v5037_v49 = vsel %vm1196_vm13, %v11268_v35, %v11240_v43 }
 0xefa   : > { %v11378_v32 = vpop.permute.xlu1 %5084  ;;  %v11380_v9 = vpop.permute.xlu0 %5216 }
 0xefc   : > { %5292 = vrot.lane.b32.xlu1 %v4930_v20, %s13469_s14  ;;  %5344 = vrot.lane.b32.xlu0 %v5068_v29, %s13469_s14 }
 0xefe   : > { %v11387_v34 = vpop.permute.xlu1 %5280  ;;  %v11389_v2 = vpop.permute.xlu0 %4994 }
 0xf00   : > { %5348 = vrot.lane.b32.xlu1 %v11234_v19, %s13469_s14  ;;  %5322 = vrot.lane.b32.xlu0 %v5037_v49, %s13469_s14  ;;  %v5228_v19 = vsel %vm1282_vm8, %v11216_v8, %v11246_v44 }
 0xf02   : > { %v11397_v16 = vpop.permute.xlu1 %4992  ;;  %v11399_v4 = vpop.permute.xlu0 %5060 }
 0xf04   : > { %5324 = vrot.lane.b32.xlu1 %v11240_v43, %s13469_s14  ;;  %5320 = vrot.lane.b32.xlu0 %v5036_v3, %s13469_s14  ;;  %v5197_v43 = vsel %vm1270_vm3, %v11258_v40, %v11252_v7  ;;  %v5005_v3 = vsel %vm1181_vm4, %v11228_v47, %v11256_v41 }
 0xf06   : > { %v11407_v20 = vpop.permute.xlu1 %5056  ;;  %v11409_v29 = vpop.permute.xlu0 %5028 }
 0xf08   : > { %5444 = vrot.lane.b32.xlu1 %v11252_v7, %s13469_s14  ;;  %5464 = vrot.lane.b32.xlu0 %v5228_v19, %s13469_s14  ;;  %v5196_v19 = vsel %vm1270_vm3, %v11232_v46, %v11258_v40  ;;  %v5229_v40 = vsel %vm1282_vm8, %v11246_v44, %v11274_v23  ;;  %v5070_v23 = vsel %vm1211_vm12, %v11312_v55, %v11351_v60 }
 0xf09   : > { %v5038_v55 = vsel %vm1196_vm13, %v11318_v22, %v11357_v33 }
 0xf0a   : > { %v11417_v49 = vpop.permute.xlu1 %5024  ;;  %v11419_v6 = vpop.permute.xlu0 %5218 }
 0xf0c   : > { %5420 = vrot.lane.b32.xlu1 %v11264_v37, %s13469_s14  ;;  %5442 = vrot.lane.b32.xlu0 %v5197_v43, %s13469_s14  ;;  %v5004_v43 = vsel %vm1181_vm4, %v11214_v61, %v11228_v47  ;;  %v5071_v47 = vsel %vm1211_vm12, %v11351_v60, %v11310_v24 }
 0xf0e   : > { %v11427_v35 = vpop.permute.xlu1 %5184  ;;  %v11429_v8 = vpop.permute.xlu0 %5188 }
 0xf10   : > { %5298 = vrot.lane.b32.xlu1 %v5005_v3, %s13469_s14  ;;  %5440 = vrot.lane.b32.xlu0 %v5196_v19, %s13469_s14 }
 0xf12   : > { %v11439_v7 = vpop.permute.xlu1 %5152  ;;  %v11441_v63 = vpop.permute.xlu0 %5186 }
 0xf14   : > { %5296 = vrot.lane.b32.xlu1 %v5004_v43, %s13469_s14  ;;  %5354 = vrot.lane.b32.xlu0 %v11310_v24, %s13469_s14 }
 0xf16   : > { %v11449_v41 = vpop.permute.xlu1 %5120  ;;  %v11451_v46 = vpop.permute.xlu0 %5156 }
 0xf18   : > { %5466 = vrot.lane.b32.xlu1 %v5229_v40, %s13469_s14  ;;  %5330 = vrot.lane.b32.xlu0 %v11316_v15, %s13469_s14  ;;  %v5039_v40 = vsel %vm1196_vm13, %v11357_v33, %v11316_v15  ;;  %v5007_v15 = vsel %vm1181_vm4, %v11304_v10, %v11345_v50 }
 0xf1a   : > { %v11459_v3 = vpop.permute.xlu1 %5088  ;;  %v11461_v61 = vpop.permute.xlu0 %5154 }
 0xf1c   : > { %5306 = vrot.lane.b32.xlu0 %v11345_v50, %s13469_s14  ;;  %5352 = vrot.lane.b32.xlu1 %v5071_v47, %s13469_s14 }
 0xf1e   : > { %v11469_v19 = vpop.permute.xlu1 %5284  ;;  %v11471_v44 = vpop.permute.xlu0 %5124 }
 0xf20   : > { %5350 = vrot.lane.b32.xlu1 %v5070_v23, %s13469_s14  ;;  %5474 = vrot.lane.b32.xlu0 %v11364_v14, %s13469_s14 }
 0xf22   : > { %v4997_v43 = vpop.permute.xlu1 %4996  ;;  %v11479_v24 = vpop.permute.xlu0 %5122 }
 0xf24   : > { %5328 = vrot.lane.b32.xlu1 %v5039_v40, %s13469_s14  ;;  %5450 = vrot.lane.b32.xlu0 %v11331_v28, %s13469_s14  ;;  %v5230_v40 = vsel %vm1282_vm8, %v11286_v45, %v11325_v18  ;;  %v5231_v45 = vsel %vm1282_vm8, %v11325_v18, %v11364_v14 }
 0xf26   : > { %v5059_v47 = vpop.permute.xlu1 %5058  ;;  %v11487_v36 = vpop.permute.xlu0 %5092 }
 0xf28   : > { %5326 = vrot.lane.b32.xlu1 %v5038_v55, %s13469_s14  ;;  %5426 = vrot.lane.b32.xlu0 %v11343_v54, %s13469_s14  ;;  %v5006_v55 = vsel %vm1181_vm4, %v11306_v21, %v11304_v10  ;;  %v5199_v21 = vsel %vm1270_vm3, %v11337_v56, %v11331_v28 }
 0xf2a   : > { %v5027_v60 = vpop.permute.xlu1 %5026  ;;  %v11495_v23 = vpop.permute.xlu0 %5090 }
 0xf2c   : > { %5304 = vrot.lane.b32.xlu1 %v5007_v15, %s13469_s14  ;;  %5470 = vrot.lane.b32.xlu0 %v5230_v40, %s13469_s14  ;;  %v5073_v40 = vsel %vm1211_vm12, %v5059_v47, %v11399_v4 }
 0xf2e   : > { %v5221_v22 = vpop.permute.xlu1 %5220  ;;  %v11505_v33 = vpop.permute.xlu0 %5288 }
 0xf30   : > { %5302 = vrot.lane.b32.xlu1 %v5006_v55, %s13469_s14  ;;  %5480 = vrot.lane.b32.xlu0 %v5221_v22, %s13469_s14  ;;  %v5198_v55 = vsel %vm1270_vm3, %v11327_v13, %v11337_v56 }
 0xf32   : > { %v11512_v50 = vpop.permute.xlu1 %5286  ;;  %v11514_v12 = vpop.permute.xlu0 %5062 }
 0xf34   : > { %5472 = vrot.lane.b32.xlu1 %v5231_v45, %s13469_s14  ;;  %5456 = vrot.lane.b32.xlu0 %v11429_v8, %s13469_s14  ;;  %v5041_v45 = vsel %vm1196_vm13, %v5027_v60, %v11409_v29 }
 0xf36   : > { %v11522_v15 = vpop.permute.xlu1 %5222  ;;  %v11524_v10 = vpop.permute.xlu0 %5030 }
 0xf38   : > { %5448 = vrot.lane.b32.xlu1 %v5199_v21, %s13469_s14  ;;  %5358 = vrot.lane.b32.xlu0 %v5073_v40, %s13469_s14  ;;  %v5040_v40 = vsel %vm1196_vm13, %v11417_v49, %v5027_v60 }
 0xf3a   : > { %v11533_v18 = vpop.permute.xlu1 %5290  ;;  %v11535_v14 = vpop.permute.xlu0 %4998 }
 0xf3c   : > { %5446 = vrot.lane.b32.xlu1 %v5198_v55, %s13469_s14  ;;  %5334 = vrot.lane.b32.xlu0 %v5041_v45, %s13469_s14  ;;  %v5009_v55 = vsel %vm1181_vm4, %v11389_v2, %v4997_v43 }
 0xf3e   : > { %v11544_v28 = vpop.permute.xlu1 %5066  ;;  %v11546_v21 = vpop.permute.xlu0 %5190 }
 0xf40   : > { %5360 = vrot.lane.b32.xlu1 %v11399_v4, %s13469_s14  ;;  %5332 = vrot.lane.b32.xlu0 %v5040_v40, %s13469_s14  ;;  %v5008_v4 = vsel %vm1181_vm4, %v11397_v16, %v11389_v2  ;;  %v5201_v16 = vsel %vm1270_vm3, %v11441_v63, %v11429_v8 }
 0xf42   : > { %v5035_v13 = vpop.permute.xlu1 %5034  ;;  %v11553_v56 = vpop.permute.xlu0 %5158 }
 0xf44   : > { %5336 = vrot.lane.b32.xlu1 %v11409_v29, %s13469_s14  ;;  %5310 = vrot.lane.b32.xlu0 %v5009_v55, %s13469_s14  ;;  %v5232_v29 = vsel %vm1282_vm8, %v11380_v9, %v11419_v6 }
 0xf46   : > { %v5003_v45 = vpop.permute.xlu1 %5002  ;;  %v11560_v38 = vpop.permute.xlu0 %5126 }
 0xf48   : > { %5312 = vrot.lane.b32.xlu1 %v4997_v43, %s13469_s14  ;;  %5308 = vrot.lane.b32.xlu0 %v5008_v4, %s13469_s14  ;;  %v5072_v43 = vsel %vm1211_vm12, %v11407_v20, %v5059_v47  ;;  %v5200_v4 = vsel %vm1270_vm3, %v11427_v35, %v11441_v63  ;;  %v5169_v47 = vsel %vm1255_vm15, %v11461_v61, %v11451_v46 }
 0xf4a   : > { %v11567_v49 = vpop.permute.xlu1 %5224  ;;  %v11569_v60 = vpop.permute.xlu0 %5094 }
 0xf4c   : > { %5476 = vrot.lane.b32.xlu0 %v5232_v29, %s13469_s14  ;;  %5432 = vrot.lane.b32.xlu1 %v11451_v46, %s13469_s14  ;;  %v5233_v29 = vsel %vm1282_vm8, %v11419_v6, %v5221_v22  ;;  %v5167_v6 = vsel %vm1255_vm15, %v11349_v48, %v11343_v54  ;;  %v5166_v46 = vsel %vm1255_vm15, %v11333_v31, %v11349_v48 }
 0xf4e   : > { %v11577_v40 = vpop.permute.xlu1 %5194  ;;  %v5065_v2 = vpop.permute.xlu0 %5064 }
 0xf4f   : > { %v5075_v26 = vsel %vm1211_vm12, %v5065_v2, %v11544_v28 }
 0xf50   : > { %5454 = vrot.lane.b32.xlu0 %v5201_v16, %s13469_s14  ;;  %5356 = vrot.lane.b32.xlu1 %v5072_v43, %s13469_s14 }
 0xf52   : > { %v11586_v9 = vpop.permute.xlu1 %5192  ;;  %v5033_v55 = vpop.permute.xlu0 %5032 }
 0xf54   : > { %5452 = vrot.lane.b32.xlu0 %v5200_v4, %s13469_s14  ;;  %5478 = vrot.lane.b32.xlu1 %v5233_v29, %s13469_s14 }
 0xf56   : > { %v11595_v8 = vpop.permute.xlu1 %5162  ;;  %v5001_v20 = vpop.permute.xlu0 %5000 }
 0xf58   : > { %5366 = vrot.lane.b32.xlu1 %v11544_v28, %s13469_s14  ;;  %5430 = vrot.lane.b32.xlu0 %v5169_v47, %s13469_s14  ;;  %v5043_v47 = vsel %vm1196_vm13, %v5033_v55, %v5035_v13 }
 0xf5a   : > { %v11603_v63 = vpop.permute.xlu1 %5160  ;;  %v5227_v35 = vpop.permute.xlu0 %5226 }
 0xf5c   : > { %5424 = vrot.lane.b32.xlu1 %v5167_v6, %s13469_s14  ;;  %5342 = vrot.lane.b32.xlu0 %v5035_v13, %s13469_s14  ;;  %v5042_v6 = vsel %vm1196_vm13, %v11524_v10, %v5033_v55  ;;  %v5010_v55 = vsel %vm1181_vm4, %v11535_v14, %v5001_v20 }
 0xf5e   : > { %v11610_v22 = vpop.permute.xlu1 %5130  ;;  %v11612_v16 = vpop.permute.xlu0 %5294 }
 0xf60   : > { %5422 = vrot.lane.b32.xlu1 %v5166_v46, %s13469_s14  ;;  %5318 = vrot.lane.b32.xlu0 %v5003_v45, %s13469_s14 }
 0xf62   : > { %v11619_v43 = vpop.permute.xlu1 %5128  ;;  %v11621_v4 = vpop.permute.xlu0 %5300 }
 0xf64   : > { %5408 = vrot.lane.b32.xlu1 %v11471_v44, %s13469_s14  ;;  %5486 = vrot.lane.b32.xlu0 %v5227_v35, %s13469_s14 }
 0xf66   : > { %v11626_v54 = vpop.permute.xlu1 %5098  ;;  %v11628_v29 = vpop.permute.xlu0 %5468 }
 0xf68   : > { %5340 = vrot.lane.b32.xlu1 %v5043_v47, %s13469_s14  ;;  %5462 = vrot.lane.b32.xlu0 %v11577_v40, %s13469_s14  ;;  %v5011_v47 = vsel %vm1181_vm4, %v5001_v20, %v5003_v45 }
 0xf6a   : > { %v11634_v31 = vpop.permute.xlu1 %5096  ;;  %v11636_v48 = vpop.permute.xlu0 %5346 }
 0xf6c   : > { %5338 = vrot.lane.b32.xlu1 %v5042_v6, %s13469_s14  ;;  %5438 = vrot.lane.b32.xlu0 %v11595_v8, %s13469_s14  ;;  %v5074_v6 = vsel %vm1211_vm12, %v11514_v12, %v5065_v2 }
 0xf6e   : > { %v11643_v46 = vpop.permute.xlu1 %5292  ;;  %v11645_v13 = vpop.permute.xlu0 %5344 }
 0xf70   : > { %5316 = vrot.lane.b32.xlu1 %v5011_v47, %s13469_s14  ;;  %5364 = vrot.lane.b32.xlu0 %v5075_v26, %s13469_s14  ;;  %v5235_v26 = vsel %vm1282_vm8, %v11567_v49, %v5227_v35  ;;  %v5168_v47 = vsel %vm1255_vm15, %v11439_v7, %v11461_v61  ;;  %v5135_v7 = vsel %vm13619_vm0, %v11362_v53, %v11355_v57 }
 0xf71   : > { %v5165_v61 = vsel %vm1255_vm15, %v11270_v11, %v11264_v37 }
 0xf72   : > { %v11652_v59 = vpop.permute.xlu1 %5348  ;;  %v11654_v10 = vpop.permute.xlu0 %5322 }
 0xf74   : > { %5314 = vrot.lane.b32.xlu1 %v5010_v55, %s13469_s14  ;;  %5362 = vrot.lane.b32.xlu0 %v5074_v6, %s13469_s14  ;;  %v5134_v6 = vsel %vm13621_vm14, %v11339_v51, %v11362_v53  ;;  %vm13630_vm14 = vcmask 891904  }
 0xf76   : > { %v11662_v45 = vpop.permute.xlu1 %5324  ;;  %v11664_v28 = vpop.permute.xlu0 %5320 }
 0xf78   : > { %5484 = vrot.lane.b32.xlu1 %v5235_v26, %s13469_s14  ;;  %5428 = vrot.lane.b32.xlu0 %v5168_v47, %s13469_s14  ;;  %v5164_v26 = vsel %vm1255_vm15, %v11238_v52, %v11270_v11 }
 0xf7a   : > { %v11673_v12 = vpop.permute.xlu1 %5444  ;;  %v11675_v14 = vpop.permute.xlu0 %5464 }
 0xf7b   : > { %13616 = vst [vmem:[#allocation32_spill] sm:$0xff] %v11673_v12 }
 0xf7c   : > { %5396 = vrot.lane.b32.xlu1 %v11276_v1, %s13469_s14  ;;  %5414 = vrot.lane.b32.xlu0 %v11610_v22, %s13469_s14 }
 0xf7e   : > { %v11681_v2 = vpop.permute.xlu1 %5420  ;;  %v11683_v20 = vpop.permute.xlu0 %5442 }
 0xf7f   : > { %13617 = vst [vmem:[#allocation38_spill] sm:$0xff] %v11681_v2  ;;  %13618 = vst [vmem:[#allocation36_spill] sm:$0xff] %v11683_v20 }
 0xf80   : > { %5400 = vrot.lane.b32.xlu1 %v5135_v7, %s13469_s14  ;;  %5418 = vrot.lane.b32.xlu0 %v5165_v61, %s13469_s14  ;;  %v5234_v7 = vsel %vm1282_vm8, %v11522_v15, %v11567_v49  ;;  %v5203_v15 = vsel %vm1270_vm3, %v11586_v9, %v11577_v40  ;;  %v5137_v49 = vsel %vm13622_vm2, %v11479_v24, %v11471_v44  ;;  %vm13631_vm2 = vmmov %vm13630_vm14 }
 0xf81   : > { %v5136_v40 = vsel %vm13623_vm9, %v11449_v41, %v11479_v24  ;;  %v5170_v24 = vsel %vm1255_vm15, %v11553_v56, %v11603_v63  ;;  %v5132_v56 = vsel %vm13628_vm7, %v11244_v5, %v11282_v27  ;;  %vm13633_vm9 = vmmov %vm13631_vm2 }
 0xf82   : > { %v11693_v35 = vpop.permute.xlu1 %5298  ;;  %v11695_v55 = vpop.permute.xlu0 %5440 }
 0xf83   : > { %13620 = vst [vmem:[#allocation34_spill] sm:$0xff] %v11695_v55 }
 0xf84   : > { %5398 = vrot.lane.b32.xlu1 %v5134_v6, %s13469_s14  ;;  %5416 = vrot.lane.b32.xlu0 %v5164_v26, %s13469_s14 }
 0xf86   : > { %v11705_v37 = vpop.permute.xlu1 %5296  ;;  %v11707_v47 = vpop.permute.xlu0 %5354 }
 0xf88   : > { %5384 = vrot.lane.b32.xlu1 %v11487_v36, %s13469_s14  ;;  %5482 = vrot.lane.b32.xlu0 %v5234_v7, %s13469_s14  ;;  %v5171_v7 = vsel %vm1255_vm15, %v11603_v63, %v11595_v8 }
 0xf8a   : > { %v11715_v51 = vpop.permute.xlu1 %5466  ;;  %v11717_v52 = vpop.permute.xlu0 %5330 }
 0xf8c   : > { %5372 = vrot.lane.b32.xlu1 %v11288_v25, %s13469_s14  ;;  %5402 = vrot.lane.b32.xlu0 %v11355_v57, %s13469_s14  ;;  %v5202_v57 = vsel %vm1270_vm3, %v11546_v21, %v11586_v9  ;;  %v5133_v9 = vsel %vm13626_vm1, %v11282_v27, %v11276_v1  ;;  %vm13634_vm1 = vmmov %vm13631_vm2 }
 0xf8d   : > { %vm13637_vm7 = vmmov %vm13634_vm1 }
 0xf8e   : > { %v11723_v11 = vpop.permute.xlu1 %5352  ;;  %v11725_v53 = vpop.permute.xlu0 %5306 }
 0xf90   : > { %5460 = vrot.lane.b32.xlu1 %v5203_v15, %s13469_s14  ;;  %5406 = vrot.lane.b32.xlu0 %v5137_v49, %s13469_s14  ;;  %v5139_v49 = vsel %vm13627_vm11, %v11619_v43, %v11610_v22  ;;  %v11791_v22 = vld [vmem:[#allocation8 + $0x8] sm:$0xff]  ;;  %vm13636_vm11 = vmmov %vm13634_vm1 }
 0xf91   : > { %13629 = vst [vmem:[#allocation28_spill] sm:$0xff] %v11791_v22  ;;  %5744 = vmatprep.mubr.f32.mxu1 %v11791_v22 }
 0xf92   : > { %v11735_v61 = vpop.permute.xlu1 %5350  ;;  %v11737_v6 = vpop.permute.xlu0 %5474 }
 0xf94   : > { %5458 = vrot.lane.b32.xlu1 %v5202_v57, %s13469_s14  ;;  %5404 = vrot.lane.b32.xlu0 %v5136_v40, %s13469_s14  ;;  %v5138_v57 = vsel %vm13619_vm0, %v11560_v38, %v11619_v43  ;;  %v5107_v40 = vsel %vm13630_vm14, %v11634_v31, %v11626_v54  ;;  %v5105_v38 = vsel %vm13631_vm2, %v11495_v23, %v11487_v36  ;;  %vm13638_vm0 = vmmov %vm13634_vm1  ;;  %vm13648_vm2 = vcmask 261120  }
 0xf95   : > { %vm13639_vm14 = vmmov %vm13638_vm0 }
 0xf96   : > { %v11747_v44 = vpop.permute.xlu1 %5328  ;;  %v11749_v26 = vpop.permute.xlu0 %5450 }
 0xf97   : > { %13624 = vst [vmem:[#allocation25_spill] sm:$0xff] %v11749_v26 }
 0xf98   : > { %5436 = vrot.lane.b32.xlu1 %v5171_v7, %s13469_s14  ;;  %5390 = vrot.lane.b32.xlu0 %v11626_v54, %s13469_s14  ;;  %v5104_v54 = vsel %vm13634_vm1, %v11459_v3, %v11495_v23  ;;  %vm13669_vm1 = vmmov %vm13648_vm2 }
 0xf9a   : > { %v11757_v21 = vpop.permute.xlu1 %5326  ;;  %v11759_v41 = vpop.permute.xlu0 %5426 }
 0xf9b   : > { %13625 = vst [vmem:[#allocation23_spill] sm:$0xff] %v11759_v41 }
 0xf9c   : > { %5434 = vrot.lane.b32.xlu1 %v5170_v24, %s13469_s14  ;;  %5394 = vrot.lane.b32.xlu0 %v5133_v9, %s13469_s14  ;;  %v5106_v24 = vsel %vm13633_vm9, %v11569_v60, %v11634_v31  ;;  %v5102_v60 = vsel %vm13637_vm7, %v11292_v62, %v11378_v32  ;;  %v5101_v31 = vsel %vm13638_vm0, %v11294_v17, %v11288_v25  ;;  %v5250_v62 = vld [vmem:[%s13288_s19 + $0x10] sm:$0xff]  ;;  %v6043_v25 = vld [vmem:[%s13289_s20 + $0x18] sm:$0xff]  ;;  %vm13668_vm9 = vmmov %vm13648_vm2 }
 0xf9d   : > { %vm13672_vm7 = vmmov %vm13669_vm1 }
 0xf9e   : > { %v11769_v8 = vpop.permute.xlu1 %5304  ;;  %v11771_v15 = vpop.permute.xlu0 %5470  ;;  %vm13673_vm0 = vmmov %vm13669_vm1 }
 0xfa0   : > { %5412 = vrot.lane.b32.xlu1 %v5139_v49, %s13469_s14  ;;  %5392 = vrot.lane.b32.xlu0 %v5132_v56, %s13469_s14  ;;  %v5103_v49 = vsel %vm13636_vm11, %v11378_v32, %v11369_v42  ;;  %v5251_v32 = vld [vmem:[%s13288_s19 + $0x18] sm:$0xff]  ;;  %vm13670_vm11 = vmmov %vm13669_vm1 }
 0xfa2   : > { %v11781_v1 = vpop.permute.xlu1 %5302  ;;  %v11783_v63 = vpop.permute.xlu0 %5480 }
 0xfa4   : > { %5410 = vrot.lane.b32.xlu1 %v5138_v57, %s13469_s14  ;;  %5378 = vrot.lane.b32.xlu0 %v11369_v42, %s13469_s14  ;;  %v5100_v42 = vsel %vm13639_vm14, %v11222_v58, %v11294_v17  ;;  %v5249_v58 = vld [vmem:[%s13288_s19 + $0x8] sm:$0xff]  ;;  %vm13674_vm14 = vmmov %vm13673_vm0 }
 0xfa6   : > { %v11793_v5 = vpop.permute.xlu1 %5472  ;;  %v11795_v27 = vpop.permute.xlu0 %5456 }
 0xfa8   : > { %5388 = vrot.lane.b32.xlu1 %v5107_v40, %s13469_s14  ;;  %5382 = vrot.lane.b32.xlu0 %v5105_v38, %s13469_s14  ;;  %v5248_v38 = vld [vmem:[%s13288_s19] sm:$0xff] }
 0xfaa   : > { %v11806_v43 = vpop.permute.xlu1 %5448  ;;  %v11808_v7 = vpop.permute.xlu0 %5358 }
 0xfab   : > { %13632 = vst [vmem:[#allocation37_spill] sm:$0xff] %v11806_v43 }
 0xfac   : > { %5386 = vrot.lane.b32.xlu1 %v5106_v24, %s13469_s14  ;;  %5380 = vrot.lane.b32.xlu0 %v5104_v54, %s13469_s14  ;;  %v6042_v24 = vld [vmem:[%s13289_s20 + $0x10] sm:$0xff] }
 0xfae   : > { %v11818_v36 = vpop.permute.xlu1 %5446  ;;  %v11820_v9 = vpop.permute.xlu0 %5334 }
 0xfaf   : > { %13635 = vst [vmem:[#allocation27_spill] sm:$0xff] %v11818_v36 }
 0xfb0   : > { %5376 = vrot.lane.b32.xlu1 %v5103_v49, %s13469_s14  ;;  %5374 = vrot.lane.b32.xlu0 %v5102_v60, %s13469_s14  ;;  %v6041_v60 = vld [vmem:[%s13289_s20 + $0x8] sm:$0xff] }
 0xfb2   : > { %v11830_v3 = vpop.permute.xlu1 %5360  ;;  %v11832_v23 = vpop.permute.xlu0 %5332 }
 0xfb4   : > { %5370 = vrot.lane.b32.xlu1 %v5101_v31, %s13469_s14  ;;  %5368 = vrot.lane.b32.xlu0 %v5100_v42, %s13469_s14  ;;  %v6040_v31 = vld [vmem:[%s13289_s20] sm:$0xff] }
 0xfb6   : > { %v11848_v56 = vpop.permute.xlu1 %5336  ;;  %v11850_v57 = vpop.permute.xlu0 %5310 }
 0xfb8   : > { %5269 = vperm.xlu1 %7820, %v5251_v32   ;;  %5264 = vperm.xlu0 %7819, %v5250_v62  }
 0xfba   : > { %v11858_v17 = vpop.permute.xlu1 %5312  ;;  %v11860_v40 = vpop.permute.xlu0 %5308 }
 0xfbc   : > { %5259 = vperm.xlu1 %7820, %v5249_v58   ;;  %6061 = vperm.xlu0 %7819, %v6043_v25  }
 0xfbe   : > { %v11868_v54 = vpop.permute.xlu1 %5432  ;;  %v11870_v49 = vpop.permute.xlu0 %5476 }
 0xfbf   : > { %13640 = vst [vmem:[#allocation26_spill] sm:$0xff] %v11868_v54 }
 0xfc0   : > { %5254 = vperm.xlu1 %7820, %v5248_v38   ;;  %6056 = vperm.xlu0 %7819, %v6042_v24  }
 0xfc2   : > { %v5357_v42 = vpop.permute.xlu1 %5356  ;;  %v11878_v32 = vpop.permute.xlu0 %5454 }
 0xfc3   : > { %13641 = vst [vmem:[#allocation40_spill] sm:$0xff] %v11878_v32  ;;  %v5516_v32 = vsel %vm1372_vm10, %v5357_v42, %v11808_v7 }
 0xfc4   : > { %6051 = vperm.xlu1 %7820, %v6041_v60   ;;  %6046 = vperm.xlu0 %7819, %v6040_v31  }
 0xfc6   : > { %v11880_v62 = vpop.permute.xlu1 %5478  ;;  %v11882_v58 = vpop.permute.xlu0 %5452 }
 0xfc7   : > { %13642 = vst [vmem:[#allocation39_spill] sm:$0xff] %v11882_v58 }
 0xfca   : > { %v11884_v25 = vpop.permute.xlu1 %5366  ;;  %v11886_v38 = vpop.permute.xlu0 %5430 }
 0xfcb   : > { %13643 = vst [vmem:[#allocation22_spill] sm:$0xff] %v11886_v38 }
 0xfce   : > { %v11888_v24 = vpop.permute.xlu1 %5424  ;;  %v11890_v22 = vpop.permute.xlu0 %5342 }
 0xfcf   : > { %13644 = vst [vmem:[#allocation18_spill] sm:$0xff] %v11888_v24 }
 0xfd2   : > { %v11892_v2 = vpop.permute.xlu1 %5422  ;;  %v11894_v41 = vpop.permute.xlu0 %5318 }
 0xfd3   : > { %13645 = vst [vmem:[#allocation15_spill] sm:$0xff] %v11892_v2 }
 0xfd6   : > { %v11896_v54 = vpop.permute.xlu1 %5408  ;;  %v11898_v60 = vpop.permute.xlu0 %5486 }
 0xfd7   : > { %13646 = vst [vmem:[#allocation16_spill] sm:$0xff] %v11896_v54  ;;  %v5517_v54 = vsel %vm1372_vm10, %v11808_v7, %v11830_v3  ;;  %v5513_v7 = vsel %vm1372_vm10, %v11636_v48, %v11652_v59 }
 0xfda   : > { %v5341_v31 = vpop.permute.xlu1 %5340  ;;  %v11900_v55 = vpop.permute.xlu0 %5462 }
 0xfde   : > { %v5339_v20 = vpop.permute.xlu1 %5338  ;;  %v11902_v36 = vpop.permute.xlu0 %5438 }
 0xfdf   : > { %13647 = vst [vmem:[#allocation12_spill] sm:$0xff] %v11902_v36 }
 0xfe2   : > { %v5317_v43 = vpop.permute.xlu1 %5316  ;;  %v5365_v38 = vpop.permute.xlu0 %5364 }
 0xfe3   : > { %v5519_v24 = vsel %vm1372_vm10, %v5365_v38, %v11884_v25 }
 0xfe4   : > { %5680 = vmatprep.subr.mxu1 %v5519_v24  ;;  %v5515_v24 = vsel %vm1372_vm10, %v11723_v11, %v11707_v47 }
 0xfe6   : > { %v5315_v12 = vpop.permute.xlu1 %5314  ;;  %v5363_v2 = vpop.permute.xlu0 %5362 }
 0xfe7   : > { %v5518_v58 = vsel %vm1372_vm10, %v5363_v2, %v5365_v38  ;;  %v5514_v2 = vsel %vm1372_vm10, %v11735_v61, %v11723_v11  ;;  %v5511_v11 = vsel %vm1372_vm10, %v5341_v31, %v11890_v22  ;;  %v5510_v61 = vsel %vm1372_vm10, %v5339_v20, %v5341_v31 }
 0xfe8   : > { %5681 = vmatpush1.msra.mxu1 %v5518_v58  ;;  %v5509_v38 = vsel %vm1372_vm10, %v11820_v9, %v11848_v56  ;;  %v5507_v20 = vsel %vm1372_vm10, %v11747_v44, %v11717_v52  ;;  %v5506_v31 = vsel %vm1372_vm10, %v11757_v21, %v11747_v44  ;;  %v5502_v44 = vsel %vm1372_vm10, %v5315_v12, %v5317_v43 }
 0xfe9   : > { %5682 = vmatprep.subr.mxu1 %v5517_v54  ;;  %v5512_v54 = vsel %vm1372_vm10, %v11645_v13, %v11636_v48  ;;  %v5508_v48 = vsel %vm1372_vm10, %v11832_v23, %v11820_v9  ;;  %v5505_v9 = vsel %vm1372_vm10, %v11654_v10, %v11662_v45  ;;  %v5504_v23 = vsel %vm1372_vm10, %v11664_v28, %v11654_v10 }
 0xfea   : > { %v5485_v36 = vpop.permute.xlu1 %5484  ;;  %5683 = vmatpush1.msra.mxu1 %v5516_v32  ;;  %v11912_v26 = vpop.permute.xlu0 %5428  ;;  %v5501_v21 = vsel %vm1372_vm10, %v11850_v57, %v11858_v17  ;;  %v5500_v10 = vsel %vm1372_vm10, %v11860_v40, %v11850_v57  ;;  %v5498_v12 = vsel %vm1372_vm10, %v11781_v1, %v11769_v8  ;;  %v5497_v57 = vsel %vm1372_vm10, %v11693_v35, %v11621_v4 }
 0xfeb   : > { %5684 = vmatprep.subr.mxu1 %v5515_v24  ;;  %v5559_v58 = vsel %vm1372_vm10, %v5485_v36, %v11898_v60  ;;  %v5557_v40 = vsel %vm1372_vm10, %v11880_v62, %v11783_v63 }
 0xfec   : > { %5685 = vmatpush1.msra.mxu1 %v5514_v2  ;;  %5793 = vmatprep.subr.mxu0 %v5559_v58 }
 0xfed   : > { %5686 = vmatprep.subr.mxu1 %v5513_v7  ;;  %v5503_v7 = vsel %vm1372_vm10, %v5317_v43, %v11894_v41 }
 0xfee   : > { %v11928_v42 = vpop.permute.xlu1 %5396  ;;  %5687 = vmatpush1.msra.mxu1 %v5512_v54  ;;  %v11930_v32 = vpop.permute.xlu0 %5414 }
 0xfef   : > { %5688 = vmatprep.subr.mxu1 %v5511_v11  ;;  %v5499_v11 = vsel %vm1372_vm10, %v11769_v8, %v11725_v53  ;;  %v5556_v8 = vsel %vm1372_vm10, %v11870_v49, %v11880_v62  ;;  %v5554_v49 = vsel %vm1372_vm10, %v11771_v15, %v11793_v5  ;;  %v5493_v62 = vsel %vm1372_vm10, %v11512_v50, %v11505_v33 }
 0xff0   : > { %5689 = vmatpush1.msra.mxu1 %v5510_v61  ;;  %v5496_v61 = vsel %vm1372_vm10, %v11705_v37, %v11693_v35  ;;  %v5555_v35 = vsel %vm1372_vm10, %v11793_v5, %v11737_v6  ;;  %v5494_v37 = vsel %vm1372_vm10, %v11533_v18, %v11643_v46  ;;  %v5492_v18 = vsel %vm1372_vm10, %v11469_v19, %v11512_v50  ;;  %v13649_v50 = vld [vmem:[#allocation35_spill] sm:$0xff] }
 0xff1   : > { %5690 = vmatprep.subr.mxu1 %v5509_v38  ;;  %v5495_v38 = vsel %vm1372_vm10, %v11643_v46, %v11612_v16  ;;  %v5552_v46 = vsel %vm1372_vm10, %v11675_v14, %v11715_v51  ;;  %v5490_v19 = vsel %vm1372_vm10, %v11298_v39, %v11387_v34  ;;  %v5489_v14 = vsel %vm1372_vm10, %v13649_v50, %v11300_v30 }
 0xff2   : > { %v11941_v13 = vpop.permute.xlu1 %5400  ;;  %5691 = vmatpush1.msra.mxu1 %v5508_v48  ;;  %v11943_v24 = vpop.permute.xlu0 %5418  ;;  %v5553_v48 = vsel %vm1372_vm10, %v11715_v51, %v11628_v29  ;;  %v13650_v51 = vld [vmem:[#allocation30_spill] sm:$0xff] }
 0xff3   : > { %5692 = vmatprep.subr.mxu1 %v5507_v20  ;;  %v12013_v20 = vld [vmem:[#allocation8 + $0x10] sm:$0xff] }
 0xff4   : > { %5693 = vmatpush1.msra.mxu1 %v5506_v31  ;;  %v5491_v31 = vsel %vm1372_vm10, %v11387_v34, %v11371_v0 }
 0xff5   : > { %5694 = vmatprep.subr.mxu1 %v5505_v9  ;;  %v5488_v9 = vsel %vm1372_vm10, %v13650_v51, %v13649_v50 }
 0xff6   : > { %v11957_v2 = vpop.permute.xlu1 %5398  ;;  %5695 = vmatpush1.msra.mxu1 %v5504_v23  ;;  %v11959_v58 = vpop.permute.xlu0 %5416 }
 0xff7   : > { %5696 = vmatprep.subr.mxu1 %v5503_v7 }
 0xff8   : > { %5697 = vmatpush1.msra.mxu1 %v5502_v44  ;;  %v13652_v44 = vld [vmem:[#allocation40_spill] sm:$0xff] }
 0xff9   : > { %5698 = vmatprep.subr.mxu1 %v5501_v21  ;;  %v5549_v21 = vsel %vm1372_vm10, %v13652_v44, %v11795_v27 }
 0xffa   : > { %v11970_v28 = vpop.permute.xlu1 %5384  ;;  %5699 = vmatpush1.msra.mxu1 %v5500_v10  ;;  %v5483_v54 = vpop.permute.xlu0 %5482  ;;  %v13653_v10 = vld [vmem:[#allocation39_spill] sm:$0xff] }
 0xffb   : > { %v5558_v43 = vsel %vm1372_vm10, %v5483_v54, %v5485_v36  ;;  %5700 = vmatprep.subr.mxu1 %v5499_v11  ;;  %v5548_v54 = vsel %vm1372_vm10, %v13653_v10, %v13652_v44  ;;  %v12135_v10 = vld [vmem:[#allocation8 + $0x58] sm:$0xff] }
 0xffc   : > { %5701 = vmatpush1.msra.mxu1 %v5498_v12  ;;  %5794 = vmatpush1.msra.mxu0 %v5558_v43  ;;  %v13655_v12 = vld [vmem:[#allocation37_spill] sm:$0xff] }
 0xffd   : > { %5702 = vmatprep.subr.mxu1 %v5497_v57  ;;  %5795 = vmatprep.subr.mxu0 %v5557_v40  ;;  %v13656_v57 = vld [vmem:[#allocation27_spill] sm:$0xff]  ;;  %v13657_v40 = vld [vmem:[#allocation12_spill] sm:$0xff] }
 0xffe   : > { %v11991_v1 = vpop.permute.xlu1 %5372  ;;  %5703 = vmatpush1.msra.mxu1 %v5496_v61  ;;  %5796 = vmatpush1.msra.mxu0 %v5556_v8  ;;  %v11993_v36 = vpop.permute.xlu0 %5402  ;;  %v13659_v8 = vld [vmem:[#allocation34_spill] sm:$0xff] }
 0xfff   : > { %5704 = vmatprep.subr.mxu1 %v5495_v38  ;;  %5797 = vmatprep.subr.mxu0 %v5555_v35  ;;  %v13660_v35 = vld [vmem:[#allocation26_spill] sm:$0xff] }
0x1000   : > { %5705 = vmatpush1.msra.mxu1 %v5494_v37  ;;  %5798 = vmatpush1.msra.mxu0 %v5554_v49 }
0x1001   : > { %5706 = vmatprep.subr.mxu1 %v5493_v62  ;;  %5799 = vmatprep.subr.mxu0 %v5553_v48  ;;  %v13661_v48 = vld [vmem:[#allocation23_spill] sm:$0xff] }
0x1002   : > { %v5461_v15 = vpop.permute.xlu1 %5460  ;;  %5707 = vmatpush1.msra.mxu1 %v5492_v18  ;;  %5800 = vmatpush1.msra.mxu0 %v5552_v46  ;;  %v12021_v5 = vpop.permute.xlu0 %5406  ;;  %v13662_v18 = vld [vmem:[#allocation22_spill] sm:$0xff] }
0x1003   : > { %5708 = vmatprep.subr.mxu1 %v5491_v31  ;;  %7377 = vmatmul.mubr.msk.f32.vlgmr.msra.gmra.mxu0 %vm13648_vm2, %v12013_v20  ;;  %v5551_v34 = vsel %vm1372_vm10, %v5461_v15, %v11900_v55  ;;  %v5540_v46 = vsel %vm1372_vm10, %v11912_v26, %v13662_v18  ;;  %v12097_v26 = vld [vmem:[#allocation8 + $0x28] sm:$0xff]  ;;  %vm13675_vm2 = vmmov %vm13673_vm0 }
0x1004   : > { %7576 = vmatprep.subr.mxu0 %v11900_v55  ;;  %5709 = vmatpush1.msra.mxu1 %v5490_v19  ;;  %v13654_v55 = vld [vmem:[#allocation32_spill] sm:$0xff]  ;;  %v13664_v19 = vld [vmem:[#allocation18_spill] sm:$0xff] }
0x1005   : > { %7577 = vmatpush3.msra.mxu0 %v11884_v25  ;;  %5710 = vmatprep.subr.mxu1 %v5489_v14  ;;  %v13651_v25 = vld [vmem:[#allocation25_spill] sm:$0xff]  ;;  %v5539_v50 = vsel %vm1372_vm10, %v13664_v19, %v13661_v48  ;;  %v13665_v14 = vld [vmem:[#allocation15_spill] sm:$0xff] }
0x1006   : > { %7578 = vmatprep.subr.mxu0 %v11795_v27  ;;  %v5459_v23 = vpop.permute.xlu1 %5458  ;;  %5711 = vmatpush1.msra.mxu1 %v5488_v9  ;;  %v12040_v7 = vpop.permute.xlu0 %5404  ;;  %v5547_v43 = vsel %vm1372_vm10, %v13655_v12, %v13651_v25  ;;  %v5546_v27 = vsel %vm1372_vm10, %v13656_v57, %v13655_v12  ;;  %v5538_v51 = vsel %vm1372_vm10, %v13665_v14, %v13664_v19 }
0x1007   : > { %v5550_v39 = vsel %vm1372_vm10, %v5459_v23, %v5461_v15  ;;  %7579 = vmatpush3.msra.mxu0 %v11830_v3  ;;  %5712 = vmatprep.subr.mxu1 %v5551_v34  ;;  %v13663_v15 = vld [vmem:[#allocation38_spill] sm:$0xff]  ;;  %v5536_v9 = vsel %vm1372_vm10, %v11959_v58, %v11943_v24  ;;  %v13666_v23 = vmov 0.0   ;;  %v12115_v58 = vld [vmem:[#allocation8 + $0x40] sm:$0xff] }
0x1008   : > { %7580 = vmatprep.subr.mxu0 %v13651_v25  ;;  %5713 = vmatpush2.msra.mxu1 %v5550_v39 }
0x1009   : > { %7581 = vmatpush3.msra.mxu0 %v11707_v47  ;;  %5714 = vmatprep.subr.mxu1 %v5549_v21  ;;  %v13658_v47 = vld [vmem:[#allocation36_spill] sm:$0xff] }
0x100a   : > { %7582 = vmatprep.subr.mxu0 %v13654_v55  ;;  %v5437_v11 = vpop.permute.xlu1 %5436  ;;  %5715 = vmatpush2.msra.mxu1 %v5548_v54  ;;  %v12055_v3 = vpop.permute.xlu0 %5390  ;;  %v5545_v61 = vsel %vm1372_vm10, %v13658_v47, %v13654_v55  ;;  %v5544_v38 = vsel %vm1372_vm10, %v13659_v8, %v13658_v47  ;;  %v5246_v47 = vld [vmem:[#allocation8 + $0x50] sm:$0xff] }
0x100b   : > { %7583 = vmatpush3.msra.mxu0 %v11652_v59  ;;  %5716 = vmatprep.subr.mxu1 %v5547_v43  ;;  %v5543_v49 = vsel %vm1372_vm10, %v5437_v11, %v13657_v40 }
0x100c   : > { %7584 = vmatprep.subr.mxu0 %v13657_v40  ;;  %5717 = vmatpush2.msra.mxu1 %v5546_v27  ;;  %v5243_v40 = vld [vmem:[#allocation8 + $0x38] sm:$0xff] }
0x100d   : > { %7585 = vmatpush3.msra.mxu0 %v11890_v22  ;;  %5718 = vmatprep.subr.mxu1 %v5545_v61  ;;  %v5541_v22 = vsel %vm1372_vm10, %v13662_v18, %v13660_v35 }
0x100e   : > { %7586 = vmatprep.subr.mxu0 %v13660_v35  ;;  %v5435_v37 = vpop.permute.xlu1 %5434  ;;  %5719 = vmatpush2.msra.mxu1 %v5544_v38  ;;  %v5395_v59 = vpop.permute.xlu0 %5394 }
0x100f   : > { %v5542_v62 = vsel %vm1372_vm10, %v5435_v37, %v5437_v11  ;;  %7587 = vmatpush3.msra.mxu0 %v11848_v56  ;;  %5720 = vmatprep.subr.mxu1 %v5543_v49  ;;  %v5236_v11 = vld [vmem:[#allocation8] sm:$0xff] }
0x1010   : > { %7588 = vmatprep.subr.mxu0 %v13661_v48  ;;  %5721 = vmatpush2.msra.mxu1 %v5542_v62 }
0x1011   : > { %7589 = vmatpush3.msra.mxu0 %v11717_v52  ;;  %5722 = vmatprep.subr.mxu1 %v5541_v22  ;;  %v5537_v52 = vsel %vm1372_vm10, %v11943_v24, %v13663_v15 }
0x1012   : > { %7590 = vmatprep.subr.mxu0 %v13663_v15  ;;  %v5413_v31 = vpop.permute.xlu1 %5412  ;;  %5723 = vmatpush2.msra.mxu1 %v5540_v46  ;;  %v5393_v56 = vpop.permute.xlu0 %5392 }
0x1013   : > { %7591 = vmatpush3.msra.mxu0 %v11662_v45  ;;  %5724 = vmatprep.subr.mxu1 %v5539_v50  ;;  %v13667_v45 = vld [vmem:[#allocation16_spill] sm:$0xff] }
0x1014   : > { %7592 = vmatprep.subr.mxu0 %v11930_v32  ;;  %5725 = vmatpush2.msra.mxu1 %v5538_v51  ;;  %v5533_v24 = vsel %vm1372_vm10, %v12021_v5, %v13667_v45 }
0x1015   : > { %7593 = vmatpush3.msra.mxu0 %v11894_v41  ;;  %5726 = vmatprep.subr.mxu1 %v5537_v52  ;;  %v5535_v41 = vsel %vm1372_vm10, %v5413_v31, %v11930_v32  ;;  %v5532_v32 = vsel %vm1372_vm10, %v12040_v7, %v12021_v5  ;;  %v5529_v5 = vsel %vm1372_vm10, %v5395_v59, %v11928_v42 }
0x1016   : > { %5839 = vmatprep.mubr.f32.mxu0 %v13666_v23  ;;  %7594 = vmatprep.subr.mxu0 %v13667_v45  ;;  %v5411_v34 = vpop.permute.xlu1 %5410  ;;  %v5379_v39 = vpop.permute.xlu0 %5378 }
0x1017   : > { %v5534_v25 = vsel %vm1372_vm10, %v5411_v34, %v5413_v31  ;;  %5727 = vmatpush2.msra.mxu1 %v5536_v9  ;;  %7378 = vmatmul.mubr.msk.f32.gmra.mxu0 %vm13668_vm9, %v12097_v26 }
0x1018   : > { %7595 = vmatpush3.msra.mxu0 %v11858_v17  ;;  %5728 = vmatprep.subr.mxu1 %v5535_v41  ;;  %v5531_v17 = vsel %vm1372_vm10, %v11941_v13, %v11993_v36 }
0x1019   : > { %7596 = vmatprep.subr.mxu0 %v11993_v36  ;;  %5729 = vmatpush2.msra.mxu1 %v5534_v25  ;;  %v5528_v36 = vsel %vm1372_vm10, %v5393_v56, %v5395_v59 }
0x101a   : > { %7597 = vmatpush3.msra.mxu0 %v11725_v53  ;;  %5730 = vmatprep.subr.mxu1 %v5533_v24  ;;  %v5389_v44 = vpop.permute.xlu1 %5388  ;;  %v5383_v21 = vpop.permute.xlu0 %5382  ;;  %v5530_v53 = vsel %vm1372_vm10, %v11957_v2, %v11941_v13 }
0x101b   : > { %5845 = vmatprep.mubr.f32.mxu0 %v13666_v23  ;;  %7598 = vmatprep.subr.mxu0 %v11928_v42  ;;  %v5527_v42 = vsel %vm1372_vm10, %v5389_v44, %v12055_v3  ;;  %v5525_v2 = vsel %vm1372_vm10, %v5383_v21, %v11970_v28 }
0x101c   : > { %5731 = vmatpush2.msra.mxu1 %v5532_v32  ;;  %7379 = vmatmul.mubr.msk.f32.gmra.mxu0 %vm13669_vm1, %v12115_v58 }
0x101d   : > { %7599 = vmatpush3.msra.mxu0 %v11621_v4  ;;  %5732 = vmatprep.subr.mxu1 %v5531_v17 }
0x101e   : > { %7600 = vmatprep.subr.mxu0 %v12055_v3  ;;  %5733 = vmatpush2.msra.mxu1 %v5530_v53  ;;  %v5387_v7 = vpop.permute.xlu1 %5386  ;;  %v5381_v54 = vpop.permute.xlu0 %5380 }
0x101f   : > { %7601 = vmatpush3.msra.mxu0 %v11612_v16  ;;  %5734 = vmatprep.subr.mxu1 %v5529_v5  ;;  %v5526_v4 = vsel %vm1372_vm10, %v5387_v7, %v5389_v44  ;;  %v5524_v55 = vsel %vm1372_vm10, %v5381_v54, %v5383_v21 }
0x1020   : > { %5851 = vmatprep.mubr.f32.mxu0 %v13666_v23  ;;  %7602 = vmatprep.subr.mxu0 %v11970_v28  ;;  %v5240_v28 = vld [vmem:[#allocation8 + $0x20] sm:$0xff] }
0x1021   : > { %5735 = vmatpush2.msra.mxu1 %v5528_v36  ;;  %7380 = vmatmul.mubr.msk.f32.gmra.mxu0 %vm13670_vm11, %v12135_v10 }
0x1022   : > { %7603 = vmatpush3.msra.mxu0 %v11505_v33  ;;  %5736 = vmatprep.subr.mxu1 %v5527_v42  ;;  %v5377_v16 = vpop.permute.xlu1 %5376  ;;  %v5375_v13 = vpop.permute.xlu0 %5374  ;;  %v13671_v33 = vld [vmem:[#allocation28_spill] sm:$0xff] }
0x1023   : > { %7604 = vmatprep.subr.mxu0 %v5379_v39  ;;  %5737 = vmatpush2.msra.mxu1 %v5526_v4  ;;  %v5523_v3 = vsel %vm1372_vm10, %v5377_v16, %v5379_v39  ;;  %v5522_v12 = vsel %vm1372_vm10, %v5375_v13, %v5377_v16 }
0x1024   : > { %7605 = vmatpush3.msra.mxu0 %v11371_v0  ;;  %5738 = vmatprep.subr.mxu1 %v5525_v2  ;;  %v5239_v0 = vld [vmem:[#allocation8 + $0x18] sm:$0xff] }
0x1025   : > { %7606 = vmatprep.subr.mxu0 %v11991_v1  ;;  %5739 = vmatpush2.msra.mxu1 %v5524_v55 }
0x1026   : > { %7607 = vmatpush3.msra.mxu0 %v11300_v30  ;;  %5922 = vmatprep.mubr.f32.mxu0 %v13671_v33  ;;  %v5371_v43 = vpop.permute.xlu1 %5370  ;;  %v5369_v57 = vpop.permute.xlu0 %5368 }
0x1027   : > { %5923 = vmatmul.mubr.f32.vlgmr.msra.gmra.mxu0 %v5236_v11  ;;  %7740 = vmatprep.subr.mxu0 %v11898_v60  ;;  %v5521_v30 = vsel %vm1372_vm10, %v5371_v43, %v11991_v1  ;;  %v5520_v27 = vsel %vm1372_vm10, %v5369_v57, %v5371_v43 }
0x1028   : > { %5740 = vmatprep.subr.mxu1 %v5523_v3  ;;  %7741 = vmatpush3.msra.mxu0 %v11898_v60  ;;  %v5242_v60 = vld [vmem:[#allocation8 + $0x30] sm:$0xff] }
0x1029   : > { %5741 = vmatpush2.msra.mxu1 %v5522_v12  ;;  %7742 = vmatprep.subr.mxu0 %v11783_v63 }
0x102a   : > { %5927 = vmatprep.mubr.f32.mxu0 %v5240_v28  ;;  %7743 = vmatpush3.msra.mxu0 %v11783_v63  ;;  %v5245_v63 = vld [vmem:[#allocation8 + $0x48] sm:$0xff] }
0x102b   : > { %5928 = vmatmul.mubr.f32.gmra.mxu0 %v5239_v0  ;;  %7744 = vmatprep.subr.mxu0 %v11737_v6 }
0x102c   : > { %5742 = vmatprep.subr.mxu1 %v5521_v30  ;;  %7745 = vmatpush3.msra.mxu0 %v11737_v6 }
0x102d   : > { %5743 = vmatpush2.msra.mxu1 %v5520_v27  ;;  %7746 = vmatprep.subr.mxu0 %v11628_v29 }
0x102e   : > { %5745 = vmatmul.mubr.f32.vlgmr.msra.gmra.mxu1 %v5236_v11  ;;  %5932 = vmatprep.mubr.f32.mxu0 %v5243_v40 }
0x102f   : > { %7747 = vmatpush3.msra.mxu0 %v11628_v29  ;;  %5750 = vmatprep.mubr.f32.mxu1 %v5240_v28  ;;  %v13676_v28 = vld [vmem:[#allocation21_spill] sm:$0xff] }
0x1030   : > { %5933 = vmatmul.mubr.f32.gmra.mxu0 %v5242_v60 }
0x1031   : > { %5937 = vmatprep.mubr.f32.mxu0 %v5246_v47 }
0x1032   : > { %5751 = vmatmul.mubr.f32.gmra.mxu1 %v5239_v0 }
0x1033   : > { %5756 = vmatprep.mubr.f32.mxu1 %v5243_v40  ;;  %v12186_v59 = vpop.permute.xlu1 %5269  ;;  %v5265_v62 = vpop.permute.xlu0 %5264 }
0x1034   : > { %5938 = vmatmul.mubr.f32.gmra.mxu0 %v5245_v63 }
0x1035   : > { %7748 = vmatprep.mubr.msk.f32.mxu0 %vm13672_vm7, %v12013_v20 }
0x1036   : > { %5757 = vmatmul.mubr.f32.gmra.mxu1 %v5242_v60 }
0x1037   : > { %5762 = vmatprep.mubr.f32.mxu1 %v5246_v47  ;;  %v5260_v46 = vpop.permute.xlu1 %5259  ;;  %v12188_v56 = vpop.permute.xlu0 %6061 }
0x1038   : > { %7749 = vmatmul.mubr.msk.f32.vlgmr.msra.gmra.mxu0 %vm13673_vm0, %v12097_v26 }
0x1039   : > { %7751 = vmatprep.mubr.msk.f32.mxu0 %vm13674_vm14, %v12115_v58 }
0x103a   : > { %5763 = vmatmul.mubr.f32.gmra.mxu1 %v5245_v63 }
0x103b   : > { %v5255_v26 = vpop.permute.xlu1 %5254  ;;  %v12190_v34 = vpop.permute.xlu0 %6056 }
0x103c   : > { %7752 = vmatmul.mubr.msk.f32.gmra.mxu0 %vm13675_vm2, %v12135_v10 }
0x103d   : > { %7007 = vmatprep.mubr.f32.mxu0 %v13666_v23 }
0x103f   : > { %v6052_v5 = vpop.permute.xlu1 %6051  ;;  %v6047_v55 = vpop.permute.xlu0 %6046 }
0x10c3   : > { %v5835_v29 = vpop.f32.mrf.mxu0 }
0x10c5   : > { %v5837_v6 = vpop.f32.mrf.mxu0 }
0x10d7   : > { %v5841_v1 = vpop.f32.mrf.mxu0 }
0x10d9   : > { %v12176_v61 = vpop.f32.mrf.mxu0 }
0x10dc   : > { %v12178_v20 = vpop.f32.mrf.mxu0 }
0x10de   : > { %v12180_v8 = vpop.f32.mrf.mxu0 }
0x10e1   : > { %v12182_v38 = vpop.f32.mrf.mxu0 }
0x10e3   : > { %v12184_v35 = vpop.f32.mrf.mxu0 }
0x10e7   : > { %v7608_v37 = vpop.f32.mrf.mxu0 }
0x10e9   : > { %v7609_v49 = vpop.f32.mrf.mxu0 }
0x10ea   : > { %v7610_v9 = vadd.f32 %v7609_v49, %v7608_v37 }
0x10eb   : > { %v7611_v48 = vpop.f32.mrf.mxu0 }
0x10ec   : > { %v5925_v17 = vadd.f32 %v7610_v9, %v5255_v26 }
0x10ed   : > { %v7612_v18 = vpop.f32.mrf.mxu0 }
0x10ee   : > { %v5746_v22 = vpop.f32.mrf.mxu1  ;;  %v7613_v14 = vadd.f32 %v7612_v18, %v7611_v48 }
0x10ef   : > { %v5747_v44 = vadd.f32 %v5746_v22, %v5255_v26 }
0x10f0   : > { %v7614_v15 = vpop.f32.mrf.mxu0  ;;  %v5748_v31 = vpop.f32.mrf.mxu1  ;;  %v5930_v41 = vadd.f32 %v7613_v14, %v5260_v46 }
0x10f1   : > { %v5749_v39 = vadd.f32 %v5748_v31, %v5255_v26  ;;  %v5836_v13 = vadd.f32 %v5835_v29, %v5747_v44  ;;  %v13677_v26 = vld [vmem:[#allocation20_spill] sm:$0xff] }
0x10f2   : > { %v7615_v19 = vpop.f32.mrf.mxu0  ;;  %v5752_v50 = vpop.f32.mrf.mxu1 }
0x10f3   : > { %v7616_v32 = vadd.f32 %v7615_v19, %v7614_v15  ;;  %v5838_v7 = vadd.f32 %v5837_v6, %v5749_v39  ;;  %v5753_v54 = vadd.f32 %v5752_v50, %v5260_v46  ;;  %vm6028_vm7 = vcmp.ge.f32.partialorder %v5836_v13, 0.0 }
0x10f4   : > { %v7617_v51 = vpop.f32.mrf.mxu0  ;;  %v5754_v52 = vpop.f32.mrf.mxu1  ;;  %v6064_v29 = vmul.f32 %v6047_v55, %v5836_v13 }
0x10f5   : > { %v5755_v11 = vadd.f32 %v5754_v52, %v5260_v46  ;;  %v5935_v33 = vadd.f32 %v7616_v32, %v5265_v62  ;;  %v6065_v43 = vmul.f32 %v6047_v55, %v5838_v7  ;;  %v5842_v30 = vadd.f32 %v5841_v1, %v5753_v54 }
0x10f6   : > { %v7618_v45 = vpop.f32.mrf.mxu0  ;;  %v5758_v24 = vpop.f32.mrf.mxu1  ;;  %vm6029_vm0 = vcmp.ge.f32.partialorder %v5838_v7, 0.0 }
0x10f7   : > { %v7619_v25 = vadd.f32 %v7618_v45, %v7617_v51  ;;  %v5844_v6 = vadd.f32 %v12176_v61, %v5755_v11  ;;  %v5759_v48 = vadd.f32 %v5758_v24, %v5265_v62  ;;  %v6077_v22 = vsel %vm6029_vm0, %v5838_v7, %v6065_v43 }
0x10f8   : > { %v7750_v58 = vpop.f32.mrf.mxu0  ;;  %v5760_v4 = vpop.f32.mrf.mxu1  ;;  %v6067_v46 = vmul.f32 %v6052_v5, %v5842_v30  ;;  %vm6031_vm2 = vcmp.ge.f32.partialorder %v5842_v30, 0.0 }
0x10f9   : > { %v6015_v21 = vadd.f32 %v7750_v58, %v5930_v41  ;;  %v5940_v10 = vadd.f32 %v7619_v25, %v12186_v59  ;;  %v5761_v27 = vadd.f32 %v5760_v4, %v5265_v62  ;;  %v6076_v62 = vsel %vm6028_vm7, %v5836_v13, %v6064_v29  ;;  %v13678_v25 = vld [vmem:[#allocation19_spill] sm:$0xff] }
0x10fa   : > { %v6009_v53 = vpop.f32.mrf.mxu0  ;;  %v5764_v40 = vpop.f32.mrf.mxu1  ;;  %v6068_v14 = vmul.f32 %v6052_v5, %v5844_v6  ;;  %v5848_v51 = vadd.f32 %v12178_v20, %v5759_v48  ;;  %v6079_v9 = vsel %vm6031_vm2, %v5842_v30, %v6067_v46  ;;  %v6088_v41 = vmul.f32 %v6076_v62, %v13678_v25 }
0x10fb   : > { %vm6033_vm9 = vcmp.ge.f32.partialorder %v6015_v21, 0.0  ;;  %v6069_v36 = vmul.f32 %v6052_v5, %v6015_v21  ;;  %v6010_v42 = vadd.f32 %v6009_v53, %v5925_v17  ;;  %v5850_v15 = vadd.f32 %v12180_v8, %v5761_v27 }
0x10fc   : > { %v7753_v16 = vpop.f32.mrf.mxu0  ;;  %v5765_v31 = vadd.f32 %v5764_v40, %v12186_v59  ;;  %v5766_v19 = vpop.f32.mrf.mxu1  ;;  %v6089_v8 = vmul.f32 %v6077_v22, %v13677_v26  ;;  %v6070_v20 = vmul.f32 %v12190_v34, %v5848_v51  ;;  %v6091_v58 = vmul.f32 %v6079_v9, %v13678_v25 }
0x10fd   : > { %v6025_v2 = vadd.f32 %v7753_v16, %v5940_v10  ;;  %v6081_v3 = vsel %vm6033_vm9, %v6015_v21, %v6069_v36  ;;  %vm6030_vm1 = vcmp.ge.f32.partialorder %v6010_v42, 0.0  ;;  %v6066_v0 = vmul.f32 %v6047_v55, %v6010_v42 }
0x10fe   : > { %v6019_v12 = vpop.f32.mrf.mxu0  ;;  %v6093_v57 = vmul.f32 %v6081_v3, %v13676_v28  ;;  %v5767_v52 = vadd.f32 %v5766_v19, %v12186_v59  ;;  %vm6032_vm9 = vcmp.ge.f32.partialorder %v5844_v6, 0.0  ;;  %v6071_v45 = vmul.f32 %v12190_v34, %v5850_v15 }
0x10ff   : > { %vm6039_vm11 = vcmp.ge.f32.partialorder %v6025_v2, 0.0  ;;  %v6075_v60 = vmul.f32 %v12188_v56, %v6025_v2  ;;  %v6020_v47 = vadd.f32 %v6019_v12, %v5935_v33  ;;  %v6078_v63 = vsel %vm6030_vm1, %v6010_v42, %v6066_v0 }
0x1100   : > { %6122 = vrot.lane.b32.xlu1 %v6093_v57, %s13515_s22  ;;  %v6090_v37 = vmul.f32 %v6078_v63, %v13676_v28  ;;  %v5854_v39 = vadd.f32 %v12182_v38, %v5765_v31  ;;  %vm6035_vm1 = vcmp.ge.f32.partialorder %v5850_v15, 0.0  ;;  %v6080_v24 = vsel %vm6032_vm9, %v5844_v6, %v6068_v14 }
0x1101   : > { %v6087_v49 = vsel %vm6039_vm11, %v6025_v2, %v6075_v60  ;;  %vm6036_vm14 = vcmp.ge.f32.partialorder %v6020_v47, 0.0  ;;  %v6072_v1 = vmul.f32 %v12190_v34, %v6020_v47  ;;  %v5856_v59 = vadd.f32 %v12184_v35, %v5767_v52 }
0x1102   : > { %v6099_v18 = vmul.f32 %v6087_v49, %v13676_v28  ;;  %6116 = vrot.lane.b32.xlu0 %v6090_v37, %s13515_s22  ;;  %vm6034_vm11 = vcmp.ge.f32.partialorder %v5848_v51, 0.0  ;;  %v6083_v44 = vsel %vm6035_vm1, %v5850_v15, %v6071_v45  ;;  %v6073_v21 = vmul.f32 %v12188_v56, %v5854_v39 }
0x1103   : > { %v6084_v61 = vsel %vm6036_vm14, %v6020_v47, %v6072_v1  ;;  %vm6037_vm7 = vcmp.ge.f32.partialorder %v5854_v39, 0.0  ;;  %v6092_v38 = vmul.f32 %v6080_v24, %v13677_v26  ;;  %v6082_v32 = vsel %vm6034_vm11, %v5848_v51, %v6070_v20 }
0x1104   : > { %6134 = vrot.lane.b32.xlu1 %v6099_v18, %s13515_s22  ;;  %v6096_v50 = vmul.f32 %v6084_v61, %v13676_v28  ;;  %v6074_v17 = vmul.f32 %v12188_v56, %v5856_v59  ;;  %v6095_v34 = vmul.f32 %v6083_v44, %v13677_v26  ;;  %v6085_v53 = vsel %vm6037_vm7, %v5854_v39, %v6073_v21 }
0x1105   : > { %vm6038_vm0 = vcmp.ge.f32.partialorder %v5856_v59, 0.0  ;;  %v6094_v35 = vmul.f32 %v6082_v32, %v13678_v25  ;;  %v6097_v7 = vmul.f32 %v6085_v53, %v13678_v25  ;;  %vm13679_vm14 = vcmask 1047744  }
0x1106   : > { %6128 = vrot.lane.b32.xlu0 %v6096_v50, %s13515_s22  ;;  %v6086_v5 = vsel %vm6038_vm0, %v5856_v59, %v6074_v17  ;;  %vm13680_vm2 = vmmov %vm13679_vm14 }
0x1107   : > { %v6098_v10 = vmul.f32 %v6086_v5, %v13677_v26  ;;  %vm13681_vm9 = vmmov %vm13680_vm2 }
0x1108   : > { %6114 = vrot.lane.b32.xlu1 %v6089_v8, %s13515_s22  ;;  %vm13682_vm1 = vmmov %vm13680_vm2 }
0x110a   : > { %6112 = vrot.lane.b32.xlu0 %v6088_v41, %s13515_s22 }
0x110c   : > { %6118 = vrot.lane.b32.xlu1 %v6091_v58, %s13515_s22 }
0x110e   : > { %6120 = vrot.lane.b32.xlu0 %v6092_v38, %s13515_s22 }
0x1110   : > { %6126 = vrot.lane.b32.xlu1 %v6095_v34, %s13515_s22 }
0x1112   : > { %6124 = vrot.lane.b32.xlu0 %v6094_v35, %s13515_s22 }
0x1114   : > { %6130 = vrot.lane.b32.xlu1 %v6097_v7, %s13515_s22 }
0x1116   : > { %6132 = vrot.lane.b32.xlu0 %v6098_v10, %s13515_s22 }
0x1172   : > { %v6123_v56 = vpop.permute.xlu1 %6122 }
0x1174   : > { %v6117_v54 = vpop.permute.xlu0 %6116 }
0x1176   : > { %v6135_v36 = vpop.permute.xlu1 %6134 }
0x1178   : > { %v6129_v4 = vpop.permute.xlu0 %6128 }
0x117a   : > { %v6115_v42 = vpop.permute.xlu1 %6114 }
0x117b   : > { %v6137_v16 = vsel %vm1155_vm5, %v6115_v42, %v6117_v54 }
0x117c   : > { %6158 = vst.msk [vmem:[#allocation3 + $0x10] sm:$0xff] %vm1255_vm15, %v6137_v16  ;;  %v6113_v13 = vpop.permute.xlu0 %6112 }
0x117d   : > { %v6136_v2 = vsel %vm1155_vm5, %v6113_v13, %v6115_v42  ;;  %6156 = vst.msk [vmem:[#allocation3] sm:$0xff] %vm13679_vm14, %v6113_v13 }
0x117e   : > { %v6119_v55 = vpop.permute.xlu1 %6118 }
0x117f   : > { %6159 = vst.msk [vmem:[#allocation3 + $0x18] sm:$0xff] %vm13680_vm2, %v6119_v55 }
0x1180   : > { %v6121_v11 = vpop.permute.xlu0 %6120 }
0x1181   : > { %v12237_v3 = vsel %vm1155_vm5, %v6119_v55, %v6121_v11  ;;  %v6139_v33 = vsel %vm1155_vm5, %v6121_v11, %v6123_v56 }
0x1182   : > { %v6127_v12 = vpop.permute.xlu1 %6126  ;;  %6161 = vst.msk [vmem:[#allocation3 + $0x28] sm:$0xff] %vm1255_vm15, %v6139_v33 }
0x1183   : > { %v6141_v43 = vsel %vm1155_vm5, %v6127_v12, %v6129_v4  ;;  %v6170_v60 = vld [vmem:[#allocation3 + $0x10] sm:$0xff] }
0x1184   : > { %6164 = vst.msk [vmem:[#allocation3 + $0x40] sm:$0xff] %vm1255_vm15, %v6141_v43  ;;  %v6125_v57 = vpop.permute.xlu0 %6124  ;;  %v6168_v0 = vld [vmem:[#allocation3] sm:$0xff] }
0x1185   : > { %v12244_v30 = vsel %vm1155_vm5, %v6125_v57, %v6127_v12  ;;  %6162 = vst.msk [vmem:[#allocation3 + $0x30] sm:$0xff] %vm13681_vm9, %v6125_v57  ;;  %6256 = vrot.lane.b32.xlu0 %v6168_v0, %s13518_s7  ;;  %6192 = vrot.lane.b32.xlu1 %v6168_v0, %s13519_s0 }
0x1186   : > { %v6131_v27 = vpop.permute.xlu1 %6130  ;;  %v6171_v29 = vld [vmem:[#allocation3 + $0x18] sm:$0xff] }
0x1187   : > { %6165 = vst.msk [vmem:[#allocation3 + $0x48] sm:$0xff] %vm13682_vm1, %v6131_v27 }
0x1188   : > { %v6133_v40 = vpop.permute.xlu0 %6132 }
0x1189   : > { %v12251_v47 = vsel %vm1155_vm5, %v6131_v27, %v6133_v40  ;;  %v6143_v63 = vsel %vm1155_vm5, %v6133_v40, %v6135_v36  ;;  %6224 = vrot.lane.b32.xlu0 %v6168_v0, %s13464_s4  ;;  %6196 = vrot.lane.b32.xlu1 %v6170_v60, %s13519_s0  ;;  %v6173_v6 = vld [vmem:[#allocation3 + $0x28] sm:$0xff]  ;;  %vm13686_vm5 = vcmask 883712  }
0x118a   : > { %6167 = vst.msk [vmem:[#allocation3 + $0x58] sm:$0xff] %vm1255_vm15, %v6143_v63 }
0x118b   : > { %v6176_v49 = vld [vmem:[#allocation3 + $0x40] sm:$0xff] }
0x118c   : > { %v6174_v37 = vld [vmem:[#allocation3 + $0x30] sm:$0xff] }
0x118d   : > { %6416 = vrot.lane.b32.xlu0 %v6168_v0, %s13466_s28  ;;  %6260 = vrot.lane.b32.xlu1 %v6170_v60, %s13518_s7 }
0x118e   : > { %v6177_v8 = vld [vmem:[#allocation3 + $0x48] sm:$0xff] }
0x1191   : > { %6384 = vrot.lane.b32.xlu0 %v6168_v0, %s13463_s25  ;;  %6228 = vrot.lane.b32.xlu1 %v6170_v60, %s13464_s4 }
0x1195   : > { %6352 = vrot.lane.b32.xlu0 %v6168_v0, %s13465_s1  ;;  %6420 = vrot.lane.b32.xlu1 %v6170_v60, %s13466_s28 }
0x1199   : > { %6320 = vrot.lane.b32.xlu0 %v6168_v0, %s13467_s26  ;;  %6388 = vrot.lane.b32.xlu1 %v6170_v60, %s13463_s25 }
0x119d   : > { %6288 = vrot.lane.b32.xlu0 %v6168_v0, %s13468_s27  ;;  %6356 = vrot.lane.b32.xlu1 %v6170_v60, %s13465_s1 }
0x11a1   : > { %6474 = vrot.lane.b32.xlu0 %v6168_v0, %s13469_s14  ;;  %6324 = vrot.lane.b32.xlu1 %v6170_v60, %s13467_s26 }
0x11a5   : > { %6290 = vrot.lane.b32.xlu1 %v6136_v2, %s13468_s27  ;;  %6194 = vrot.lane.b32.xlu0 %v6136_v2, %s13519_s0 }
0x11a9   : > { %6478 = vrot.lane.b32.xlu1 %v6170_v60, %s13469_s14  ;;  %6258 = vrot.lane.b32.xlu0 %v6136_v2, %s13518_s7 }
0x11ad   : > { %6262 = vrot.lane.b32.xlu1 %v6171_v29, %s13518_s7  ;;  %6226 = vrot.lane.b32.xlu0 %v6136_v2, %s13464_s4 }
0x11b1   : > { %6230 = vrot.lane.b32.xlu1 %v6171_v29, %s13464_s4  ;;  %6418 = vrot.lane.b32.xlu0 %v6136_v2, %s13466_s28 }
0x11b5   : > { %6422 = vrot.lane.b32.xlu1 %v6171_v29, %s13466_s28  ;;  %6386 = vrot.lane.b32.xlu0 %v6136_v2, %s13463_s25 }
0x11b9   : > { %6390 = vrot.lane.b32.xlu1 %v6171_v29, %s13463_s25  ;;  %6354 = vrot.lane.b32.xlu0 %v6136_v2, %s13465_s1 }
0x11bd   : > { %6358 = vrot.lane.b32.xlu1 %v6171_v29, %s13465_s1  ;;  %6322 = vrot.lane.b32.xlu0 %v6136_v2, %s13467_s26 }
0x11c1   : > { %6326 = vrot.lane.b32.xlu1 %v6171_v29, %s13467_s26  ;;  %6292 = vrot.lane.b32.xlu0 %v6170_v60, %s13468_s27 }
0x11c5   : > { %6476 = vrot.lane.b32.xlu0 %v6136_v2, %s13469_s14  ;;  %6200 = vrot.lane.b32.xlu1 %v12237_v3, %s13519_s0  ;;  %v6179_v2 = vld [vmem:[#allocation3 + $0x58] sm:$0xff] }
0x11c9   : > { %6198 = vrot.lane.b32.xlu0 %v6171_v29, %s13519_s0  ;;  %6264 = vrot.lane.b32.xlu1 %v12237_v3, %s13518_s7 }
0x11cd   : > { %6294 = vrot.lane.b32.xlu0 %v6171_v29, %s13468_s27  ;;  %6232 = vrot.lane.b32.xlu1 %v12237_v3, %s13464_s4 }
0x11d1   : > { %6480 = vrot.lane.b32.xlu0 %v6171_v29, %s13469_s14  ;;  %6424 = vrot.lane.b32.xlu1 %v12237_v3, %s13466_s28 }
0x11d5   : > { %6202 = vrot.lane.b32.xlu0 %v6173_v6, %s13519_s0  ;;  %6392 = vrot.lane.b32.xlu1 %v12237_v3, %s13463_s25 }
0x11d9   : > { %6266 = vrot.lane.b32.xlu0 %v6173_v6, %s13518_s7  ;;  %6360 = vrot.lane.b32.xlu1 %v12237_v3, %s13465_s1 }
0x11dd   : > { %6234 = vrot.lane.b32.xlu0 %v6173_v6, %s13464_s4  ;;  %6328 = vrot.lane.b32.xlu1 %v12237_v3, %s13467_s26 }
0x11e1   : > { %6426 = vrot.lane.b32.xlu0 %v6173_v6, %s13466_s28  ;;  %6296 = vrot.lane.b32.xlu1 %v12237_v3, %s13468_s27 }
0x11e5   : > { %6394 = vrot.lane.b32.xlu0 %v6173_v6, %s13463_s25  ;;  %6484 = vrot.lane.b32.xlu1 %v6173_v6, %s13469_s14 }
0x11e9   : > { %6362 = vrot.lane.b32.xlu0 %v6173_v6, %s13465_s1  ;;  %6204 = vrot.lane.b32.xlu1 %v6174_v37, %s13519_s0 }
0x11ed   : > { %6330 = vrot.lane.b32.xlu0 %v6173_v6, %s13467_s26  ;;  %6208 = vrot.lane.b32.xlu1 %v6176_v49, %s13519_s0 }
0x11f1   : > { %6298 = vrot.lane.b32.xlu0 %v6173_v6, %s13468_s27  ;;  %6272 = vrot.lane.b32.xlu1 %v6176_v49, %s13518_s7 }
0x11f5   : > { %6482 = vrot.lane.b32.xlu0 %v12237_v3, %s13469_s14  ;;  %6240 = vrot.lane.b32.xlu1 %v6176_v49, %s13464_s4 }
0x11f7   : > { %v12320_v48 = vpop.permute.xlu1 %6192  ;;  %v12322_v18 = vpop.permute.xlu0 %6256 }
0x11f9   : > { %6268 = vrot.lane.b32.xlu0 %v6174_v37, %s13518_s7  ;;  %6432 = vrot.lane.b32.xlu1 %v6176_v49, %s13466_s28 }
0x11fb   : > { %v12326_v1 = vpop.permute.xlu1 %6196  ;;  %v12328_v22 = vpop.permute.xlu0 %6224 }
0x11fd   : > { %6236 = vrot.lane.b32.xlu0 %v6174_v37, %s13464_s4  ;;  %6400 = vrot.lane.b32.xlu1 %v6176_v49, %s13463_s25 }
0x11ff   : > { %v12332_v46 = vpop.permute.xlu1 %6260  ;;  %v12334_v15 = vpop.permute.xlu0 %6416 }
0x1201   : > { %6428 = vrot.lane.b32.xlu0 %v6174_v37, %s13466_s28  ;;  %6368 = vrot.lane.b32.xlu1 %v6176_v49, %s13465_s1 }
0x1203   : > { %v12338_v31 = vpop.permute.xlu1 %6228  ;;  %v12340_v19 = vpop.permute.xlu0 %6384 }
0x1205   : > { %6396 = vrot.lane.b32.xlu0 %v6174_v37, %s13463_s25  ;;  %6336 = vrot.lane.b32.xlu1 %v6176_v49, %s13467_s26 }
0x1207   : > { %v12344_v61 = vpop.permute.xlu1 %6420  ;;  %v12346_v62 = vpop.permute.xlu0 %6352 }
0x1209   : > { %6364 = vrot.lane.b32.xlu0 %v6174_v37, %s13465_s1  ;;  %6304 = vrot.lane.b32.xlu1 %v6176_v49, %s13468_s27 }
0x120b   : > { %v12350_v50 = vpop.permute.xlu1 %6388  ;;  %v12352_v14 = vpop.permute.xlu0 %6320 }
0x120d   : > { %6332 = vrot.lane.b32.xlu0 %v6174_v37, %s13467_s26  ;;  %6490 = vrot.lane.b32.xlu1 %v6176_v49, %s13469_s14 }
0x120f   : > { %v12356_v51 = vpop.permute.xlu1 %6356  ;;  %v12358_v52 = vpop.permute.xlu0 %6288 }
0x1211   : > { %6300 = vrot.lane.b32.xlu0 %v6174_v37, %s13468_s27  ;;  %6274 = vrot.lane.b32.xlu1 %v6177_v8, %s13518_s7 }
0x1213   : > { %v12362_v9 = vpop.permute.xlu1 %6324  ;;  %v12364_v45 = vpop.permute.xlu0 %6474 }
0x1215   : > { %6486 = vrot.lane.b32.xlu0 %v6174_v37, %s13469_s14  ;;  %6242 = vrot.lane.b32.xlu1 %v6177_v8, %s13464_s4 }
0x1217   : > { %v12368_v39 = vpop.permute.xlu1 %6290  ;;  %v12370_v41 = vpop.permute.xlu0 %6194 }
0x1219   : > { %6434 = vrot.lane.b32.xlu1 %v6177_v8, %s13466_s28  ;;  %6206 = vrot.lane.b32.xlu0 %v12244_v30, %s13519_s0 }
0x121b   : > { %v12375_v24 = vpop.permute.xlu1 %6478  ;;  %v12377_v20 = vpop.permute.xlu0 %6258 }
0x121c   : > { %v6281_v28 = vsel %vm1211_vm12, %v12377_v20, %v12332_v46 }
0x121d   : > { %6402 = vrot.lane.b32.xlu1 %v6177_v8, %s13463_s25  ;;  %6270 = vrot.lane.b32.xlu0 %v12244_v30, %s13518_s7 }
0x121f   : > { %v12382_v59 = vpop.permute.xlu1 %6262  ;;  %v12384_v58 = vpop.permute.xlu0 %6226 }
0x1221   : > { %6370 = vrot.lane.b32.xlu1 %v6177_v8, %s13465_s1  ;;  %6238 = vrot.lane.b32.xlu0 %v12244_v30, %s13464_s4 }
0x1223   : > { %v12389_v44 = vpop.permute.xlu1 %6230  ;;  %v12391_v21 = vpop.permute.xlu0 %6418 }
0x1225   : > { %6338 = vrot.lane.b32.xlu1 %v6177_v8, %s13467_s26  ;;  %6430 = vrot.lane.b32.xlu0 %v12244_v30, %s13466_s28 }
0x1227   : > { %v12396_v38 = vpop.permute.xlu1 %6422  ;;  %v12398_v32 = vpop.permute.xlu0 %6386 }
0x1229   : > { %6306 = vrot.lane.b32.xlu1 %v6177_v8, %s13468_s27  ;;  %6398 = vrot.lane.b32.xlu0 %v12244_v30, %s13463_s25 }
0x122b   : > { %v12403_v17 = vpop.permute.xlu1 %6390  ;;  %v12405_v34 = vpop.permute.xlu0 %6354 }
0x122d   : > { %6366 = vrot.lane.b32.xlu0 %v12244_v30, %s13465_s1  ;;  %6276 = vrot.lane.b32.xlu1 %v12251_v47, %s13518_s7 }
0x122f   : > { %v12411_v53 = vpop.permute.xlu1 %6358  ;;  %v12413_v35 = vpop.permute.xlu0 %6322 }
0x1231   : > { %6334 = vrot.lane.b32.xlu0 %v12244_v30, %s13467_s26  ;;  %6244 = vrot.lane.b32.xlu1 %v12251_v47, %s13464_s4 }
0x1233   : > { %v12419_v5 = vpop.permute.xlu1 %6326  ;;  %v12421_v7 = vpop.permute.xlu0 %6292 }
0x1235   : > { %6302 = vrot.lane.b32.xlu0 %v12244_v30, %s13468_s27  ;;  %6212 = vrot.lane.b32.xlu1 %v12251_v47, %s13519_s0 }
0x1237   : > { %v12427_v10 = vpop.permute.xlu1 %6200  ;;  %v12429_v56 = vpop.permute.xlu0 %6476 }
0x1239   : > { %6488 = vrot.lane.b32.xlu0 %v12244_v30, %s13469_s14  ;;  %6436 = vrot.lane.b32.xlu1 %v12251_v47, %s13466_s28 }
0x123b   : > { %v12435_v54 = vpop.permute.xlu1 %6264  ;;  %v12437_v36 = vpop.permute.xlu0 %6198 }
0x123d   : > { %6210 = vrot.lane.b32.xlu0 %v6177_v8, %s13519_s0  ;;  %6404 = vrot.lane.b32.xlu1 %v12251_v47, %s13463_s25 }
0x123f   : > { %v12442_v4 = vpop.permute.xlu1 %6232  ;;  %v12444_v42 = vpop.permute.xlu0 %6294 }
0x1241   : > { %6492 = vrot.lane.b32.xlu0 %v6177_v8, %s13469_s14  ;;  %6372 = vrot.lane.b32.xlu1 %v12251_v47, %s13465_s1 }
0x1243   : > { %v12449_v16 = vpop.permute.xlu1 %6424  ;;  %v12451_v13 = vpop.permute.xlu0 %6480 }
0x1245   : > { %6278 = vrot.lane.b32.xlu0 %v6179_v2, %s13518_s7  ;;  %6340 = vrot.lane.b32.xlu1 %v12251_v47, %s13467_s26 }
0x1247   : > { %v12456_v55 = vpop.permute.xlu1 %6392  ;;  %v12458_v11 = vpop.permute.xlu0 %6202 }
0x1249   : > { %6308 = vrot.lane.b32.xlu1 %v12251_v47, %s13468_s27  ;;  %6246 = vrot.lane.b32.xlu0 %v6179_v2, %s13464_s4 }
0x124b   : > { %v12463_v3 = vpop.permute.xlu1 %6360  ;;  %v12465_v33 = vpop.permute.xlu0 %6266 }
0x124d   : > { %6496 = vrot.lane.b32.xlu1 %v6179_v2, %s13469_s14  ;;  %6214 = vrot.lane.b32.xlu0 %v6179_v2, %s13519_s0 }
0x124f   : > { %v12469_v12 = vpop.permute.xlu1 %6328  ;;  %v12471_v43 = vpop.permute.xlu0 %6234 }
0x1251   : > { %6550 = vrot.lane.b32.xlu1 %v12332_v46, %s13469_s14  ;;  %6438 = vrot.lane.b32.xlu0 %v6179_v2, %s13466_s28  ;;  %v6409_v46 = vsel %vm1270_vm3, %v12398_v32, %v12350_v50 }
0x1253   : > { %v12476_v57 = vpop.permute.xlu1 %6296  ;;  %v12478_v0 = vpop.permute.xlu0 %6426 }
0x1255   : > { %6526 = vrot.lane.b32.xlu1 %v12338_v31, %s13469_s14  ;;  %6406 = vrot.lane.b32.xlu0 %v6179_v2, %s13463_s25 }
0x1257   : > { %v12483_v30 = vpop.permute.xlu1 %6484  ;;  %v12485_v27 = vpop.permute.xlu0 %6394 }
0x1259   : > { %6502 = vrot.lane.b32.xlu1 %v12326_v1, %s13469_s14  ;;  %6374 = vrot.lane.b32.xlu0 %v6179_v2, %s13465_s1 }
0x125b   : > { %v12490_v40 = vpop.permute.xlu1 %6204  ;;  %v12492_v60 = vpop.permute.xlu0 %6362 }
0x125d   : > { %6670 = vrot.lane.b32.xlu1 %v12344_v61, %s13469_s14  ;;  %6342 = vrot.lane.b32.xlu0 %v6179_v2, %s13467_s26  ;;  %s824_s26 = scalar_lea.vmem %s13291_s23, %s8410_s29 }
0x125f   : > { %v12497_v63 = vpop.permute.xlu1 %6208  ;;  %v12499_v29 = vpop.permute.xlu0 %6330 }
0x1261   : > { %6646 = vrot.lane.b32.xlu1 %v12350_v50, %s13469_s14  ;;  %6310 = vrot.lane.b32.xlu0 %v6179_v2, %s13468_s27  ;;  %v6440_v2 = vsel %vm1282_vm8, %v12334_v15, %v12391_v21 }
0x1263   : > { %v12504_v6 = vpop.permute.xlu1 %6272  ;;  %v12506_v37 = vpop.permute.xlu0 %6298 }
0x1265   : > { %6622 = vrot.lane.b32.xlu1 %v12356_v51, %s13469_s14  ;;  %6494 = vrot.lane.b32.xlu0 %v12251_v47, %s13469_s14  ;;  %v6280_v47 = vsel %vm1211_vm12, %v12322_v18, %v12377_v20  ;;  %v6408_v18 = vsel %vm1270_vm3, %v12340_v19, %v12398_v32 }
0x1267   : > { %v12512_v49 = vpop.permute.xlu1 %6240  ;;  %v12514_v8 = vpop.permute.xlu0 %6482 }
0x1269   : > { %6548 = vrot.lane.b32.xlu0 %v6281_v28, %s13469_s14  ;;  %6666 = vrot.lane.b32.xlu1 %v6440_v2, %s13469_s14  ;;  %v6249_v2 = vsel %vm1196_vm13, %v12384_v58, %v12338_v31  ;;  %v6377_v31 = vsel %vm1255_vm15, %v12405_v34, %v12356_v51 }
0x126b   : > { %v12524_v26 = vpop.permute.xlu1 %6432  ;;  %v12526_v25 = vpop.permute.xlu0 %6268 }
0x126d   : > { %6546 = vrot.lane.b32.xlu0 %v6280_v47, %s13469_s14  ;;  %6644 = vrot.lane.b32.xlu1 %v6409_v46, %s13469_s14  ;;  %v6248_v47 = vsel %vm1196_vm13, %v12328_v22, %v12384_v58  ;;  %v6217_v46 = vsel %vm1181_vm4, %v12370_v41, %v12326_v1  ;;  %v6376_v22 = vsel %vm1255_vm15, %v12346_v62, %v12405_v34 }
0x126e   : > { %v6441_v34 = vsel %vm1282_vm8, %v12391_v21, %v12344_v61 }
0x126f   : > { %v12536_v15 = vpop.permute.xlu1 %6400  ;;  %v12538_v28 = vpop.permute.xlu0 %6236 }
0x1271   : > { %6524 = vrot.lane.b32.xlu0 %v6249_v2, %s13469_s14  ;;  %6642 = vrot.lane.b32.xlu1 %v6408_v18, %s13469_s14  ;;  %v6216_v2 = vsel %vm1181_vm4, %v12320_v48, %v12370_v41  ;;  %v6283_v18 = vsel %vm1211_vm12, %v12435_v54, %v12465_v33 }
0x1273   : > { %v12548_v50 = vpop.permute.xlu1 %6368  ;;  %v12550_v20 = vpop.permute.xlu0 %6428 }
0x1275   : > { %6522 = vrot.lane.b32.xlu0 %v6248_v47, %s13469_s14  ;;  %6620 = vrot.lane.b32.xlu1 %v6377_v31, %s13469_s14  ;;  %v6282_v47 = vsel %vm1211_vm12, %v12382_v59, %v12435_v54  ;;  %v6251_v31 = vsel %vm1196_vm13, %v12442_v4, %v12471_v43  ;;  %v6250_v54 = vsel %vm1196_vm13, %v12389_v44, %v12442_v4 }
0x1276   : > { %v6218_v4 = vsel %vm1181_vm4, %v12437_v36, %v12427_v10 }
0x1277   : > { %v12560_v19 = vpop.permute.xlu1 %6336  ;;  %v12562_v32 = vpop.permute.xlu0 %6396 }
0x1279   : > { %6500 = vrot.lane.b32.xlu0 %v6217_v46, %s13469_s14  ;;  %6618 = vrot.lane.b32.xlu1 %v6376_v22, %s13469_s14 }
0x127b   : > { %v12572_v51 = vpop.permute.xlu1 %6304  ;;  %v12574_v58 = vpop.permute.xlu0 %6364 }
0x127d   : > { %6498 = vrot.lane.b32.xlu0 %v6216_v2, %s13469_s14  ;;  %6676 = vrot.lane.b32.xlu1 %v12478_v0, %s13469_s14 }
0x127f   : > { %v12582_v1 = vpop.permute.xlu1 %6490  ;;  %v12584_v62 = vpop.permute.xlu0 %6332 }
0x1281   : > { %6668 = vrot.lane.b32.xlu0 %v6441_v34, %s13469_s14  ;;  %6554 = vrot.lane.b32.xlu1 %v6283_v18, %s13469_s14  ;;  %v6442_v18 = vsel %vm1282_vm8, %v12396_v38, %v12449_v16 }
0x1283   : > { %v12594_v48 = vpop.permute.xlu1 %6274  ;;  %v12596_v41 = vpop.permute.xlu0 %6300 }
0x1285   : > { %6556 = vrot.lane.b32.xlu0 %v12465_v33, %s13469_s14  ;;  %6552 = vrot.lane.b32.xlu1 %v6282_v47, %s13469_s14  ;;  %v6443_v47 = vsel %vm1282_vm8, %v12449_v16, %v12478_v0  ;;  %v6410_v16 = vsel %vm1270_vm3, %v12403_v17, %v12456_v55 }
0x1287   : > { %v12604_v61 = vpop.permute.xlu1 %6242  ;;  %v12606_v21 = vpop.permute.xlu0 %6486 }
0x1289   : > { %6532 = vrot.lane.b32.xlu0 %v12471_v43, %s13469_s14  ;;  %6530 = vrot.lane.b32.xlu1 %v6251_v31, %s13469_s14  ;;  %v6219_v43 = vsel %vm1181_vm4, %v12427_v10, %v12458_v11  ;;  %v6411_v31 = vsel %vm1270_vm3, %v12456_v55, %v12485_v27  ;;  %v6378_v55 = vsel %vm1255_vm15, %v12411_v53, %v12463_v3 }
0x128b   : > { %v12614_v46 = vpop.permute.xlu1 %6434  ;;  %v12616_v59 = vpop.permute.xlu0 %6206 }
0x128d   : > { %6508 = vrot.lane.b32.xlu0 %v12458_v11, %s13469_s14  ;;  %6528 = vrot.lane.b32.xlu1 %v6250_v54, %s13469_s14 }
0x128f   : > { %v12624_v33 = vpop.permute.xlu1 %6402  ;;  %v6271_v22 = vpop.permute.xlu0 %6270 }
0x1290   : > { %v6285_v53 = vsel %vm1211_vm12, %v6271_v22, %v12504_v6 }
0x1291   : > { %6506 = vrot.lane.b32.xlu1 %v6219_v43, %s13469_s14  ;;  %6652 = vrot.lane.b32.xlu0 %v12485_v27, %s13469_s14  ;;  %v6379_v43 = vsel %vm1255_vm15, %v12463_v3, %v12492_v60 }
0x1293   : > { %v12632_v2 = vpop.permute.xlu1 %6370  ;;  %v6239_v44 = vpop.permute.xlu0 %6238 }
0x1294   : > { %v6253_v3 = vsel %vm1196_vm13, %v6239_v44, %v12512_v49  ;;  %v6252_v23 = vsel %vm1196_vm13, %v12538_v28, %v6239_v44 }
0x1295   : > { %6504 = vrot.lane.b32.xlu1 %v6218_v4, %s13469_s14  ;;  %6628 = vrot.lane.b32.xlu0 %v12492_v60, %s13469_s14 }
0x1297   : > { %v12640_v34 = vpop.permute.xlu1 %6338  ;;  %v6431_v11 = vpop.permute.xlu0 %6430 }
0x1298   : > { %v6445_v44 = vsel %vm1282_vm8, %v6431_v11, %v12524_v26 }
0x1299   : > { %6672 = vrot.lane.b32.xlu1 %v6442_v18, %s13469_s14  ;;  %6674 = vrot.lane.b32.xlu0 %v6443_v47, %s13469_s14 }
0x129b   : > { %v12650_v10 = vpop.permute.xlu1 %6306  ;;  %v6399_v36 = vpop.permute.xlu0 %6398 }
0x129d   : > { %6538 = vrot.lane.b32.xlu1 %v12512_v49, %s13469_s14  ;;  %6650 = vrot.lane.b32.xlu0 %v6411_v31, %s13469_s14 }
0x129f   : > { %v12658_v38 = vpop.permute.xlu1 %6276  ;;  %v6367_v54 = vpop.permute.xlu0 %6366 }
0x12a1   : > { %6514 = vrot.lane.b32.xlu1 %v12497_v63, %s13469_s14  ;;  %6648 = vrot.lane.b32.xlu0 %v6410_v16, %s13469_s14 }
0x12a3   : > { %v12666_v0 = vpop.permute.xlu1 %6244  ;;  %v12668_v27 = vpop.permute.xlu0 %6334 }
0x12a5   : > { %6682 = vrot.lane.b32.xlu1 %v12524_v26, %s13469_s14  ;;  %6626 = vrot.lane.b32.xlu0 %v6379_v43, %s13469_s14 }
0x12a7   : > { %v12676_v4 = vpop.permute.xlu1 %6212  ;;  %v12678_v17 = vpop.permute.xlu0 %6302 }
0x12a9   : > { %6658 = vrot.lane.b32.xlu1 %v12536_v15, %s13469_s14  ;;  %6624 = vrot.lane.b32.xlu0 %v6378_v55, %s13469_s14  ;;  %v6284_v55 = vsel %vm1211_vm12, %v12526_v25, %v6271_v22  ;;  %v6413_v22 = vsel %vm1270_vm3, %v6399_v36, %v12536_v15 }
0x12ab   : > { %v12686_v18 = vpop.permute.xlu1 %6436  ;;  %v12688_v60 = vpop.permute.xlu0 %6488 }
0x12ad   : > { %6634 = vrot.lane.b32.xlu1 %v12548_v50, %s13469_s14  ;;  %6562 = vrot.lane.b32.xlu0 %v12504_v6, %s13469_s14 }
0x12af   : > { %v12694_v47 = vpop.permute.xlu1 %6404  ;;  %v12696_v31 = vpop.permute.xlu0 %6210 }
0x12b1   : > { %6560 = vrot.lane.b32.xlu1 %v6285_v53, %s13469_s14  ;;  %6536 = vrot.lane.b32.xlu0 %v6253_v3, %s13469_s14  ;;  %v6221_v53 = vsel %vm1181_vm4, %v12616_v59, %v12497_v63  ;;  %v6444_v3 = vsel %vm1282_vm8, %v12550_v20, %v6431_v11 }
0x12b3   : > { %v12704_v16 = vpop.permute.xlu1 %6372  ;;  %v12706_v43 = vpop.permute.xlu0 %6492 }
0x12b5   : > { %6558 = vrot.lane.b32.xlu1 %v6284_v55, %s13469_s14  ;;  %6534 = vrot.lane.b32.xlu0 %v6252_v23, %s13469_s14  ;;  %v6220_v23 = vsel %vm1181_vm4, %v12490_v40, %v12616_v59  ;;  %v6412_v55 = vsel %vm1270_vm3, %v12562_v32, %v6399_v36  ;;  %v6381_v59 = vsel %vm1255_vm15, %v6367_v54, %v12548_v50 }
0x12b6   : > { %v6380_v32 = vsel %vm1255_vm15, %v12574_v58, %v6367_v54 }
0x12b7   : > { %v12714_v6 = vpop.permute.xlu1 %6340  ;;  %v6279_v49 = vpop.permute.xlu0 %6278 }
0x12b9   : > { %6512 = vrot.lane.b32.xlu0 %v6221_v53, %s13469_s14  ;;  %6678 = vrot.lane.b32.xlu1 %v6444_v3, %s13469_s14 }
0x12bb   : > { %v12723_v25 = vpop.permute.xlu1 %6308  ;;  %v6247_v28 = vpop.permute.xlu0 %6246 }
0x12bd   : > { %6510 = vrot.lane.b32.xlu0 %v6220_v23, %s13469_s14  ;;  %6656 = vrot.lane.b32.xlu1 %v6413_v22, %s13469_s14  ;;  %v6287_v23 = vsel %vm1211_vm12, %v12658_v38, %v6279_v49 }
0x12bf   : > { %v12732_v63 = vpop.permute.xlu1 %6496  ;;  %v6215_v20 = vpop.permute.xlu0 %6214 }
0x12c1   : > { %6680 = vrot.lane.b32.xlu0 %v6445_v44, %s13469_s14  ;;  %6654 = vrot.lane.b32.xlu1 %v6412_v55, %s13469_s14  ;;  %v6286_v55 = vsel %vm1211_vm12, %v12594_v48, %v12658_v38  ;;  %vm13688_vm12 = vmmov %vm13686_vm5 }
0x12c3   : > { %v12740_v40 = vpop.permute.xlu1 %6550  ;;  %v6439_v15 = vpop.permute.xlu0 %6438 }
0x12c5   : > { %6632 = vrot.lane.b32.xlu1 %v6381_v59, %s13469_s14  ;;  %6568 = vrot.lane.b32.xlu0 %v6279_v49, %s13469_s14  ;;  %v6447_v59 = vsel %vm1282_vm8, %v12686_v18, %v6439_v15 }
0x12c7   : > { %v12746_v53 = vpop.permute.xlu1 %6526  ;;  %v12748_v26 = vpop.permute.xlu0 %6406 }
0x12c9   : > { %6630 = vrot.lane.b32.xlu1 %v6380_v32, %s13469_s14  ;;  %6544 = vrot.lane.b32.xlu0 %v6247_v28, %s13469_s14 }
0x12cb   : > { %v12754_v11 = vpop.permute.xlu1 %6502  ;;  %v12756_v36 = vpop.permute.xlu0 %6374 }
0x12cd   : > { %6520 = vrot.lane.b32.xlu0 %v6215_v20, %s13469_s14  ;;  %6688 = vrot.lane.b32.xlu1 %v6439_v15, %s13469_s14  ;;  %v6254_v15 = vsel %vm1196_vm13, %v12604_v61, %v12666_v0  ;;  %v6346_v61 = vsel %vm13688_vm12, %v12419_v5, %v12469_v12 }
0x12cf   : > { %v12760_v50 = vpop.permute.xlu1 %6670  ;;  %v12762_v3 = vpop.permute.xlu0 %6342 }
0x12d1   : > { %6664 = vrot.lane.b32.xlu1 %v12748_v26, %s13469_s14  ;;  %6640 = vrot.lane.b32.xlu0 %v12756_v36, %s13469_s14 }
0x12d3   : > { %v12768_v58 = vpop.permute.xlu1 %6646  ;;  %v12770_v54 = vpop.permute.xlu0 %6310 }
0x12d4   : > { %13683 = vst [vmem:[#allocation35_spill] sm:$0xff] %v12768_v58 }
0x12d5   : > { %6566 = vrot.lane.b32.xlu1 %v6287_v23, %s13469_s14  ;;  %6616 = vrot.lane.b32.xlu0 %v12762_v3, %s13469_s14  ;;  %v6255_v23 = vsel %vm1196_vm13, %v12666_v0, %v6247_v28  ;;  %v6347_v28 = vsel %vm13686_vm5, %v12469_v12, %v12499_v29  ;;  %vm13691_vm13 = vcmask 891904  }
0x12d6   : > { %vm13700_vm0 = vmmov %vm13691_vm13 }
0x12d7   : > { %v12777_v22 = vpop.permute.xlu1 %6622  ;;  %v12779_v44 = vpop.permute.xlu0 %6494  ;;  %vm13701_vm14 = vmmov %vm13700_vm0 }
0x12d8   : > { %13684 = vst [vmem:[#allocation30_spill] sm:$0xff] %v12777_v22  ;;  %vm13705_vm2 = vmmov %vm13700_vm0 }
0x12d9   : > { %6564 = vrot.lane.b32.xlu1 %v6286_v55, %s13469_s14  ;;  %6686 = vrot.lane.b32.xlu0 %v6447_v59, %s13469_s14  ;;  %vm13706_vm9 = vmmov %vm13700_vm0 }
0x12da   : > { %vm13708_vm1 = vmmov %vm13700_vm0 }
0x12db   : > { %v6667_v49 = vpop.permute.xlu1 %6666  ;;  %v12788_v32 = vpop.permute.xlu0 %6548  ;;  %vm13711_vm12 = vmmov %vm13700_vm0 }
0x12dd   : > { %6542 = vrot.lane.b32.xlu1 %v6255_v23, %s13469_s14  ;;  %6604 = vrot.lane.b32.xlu0 %v12499_v29, %s13469_s14 }
0x12df   : > { %v12795_v22 = vpop.permute.xlu1 %6644  ;;  %v6547_v48 = vpop.permute.xlu0 %6546 }
0x12e0   : > { %13685 = vst [vmem:[#allocation25_spill] sm:$0xff] %v12795_v22  ;;  %v12799_v38 = vsel %vm1372_vm10, %v6547_v48, %v12788_v32  ;;  %v6223_v48 = vsel %vm1181_vm4, %v12676_v4, %v6215_v20 }
0x12e1   : > { %6540 = vrot.lane.b32.xlu1 %v6254_v15, %s13469_s14  ;;  %6602 = vrot.lane.b32.xlu0 %v6347_v28, %s13469_s14  ;;  %v6222_v15 = vsel %vm1181_vm4, %v12696_v31, %v12676_v4  ;;  %vm13692_vm4 = vmmov %vm13686_vm5 }
0x12e2   : > { %vm13710_vm5 = vmmov %vm13700_vm0 }
0x12e3   : > { %v6643_v55 = vpop.permute.xlu1 %6642  ;;  %v12809_v59 = vpop.permute.xlu0 %6524 }
0x12e4   : > { %v12813_v23 = vsel %vm1372_vm10, %v6643_v55, %v12795_v22 }
0x12e5   : > { %13687 = vst [vmem:[#allocation40_spill] sm:$0xff] %v12813_v23  ;;  %6518 = vrot.lane.b32.xlu1 %v6223_v48, %s13469_s14  ;;  %6600 = vrot.lane.b32.xlu0 %v6346_v61, %s13469_s14  ;;  %v6446_v48 = vsel %vm1282_vm8, %v12614_v46, %v12686_v18  ;;  %v6315_v61 = vsel %vm13691_vm13, %v12476_v57, %v12506_v37  ;;  %vm13693_vm8 = vmmov %vm13692_vm4  ;;  %vm13722_vm13 = vcmask 261120  }
0x12e6   : > { %v6349_v46 = vsel %vm13692_vm4, %v12668_v27, %v12560_v19 }
0x12e7   : > { %v12822_v29 = vpop.permute.xlu1 %6620  ;;  %v6523_v0 = vpop.permute.xlu0 %6522 }
0x12e8   : > { %13689 = vst [vmem:[#allocation39_spill] sm:$0xff] %v12822_v29  ;;  %v12829_v28 = vsel %vm1372_vm10, %v6523_v0, %v12809_v59 }
0x12e9   : > { %6516 = vrot.lane.b32.xlu1 %v6222_v15, %s13469_s14  ;;  %6592 = vrot.lane.b32.xlu0 %v12770_v54, %s13469_s14 }
0x12eb   : > { %v6619_v5 = vpop.permute.xlu1 %6618  ;;  %v12834_v12 = vpop.permute.xlu0 %6500 }
0x12ec   : > { %v12838_v20 = vsel %vm1372_vm10, %v6619_v5, %v12822_v29 }
0x12ed   : > { %13690 = vst [vmem:[#allocation32_spill] sm:$0xff] %v12838_v20  ;;  %6610 = vrot.lane.b32.xlu1 %v12560_v19, %s13469_s14  ;;  %6580 = vrot.lane.b32.xlu0 %v12506_v37, %s13469_s14  ;;  %v6415_v37 = vsel %vm1270_vm3, %v12694_v47, %v12748_v26  ;;  %v6414_v19 = vsel %vm1270_vm3, %v12624_v33, %v12694_v47  ;;  %vm13694_vm3 = vmmov %vm13692_vm4  ;;  %vm13746_vm4 = vmmov 0  }
0x12ee   : > { %v6345_v47 = vsel %vm13694_vm3, %v12413_v35, %v12362_v9  ;;  %vm13696_vm11 = vmmov %vm13694_vm3 }
0x12ef   : > { %v12844_v4 = vpop.permute.xlu1 %6676  ;;  %v6499_v31 = vpop.permute.xlu0 %6498  ;;  %vm13697_vm7 = vmmov %vm13694_vm3 }
0x12f0   : > { %v12848_v55 = vsel %vm1372_vm10, %v6499_v31, %v12834_v12 }
0x12f1   : > { %6684 = vrot.lane.b32.xlu1 %v6446_v48, %s13469_s14  ;;  %6578 = vrot.lane.b32.xlu0 %v6315_v61, %s13469_s14 }
0x12f3   : > { %v12858_v0 = vpop.permute.xlu1 %6554  ;;  %v12860_v15 = vpop.permute.xlu0 %6668 }
0x12f4   : > { %v12864_v5 = vsel %vm1372_vm10, %v6667_v49, %v12860_v15  ;;  %v6348_v49 = vsel %vm13693_vm8, %v12584_v62, %v12668_v27 }
0x12f5   : > { %6608 = vrot.lane.b32.xlu1 %v6349_v46, %s13469_s14  ;;  %6662 = vrot.lane.b32.xlu0 %v6415_v37, %s13469_s14  ;;  %v6383_v46 = vsel %vm1255_vm15, %v12704_v16, %v12756_v36  ;;  %v6382_v36 = vsel %vm1255_vm15, %v12632_v2, %v12704_v16  ;;  %vm13699_vm15 = vmmov %vm13694_vm3 }
0x12f7   : > { %v6553_v18 = vpop.permute.xlu1 %6552  ;;  %v12874_v31 = vpop.permute.xlu0 %6556 }
0x12f8   : > { %v12878_v48 = vsel %vm1372_vm10, %v6553_v18, %v12858_v0 }
0x12f9   : > { %6606 = vrot.lane.b32.xlu1 %v6348_v49, %s13469_s14  ;;  %6660 = vrot.lane.b32.xlu0 %v6414_v19, %s13469_s14  ;;  %v6351_v49 = vsel %vm13696_vm11, %v12714_v6, %v12762_v3  ;;  %v12941_v3 = vld [vmem:[%s13290_s21] sm:$0x7] }
0x12fb   : > { %v12888_v26 = vpop.permute.xlu1 %6530  ;;  %v12890_v61 = vpop.permute.xlu0 %6532 }
0x12fd   : > { %6598 = vrot.lane.b32.xlu1 %v12362_v9, %s13469_s14  ;;  %6638 = vrot.lane.b32.xlu0 %v6383_v46, %s13469_s14  ;;  %v6344_v9 = vsel %vm13697_vm7, %v12352_v14, %v12413_v35  ;;  %v6350_v46 = vsel %vm13699_vm15, %v12640_v34, %v12714_v6  ;;  %v6317_v6 = vsel %vm13701_vm14, %v12678_v17, %v12572_v51 }
0x12ff   : > { %v6529_v62 = vpop.permute.xlu1 %6528  ;;  %v12898_v27 = vpop.permute.xlu0 %6508 }
0x1300   : > { %v12902_v33 = vsel %vm1372_vm10, %v6529_v62, %v12888_v26  ;;  %v6319_v62 = vsel %vm13700_vm0, %v12723_v25, %v12770_v54 }
0x1301   : > { %6596 = vrot.lane.b32.xlu1 %v6345_v47, %s13469_s14  ;;  %6636 = vrot.lane.b32.xlu0 %v6382_v36, %s13469_s14  ;;  %v13702_v47 = vld [vmem:[#allocation13_spill] sm:$0xff] }
0x1302   : > { %v12955_v36 = vrot.slane %v12941_v3, %v13702_v47 }
0x1303   : > { %v12912_v37 = vpop.permute.xlu1 %6506  ;;  %v12914_v18 = vpop.permute.xlu0 %6652 }
0x1304   : > { %13695 = vst [vmem:[#allocation37_spill] sm:$0xff] %v12914_v18  ;;  %13703 = vst [vmem:[#allocation12_spill] sm:$0xff] %v12955_v36  ;;  %6936 = vmatprep.mubr.f32.mxu1 %v12955_v36 }
0x1305   : > { %6594 = vrot.lane.b32.xlu1 %v6344_v9, %s13469_s14  ;;  %6614 = vrot.lane.b32.xlu0 %v6351_v49, %s13469_s14  ;;  %v6316_v9 = vsel %vm13705_vm2, %v12596_v41, %v12678_v17  ;;  %v6313_v17 = vsel %vm13710_vm5, %v12368_v39, %v12421_v7 }
0x1307   : > { %v6505_v2 = vpop.permute.xlu1 %6504  ;;  %v12924_v16 = vpop.permute.xlu0 %6628 }
0x1308   : > { %13698 = vst [vmem:[#allocation27_spill] sm:$0xff] %v12924_v16  ;;  %v12928_v19 = vsel %vm1372_vm10, %v6505_v2, %v12912_v37 }
0x1309   : > { %6586 = vrot.lane.b32.xlu1 %v12572_v51, %s13469_s14  ;;  %6612 = vrot.lane.b32.xlu0 %v6350_v46, %s13469_s14  ;;  %v6318_v51 = vsel %vm13706_vm9, %v12650_v10, %v12723_v25  ;;  %v6312_v25 = vsel %vm13711_vm12, %v12358_v52, %v12368_v39 }
0x130b   : > { %v6673_v14 = vpop.permute.xlu1 %6672  ;;  %v12936_v35 = vpop.permute.xlu0 %6674 }
0x130c   : > { %v12948_v34 = vsel %vm1372_vm10, %v6673_v14, %v12936_v35 }
0x130d   : > { %6584 = vrot.lane.b32.xlu1 %v6317_v6, %s13469_s14  ;;  %6590 = vrot.lane.b32.xlu0 %v6319_v62, %s13469_s14  ;;  %v6314_v62 = vsel %vm13708_vm1, %v12444_v42, %v12476_v57  ;;  %v6449_v42 = vld [vmem:[#allocation5] sm:$0x1] }
0x130f   : > { %v12960_v49 = vpop.permute.xlu1 %6538  ;;  %v12962_v54 = vpop.permute.xlu0 %6650 }
0x1310   : > { %13704 = vst [vmem:[#allocation36_spill] sm:$0xff] %v12962_v54 }
0x1311   : > { %6582 = vrot.lane.b32.xlu1 %v6316_v9, %s13469_s14  ;;  %6588 = vrot.lane.b32.xlu0 %v6318_v51, %s13469_s14 }
0x1313   : > { %v12972_v2 = vpop.permute.xlu1 %6514  ;;  %v6649_v46 = vpop.permute.xlu0 %6648 }
0x1314   : > { %v12976_v14 = vsel %vm1372_vm10, %v6649_v46, %v12962_v54 }
0x1315   : > { %13707 = vst [vmem:[#allocation34_spill] sm:$0xff] %v12976_v14  ;;  %6574 = vrot.lane.b32.xlu1 %v12421_v7, %s13469_s14  ;;  %6576 = vrot.lane.b32.xlu0 %v6314_v62, %s13469_s14 }
0x1317   : > { %v12984_v41 = vpop.permute.xlu1 %6682  ;;  %v12986_v10 = vpop.permute.xlu0 %6626 }
0x1318   : > { %13709 = vst [vmem:[#allocation26_spill] sm:$0xff] %v12986_v10 }
0x1319   : > { %6572 = vrot.lane.b32.xlu1 %v6313_v17, %s13469_s14  ;;  %6570 = vrot.lane.b32.xlu0 %v6312_v25, %s13469_s14 }
0x131b   : > { %v12996_v57 = vpop.permute.xlu1 %6658  ;;  %v6625_v6 = vpop.permute.xlu0 %6624 }
0x131c   : > { %13712 = vst [vmem:[#allocation23_spill] sm:$0xff] %v12996_v57  ;;  %v13000_v47 = vsel %vm1372_vm10, %v6625_v6, %v12986_v10 }
0x131d   : > { %13713 = vst [vmem:[#allocation22_spill] sm:$0xff] %v13000_v47  ;;  %6452 = vperm.xlu1 %7820, %v6449_v42  }
0x131f   : > { %v13002_v9 = vpop.permute.xlu1 %6634  ;;  %v13004_v7 = vpop.permute.xlu0 %6562 }
0x1320   : > { %13714 = vst [vmem:[#allocation38_spill] sm:$0xff] %v13002_v9 }
0x1323   : > { %v6561_v51 = vpop.permute.xlu1 %6560  ;;  %v6537_v46 = vpop.permute.xlu0 %6536 }
0x1327   : > { %v6559_v52 = vpop.permute.xlu1 %6558  ;;  %v6535_v39 = vpop.permute.xlu0 %6534 }
0x132b   : > { %v13006_v62 = vpop.permute.xlu1 %6678  ;;  %v6513_v17 = vpop.permute.xlu0 %6512 }
0x132f   : > { %v13008_v25 = vpop.permute.xlu1 %6656  ;;  %v6511_v36 = vpop.permute.xlu0 %6510 }
0x1330   : > { %13715 = vst [vmem:[#allocation18_spill] sm:$0xff] %v13008_v25  ;;  %v6719_v25 = vsel %vm1372_vm10, %v6561_v51, %v13004_v7 }
0x1333   : > { %v13010_v20 = vpop.permute.xlu1 %6654  ;;  %v13012_v29 = vpop.permute.xlu0 %6680 }
0x1334   : > { %13716 = vst [vmem:[#allocation15_spill] sm:$0xff] %v13010_v20 }
0x1337   : > { %v13014_v6 = vpop.permute.xlu1 %6632  ;;  %v13016_v42 = vpop.permute.xlu0 %6568 }
0x1338   : > { %13717 = vst [vmem:[#allocation16_spill] sm:$0xff] %v13014_v6 }
0x133b   : > { %v13018_v47 = vpop.permute.xlu1 %6630  ;;  %v13020_v10 = vpop.permute.xlu0 %6544 }
0x133c   : > { %13718 = vst [vmem:[#allocation28_spill] sm:$0xff] %v13018_v47 }
0x133f   : > { %v13022_v16 = vpop.permute.xlu1 %6688  ;;  %v13024_v9 = vpop.permute.xlu0 %6520 }
0x1343   : > { %v13026_v23 = vpop.permute.xlu1 %6664  ;;  %v13028_v22 = vpop.permute.xlu0 %6640 }
0x1344   : > { %13719 = vst [vmem:[#allocation13_spill] sm:$0xff] %v13028_v22  ;;  %v6718_v22 = vsel %vm1372_vm10, %v6559_v52, %v6561_v51 }
0x1347   : > { %v6567_v58 = vpop.permute.xlu1 %6566  ;;  %v13030_v14 = vpop.permute.xlu0 %6616 }
0x1348   : > { %13720 = vst [vmem:[#allocation42_spill] sm:$0xff] %v13030_v14  ;;  %v6721_v6 = vsel %vm1372_vm10, %v6567_v58, %v13016_v42 }
0x1349   : > { %6872 = vmatprep.subr.mxu1 %v6721_v6  ;;  %v6717_v6 = vsel %vm1372_vm10, %v12858_v0, %v12874_v31  ;;  %v6711_v0 = vsel %vm1372_vm10, %v6537_v46, %v12960_v49 }
0x134b   : > { %v6565_v54 = vpop.permute.xlu1 %6564  ;;  %v6687_v18 = vpop.permute.xlu0 %6686 }
0x134c   : > { %v6720_v47 = vsel %vm1372_vm10, %v6565_v54, %v6567_v58  ;;  %v6761_v20 = vsel %vm1372_vm10, %v6687_v18, %v13022_v16  ;;  %v6715_v58 = vsel %vm1372_vm10, %v12788_v32, %v12740_v40 }
0x134d   : > { %6873 = vmatpush1.msra.mxu1 %v6720_v47  ;;  %6967 = vmatprep.subr.mxu0 %v6761_v20 }
0x134e   : > { %6874 = vmatprep.subr.mxu1 %v6719_v25 }
0x134f   : > { %v6543_v14 = vpop.permute.xlu1 %6542  ;;  %6875 = vmatpush1.msra.mxu1 %v6718_v22  ;;  %v13040_v57 = vpop.permute.xlu0 %6604 }
0x1350   : > { %6876 = vmatprep.subr.mxu1 %v6717_v6  ;;  %v6713_v22 = vsel %vm1372_vm10, %v6543_v14, %v13020_v10 }
0x1351   : > { %6877 = vmatpush1.msra.mxu1 %v12878_v48  ;;  %v6710_v48 = vsel %vm1372_vm10, %v6535_v39, %v6537_v46 }
0x1352   : > { %6878 = vmatprep.subr.mxu1 %v6715_v58  ;;  %v6699_v58 = vsel %vm1372_vm10, %v12834_v12, %v12754_v11  ;;  %v6695_v12 = vsel %vm1372_vm10, %v12688_v60, %v12582_v1 }
0x1353   : > { %v6541_v20 = vpop.permute.xlu1 %6540  ;;  %6879 = vmatpush1.msra.mxu1 %v12799_v38  ;;  %v13050_v54 = vpop.permute.xlu0 %6602  ;;  %v6709_v38 = vsel %vm1372_vm10, %v12888_v26, %v12890_v61  ;;  %v6703_v26 = vsel %vm1372_vm10, %v6513_v17, %v12972_v2 }
0x1354   : > { %v6712_v47 = vsel %vm1372_vm10, %v6541_v20, %v6543_v14  ;;  %6880 = vmatprep.subr.mxu1 %v6713_v22  ;;  %v6707_v14 = vsel %vm1372_vm10, %v12809_v59, %v12746_v53  ;;  %v6758_v22 = vsel %vm1372_vm10, %v13006_v62, %v13012_v29  ;;  %v13721_v62 = vld [vmem:[#allocation17_spill] sm:$0xff] }
0x1355   : > { %6881 = vmatpush1.msra.mxu1 %v6712_v47  ;;  %v6693_v47 = vsel %vm1372_vm10, %v12514_v8, %v12483_v30 }
0x1356   : > { %6882 = vmatprep.subr.mxu1 %v6711_v0  ;;  %v6757_v0 = vsel %vm1372_vm10, %v12936_v35, %v12844_v4  ;;  %v13129_v35 = vrot.slane %v12941_v3, %v13721_v62  ;;  %v13740_v62 = vld [vmem:[#allocation39_spill] sm:$0xff] }
0x1357   : > { %v6519_v32 = vpop.permute.xlu1 %6518  ;;  %6883 = vmatpush1.msra.mxu1 %v6710_v48  ;;  %v13058_v51 = vpop.permute.xlu0 %6600 }
0x1358   : > { %6884 = vmatprep.subr.mxu1 %v6709_v38  ;;  %v6705_v39 = vsel %vm1372_vm10, %v6519_v32, %v13024_v9  ;;  %v13725_v38 = vld [vmem:[#allocation15_spill] sm:$0xff] }
0x1359   : > { %6885 = vmatpush1.msra.mxu1 %v12902_v33  ;;  %v6702_v33 = vsel %vm1372_vm10, %v6511_v36, %v6513_v17  ;;  %v6697_v17 = vsel %vm1372_vm10, %v12779_v44, %v12732_v63 }
0x135a   : > { %6886 = vmatprep.subr.mxu1 %v6707_v14 }
0x135b   : > { %v6517_v52 = vpop.permute.xlu1 %6516  ;;  %6887 = vmatpush1.msra.mxu1 %v12829_v28  ;;  %v13068_v46 = vpop.permute.xlu0 %6592  ;;  %v6701_v28 = vsel %vm1372_vm10, %v12912_v37, %v12898_v27  ;;  %v6696_v37 = vsel %vm1372_vm10, %v12706_v43, %v12779_v44  ;;  %v6694_v43 = vsel %vm1372_vm10, %v12606_v21, %v12688_v60  ;;  %v6691_v21 = vsel %vm1372_vm10, %v12429_v56, %v12375_v24 }
0x135c   : > { %v6704_v25 = vsel %vm1372_vm10, %v6517_v52, %v6519_v32  ;;  %6888 = vmatprep.subr.mxu1 %v6705_v39  ;;  %v6755_v60 = vsel %vm1372_vm10, %v12860_v15, %v12760_v50  ;;  %v13723_v32 = vld [vmem:[#allocation23_spill] sm:$0xff]  ;;  %v13726_v52 = vld [vmem:[#allocation37_spill] sm:$0xff]  ;;  %v13727_v39 = vld [vmem:[#allocation36_spill] sm:$0xff] }
0x135d   : > { %6889 = vmatpush1.msra.mxu1 %v6704_v25  ;;  %v6749_v25 = vsel %vm1372_vm10, %v13727_v39, %v13726_v52 }
0x135e   : > { %6890 = vmatprep.subr.mxu1 %v6703_v26  ;;  %v13728_v26 = vld [vmem:[#allocation34_spill] sm:$0xff] }
0x135f   : > { %v13076_v59 = vpop.permute.xlu1 %6610  ;;  %6891 = vmatpush1.msra.mxu1 %v6702_v33  ;;  %v13078_v6 = vpop.permute.xlu0 %6580  ;;  %v13729_v33 = vld [vmem:[#allocation35_spill] sm:$0xff] }
0x1360   : > { %6892 = vmatprep.subr.mxu1 %v6701_v28 }
0x1361   : > { %6893 = vmatpush1.msra.mxu1 %v12928_v19 }
0x1362   : > { %6894 = vmatprep.subr.mxu1 %v6699_v58 }
0x1363   : > { %v6685_v20 = vpop.permute.xlu1 %6684  ;;  %6895 = vmatpush1.msra.mxu1 %v12848_v55  ;;  %v13088_v36 = vpop.permute.xlu0 %6578  ;;  %v6759_v55 = vsel %vm1372_vm10, %v13012_v29, %v12984_v41  ;;  %v6692_v29 = vsel %vm1372_vm10, %v12451_v13, %v12514_v8  ;;  %v6690_v13 = vsel %vm1372_vm10, %v12364_v45, %v12429_v56  ;;  %v13724_v45 = vld [vmem:[#allocation18_spill] sm:$0xff] }
0x1364   : > { %v6760_v19 = vsel %vm1372_vm10, %v6685_v20, %v6687_v18  ;;  %6896 = vmatprep.subr.mxu1 %v6697_v17  ;;  %v6751_v56 = vsel %vm1372_vm10, %v13724_v45, %v13723_v32  ;;  %v13731_v20 = vld [vmem:[#allocation40_spill] sm:$0xff] }
0x1365   : > { %6897 = vmatpush1.msra.mxu1 %v6696_v37  ;;  %6968 = vmatpush1.msra.mxu0 %v6760_v19  ;;  %v13732_v37 = vld [vmem:[#allocation13_spill] sm:$0xff] }
0x1366   : > { %6898 = vmatprep.subr.mxu1 %v6695_v12  ;;  %6969 = vmatprep.subr.mxu0 %v6759_v55  ;;  %v13733_v12 = vld [vmem:[#allocation38_spill] sm:$0xff] }
0x1367   : > { %v13109_v44 = vpop.permute.xlu1 %6608  ;;  %6899 = vmatpush1.msra.mxu1 %v6694_v43  ;;  %6970 = vmatpush1.msra.mxu0 %v6758_v22  ;;  %v6663_v18 = vpop.permute.xlu0 %6662  ;;  %v13735_v22 = vld [vmem:[#allocation28_spill] sm:$0xff] }
0x1368   : > { %6900 = vmatprep.subr.mxu1 %v6693_v47  ;;  %6971 = vmatprep.subr.mxu0 %v6757_v0  ;;  %v6753_v48 = vsel %vm1372_vm10, %v6663_v18, %v13026_v23  ;;  %v13736_v47 = vld [vmem:[#allocation27_spill] sm:$0xff]  ;;  %v13737_v0 = vld [vmem:[#allocation26_spill] sm:$0xff] }
0x1369   : > { %6901 = vmatpush1.msra.mxu1 %v6692_v29  ;;  %6972 = vmatpush1.msra.mxu0 %v12948_v34  ;;  %v6741_v29 = vsel %vm1372_vm10, %v13737_v0, %v13736_v47 }
0x136a   : > { %6902 = vmatprep.subr.mxu1 %v6691_v21  ;;  %6973 = vmatprep.subr.mxu0 %v6755_v60  ;;  %v13738_v21 = vld [vmem:[#allocation22_spill] sm:$0xff] }
0x136b   : > { %v13134_v8 = vpop.permute.xlu1 %6606  ;;  %6903 = vmatpush1.msra.mxu1 %v6690_v13  ;;  %6974 = vmatpush1.msra.mxu0 %v12864_v5  ;;  %v6661_v34 = vpop.permute.xlu0 %6660  ;;  %v6750_v5 = vsel %vm1372_vm10, %v13725_v38, %v13724_v45  ;;  %v13739_v60 = vld [vmem:[#allocation30_spill] sm:$0xff]  ;;  %v6733_v38 = vsel %vm1372_vm10, %v13050_v54, %v13040_v57 }
0x136c   : > { %v6752_v15 = vsel %vm1372_vm10, %v6661_v34, %v6663_v18  ;;  %6904 = vmatprep.subr.mxu1 %v6753_v48  ;;  %7628 = vmatprep.subr.mxu0 %v13026_v23  ;;  %v13741_v34 = vld [vmem:[#allocation32_spill] sm:$0xff]  ;;  %v6734_v45 = vsel %vm1372_vm10, %v13134_v8, %v13109_v44 }
0x136d   : > { %6905 = vmatpush2.msra.mxu1 %v6752_v15  ;;  %7385 = vmatmul.mubr.msk.f32.vlgmr.msra.gmra.mxu0 %vm13722_vm13, %v13129_v35  ;;  %v13742_v15 = vld [vmem:[#allocation42_spill] sm:$0xff] }
0x136e   : > { %7629 = vmatpush3.msra.mxu0 %v13016_v42  ;;  %6906 = vmatprep.subr.mxu1 %v6751_v56  ;;  %v13730_v42 = vld [vmem:[#allocation25_spill] sm:$0xff] }
0x136f   : > { %7630 = vmatprep.subr.mxu0 %v13723_v32  ;;  %v13151_v14 = vpop.permute.xlu1 %6598  ;;  %6907 = vmatpush2.msra.mxu1 %v6750_v5  ;;  %v6639_v23 = vpop.permute.xlu0 %6638  ;;  %v6747_v28 = vsel %vm1372_vm10, %v13730_v42, %v13729_v33  ;;  %v6732_v5 = vsel %vm1372_vm10, %v13058_v51, %v13050_v54 }
0x1370   : > { %7631 = vmatpush3.msra.mxu0 %v13004_v7  ;;  %6908 = vmatprep.subr.mxu1 %v6749_v25  ;;  %v6745_v7 = vsel %vm1372_vm10, %v6639_v23, %v13732_v37 }
0x1371   : > { %7632 = vmatprep.subr.mxu0 %v13726_v52  ;;  %6909 = vmatpush2.msra.mxu1 %v13728_v26  ;;  %v13744_v52 = vld [vmem:[#allocation12_spill] sm:$0xff]  ;;  %v13745_v26 = vmov 0.0  }
0x1372   : > { %7633 = vmatpush3.msra.mxu0 %v12874_v31  ;;  %6910 = vmatprep.subr.mxu1 %v6747_v28  ;;  %v13734_v31 = vld [vmem:[#allocation16_spill] sm:$0xff] }
0x1373   : > { %7634 = vmatprep.subr.mxu0 %v13729_v33  ;;  %v6597_v58 = vpop.permute.xlu1 %6596  ;;  %6911 = vmatpush2.msra.mxu1 %v13731_v20  ;;  %v6637_v17 = vpop.permute.xlu0 %6636  ;;  %v6743_v55 = vsel %vm1372_vm10, %v13734_v31, %v13733_v12  ;;  %v6742_v43 = vsel %vm1372_vm10, %v13735_v22, %v13734_v31  ;;  %v13750_v22 = vld [vmem:[#allocation31_spill] sm:$0xff] }
0x1374   : > { %7635 = vmatpush3.msra.mxu0 %v12740_v40  ;;  %v6744_v19 = vsel %vm1372_vm10, %v6637_v17, %v6639_v23  ;;  %6912 = vmatprep.subr.mxu1 %v6745_v7  ;;  %v13743_v23 = vld [vmem:[#allocation14_spill] sm:$0xff] }
0x1375   : > { %7636 = vmatprep.subr.mxu0 %v13732_v37  ;;  %6913 = vmatpush2.msra.mxu1 %v6744_v19  ;;  %v13748_v37 = vld [vmem:[#allocation41_spill] sm:$0xff] }
0x1376   : > { %7637 = vmatpush3.msra.mxu0 %v13020_v10  ;;  %6914 = vmatprep.subr.mxu1 %v6743_v55  ;;  %v6739_v10 = vsel %vm1372_vm10, %v13740_v62, %v13739_v60  ;;  %v13754_v62 = vld [vmem:[#allocation24_spill] sm:$0xff] }
0x1377   : > { %7638 = vmatprep.subr.mxu0 %v13733_v12  ;;  %v6595_v40 = vpop.permute.xlu1 %6594  ;;  %6915 = vmatpush2.msra.mxu1 %v6742_v43  ;;  %v6615_v18 = vpop.permute.xlu0 %6614  ;;  %v13749_v12 = vld [vmem:[#allocation33_spill] sm:$0xff] }
0x1378   : > { %7639 = vmatpush3.msra.mxu0 %v12960_v49  ;;  %6916 = vmatprep.subr.mxu1 %v6741_v29  ;;  %v6737_v49 = vsel %vm1372_vm10, %v6615_v18, %v13742_v15  ;;  %v13753_v29 = vld [vmem:[#allocation21_spill] sm:$0xff] }
0x1379   : > { %7640 = vmatprep.subr.mxu0 %v13736_v47  ;;  %6917 = vmatpush2.msra.mxu1 %v13738_v21  ;;  %v13752_v47 = vld [vmem:[#allocation20_spill] sm:$0xff] }
0x137a   : > { %7641 = vmatpush3.msra.mxu0 %v12890_v61  ;;  %6918 = vmatprep.subr.mxu1 %v6739_v10  ;;  %v6735_v61 = vsel %vm1372_vm10, %v13109_v44, %v13076_v59 }
0x137b   : > { %7642 = vmatprep.subr.mxu0 %v13739_v60  ;;  %v6587_v13 = vpop.permute.xlu1 %6586  ;;  %6919 = vmatpush2.msra.mxu1 %v13741_v34  ;;  %v6613_v48 = vpop.permute.xlu0 %6612 }
0x137c   : > { %7643 = vmatpush3.msra.mxu0 %v12746_v53  ;;  %v6736_v32 = vsel %vm1372_vm10, %v6613_v48, %v6615_v18  ;;  %6920 = vmatprep.subr.mxu1 %v6737_v49 }
0x137d   : > { %7644 = vmatprep.subr.mxu0 %v13742_v15  ;;  %6921 = vmatpush2.msra.mxu1 %v6736_v32 }
0x137e   : > { %7645 = vmatpush3.msra.mxu0 %v13024_v9  ;;  %6922 = vmatprep.subr.mxu1 %v6735_v61  ;;  %v6731_v9 = vsel %vm1372_vm10, %v6597_v58, %v13151_v14 }
0x137f   : > { %7646 = vmatprep.subr.mxu0 %v13076_v59  ;;  %v6585_v53 = vpop.permute.xlu1 %6584  ;;  %6923 = vmatpush2.msra.mxu1 %v6734_v45  ;;  %v6591_v56 = vpop.permute.xlu0 %6590  ;;  %v6730_v59 = vsel %vm1372_vm10, %v6595_v40, %v6597_v58  ;;  %v13751_v40 = vld [vmem:[#allocation19_spill] sm:$0xff] }
0x1380   : > { %7647 = vmatpush3.msra.mxu0 %v12972_v2  ;;  %6924 = vmatprep.subr.mxu1 %v6733_v38  ;;  %v6729_v2 = vsel %vm1372_vm10, %v6591_v56, %v13068_v46  ;;  %v6727_v54 = vsel %vm1372_vm10, %v6585_v53, %v6587_v13 }
0x1381   : > { %7648 = vmatprep.subr.mxu0 %v13040_v57  ;;  %6925 = vmatpush2.msra.mxu1 %v6732_v5 }
0x1382   : > { %7649 = vmatpush3.msra.mxu0 %v12898_v27  ;;  %6926 = vmatprep.subr.mxu1 %v6731_v9 }
0x1383   : > { %7650 = vmatprep.subr.mxu0 %v13151_v14  ;;  %v6583_v44 = vpop.permute.xlu1 %6582  ;;  %6927 = vmatpush2.msra.mxu1 %v6730_v59  ;;  %v6589_v8 = vpop.permute.xlu0 %6588 }
0x1384   : > { %7651 = vmatpush3.msra.mxu0 %v12754_v11  ;;  %v6728_v57 = vsel %vm1372_vm10, %v6589_v8, %v6591_v56  ;;  %6928 = vmatprep.subr.mxu1 %v6729_v2  ;;  %v6726_v27 = vsel %vm1372_vm10, %v6583_v44, %v6585_v53  ;;  %v6725_v11 = vsel %vm1372_vm10, %v13088_v36, %v13078_v6 }
0x1385   : > { %7652 = vmatprep.subr.mxu0 %v13068_v46  ;;  %6929 = vmatpush2.msra.mxu1 %v6728_v57 }
0x1386   : > { %7653 = vmatpush3.msra.mxu0 %v12732_v63  ;;  %6930 = vmatprep.subr.mxu1 %v6727_v54  ;;  %v6463_v63 = vrot.slane %v12941_v3, %v13743_v23 }
0x1387   : > { %7654 = vmatprep.subr.mxu0 %v6587_v13  ;;  %v6575_v51 = vpop.permute.xlu1 %6574  ;;  %6931 = vmatpush2.msra.mxu1 %v6726_v27  ;;  %v6577_v14 = vpop.permute.xlu0 %6576 }
0x1388   : > { %7655 = vmatpush3.msra.mxu0 %v12582_v1  ;;  %v6724_v46 = vsel %vm1372_vm10, %v6577_v14, %v13088_v36  ;;  %6932 = vmatprep.subr.mxu1 %v6725_v11 }
0x1389   : > { %7656 = vmatprep.subr.mxu0 %v13078_v6  ;;  %6933 = vmatpush2.msra.mxu1 %v6724_v46 }
0x138a   : > { %7657 = vmatpush3.msra.mxu0 %v12483_v30  ;;  %7078 = vmatprep.mubr.f32.mxu0 %v13744_v52 }
0x138b   : > { %7658 = vmatprep.subr.mxu0 %v6575_v51  ;;  %v6573_v39 = vpop.permute.xlu1 %6572  ;;  %v6571_v25 = vpop.permute.xlu0 %6570 }
0x138c   : > { %7659 = vmatpush3.msra.mxu0 %v12375_v24  ;;  %v6722_v1 = vsel %vm1372_vm10, %v6571_v25, %v6573_v39  ;;  %v6723_v36 = vsel %vm1372_vm10, %v6573_v39, %v6575_v51  ;;  %vm13747_vm10 = vmmov %vm13722_vm13 }
0x138d   : > { %7079 = vmatmul.mubr.f32.vlgmr.msra.gmra.mxu0 %v6463_v63  ;;  %7754 = vmatprep.subr.mxu0 %v13745_v26 }
0x138e   : > { %6934 = vmatprep.subr.mxu1 %v6723_v36  ;;  %7755 = vmatpush3.msra.mxu0 %v13022_v16 }
0x138f   : > { %6935 = vmatpush2.msra.mxu1 %v6722_v1  ;;  %7756 = vmatprep.subr.mxu0 %v13745_v26 }
0x1390   : > { %6937 = vmatmul.mubr.f32.vlgmr.msra.gmra.mxu1 %v6463_v63  ;;  %7757 = vmatpush3.msra.mxu0 %v12984_v41 }
0x1391   : > { %7758 = vmatprep.subr.mxu0 %v13745_v26  ;;  %7762 = vmatprep.mubr.msk.f32.mxu0 %vm13746_vm4, %v13745_v26 }
0x1392   : > { %7759 = vmatpush3.msra.mxu0 %v12844_v4 }
0x1393   : > { %7760 = vmatprep.subr.mxu0 %v13745_v26 }
0x1394   : > { %7761 = vmatpush3.msra.mxu0 %v12760_v50 }
0x1395   : > { %7763 = vmatmul.mubr.msk.f32.vlgmr.msra.gmra.mxu0 %vm13747_vm10, %v13129_v35 }
0x1398   : > { %v6453_v16 = vpop.permute.xlu1 %6452 }
0x1399   : > { %v6458_v41 = vrot.slane %v6453_v16, %v13743_v23 }
0x142d   : > { %v7009_v24 = vpop.f32.mrf.mxu0 }
0x142f   : > { %v7011_v30 = vpop.f32.mrf.mxu0 }
0x144d   : > { %v7660_v3 = vpop.f32.mrf.mxu0 }
0x144f   : > { %v7661_v6 = vpop.f32.mrf.mxu0 }
0x1450   : > { %v7662_v33 = vadd.f32 %v7661_v6, %v7660_v3  ;;  %v6938_v42 = vpop.f32.mrf.mxu1 }
0x1451   : > { %v6939_v28 = vadd.f32 %v6938_v42, %v6458_v41 }
0x1452   : > { %v6940_v58 = vpop.f32.mrf.mxu1  ;;  %v7081_v17 = vadd.f32 %v7662_v33, %v6458_v41 }
0x1453   : > { %v7010_v20 = vadd.f32 %v7009_v24, %v6939_v28  ;;  %v6941_v4 = vadd.f32 %v6940_v58, %v6458_v41 }
0x1455   : > { %v7154_v50 = vadd.f32 %v7010_v20, %v13748_v37  ;;  %v7012_v7 = vadd.f32 %v7011_v30, %v6941_v4  ;;  %v7150_v19 = vpop.f32.mrf.mxu0 }
0x1456   : > { %v7151_v35 = vadd.f32 %v7150_v19, %v7081_v17 }
0x1457   : > { %v7155_v31 = vadd.f32 %v7012_v7, %v13749_v12  ;;  %v7764_v55 = vpop.f32.mrf.mxu0  ;;  %v7157_v18 = vmul.f32 %v7154_v50, %v13751_v40 }
0x1458   : > { %v7156_v43 = vadd.f32 %v7151_v35, %v13750_v22 }
0x1459   : > { %v7158_v0 = vmul.f32 %v7155_v31, %v13752_v47 }
0x145a   : > { %v7159_v21 = vmul.f32 %v7156_v43, %v13753_v29 }
0x145b   : > { %v7163_v60 = vcombine.low %v7157_v18, %v7158_v0 }
0x145c   : > { %v7177_v10 = vrot.slane %v7159_v21, %v13754_v62 }
0x145d   : > { %v7170_v13 = vrot.slane %v7163_v60, %v13754_v62 }
0x145f   : > { %v7178_v34 = vcombine.low %v7170_v13, %v7177_v10 }
0x1461   : > { %v7185_v48 = vrot.slane %v7178_v34, %v13754_v62 }
0x1463   : > { %7187 = vst.msk [vmem:[%s824_s26] sm:$0x7] %vm10890_vm6, %v7185_v48 }
0x1464 PF: > { %s41_s6 = sadd.s32 1, %s7891_s6  }
0x1465   : > { %p38_p3 = scmp.ge.s32.totalorder %s41_s6, 4  }
0x1467   :  { %40 = sbr.rel (!%p38_p3) target bundleno = 18 (0x12), region = 172 }
0x146c   :  { %7221 = vsyncpa [#allocation7], 1 }
0x146d   :  { %7223 = vsyncpa [#allocation7 + $0x1], 1 }
0x146e   :  { %7224 = vsyncpa [#allocation9], 1 }

</bundles_post_ra>
